<compile_context>
chip_gen: v7x
topology: tpu7x:2x2x1
jax: 0.10.0
libtpu: 0.0.40
codegen_flags: <defaults>
</compile_context>

<pallas_src>
import functools

import jax
import jax.numpy as jnp
from jax.experimental import pallas as pl
from jax.experimental.pallas import tpu as pltpu

BN_EPS = 1e-5

# One BasicBlock per layer (synthetic, expansion = 1): (cin, cout, stride).
LAYER_CFG = ((64, 64, 1), (64, 128, 2), (128, 256, 2))


# ----------------------------------------------------------------------------
# Pallas kernels
# ----------------------------------------------------------------------------
def _mm_epilogue_kernel(*refs, relu, has_shift, has_res):
    """(TM,K)@(K,TN) on the MXU (bf16 in, f32 acc) + shift + residual + ReLU."""
    a_ref, b_ref = refs[0], refs[1]
    o_ref = refs[-1]
    rest = refs[2:-1]
    idx = 0
    shift_ref = None
    res_ref = None
    if has_shift:
        shift_ref = rest[idx]
        idx += 1
    if has_res:
        res_ref = rest[idx]
        idx += 1

    acc = jnp.dot(a_ref[...], b_ref[...], preferred_element_type=jnp.float32)
    if has_shift:
        acc = acc + shift_ref[...]          # (1, TN) broadcast over rows
    if has_res:
        acc = acc + res_ref[...].astype(jnp.float32)
    if relu:
        acc = jnp.maximum(acc, 0.0)
    o_ref[...] = acc.astype(o_ref.dtype)


def _max3_kernel(a_ref, b_ref, c_ref, o_ref):
    o_ref[...] = jnp.maximum(a_ref[...], jnp.maximum(b_ref[...], c_ref[...]))


# ----------------------------------------------------------------------------
# Pallas wrappers
# ----------------------------------------------------------------------------
def _pick_tm(m):
    for tm in (512, 256, 128):
        if m >= tm:
            return tm
    return max(8, ((m + 7) // 8) * 8)


def matmul_fused(A, B, shift=None, *, relu=False, residual=None,
                 out_dtype=jnp.bfloat16):
    """out = relu?((A @ B) + shift + residual).

    A:(M,K) activations, B:(K,N) weights (BN scale already folded in),
    shift:(N,) or None, residual:(M,N) or None.  MXU runs in bf16 with f32
    accumulation; N is padded to a multiple of 128 for lane-dense stores and
    sliced back afterwards.
    """
    M, K = A.shape
    K2, N = B.shape
    assert K == K2
    Npad = ((N + 127) // 128) * 128
    TN = 128
    grid_n = Npad // TN

    TM = _pick_tm(M)
    # Give the grid >= 2 steps when possible so both v7x TensorCores have work.
    if grid_n == 1 and M <= TM and TM >= 16:
        TM = max(8, (TM // 2) // 8 * 8)
    grid_m = pl.cdiv(M, TM)

    A = A.astype(jnp.bfloat16)
    B = B.astype(jnp.float32)
    if Npad != N:
        B = jnp.pad(B, ((0, 0), (0, Npad - N)))
    B = B.astype(jnp.bfloat16)

    inputs = [A, B]
    in_specs = [
        pl.BlockSpec((TM, K), lambda i, j: (i, 0)),
        pl.BlockSpec((K, TN), lambda i, j: (0, j)),
    ]

    has_shift = shift is not None
    if has_shift:
        s = shift.reshape(1, N).astype(jnp.float32)
        if Npad != N:
            s = jnp.pad(s, ((0, 0), (0, Npad - N)))
        inputs.append(s)
        in_specs.append(pl.BlockSpec((1, TN), lambda i, j: (0, j)))

    has_res = residual is not None
    if has_res:
        r = residual.reshape(M, N).astype(jnp.bfloat16)
        if Npad != N:
            r = jnp.pad(r, ((0, 0), (0, Npad - N)))
        inputs.append(r)
        in_specs.append(pl.BlockSpec((TM, TN), lambda i, j: (i, j)))

    out = pl.pallas_call(
        functools.partial(_mm_epilogue_kernel, relu=relu,
                          has_shift=has_shift, has_res=has_res),
        out_shape=jax.ShapeDtypeStruct((M, Npad), out_dtype),
        grid=(grid_m, grid_n),
        in_specs=in_specs,
        out_specs=pl.BlockSpec((TM, TN), lambda i, j: (i, j)),
        compiler_params=pltpu.CompilerParams(
            dimension_semantics=("parallel", "parallel")),
    )(*inputs)

    return out if Npad == N else out[:, :N]


def _lane_dense_2d(x):
    """Reshape an elementwise operand to (rows, lanes) with a dense lane dim."""
    total = x.size
    for lanes in (2048, 1024, 512, 256, 128):
        if total % lanes == 0:
            return x.reshape(total // lanes, lanes)
    return x.reshape(-1, x.shape[-1])


def max3(a, b, c):
    """Elementwise max of three same-shaped tensors (tiled Pallas kernel)."""
    shape = a.shape
    a2 = _lane_dense_2d(a)
    b2 = b.reshape(a2.shape)
    c2 = c.reshape(a2.shape)
    rows, lanes = a2.shape
    TM = rows if rows <= 256 else 256
    out = pl.pallas_call(
        _max3_kernel,
        out_shape=jax.ShapeDtypeStruct((rows, lanes), a2.dtype),
        grid=(pl.cdiv(rows, TM),),
        in_specs=[pl.BlockSpec((TM, lanes), lambda i: (i, 0))] * 3,
        out_specs=pl.BlockSpec((TM, lanes), lambda i: (i, 0)),
        compiler_params=pltpu.CompilerParams(dimension_semantics=("parallel",)),
    )(a2, b2, c2)
    return out.reshape(shape)


def maxpool_3x3_s2_p1(x):
    """PyTorch MaxPool2d(kernel_size=3, stride=2, padding=1) on NHWC input.

    Decomposed into a vertical 3-way max and a horizontal 3-way max using the
    even/odd split, so nothing is materialised 9x.
    """
    N, H, W, C = x.shape
    assert H % 2 == 0 and W % 2 == 0
    Ho, Wo = H // 2, W // 2
    neg = jnp.asarray(-jnp.inf, x.dtype)

    # vertical: rows {2oh-1, 2oh, 2oh+1}
    xe = x[:, 0::2]                                        # (N, Ho, W, C)
    xo = x[:, 1::2]                                        # (N, Ho, W, C)
    xprev = jnp.concatenate(
        [jnp.full((N, 1, W, C), neg, x.dtype), xo[:, :-1]], axis=1)
    vert = max3(xe, xo, xprev)                             # (N, Ho, W, C)

    # horizontal: cols {2ow-1, 2ow, 2ow+1}
    ve = vert[:, :, 0::2]                                  # (N, Ho, Wo, C)
    vo = vert[:, :, 1::2]
    vprev = jnp.concatenate(
        [jnp.full((N, Ho, 1, C), neg, x.dtype), vo[:, :, :-1]], axis=2)
    return max3(ve, vo, vprev)                             # (N, Ho, Wo, C)


# ----------------------------------------------------------------------------
# Conv + folded-BN (+ residual + ReLU) via im2col + fused Pallas matmul
# ----------------------------------------------------------------------------
def conv_bn(x, w, bn, *, stride, pad, relu, residual=None):
    """x: NHWC bf16.  w: PyTorch layout (Cout, Cin, kh, kw).  bn: dict."""
    N, H, W, Cin = x.shape
    Cout, Cin2, kh, kw = w.shape
    assert Cin == Cin2
    Ho = (H + 2 * pad - kh) // stride + 1
    Wo = (W + 2 * pad - kw) // stride + 1

    xp = jnp.pad(x, ((0, 0), (pad, pad), (pad, pad), (0, 0))) if pad else x
    # TODO(synk): lower im2col to a per-tap K-accumulation Pallas kernel
    # (memory_space=pl.ANY) to avoid materialising kh*kw shifted copies.
    cols = [xp[:, dy:dy + stride * Ho:stride, dx:dx + stride * Wo:stride, :]
            for dy in range(kh) for dx in range(kw)]
    patches = jnp.concatenate(cols, axis=-1)               # (N, Ho, Wo, kh*kw*Cin)
    A = patches.reshape(N * Ho * Wo, kh * kw * Cin)        # (M, K) bf16

    scale = bn["gamma"] / jnp.sqrt(bn["var"] + BN_EPS)
    shift = bn["beta"] - bn["mean"] * scale
    Bm = jnp.transpose(w, (2, 3, 1, 0)).reshape(kh * kw * Cin, Cout)
    Bm = Bm * scale[None, :]                                # fold BN scale into W

    res2d = None
    if residual is not None:
        res2d = residual.reshape(N * Ho * Wo, Cout)

    out = matmul_fused(A, Bm, shift, relu=relu, residual=res2d,
                       out_dtype=jnp.bfloat16)              # (M, Cout)
    return out.reshape(N, Ho, Wo, Cout)


# ----------------------------------------------------------------------------
# Parameter construction (deterministic, synthetic; arrays only -- no statics)
# ----------------------------------------------------------------------------
def _bn_params(key, c):
    k1, k2, k3, k4 = jax.random.split(key, 4)
    return dict(
        gamma=jax.random.uniform(k1, (c,), jnp.float32, 0.5, 1.5),
        beta=0.1 * jax.random.normal(k2, (c,), jnp.float32),
        mean=0.1 * jax.random.normal(k3, (c,), jnp.float32),
        var=jax.random.uniform(k4, (c,), jnp.float32, 0.5, 1.5),
    )


def _conv_w(key, cout, cin, k):
    return 0.05 * jax.random.normal(key, (cout, cin, k, k), jnp.float32)


def make_basic_block_params(key, cin, cout, stride):
    ks = jax.random.split(key, 6)
    p = dict(
        conv1_w=_conv_w(ks[0], cout, cin, 3), bn1=_bn_params(ks[1], cout),
        conv2_w=_conv_w(ks[2], cout, cout, 3), bn2=_bn_params(ks[3], cout),
    )
    if stride != 1 or cin != cout:
        p["down_w"] = _conv_w(ks[4], cout, cin, 1)
        p["down_bn"] = _bn_params(ks[5], cout)
    return p


def make_model_params(key, expansion=1, use_gcc=True):
    ks = jax.random.split(key, 8)
    params = dict(
        conv1_w=_conv_w(ks[0], 64, 3, 7), bn1=_bn_params(ks[1], 64),
        layer1=[make_basic_block_params(ks[2], *LAYER_CFG[0])],
        layer2=[make_basic_block_params(ks[3], *LAYER_CFG[1])],
        layer3=[make_basic_block_params(ks[4], *LAYER_CFG[2])],
    )
    if use_gcc:
        # nn.Linear(256, 256*expansion, bias=False), stored pre-transposed as
        # (in=256, out=256*expansion) so no transpose happens in the forward.
        params["map_w_t"] = 0.05 * jax.random.normal(
            ks[5], (256, 256 * expansion), jnp.float32)
    return params


# ----------------------------------------------------------------------------
# Forward pass (ModelWrapper.forward)
# ----------------------------------------------------------------------------
def basic_block_forward(x, p, stride):
    if "down_w" in p:
        sc = conv_bn(x, p["down_w"], p["down_bn"], stride=stride, pad=0,
                     relu=False)
    else:
        sc = x
    out = conv_bn(x, p["conv1_w"], p["bn1"], stride=stride, pad=1, relu=True)
    # conv2 + BN + residual add + ReLU fused into a single Pallas matmul.
    out = conv_bn(out, p["conv2_w"], p["bn2"], stride=1, pad=1, relu=True,
                  residual=sc)
    return out


def model_wrapper_forward(params, x_nchw, *, use_gcc=True):
    x = jnp.transpose(x_nchw, (0, 2, 3, 1)).astype(jnp.bfloat16)   # NCHW -> NHWC
    x = conv_bn(x, params["conv1_w"], params["bn1"], stride=2, pad=3, relu=True)
    x = maxpool_3x3_s2_p1(x)
    layers = (params["layer1"], params["layer2"], params["layer3"])
    for blocks, (_, _, stride) in zip(layers, LAYER_CFG):
        for i, blk in enumerate(blocks):
            x = basic_block_forward(x, blk, stride if i == 0 else 1)

    if use_gcc:
        # x[:, :, center, center] in NCHW  ==  x_nhwc[:, center, center, :]
        center = x.shape[1] // 2
        feat = x[:, center, center, :]                              # (N, 256)
        y = matmul_fused(feat, params["map_w_t"], shift=None, relu=False,
                         out_dtype=jnp.float32)                     # (N, 256*exp)
        return y[:, :, None, None]                                  # NCHW (N,C,1,1)
    return jnp.transpose(x, (0, 3, 1, 2)).astype(jnp.float32)       # NHWC -> NCHW


# ----------------------------------------------------------------------------
if __name__ == "__main__":
    key = jax.random.PRNGKey(0)
    pkey, xkey = jax.random.split(key)

    expansion = 1
    params = make_model_params(pkey, expansion=expansion, use_gcc=True)

    # Small NCHW input consistent with a ResNet stem (3 input channels).
    x = jax.random.normal(xkey, (2, 3, 64, 64), jnp.float32)

    fwd = jax.jit(model_wrapper_forward)
    out = jax.block_until_ready(fwd(params, x))

    assert out.shape == (2, 256 * expansion, 1, 1), out.shape
    assert out.dtype == jnp.float32
    print("KERNEL_OK")
</pallas_src>

<mosaic_0001>
module attributes {stable_mosaic.version = 11 : i64} {
  func.func @_mm_epilogue_kernel(%arg0: i32, %arg1: i32, %arg2: memref<512x147xbf16, #tpu.memory_space<vmem>>, %arg3: memref<147x128xbf16, #tpu.memory_space<vmem>>, %arg4: memref<1x128xf32, #tpu.memory_space<vmem>>, %arg5: memref<512x128xbf16, #tpu.memory_space<vmem>>) attributes {dimension_semantics = [#tpu.dimension_semantics<parallel>, #tpu.dimension_semantics<parallel>], iteration_bounds = array<i64: 4, 1>, scalar_prefetch = 0 : i64, scratch_operands = 0 : i64, tpu.core_type = #tpu.core_type<tc>, window_params = [{transform_indices = @transform_0, window_bounds = array<i64: 512, 147>}, {transform_indices = @transform_1, window_bounds = array<i64: 147, 128>}, {transform_indices = @transform_2, window_bounds = array<i64: 1, 128>}, {transform_indices = @transform_3, window_bounds = array<i64: 512, 128>}]} {
    %c0 = arith.constant 0 : index
    %c0_0 = arith.constant 0 : index
    %0 = vector.load %arg2[%c0, %c0_0] : memref<512x147xbf16, #tpu.memory_space<vmem>>, vector<512x147xbf16>
    %c0_1 = arith.constant 0 : index
    %c0_2 = arith.constant 0 : index
    %1 = vector.load %arg3[%c0_1, %c0_2] : memref<147x128xbf16, #tpu.memory_space<vmem>>, vector<147x128xbf16>
    %cst = arith.constant dense<0.000000e+00> : vector<512x128xf32>
    %2 = tpu.matmul %0, %1, %cst {dimension_numbers = #tpu.dot_dimension_numbers<[1], [0], [0], [1], [0, 0, 1, 1], [], []>} : vector<512x147xbf16>, vector<147x128xbf16>, vector<512x128xf32> -> vector<512x128xf32>
    %c0_3 = arith.constant 0 : index
    %c0_4 = arith.constant 0 : index
    %3 = vector.load %arg4[%c0_3, %c0_4] : memref<1x128xf32, #tpu.memory_space<vmem>>, vector<1x128xf32>
    %4 = vector.broadcast %3 : vector<1x128xf32> to vector<512x128xf32>
    %5 = arith.addf %2, %4 : vector<512x128xf32>
    %cst_5 = arith.constant 0.000000e+00 : f32
    %6 = vector.broadcast %cst_5 : f32 to vector<512x128xf32>
    %7 = arith.maximumf %5, %6 : vector<512x128xf32>
    %8 = arith.truncf %7 : vector<512x128xf32> to vector<512x128xbf16>
    %c0_6 = arith.constant 0 : index
    %c0_7 = arith.constant 0 : index
    %9 = vector.load %arg5[%c0_6, %c0_7] : memref<512x128xbf16, #tpu.memory_space<vmem>>, vector<512x128xbf16>
    tpu.vector_store %arg5[%c0_6, %c0_7], %8 {strides = array<i32>} : memref<512x128xbf16, #tpu.memory_space<vmem>>, vector<512x128xbf16>,
    return
  }
  func.func @transform_0(%arg0: i32, %arg1: i32) -> (i32, i32) {
    %c0_i32 = arith.constant 0 : i32
    %c0_i32_0 = arith.constant 0 : i32
    return %arg0, %c0_i32 : i32, i32
  }
  func.func @transform_1(%arg0: i32, %arg1: i32) -> (i32, i32) {
    %c0_i32 = arith.constant 0 : i32
    %c0_i32_0 = arith.constant 0 : i32
    return %c0_i32, %arg1 : i32, i32
  }
  func.func @transform_2(%arg0: i32, %arg1: i32) -> (i32, i32) {
    %c0_i32 = arith.constant 0 : i32
    %c0_i32_0 = arith.constant 0 : i32
    return %c0_i32, %arg1 : i32, i32
  }
  func.func @transform_3(%arg0: i32, %arg1: i32) -> (i32, i32) {
    %c0_i32 = arith.constant 0 : i32
    return %arg0, %arg1 : i32, i32
  }
}

module attributes {stable_mosaic.version = 11 : i64} {
  func.func @_max3_kernel(%arg0: i32, %arg1: memref<32x2048xbf16, #tpu.memory_space<vmem>>, %arg2: memref<32x2048xbf16, #tpu.memory_space<vmem>>, %arg3: memref<32x2048xbf16, #tpu.memory_space<vmem>>, %arg4: memref<32x2048xbf16, #tpu.memory_space<vmem>>) attributes {dimension_semantics = [#tpu.dimension_semantics<parallel>], iteration_bounds = array<i64: 1>, scalar_prefetch = 0 : i64, scratch_operands = 0 : i64, tpu.core_type = #tpu.core_type<tc>, window_params = [{transform_indices = @transform_0, window_bounds = array<i64: 32, 2048>}, {transform_indices = @transform_1, window_bounds = array<i64: 32, 2048>}, {transform_indices = @transform_2, window_bounds = array<i64: 32, 2048>}, {transform_indices = @transform_3, window_bounds = array<i64: 32, 2048>}]} {
    %c0 = arith.constant 0 : index
    %c0_0 = arith.constant 0 : index
    %0 = vector.load %arg1[%c0, %c0_0] : memref<32x2048xbf16, #tpu.memory_space<vmem>>, vector<32x2048xbf16>
    %c0_1 = arith.constant 0 : index
    %c0_2 = arith.constant 0 : index
    %1 = vector.load %arg2[%c0_1, %c0_2] : memref<32x2048xbf16, #tpu.memory_space<vmem>>, vector<32x2048xbf16>
    %c0_3 = arith.constant 0 : index
    %c0_4 = arith.constant 0 : index
    %2 = vector.load %arg3[%c0_3, %c0_4] : memref<32x2048xbf16, #tpu.memory_space<vmem>>, vector<32x2048xbf16>
    %3 = arith.maximumf %1, %2 : vector<32x2048xbf16>
    %4 = arith.maximumf %0, %3 : vector<32x2048xbf16>
    %c0_5 = arith.constant 0 : index
    %c0_6 = arith.constant 0 : index
    %5 = vector.load %arg4[%c0_5, %c0_6] : memref<32x2048xbf16, #tpu.memory_space<vmem>>, vector<32x2048xbf16>
    tpu.vector_store %arg4[%c0_5, %c0_6], %4 {strides = array<i32>} : memref<32x2048xbf16, #tpu.memory_space<vmem>>, vector<32x2048xbf16>,
    return
  }
  func.func @transform_0(%arg0: i32) -> (i32, i32) {
    %c0_i32 = arith.constant 0 : i32
    %c0_i32_0 = arith.constant 0 : i32
    return %arg0, %c0_i32 : i32, i32
  }
  func.func @transform_1(%arg0: i32) -> (i32, i32) {
    %c0_i32 = arith.constant 0 : i32
    %c0_i32_0 = arith.constant 0 : i32
    return %arg0, %c0_i32 : i32, i32
  }
  func.func @transform_2(%arg0: i32) -> (i32, i32) {
    %c0_i32 = arith.constant 0 : i32
    %c0_i32_0 = arith.constant 0 : i32
    return %arg0, %c0_i32 : i32, i32
  }
  func.func @transform_3(%arg0: i32) -> (i32, i32) {
    %c0_i32 = arith.constant 0 : i32
    %c0_i32_0 = arith.constant 0 : i32
    return %arg0, %c0_i32 : i32, i32
  }
}

module attributes {stable_mosaic.version = 11 : i64} {
  func.func @_max3_kernel(%arg0: i32, %arg1: memref<16x2048xbf16, #tpu.memory_space<vmem>>, %arg2: memref<16x2048xbf16, #tpu.memory_space<vmem>>, %arg3: memref<16x2048xbf16, #tpu.memory_space<vmem>>, %arg4: memref<16x2048xbf16, #tpu.memory_space<vmem>>) attributes {dimension_semantics = [#tpu.dimension_semantics<parallel>], iteration_bounds = array<i64: 1>, scalar_prefetch = 0 : i64, scratch_operands = 0 : i64, tpu.core_type = #tpu.core_type<tc>, window_params = [{transform_indices = @transform_0, window_bounds = array<i64: 16, 2048>}, {transform_indices = @transform_1, window_bounds = array<i64: 16, 2048>}, {transform_indices = @transform_2, window_bounds = array<i64: 16, 2048>}, {transform_indices = @transform_3, window_bounds = array<i64: 16, 2048>}]} {
    %c0 = arith.constant 0 : index
    %c0_0 = arith.constant 0 : index
    %0 = vector.load %arg1[%c0, %c0_0] : memref<16x2048xbf16, #tpu.memory_space<vmem>>, vector<16x2048xbf16>
    %c0_1 = arith.constant 0 : index
    %c0_2 = arith.constant 0 : index
    %1 = vector.load %arg2[%c0_1, %c0_2] : memref<16x2048xbf16, #tpu.memory_space<vmem>>, vector<16x2048xbf16>
    %c0_3 = arith.constant 0 : index
    %c0_4 = arith.constant 0 : index
    %2 = vector.load %arg3[%c0_3, %c0_4] : memref<16x2048xbf16, #tpu.memory_space<vmem>>, vector<16x2048xbf16>
    %3 = arith.maximumf %1, %2 : vector<16x2048xbf16>
    %4 = arith.maximumf %0, %3 : vector<16x2048xbf16>
    %c0_5 = arith.constant 0 : index
    %c0_6 = arith.constant 0 : index
    %5 = vector.load %arg4[%c0_5, %c0_6] : memref<16x2048xbf16, #tpu.memory_space<vmem>>, vector<16x2048xbf16>
    tpu.vector_store %arg4[%c0_5, %c0_6], %4 {strides = array<i32>} : memref<16x2048xbf16, #tpu.memory_space<vmem>>, vector<16x2048xbf16>,
    return
  }
  func.func @transform_0(%arg0: i32) -> (i32, i32) {
    %c0_i32 = arith.constant 0 : i32
    %c0_i32_0 = arith.constant 0 : i32
    return %arg0, %c0_i32 : i32, i32
  }
  func.func @transform_1(%arg0: i32) -> (i32, i32) {
    %c0_i32 = arith.constant 0 : i32
    %c0_i32_0 = arith.constant 0 : i32
    return %arg0, %c0_i32 : i32, i32
  }
  func.func @transform_2(%arg0: i32) -> (i32, i32) {
    %c0_i32 = arith.constant 0 : i32
    %c0_i32_0 = arith.constant 0 : i32
    return %arg0, %c0_i32 : i32, i32
  }
  func.func @transform_3(%arg0: i32) -> (i32, i32) {
    %c0_i32 = arith.constant 0 : i32
    %c0_i32_0 = arith.constant 0 : i32
    return %arg0, %c0_i32 : i32, i32
  }
}

module attributes {stable_mosaic.version = 11 : i64} {
  func.func @_mm_epilogue_kernel(%arg0: i32, %arg1: i32, %arg2: memref<256x576xbf16, #tpu.memory_space<vmem>>, %arg3: memref<576x128xbf16, #tpu.memory_space<vmem>>, %arg4: memref<1x128xf32, #tpu.memory_space<vmem>>, %arg5: memref<256x128xbf16, #tpu.memory_space<vmem>>) attributes {dimension_semantics = [#tpu.dimension_semantics<parallel>, #tpu.dimension_semantics<parallel>], iteration_bounds = array<i64: 2, 1>, scalar_prefetch = 0 : i64, scratch_operands = 0 : i64, tpu.core_type = #tpu.core_type<tc>, window_params = [{transform_indices = @transform_0, window_bounds = array<i64: 256, 576>}, {transform_indices = @transform_1, window_bounds = array<i64: 576, 128>}, {transform_indices = @transform_2, window_bounds = array<i64: 1, 128>}, {transform_indices = @transform_3, window_bounds = array<i64: 256, 128>}]} {
    %c0 = arith.constant 0 : index
    %c0_0 = arith.constant 0 : index
    %0 = vector.load %arg2[%c0, %c0_0] : memref<256x576xbf16, #tpu.memory_space<vmem>>, vector<256x576xbf16>
    %c0_1 = arith.constant 0 : index
    %c0_2 = arith.constant 0 : index
    %1 = vector.load %arg3[%c0_1, %c0_2] : memref<576x128xbf16, #tpu.memory_space<vmem>>, vector<576x128xbf16>
    %cst = arith.constant dense<0.000000e+00> : vector<256x128xf32>
    %2 = tpu.matmul %0, %1, %cst {dimension_numbers = #tpu.dot_dimension_numbers<[1], [0], [0], [1], [0, 0, 1, 1], [], []>} : vector<256x576xbf16>, vector<576x128xbf16>, vector<256x128xf32> -> vector<256x128xf32>
    %c0_3 = arith.constant 0 : index
    %c0_4 = arith.constant 0 : index
    %3 = vector.load %arg4[%c0_3, %c0_4] : memref<1x128xf32, #tpu.memory_space<vmem>>, vector<1x128xf32>
    %4 = vector.broadcast %3 : vector<1x128xf32> to vector<256x128xf32>
    %5 = arith.addf %2, %4 : vector<256x128xf32>
    %cst_5 = arith.constant 0.000000e+00 : f32
    %6 = vector.broadcast %cst_5 : f32 to vector<256x128xf32>
    %7 = arith.maximumf %5, %6 : vector<256x128xf32>
    %8 = arith.truncf %7 : vector<256x128xf32> to vector<256x128xbf16>
    %c0_6 = arith.constant 0 : index
    %c0_7 = arith.constant 0 : index
    %9 = vector.load %arg5[%c0_6, %c0_7] : memref<256x128xbf16, #tpu.memory_space<vmem>>, vector<256x128xbf16>
    tpu.vector_store %arg5[%c0_6, %c0_7], %8 {strides = array<i32>} : memref<256x128xbf16, #tpu.memory_space<vmem>>, vector<256x128xbf16>,
    return
  }
  func.func @transform_0(%arg0: i32, %arg1: i32) -> (i32, i32) {
    %c0_i32 = arith.constant 0 : i32
    %c0_i32_0 = arith.constant 0 : i32
    return %arg0, %c0_i32 : i32, i32
  }
  func.func @transform_1(%arg0: i32, %arg1: i32) -> (i32, i32) {
    %c0_i32 = arith.constant 0 : i32
    %c0_i32_0 = arith.constant 0 : i32
    return %c0_i32, %arg1 : i32, i32
  }
  func.func @transform_2(%arg0: i32, %arg1: i32) -> (i32, i32) {
    %c0_i32 = arith.constant 0 : i32
    %c0_i32_0 = arith.constant 0 : i32
    return %c0_i32, %arg1 : i32, i32
  }
  func.func @transform_3(%arg0: i32, %arg1: i32) -> (i32, i32) {
    %c0_i32 = arith.constant 0 : i32
    return %arg0, %arg1 : i32, i32
  }
}

module attributes {stable_mosaic.version = 11 : i64} {
  func.func @_mm_epilogue_kernel(%arg0: i32, %arg1: i32, %arg2: memref<256x576xbf16, #tpu.memory_space<vmem>>, %arg3: memref<576x128xbf16, #tpu.memory_space<vmem>>, %arg4: memref<1x128xf32, #tpu.memory_space<vmem>>, %arg5: memref<256x128xbf16, #tpu.memory_space<vmem>>, %arg6: memref<256x128xbf16, #tpu.memory_space<vmem>>) attributes {dimension_semantics = [#tpu.dimension_semantics<parallel>, #tpu.dimension_semantics<parallel>], iteration_bounds = array<i64: 2, 1>, scalar_prefetch = 0 : i64, scratch_operands = 0 : i64, tpu.core_type = #tpu.core_type<tc>, window_params = [{transform_indices = @transform_0, window_bounds = array<i64: 256, 576>}, {transform_indices = @transform_1, window_bounds = array<i64: 576, 128>}, {transform_indices = @transform_2, window_bounds = array<i64: 1, 128>}, {transform_indices = @transform_3, window_bounds = array<i64: 256, 128>}, {transform_indices = @transform_4, window_bounds = array<i64: 256, 128>}]} {
    %c0 = arith.constant 0 : index
    %c0_0 = arith.constant 0 : index
    %0 = vector.load %arg2[%c0, %c0_0] : memref<256x576xbf16, #tpu.memory_space<vmem>>, vector<256x576xbf16>
    %c0_1 = arith.constant 0 : index
    %c0_2 = arith.constant 0 : index
    %1 = vector.load %arg3[%c0_1, %c0_2] : memref<576x128xbf16, #tpu.memory_space<vmem>>, vector<576x128xbf16>
    %cst = arith.constant dense<0.000000e+00> : vector<256x128xf32>
    %2 = tpu.matmul %0, %1, %cst {dimension_numbers = #tpu.dot_dimension_numbers<[1], [0], [0], [1], [0, 0, 1, 1], [], []>} : vector<256x576xbf16>, vector<576x128xbf16>, vector<256x128xf32> -> vector<256x128xf32>
    %c0_3 = arith.constant 0 : index
    %c0_4 = arith.constant 0 : index
    %3 = vector.load %arg4[%c0_3, %c0_4] : memref<1x128xf32, #tpu.memory_space<vmem>>, vector<1x128xf32>
    %4 = vector.broadcast %3 : vector<1x128xf32> to vector<256x128xf32>
    %5 = arith.addf %2, %4 : vector<256x128xf32>
    %c0_5 = arith.constant 0 : index
    %c0_6 = arith.constant 0 : index
    %6 = vector.load %arg5[%c0_5, %c0_6] : memref<256x128xbf16, #tpu.memory_space<vmem>>, vector<256x128xbf16>
    %7 = arith.extf %6 : vector<256x128xbf16> to vector<256x128xf32>
    %8 = arith.addf %5, %7 : vector<256x128xf32>
    %cst_7 = arith.constant 0.000000e+00 : f32
    %9 = vector.broadcast %cst_7 : f32 to vector<256x128xf32>
    %10 = arith.maximumf %8, %9 : vector<256x128xf32>
    %11 = arith.truncf %10 : vector<256x128xf32> to vector<256x128xbf16>
    %c0_8 = arith.constant 0 : index
    %c0_9 = arith.constant 0 : index
    %12 = vector.load %arg6[%c0_8, %c0_9] : memref<256x128xbf16, #tpu.memory_space<vmem>>, vector<256x128xbf16>
    tpu.vector_store %arg6[%c0_8, %c0_9], %11 {strides = array<i32>} : memref<256x128xbf16, #tpu.memory_space<vmem>>, vector<256x128xbf16>,
    return
  }
  func.func @transform_0(%arg0: i32, %arg1: i32) -> (i32, i32) {
    %c0_i32 = arith.constant 0 : i32
    %c0_i32_0 = arith.constant 0 : i32
    return %arg0, %c0_i32 : i32, i32
  }
  func.func @transform_1(%arg0: i32, %arg1: i32) -> (i32, i32) {
    %c0_i32 = arith.constant 0 : i32
    %c0_i32_0 = arith.constant 0 : i32
    return %c0_i32, %arg1 : i32, i32
  }
  func.func @transform_2(%arg0: i32, %arg1: i32) -> (i32, i32) {
    %c0_i32 = arith.constant 0 : i32
    %c0_i32_0 = arith.constant 0 : i32
    return %c0_i32, %arg1 : i32, i32
  }
  func.func @transform_3(%arg0: i32, %arg1: i32) -> (i32, i32) {
    %c0_i32 = arith.constant 0 : i32
    return %arg0, %arg1 : i32, i32
  }
  func.func @transform_4(%arg0: i32, %arg1: i32) -> (i32, i32) {
    %c0_i32 = arith.constant 0 : i32
    return %arg0, %arg1 : i32, i32
  }
}

module attributes {stable_mosaic.version = 11 : i64} {
  func.func @_mm_epilogue_kernel(%arg0: i32, %arg1: i32, %arg2: memref<64x576xbf16, #tpu.memory_space<vmem>>, %arg3: memref<576x128xbf16, #tpu.memory_space<vmem>>, %arg4: memref<1x128xf32, #tpu.memory_space<vmem>>, %arg5: memref<64x128xbf16, #tpu.memory_space<vmem>>) attributes {dimension_semantics = [#tpu.dimension_semantics<parallel>, #tpu.dimension_semantics<parallel>], iteration_bounds = array<i64: 2, 1>, scalar_prefetch = 0 : i64, scratch_operands = 0 : i64, tpu.core_type = #tpu.core_type<tc>, window_params = [{transform_indices = @transform_0, window_bounds = array<i64: 64, 576>}, {transform_indices = @transform_1, window_bounds = array<i64: 576, 128>}, {transform_indices = @transform_2, window_bounds = array<i64: 1, 128>}, {transform_indices = @transform_3, window_bounds = array<i64: 64, 128>}]} {
    %c0 = arith.constant 0 : index
    %c0_0 = arith.constant 0 : index
    %0 = vector.load %arg2[%c0, %c0_0] : memref<64x576xbf16, #tpu.memory_space<vmem>>, vector<64x576xbf16>
    %c0_1 = arith.constant 0 : index
    %c0_2 = arith.constant 0 : index
    %1 = vector.load %arg3[%c0_1, %c0_2] : memref<576x128xbf16, #tpu.memory_space<vmem>>, vector<576x128xbf16>
    %cst = arith.constant dense<0.000000e+00> : vector<64x128xf32>
    %2 = tpu.matmul %0, %1, %cst {dimension_numbers = #tpu.dot_dimension_numbers<[1], [0], [0], [1], [0, 0, 1, 1], [], []>} : vector<64x576xbf16>, vector<576x128xbf16>, vector<64x128xf32> -> vector<64x128xf32>
    %c0_3 = arith.constant 0 : index
    %c0_4 = arith.constant 0 : index
    %3 = vector.load %arg4[%c0_3, %c0_4] : memref<1x128xf32, #tpu.memory_space<vmem>>, vector<1x128xf32>
    %4 = vector.broadcast %3 : vector<1x128xf32> to vector<64x128xf32>
    %5 = arith.addf %2, %4 : vector<64x128xf32>
    %cst_5 = arith.constant 0.000000e+00 : f32
    %6 = vector.broadcast %cst_5 : f32 to vector<64x128xf32>
    %7 = arith.maximumf %5, %6 : vector<64x128xf32>
    %8 = arith.truncf %7 : vector<64x128xf32> to vector<64x128xbf16>
    %c0_6 = arith.constant 0 : index
    %c0_7 = arith.constant 0 : index
    %9 = vector.load %arg5[%c0_6, %c0_7] : memref<64x128xbf16, #tpu.memory_space<vmem>>, vector<64x128xbf16>
    tpu.vector_store %arg5[%c0_6, %c0_7], %8 {strides = array<i32>} : memref<64x128xbf16, #tpu.memory_space<vmem>>, vector<64x128xbf16>,
    return
  }
  func.func @transform_0(%arg0: i32, %arg1: i32) -> (i32, i32) {
    %c0_i32 = arith.constant 0 : i32
    %c0_i32_0 = arith.constant 0 : i32
    return %arg0, %c0_i32 : i32, i32
  }
  func.func @transform_1(%arg0: i32, %arg1: i32) -> (i32, i32) {
    %c0_i32 = arith.constant 0 : i32
    %c0_i32_0 = arith.constant 0 : i32
    return %c0_i32, %arg1 : i32, i32
  }
  func.func @transform_2(%arg0: i32, %arg1: i32) -> (i32, i32) {
    %c0_i32 = arith.constant 0 : i32
    %c0_i32_0 = arith.constant 0 : i32
    return %c0_i32, %arg1 : i32, i32
  }
  func.func @transform_3(%arg0: i32, %arg1: i32) -> (i32, i32) {
    %c0_i32 = arith.constant 0 : i32
    return %arg0, %arg1 : i32, i32
  }
}

module attributes {stable_mosaic.version = 11 : i64} {
  func.func @_mm_epilogue_kernel(%arg0: i32, %arg1: i32, %arg2: memref<64x64xbf16, #tpu.memory_space<vmem>>, %arg3: memref<64x128xbf16, #tpu.memory_space<vmem>>, %arg4: memref<1x128xf32, #tpu.memory_space<vmem>>, %arg5: memref<64x128xbf16, #tpu.memory_space<vmem>>) attributes {dimension_semantics = [#tpu.dimension_semantics<parallel>, #tpu.dimension_semantics<parallel>], iteration_bounds = array<i64: 2, 1>, scalar_prefetch = 0 : i64, scratch_operands = 0 : i64, tpu.core_type = #tpu.core_type<tc>, window_params = [{transform_indices = @transform_0, window_bounds = array<i64: 64, 64>}, {transform_indices = @transform_1, window_bounds = array<i64: 64, 128>}, {transform_indices = @transform_2, window_bounds = array<i64: 1, 128>}, {transform_indices = @transform_3, window_bounds = array<i64: 64, 128>}]} {
    %c0 = arith.constant 0 : index
    %c0_0 = arith.constant 0 : index
    %0 = vector.load %arg2[%c0, %c0_0] : memref<64x64xbf16, #tpu.memory_space<vmem>>, vector<64x64xbf16>
    %c0_1 = arith.constant 0 : index
    %c0_2 = arith.constant 0 : index
    %1 = vector.load %arg3[%c0_1, %c0_2] : memref<64x128xbf16, #tpu.memory_space<vmem>>, vector<64x128xbf16>
    %cst = arith.constant dense<0.000000e+00> : vector<64x128xf32>
    %2 = tpu.matmul %0, %1, %cst {dimension_numbers = #tpu.dot_dimension_numbers<[1], [0], [0], [1], [0, 0, 1, 1], [], []>} : vector<64x64xbf16>, vector<64x128xbf16>, vector<64x128xf32> -> vector<64x128xf32>
    %c0_3 = arith.constant 0 : index
    %c0_4 = arith.constant 0 : index
    %3 = vector.load %arg4[%c0_3, %c0_4] : memref<1x128xf32, #tpu.memory_space<vmem>>, vector<1x128xf32>
    %4 = vector.broadcast %3 : vector<1x128xf32> to vector<64x128xf32>
    %5 = arith.addf %2, %4 : vector<64x128xf32>
    %6 = arith.truncf %5 : vector<64x128xf32> to vector<64x128xbf16>
    %c0_5 = arith.constant 0 : index
    %c0_6 = arith.constant 0 : index
    %7 = vector.load %arg5[%c0_5, %c0_6] : memref<64x128xbf16, #tpu.memory_space<vmem>>, vector<64x128xbf16>
    tpu.vector_store %arg5[%c0_5, %c0_6], %6 {strides = array<i32>} : memref<64x128xbf16, #tpu.memory_space<vmem>>, vector<64x128xbf16>,
    return
  }
  func.func @transform_0(%arg0: i32, %arg1: i32) -> (i32, i32) {
    %c0_i32 = arith.constant 0 : i32
    %c0_i32_0 = arith.constant 0 : i32
    return %arg0, %c0_i32 : i32, i32
  }
  func.func @transform_1(%arg0: i32, %arg1: i32) -> (i32, i32) {
    %c0_i32 = arith.constant 0 : i32
    %c0_i32_0 = arith.constant 0 : i32
    return %c0_i32, %arg1 : i32, i32
  }
  func.func @transform_2(%arg0: i32, %arg1: i32) -> (i32, i32) {
    %c0_i32 = arith.constant 0 : i32
    %c0_i32_0 = arith.constant 0 : i32
    return %c0_i32, %arg1 : i32, i32
  }
  func.func @transform_3(%arg0: i32, %arg1: i32) -> (i32, i32) {
    %c0_i32 = arith.constant 0 : i32
    return %arg0, %arg1 : i32, i32
  }
}

module attributes {stable_mosaic.version = 11 : i64} {
  func.func @_mm_epilogue_kernel(%arg0: i32, %arg1: i32, %arg2: memref<64x1152xbf16, #tpu.memory_space<vmem>>, %arg3: memref<1152x128xbf16, #tpu.memory_space<vmem>>, %arg4: memref<1x128xf32, #tpu.memory_space<vmem>>, %arg5: memref<64x128xbf16, #tpu.memory_space<vmem>>, %arg6: memref<64x128xbf16, #tpu.memory_space<vmem>>) attributes {dimension_semantics = [#tpu.dimension_semantics<parallel>, #tpu.dimension_semantics<parallel>], iteration_bounds = array<i64: 2, 1>, scalar_prefetch = 0 : i64, scratch_operands = 0 : i64, tpu.core_type = #tpu.core_type<tc>, window_params = [{transform_indices = @transform_0, window_bounds = array<i64: 64, 1152>}, {transform_indices = @transform_1, window_bounds = array<i64: 1152, 128>}, {transform_indices = @transform_2, window_bounds = array<i64: 1, 128>}, {transform_indices = @transform_3, window_bounds = array<i64: 64, 128>}, {transform_indices = @transform_4, window_bounds = array<i64: 64, 128>}]} {
    %c0 = arith.constant 0 : index
    %c0_0 = arith.constant 0 : index
    %0 = vector.load %arg2[%c0, %c0_0] : memref<64x1152xbf16, #tpu.memory_space<vmem>>, vector<64x1152xbf16>
    %c0_1 = arith.constant 0 : index
    %c0_2 = arith.constant 0 : index
    %1 = vector.load %arg3[%c0_1, %c0_2] : memref<1152x128xbf16, #tpu.memory_space<vmem>>, vector<1152x128xbf16>
    %cst = arith.constant dense<0.000000e+00> : vector<64x128xf32>
    %2 = tpu.matmul %0, %1, %cst {dimension_numbers = #tpu.dot_dimension_numbers<[1], [0], [0], [1], [0, 0, 1, 1], [], []>} : vector<64x1152xbf16>, vector<1152x128xbf16>, vector<64x128xf32> -> vector<64x128xf32>
    %c0_3 = arith.constant 0 : index
    %c0_4 = arith.constant 0 : index
    %3 = vector.load %arg4[%c0_3, %c0_4] : memref<1x128xf32, #tpu.memory_space<vmem>>, vector<1x128xf32>
    %4 = vector.broadcast %3 : vector<1x128xf32> to vector<64x128xf32>
    %5 = arith.addf %2, %4 : vector<64x128xf32>
    %c0_5 = arith.constant 0 : index
    %c0_6 = arith.constant 0 : index
    %6 = vector.load %arg5[%c0_5, %c0_6] : memref<64x128xbf16, #tpu.memory_space<vmem>>, vector<64x128xbf16>
    %7 = arith.extf %6 : vector<64x128xbf16> to vector<64x128xf32>
    %8 = arith.addf %5, %7 : vector<64x128xf32>
    %cst_7 = arith.constant 0.000000e+00 : f32
    %9 = vector.broadcast %cst_7 : f32 to vector<64x128xf32>
    %10 = arith.maximumf %8, %9 : vector<64x128xf32>
    %11 = arith.truncf %10 : vector<64x128xf32> to vector<64x128xbf16>
    %c0_8 = arith.constant 0 : index
    %c0_9 = arith.constant 0 : index
    %12 = vector.load %arg6[%c0_8, %c0_9] : memref<64x128xbf16, #tpu.memory_space<vmem>>, vector<64x128xbf16>
    tpu.vector_store %arg6[%c0_8, %c0_9], %11 {strides = array<i32>} : memref<64x128xbf16, #tpu.memory_space<vmem>>, vector<64x128xbf16>,
    return
  }
  func.func @transform_0(%arg0: i32, %arg1: i32) -> (i32, i32) {
    %c0_i32 = arith.constant 0 : i32
    %c0_i32_0 = arith.constant 0 : i32
    return %arg0, %c0_i32 : i32, i32
  }
  func.func @transform_1(%arg0: i32, %arg1: i32) -> (i32, i32) {
    %c0_i32 = arith.constant 0 : i32
    %c0_i32_0 = arith.constant 0 : i32
    return %c0_i32, %arg1 : i32, i32
  }
  func.func @transform_2(%arg0: i32, %arg1: i32) -> (i32, i32) {
    %c0_i32 = arith.constant 0 : i32
    %c0_i32_0 = arith.constant 0 : i32
    return %c0_i32, %arg1 : i32, i32
  }
  func.func @transform_3(%arg0: i32, %arg1: i32) -> (i32, i32) {
    %c0_i32 = arith.constant 0 : i32
    return %arg0, %arg1 : i32, i32
  }
  func.func @transform_4(%arg0: i32, %arg1: i32) -> (i32, i32) {
    %c0_i32 = arith.constant 0 : i32
    return %arg0, %arg1 : i32, i32
  }
}

module attributes {stable_mosaic.version = 11 : i64} {
  func.func @_mm_epilogue_kernel(%arg0: i32, %arg1: i32, %arg2: memref<32x1152xbf16, #tpu.memory_space<vmem>>, %arg3: memref<1152x128xbf16, #tpu.memory_space<vmem>>, %arg4: memref<1x128xf32, #tpu.memory_space<vmem>>, %arg5: memref<32x128xbf16, #tpu.memory_space<vmem>>) attributes {dimension_semantics = [#tpu.dimension_semantics<parallel>, #tpu.dimension_semantics<parallel>], iteration_bounds = array<i64: 1, 2>, scalar_prefetch = 0 : i64, scratch_operands = 0 : i64, tpu.core_type = #tpu.core_type<tc>, window_params = [{transform_indices = @transform_0, window_bounds = array<i64: 32, 1152>}, {transform_indices = @transform_1, window_bounds = array<i64: 1152, 128>}, {transform_indices = @transform_2, window_bounds = array<i64: 1, 128>}, {transform_indices = @transform_3, window_bounds = array<i64: 32, 128>}]} {
    %c0 = arith.constant 0 : index
    %c0_0 = arith.constant 0 : index
    %0 = vector.load %arg2[%c0, %c0_0] : memref<32x1152xbf16, #tpu.memory_space<vmem>>, vector<32x1152xbf16>
    %c0_1 = arith.constant 0 : index
    %c0_2 = arith.constant 0 : index
    %1 = vector.load %arg3[%c0_1, %c0_2] : memref<1152x128xbf16, #tpu.memory_space<vmem>>, vector<1152x128xbf16>
    %cst = arith.constant dense<0.000000e+00> : vector<32x128xf32>
    %2 = tpu.matmul %0, %1, %cst {dimension_numbers = #tpu.dot_dimension_numbers<[1], [0], [0], [1], [0, 0, 1, 1], [], []>} : vector<32x1152xbf16>, vector<1152x128xbf16>, vector<32x128xf32> -> vector<32x128xf32>
    %c0_3 = arith.constant 0 : index
    %c0_4 = arith.constant 0 : index
    %3 = vector.load %arg4[%c0_3, %c0_4] : memref<1x128xf32, #tpu.memory_space<vmem>>, vector<1x128xf32>
    %4 = vector.broadcast %3 : vector<1x128xf32> to vector<32x128xf32>
    %5 = arith.addf %2, %4 : vector<32x128xf32>
    %cst_5 = arith.constant 0.000000e+00 : f32
    %6 = vector.broadcast %cst_5 : f32 to vector<32x128xf32>
    %7 = arith.maximumf %5, %6 : vector<32x128xf32>
    %8 = arith.truncf %7 : vector<32x128xf32> to vector<32x128xbf16>
    %c0_6 = arith.constant 0 : index
    %c0_7 = arith.constant 0 : index
    %9 = vector.load %arg5[%c0_6, %c0_7] : memref<32x128xbf16, #tpu.memory_space<vmem>>, vector<32x128xbf16>
    tpu.vector_store %arg5[%c0_6, %c0_7], %8 {strides = array<i32>} : memref<32x128xbf16, #tpu.memory_space<vmem>>, vector<32x128xbf16>,
    return
  }
  func.func @transform_0(%arg0: i32, %arg1: i32) -> (i32, i32) {
    %c0_i32 = arith.constant 0 : i32
    %c0_i32_0 = arith.constant 0 : i32
    return %arg0, %c0_i32 : i32, i32
  }
  func.func @transform_1(%arg0: i32, %arg1: i32) -> (i32, i32) {
    %c0_i32 = arith.constant 0 : i32
    %c0_i32_0 = arith.constant 0 : i32
    return %c0_i32, %arg1 : i32, i32
  }
  func.func @transform_2(%arg0: i32, %arg1: i32) -> (i32, i32) {
    %c0_i32 = arith.constant 0 : i32
    %c0_i32_0 = arith.constant 0 : i32
    return %c0_i32, %arg1 : i32, i32
  }
  func.func @transform_3(%arg0: i32, %arg1: i32) -> (i32, i32) {
    %c0_i32 = arith.constant 0 : i32
    return %arg0, %arg1 : i32, i32
  }
}

module attributes {stable_mosaic.version = 11 : i64} {
  func.func @_mm_epilogue_kernel(%arg0: i32, %arg1: i32, %arg2: memref<32x128xbf16, #tpu.memory_space<vmem>>, %arg3: memref<128x128xbf16, #tpu.memory_space<vmem>>, %arg4: memref<1x128xf32, #tpu.memory_space<vmem>>, %arg5: memref<32x128xbf16, #tpu.memory_space<vmem>>) attributes {dimension_semantics = [#tpu.dimension_semantics<parallel>, #tpu.dimension_semantics<parallel>], iteration_bounds = array<i64: 1, 2>, scalar_prefetch = 0 : i64, scratch_operands = 0 : i64, tpu.core_type = #tpu.core_type<tc>, window_params = [{transform_indices = @transform_0, window_bounds = array<i64: 32, 128>}, {transform_indices = @transform_1, window_bounds = array<i64: 128, 128>}, {transform_indices = @transform_2, window_bounds = array<i64: 1, 128>}, {transform_indices = @transform_3, window_bounds = array<i64: 32, 128>}]} {
    %c0 = arith.constant 0 : index
    %c0_0 = arith.constant 0 : index
    %0 = vector.load %arg2[%c0, %c0_0] : memref<32x128xbf16, #tpu.memory_space<vmem>>, vector<32x128xbf16>
    %c0_1 = arith.constant 0 : index
    %c0_2 = arith.constant 0 : index
    %1 = vector.load %arg3[%c0_1, %c0_2] : memref<128x128xbf16, #tpu.memory_space<vmem>>, vector<128x128xbf16>
    %cst = arith.constant dense<0.000000e+00> : vector<32x128xf32>
    %2 = tpu.matmul %0, %1, %cst {dimension_numbers = #tpu.dot_dimension_numbers<[1], [0], [0], [1], [0, 0, 1, 1], [], []>} : vector<32x128xbf16>, vector<128x128xbf16>, vector<32x128xf32> -> vector<32x128xf32>
    %c0_3 = arith.constant 0 : index
    %c0_4 = arith.constant 0 : index
    %3 = vector.load %arg4[%c0_3, %c0_4] : memref<1x128xf32, #tpu.memory_space<vmem>>, vector<1x128xf32>
    %4 = vector.broadcast %3 : vector<1x128xf32> to vector<32x128xf32>
    %5 = arith.addf %2, %4 : vector<32x128xf32>
    %6 = arith.truncf %5 : vector<32x128xf32> to vector<32x128xbf16>
    %c0_5 = arith.constant 0 : index
    %c0_6 = arith.constant 0 : index
    %7 = vector.load %arg5[%c0_5, %c0_6] : memref<32x128xbf16, #tpu.memory_space<vmem>>, vector<32x128xbf16>
    tpu.vector_store %arg5[%c0_5, %c0_6], %6 {strides = array<i32>} : memref<32x128xbf16, #tpu.memory_space<vmem>>, vector<32x128xbf16>,
    return
  }
  func.func @transform_0(%arg0: i32, %arg1: i32) -> (i32, i32) {
    %c0_i32 = arith.constant 0 : i32
    %c0_i32_0 = arith.constant 0 : i32
    return %arg0, %c0_i32 : i32, i32
  }
  func.func @transform_1(%arg0: i32, %arg1: i32) -> (i32, i32) {
    %c0_i32 = arith.constant 0 : i32
    %c0_i32_0 = arith.constant 0 : i32
    return %c0_i32, %arg1 : i32, i32
  }
  func.func @transform_2(%arg0: i32, %arg1: i32) -> (i32, i32) {
    %c0_i32 = arith.constant 0 : i32
    %c0_i32_0 = arith.constant 0 : i32
    return %c0_i32, %arg1 : i32, i32
  }
  func.func @transform_3(%arg0: i32, %arg1: i32) -> (i32, i32) {
    %c0_i32 = arith.constant 0 : i32
    return %arg0, %arg1 : i32, i32
  }
}

module attributes {stable_mosaic.version = 11 : i64} {
  func.func @_mm_epilogue_kernel(%arg0: i32, %arg1: i32, %arg2: memref<32x2304xbf16, #tpu.memory_space<vmem>>, %arg3: memref<2304x128xbf16, #tpu.memory_space<vmem>>, %arg4: memref<1x128xf32, #tpu.memory_space<vmem>>, %arg5: memref<32x128xbf16, #tpu.memory_space<vmem>>, %arg6: memref<32x128xbf16, #tpu.memory_space<vmem>>) attributes {dimension_semantics = [#tpu.dimension_semantics<parallel>, #tpu.dimension_semantics<parallel>], iteration_bounds = array<i64: 1, 2>, scalar_prefetch = 0 : i64, scratch_operands = 0 : i64, tpu.core_type = #tpu.core_type<tc>, window_params = [{transform_indices = @transform_0, window_bounds = array<i64: 32, 2304>}, {transform_indices = @transform_1, window_bounds = array<i64: 2304, 128>}, {transform_indices = @transform_2, window_bounds = array<i64: 1, 128>}, {transform_indices = @transform_3, window_bounds = array<i64: 32, 128>}, {transform_indices = @transform_4, window_bounds = array<i64: 32, 128>}]} {
    %c0 = arith.constant 0 : index
    %c0_0 = arith.constant 0 : index
    %0 = vector.load %arg2[%c0, %c0_0] : memref<32x2304xbf16, #tpu.memory_space<vmem>>, vector<32x2304xbf16>
    %c0_1 = arith.constant 0 : index
    %c0_2 = arith.constant 0 : index
    %1 = vector.load %arg3[%c0_1, %c0_2] : memref<2304x128xbf16, #tpu.memory_space<vmem>>, vector<2304x128xbf16>
    %cst = arith.constant dense<0.000000e+00> : vector<32x128xf32>
    %2 = tpu.matmul %0, %1, %cst {dimension_numbers = #tpu.dot_dimension_numbers<[1], [0], [0], [1], [0, 0, 1, 1], [], []>} : vector<32x2304xbf16>, vector<2304x128xbf16>, vector<32x128xf32> -> vector<32x128xf32>
    %c0_3 = arith.constant 0 : index
    %c0_4 = arith.constant 0 : index
    %3 = vector.load %arg4[%c0_3, %c0_4] : memref<1x128xf32, #tpu.memory_space<vmem>>, vector<1x128xf32>
    %4 = vector.broadcast %3 : vector<1x128xf32> to vector<32x128xf32>
    %5 = arith.addf %2, %4 : vector<32x128xf32>
    %c0_5 = arith.constant 0 : index
    %c0_6 = arith.constant 0 : index
    %6 = vector.load %arg5[%c0_5, %c0_6] : memref<32x128xbf16, #tpu.memory_space<vmem>>, vector<32x128xbf16>
    %7 = arith.extf %6 : vector<32x128xbf16> to vector<32x128xf32>
    %8 = arith.addf %5, %7 : vector<32x128xf32>
    %cst_7 = arith.constant 0.000000e+00 : f32
    %9 = vector.broadcast %cst_7 : f32 to vector<32x128xf32>
    %10 = arith.maximumf %8, %9 : vector<32x128xf32>
    %11 = arith.truncf %10 : vector<32x128xf32> to vector<32x128xbf16>
    %c0_8 = arith.constant 0 : index
    %c0_9 = arith.constant 0 : index
    %12 = vector.load %arg6[%c0_8, %c0_9] : memref<32x128xbf16, #tpu.memory_space<vmem>>, vector<32x128xbf16>
    tpu.vector_store %arg6[%c0_8, %c0_9], %11 {strides = array<i32>} : memref<32x128xbf16, #tpu.memory_space<vmem>>, vector<32x128xbf16>,
    return
  }
  func.func @transform_0(%arg0: i32, %arg1: i32) -> (i32, i32) {
    %c0_i32 = arith.constant 0 : i32
    %c0_i32_0 = arith.constant 0 : i32
    return %arg0, %c0_i32 : i32, i32
  }
  func.func @transform_1(%arg0: i32, %arg1: i32) -> (i32, i32) {
    %c0_i32 = arith.constant 0 : i32
    %c0_i32_0 = arith.constant 0 : i32
    return %c0_i32, %arg1 : i32, i32
  }
  func.func @transform_2(%arg0: i32, %arg1: i32) -> (i32, i32) {
    %c0_i32 = arith.constant 0 : i32
    %c0_i32_0 = arith.constant 0 : i32
    return %c0_i32, %arg1 : i32, i32
  }
  func.func @transform_3(%arg0: i32, %arg1: i32) -> (i32, i32) {
    %c0_i32 = arith.constant 0 : i32
    return %arg0, %arg1 : i32, i32
  }
  func.func @transform_4(%arg0: i32, %arg1: i32) -> (i32, i32) {
    %c0_i32 = arith.constant 0 : i32
    return %arg0, %arg1 : i32, i32
  }
}

module attributes {stable_mosaic.version = 11 : i64} {
  func.func @_mm_epilogue_kernel(%arg0: i32, %arg1: i32, %arg2: memref<8x256xbf16, #tpu.memory_space<vmem>>, %arg3: memref<256x128xbf16, #tpu.memory_space<vmem>>, %arg4: memref<8x128xf32, #tpu.memory_space<vmem>>) attributes {dimension_semantics = [#tpu.dimension_semantics<parallel>, #tpu.dimension_semantics<parallel>], iteration_bounds = array<i64: 1, 2>, scalar_prefetch = 0 : i64, scratch_operands = 0 : i64, tpu.core_type = #tpu.core_type<tc>, window_params = [{transform_indices = @transform_0, window_bounds = array<i64: 8, 256>}, {transform_indices = @transform_1, window_bounds = array<i64: 256, 128>}, {transform_indices = @transform_2, window_bounds = array<i64: 8, 128>}]} {
    %c0 = arith.constant 0 : index
    %c0_0 = arith.constant 0 : index
    %0 = vector.load %arg2[%c0, %c0_0] : memref<8x256xbf16, #tpu.memory_space<vmem>>, vector<8x256xbf16>
    %c0_1 = arith.constant 0 : index
    %c0_2 = arith.constant 0 : index
    %1 = vector.load %arg3[%c0_1, %c0_2] : memref<256x128xbf16, #tpu.memory_space<vmem>>, vector<256x128xbf16>
    %cst = arith.constant dense<0.000000e+00> : vector<8x128xf32>
    %2 = tpu.matmul %0, %1, %cst {dimension_numbers = #tpu.dot_dimension_numbers<[1], [0], [0], [1], [0, 0, 1, 1], [], []>} : vector<8x256xbf16>, vector<256x128xbf16>, vector<8x128xf32> -> vector<8x128xf32>
    %c0_3 = arith.constant 0 : index
    %c0_4 = arith.constant 0 : index
    %3 = vector.load %arg4[%c0_3, %c0_4] : memref<8x128xf32, #tpu.memory_space<vmem>>, vector<8x128xf32>
    tpu.vector_store %arg4[%c0_3, %c0_4], %2 {strides = array<i32>} : memref<8x128xf32, #tpu.memory_space<vmem>>, vector<8x128xf32>,
    return
  }
  func.func @transform_0(%arg0: i32, %arg1: i32) -> (i32, i32) {
    %c0_i32 = arith.constant 0 : i32
    %c0_i32_0 = arith.constant 0 : i32
    return %arg0, %c0_i32 : i32, i32
  }
  func.func @transform_1(%arg0: i32, %arg1: i32) -> (i32, i32) {
    %c0_i32 = arith.constant 0 : i32
    %c0_i32_0 = arith.constant 0 : i32
    return %c0_i32, %arg1 : i32, i32
  }
  func.func @transform_2(%arg0: i32, %arg1: i32) -> (i32, i32) {
    %c0_i32 = arith.constant 0 : i32
    return %arg0, %arg1 : i32, i32
  }
}

</mosaic_0001>

<bundles_post_ra>
// kernel: model_wrapper_forward.12
= control target key start
LH: loop header
LB: loop body
LE: loop exit
PB: predicated region body
PF: predicated region fallthrough
CT: control target
= control target key end

     0   :  { %s2182_s12 = smov 0   ;;  %s2184_s13 = smov 0   ;;  %s2450_s0 = inlined_call_operand.vmem [shape: bf16[2048,147], index: 0, kind: input, shape index: {}]   ;;  %s2451_s1 = inlined_call_operand.vmem [shape: bf16[147,128], index: 1, kind: input, shape index: {}]   ;;  %s2452_s2 = inlined_call_operand.vmem [shape: f32[1,128], index: 2, kind: input, shape index: {}]   ;;  %s2453_s3 = inlined_call_operand.vmem [shape: bf16[2048,128], index: 3, kind: output, shape index: {}]  }
   0x1   :  { %s2186_s14 = smov 0  }
   0x2 LB: > { %s25_s15 = sadd.s32 1, %s2154_s13  ;;  %p1549_p0 = scmp.ge.s32.totalorder %s2158_s14, 1  ;;  %s2158_s14 = sphi %s2186_s14, %s13_s14   ;;  %s2154_s13 = sphi %s2184_s13, %s2455_s13   ;;  %s2150_s12 = sphi %s2182_s12, %s2454_s12  }
   0x3   : > { %p27_p1 = scmp.ge.s32.totalorder %s25_s15, 4  ;;  %p170_p2 = scmp.lt.s32.totalorder %s2158_s14, 5 }
   0x5   : > { %s2457_s15 = smov (%p27_p1, %s25_s15), 0  ;;  %p171_p3 = pnand %p1549_p0, %p170_p2 }
   0x6   : > { %v2030_v0 = vld [vmem:[%s2451_s1] sm:$0xff] (!%p171_p3)   ;;  %v2160_v1 = vmov (!%p171_p3), 0   ;;  %v2031_v2 = vld [vmem:[%s2451_s1 + $0x8] sm:$0xff] (!%p171_p3)   ;;  %v2032_v3 = vld [vmem:[%s2451_s1 + $0x10] sm:$0xff] (!%p171_p3)   ;;  %s1550_s22 = sshll.u32 (!%p171_p3), %s2150_s12, 6  ;;  %vm664_vm0 = vcmask (!%p171_p3), 154624  }
   0x7   : > { %174 = sbr.rel (%p171_p3) target bundleno = 388 (0x184), region = 32  ;;  %768 = vmatprep.subr.bf16.mxu0 (!%p171_p3), %v2160_v1  ;;  %1984 = vmatprep.subr.bf16.mxu1 (!%p171_p3), %v2160_v1  ;;  %p206_p4 = scmp.lt.s32.totalorder (!%p171_p3), %s1550_s22, 255  ;;  %v2033_v4 = vld [vmem:[%s2451_s1 + $0x18] sm:$0xff] (!%p171_p3)   ;;  %v2034_v5 = vld [vmem:[%s2451_s1 + $0x20] sm:$0xff] (!%p171_p3)   ;;  %v2035_v8 = vld [vmem:[%s2451_s1 + $0x28] sm:$0xff] (!%p171_p3)   ;;  %vm761_vm1 = vcmask (!%p171_p3), 1040384  }
   0x8   : > { %769 = vmatpush1.bf16.msra.mxu0 (!%p171_p3), %v2030_v0  ;;  %1994 = vmatpush1.bf16.msra.mxu1 (!%p171_p3), %v2030_v0  ;;  %v2036_v9 = vld [vmem:[%s2451_s1 + $0x30] sm:$0xff] (!%p171_p3)   ;;  %v2037_v10 = vld [vmem:[%s2451_s1 + $0x38] sm:$0xff] (!%p171_p3)   ;;  %vm762_vm2 = vcmask (!%p171_p3), 1041408   ;;  %v2161_v11 = vmov (!%p171_p3), 65535   ;;  %v2038_v13 = vld [vmem:[%s2451_s1 + $0x40] sm:$0xff] (!%p171_p3)  }
   0x9   : > { %770 = vmatprep.subr.bf16.mxu0 (!%p171_p3), %v2160_v1  ;;  %1985 = vmatprep.subr.bf16.mxu1 (!%p171_p3), %v2160_v1  ;;  %v763_v12 = vsel (!%p171_p3), %vm761_vm1, 4294967295, %v2161_v11  ;;  %v2039_v14 = vld [vmem:[%s2451_s1 + $0x48] ss:$0 sps:$4 sm:$0x33] (!%p171_p3)  }
   0xa   : > { %v764_v15 = vsel (!%p171_p3), %vm762_vm2, %v763_v12, 0 }
   0xb   : > { %v766_v16 = vand.u32 (!%p171_p3), %v2039_v14, %v764_v15  ;;  %v2337_v15 = vld [vmem:[%s2452_s2] ss:$0 sm:$0xff] (!%p171_p3) }
   0xc   : > { %771 = vmatpush1.bf16.msra.mxu0 (!%p171_p3), %v2031_v2  ;;  %1995 = vmatpush1.bf16.msra.mxu1 (!%p171_p3), %v2031_v2 }
   0xd   : > { %772 = vmatprep.subr.bf16.mxu0 (!%p171_p3), %v2160_v1  ;;  %1986 = vmatprep.subr.bf16.mxu1 (!%p171_p3), %v2160_v1 }
   0xe   : > { %s2459_s22 = smov (!%p206_p4, %s1550_s22), 255 }
   0xf   : > { %s1728_s25 = sshll.u32 %s2459_s22, 3  ;;  %s1554_s19 = sshll.u32 %s2459_s22, 2 }
  0x10   : > { %773 = vmatpush1.bf16.msra.mxu0 %v2032_v3  ;;  %1996 = vmatpush1.bf16.msra.mxu1 %v2032_v3  ;;  %s2218_s28 = scalar_lea.vmem %s2450_s0, %s1728_s25  ;;  %s2347_s23 = scalar_lea.vmem %s2453_s3, %s1554_s19 }
  0x11   : > { %774 = vmatprep.subr.bf16.mxu0 %v2160_v1  ;;  %1987 = vmatprep.subr.bf16.mxu1 %v2160_v1  ;;  %v2042_v6 = vld [vmem:[%s2218_s28 + $0x4] ss:$8 sps:$4 sm:$0xff]   ;;  %v2040_v17 = vld [vmem:[%s2218_s28] ss:$8 sps:$4 sm:$0xff]   ;;  %v2046_v19 = vld [vmem:[%s2218_s28 + $0x14] ss:$8 sps:$4 sm:$0xff]  }
  0x12   : > { %v2045_v7 = vld [vmem:[%s2218_s28 + $0x104] ss:$8 sps:$4 sm:$0xff]   ;;  %1630 = vmatprep.mubr.msk.bf16.mxu0 %vm664_vm0, %v2042_v6  ;;  %v2043_v18 = vld [vmem:[%s2218_s28 + $0x100] ss:$8 sps:$4 sm:$0xff]   ;;  %v2048_v20 = vld [vmem:[%s2218_s28 + $0x114] ss:$8 sps:$4 sm:$0xff]  }
  0x13   : > { %1646 = vmatprep.mubr.msk.bf16.mxu1 %vm664_vm0, %v2045_v7  ;;  %v2050_v21 = vld [vmem:[%s2218_s28 + $0x10] ss:$8 sps:$4 sm:$0xff]   ;;  %v2052_v23 = vld [vmem:[%s2218_s28 + $0x24] ss:$8 sps:$4 sm:$0xff]   ;;  %v2056_v25 = vld [vmem:[%s2218_s28 + $0x20] ss:$8 sps:$4 sm:$0xff]  }
  0x14   : > { %775 = vmatpush1.bf16.msra.mxu0 %v2033_v4  ;;  %1997 = vmatpush1.bf16.msra.mxu1 %v2033_v4  ;;  %v2051_v22 = vld [vmem:[%s2218_s28 + $0x110] ss:$8 sps:$4 sm:$0xff]   ;;  %v2054_v24 = vld [vmem:[%s2218_s28 + $0x124] ss:$8 sps:$4 sm:$0xff]   ;;  %v2057_v26 = vld [vmem:[%s2218_s28 + $0x120] ss:$8 sps:$4 sm:$0xff]  }
  0x15   : > { %776 = vmatprep.subr.bf16.mxu0 %v2160_v1  ;;  %1988 = vmatprep.subr.bf16.mxu1 %v2160_v1  ;;  %v2058_v27 = vld [vmem:[%s2218_s28 + $0x34] ss:$8 sps:$4 sm:$0xff]   ;;  %v2062_v29 = vld [vmem:[%s2218_s28 + $0x30] ss:$8 sps:$4 sm:$0xff]   ;;  %v2064_v31 = vld [vmem:[%s2218_s28 + $0x44] ss:$8 sps:$4 sm:$0xff]  }
  0x16   : > { %v2060_v28 = vld [vmem:[%s2218_s28 + $0x134] ss:$8 sps:$4 sm:$0xff]   ;;  %v2063_v30 = vld [vmem:[%s2218_s28 + $0x130] ss:$8 sps:$4 sm:$0xff]   ;;  %v2066_v32 = vld [vmem:[%s2218_s28 + $0x144] ss:$8 sps:$4 sm:$0xff]  }
  0x17   : > { %v2068_v33 = vld [vmem:[%s2218_s28 + $0x40] ss:$8 sps:$4 sm:$0xff]   ;;  %v2070_v35 = vld [vmem:[%s2218_s28 + $0x54] ss:$8 sps:$4 sm:$0xff]   ;;  %v2074_v37 = vld [vmem:[%s2218_s28 + $0x50] ss:$8 sps:$4 sm:$0xff]  }
  0x18   : > { %777 = vmatpush1.bf16.msra.mxu0 %v2034_v5  ;;  %1998 = vmatpush1.bf16.msra.mxu1 %v2034_v5  ;;  %v2069_v34 = vld [vmem:[%s2218_s28 + $0x140] ss:$8 sps:$4 sm:$0xff]   ;;  %v2072_v36 = vld [vmem:[%s2218_s28 + $0x154] ss:$8 sps:$4 sm:$0xff]   ;;  %v2075_v38 = vld [vmem:[%s2218_s28 + $0x150] ss:$8 sps:$4 sm:$0xff]  }
  0x19   : > { %778 = vmatprep.subr.bf16.mxu0 %v2160_v1  ;;  %1989 = vmatprep.subr.bf16.mxu1 %v2160_v1  ;;  %v2076_v39 = vld [vmem:[%s2218_s28 + $0x64] ss:$8 sps:$4 sm:$0xff]   ;;  %v2080_v41 = vld [vmem:[%s2218_s28 + $0x60] ss:$8 sps:$4 sm:$0xff]   ;;  %v2082_v43 = vld [vmem:[%s2218_s28 + $0x74] ss:$8 sps:$4 sm:$0xff]  }
  0x1a   : > { %v2078_v40 = vld [vmem:[%s2218_s28 + $0x164] ss:$8 sps:$4 sm:$0xff]   ;;  %v2081_v42 = vld [vmem:[%s2218_s28 + $0x160] ss:$8 sps:$4 sm:$0xff]   ;;  %v2084_v44 = vld [vmem:[%s2218_s28 + $0x174] ss:$8 sps:$4 sm:$0xff]  }
  0x1b   : > { %v2086_v45 = vld [vmem:[%s2218_s28 + $0x70] ss:$8 sps:$4 sm:$0xff]   ;;  %v2088_v47 = vld [vmem:[%s2218_s28 + $0x84] ss:$8 sps:$4 sm:$0xff]   ;;  %v2092_v49 = vld [vmem:[%s2218_s28 + $0x80] ss:$8 sps:$4 sm:$0xff]  }
  0x1c   : > { %779 = vmatpush1.bf16.msra.mxu0 %v2035_v8  ;;  %1999 = vmatpush1.bf16.msra.mxu1 %v2035_v8  ;;  %v2087_v46 = vld [vmem:[%s2218_s28 + $0x170] ss:$8 sps:$4 sm:$0xff]   ;;  %v2090_v48 = vld [vmem:[%s2218_s28 + $0x184] ss:$8 sps:$4 sm:$0xff]   ;;  %v2093_v50 = vld [vmem:[%s2218_s28 + $0x180] ss:$8 sps:$4 sm:$0xff]  }
  0x1d   : > { %780 = vmatprep.subr.bf16.mxu0 %v2160_v1  ;;  %1990 = vmatprep.subr.bf16.mxu1 %v2160_v1  ;;  %v2094_v51 = vld [vmem:[%s2218_s28 + $0x94] ss:$8 sps:$4 sm:$0xff]   ;;  %v2098_v53 = vld [vmem:[%s2218_s28 + $0x90] ss:$8 sps:$4 sm:$0xff]   ;;  %v2100_v55 = vld [vmem:[%s2218_s28 + $0xa4] ss:$8 sps:$4 sm:$0xff]  }
  0x1e   : > { %v2096_v52 = vld [vmem:[%s2218_s28 + $0x194] ss:$8 sps:$4 sm:$0xff]   ;;  %v2099_v54 = vld [vmem:[%s2218_s28 + $0x190] ss:$8 sps:$4 sm:$0xff]   ;;  %v2102_v56 = vld [vmem:[%s2218_s28 + $0x1a4] ss:$8 sps:$4 sm:$0xff]  }
  0x1f   : > { %v2104_v57 = vld [vmem:[%s2218_s28 + $0xa0] ss:$8 sps:$4 sm:$0xff]   ;;  %v2106_v59 = vld [vmem:[%s2218_s28 + $0xb4] ss:$8 sps:$4 sm:$0xff]   ;;  %v2110_v61 = vld [vmem:[%s2218_s28 + $0xb0] ss:$8 sps:$4 sm:$0xff]  }
  0x20   : > { %781 = vmatpush1.bf16.msra.mxu0 %v2036_v9  ;;  %2000 = vmatpush1.bf16.msra.mxu1 %v2036_v9  ;;  %v2105_v58 = vld [vmem:[%s2218_s28 + $0x1a0] ss:$8 sps:$4 sm:$0xff]   ;;  %v2108_v60 = vld [vmem:[%s2218_s28 + $0x1b4] ss:$8 sps:$4 sm:$0xff]   ;;  %v2111_v62 = vld [vmem:[%s2218_s28 + $0x1b0] ss:$8 sps:$4 sm:$0xff]  }
  0x21   : > { %782 = vmatprep.subr.bf16.mxu0 %v2160_v1  ;;  %1991 = vmatprep.subr.bf16.mxu1 %v2160_v1  ;;  %v2112_v63 = vld [vmem:[%s2218_s28 + $0xc4] ss:$8 sps:$4 sm:$0xff]   ;;  %v2117_v2 = vld [vmem:[%s2218_s28 + $0x1c0] ss:$8 sps:$4 sm:$0xff]   ;;  %v2118_v3 = vld [vmem:[%s2218_s28 + $0xd4] ss:$8 sps:$4 sm:$0xff]  }
  0x22   : > { %v2114_v0 = vld [vmem:[%s2218_s28 + $0x1c4] ss:$8 sps:$4 sm:$0xff]   ;;  %v2120_v4 = vld [vmem:[%s2218_s28 + $0x1d4] ss:$8 sps:$4 sm:$0xff]   ;;  %v2122_v5 = vld [vmem:[%s2218_s28 + $0xd0] ss:$8 sps:$4 sm:$0xff]  }
  0x23   : > { %v2123_v6 = vld [vmem:[%s2218_s28 + $0x1d0] ss:$8 sps:$4 sm:$0xff]   ;;  %v2124_v7 = vld [vmem:[%s2218_s28 + $0xe4] ss:$8 sps:$4 sm:$0xff]   ;;  %v2128_v9 = vld [vmem:[%s2218_s28 + $0xe0] ss:$8 sps:$4 sm:$0xff]  }
  0x24   : > { %783 = vmatpush1.bf16.msra.mxu0 %v2037_v10  ;;  %2001 = vmatpush1.bf16.msra.mxu1 %v2037_v10  ;;  %v2126_v8 = vld [vmem:[%s2218_s28 + $0x1e4] ss:$8 sps:$4 sm:$0xff]   ;;  %v2129_v10 = vld [vmem:[%s2218_s28 + $0x1e0] ss:$8 sps:$4 sm:$0xff]   ;;  %v2130_v11 = vld [vmem:[%s2218_s28 + $0xf4] ss:$8 sps:$4 sm:$0xff]  }
  0x25   : > { %784 = vmatprep.subr.bf16.mxu0 %v2160_v1  ;;  %1992 = vmatprep.subr.bf16.mxu1 %v2160_v1  ;;  %v2132_v12 = vld [vmem:[%s2218_s28 + $0x1f4] ss:$8 sps:$4 sm:$0xff]   ;;  %v2135_v14 = vld [vmem:[%s2218_s28 + $0x1f0] ss:$8 sps:$4 sm:$0xff]  }
  0x28   : > { %785 = vmatpush1.bf16.msra.mxu0 %v2038_v13  ;;  %2002 = vmatpush1.bf16.msra.mxu1 %v2038_v13  ;;  %v2134_v13 = vld [vmem:[%s2218_s28 + $0xf0] ss:$8 sps:$4 sm:$0xff]  }
  0x29   : > { %786 = vmatprep.subr.bf16.mxu0 %v2160_v1  ;;  %1993 = vmatprep.subr.bf16.mxu1 %v2160_v1  ;;  %v2116_v1 = vld [vmem:[%s2218_s28 + $0xc0] ss:$8 sps:$4 sm:$0xff]  }
  0x2c   : > { %787 = vmatpush1.bf16.msra.mxu0 %v766_v16  ;;  %2003 = vmatpush1.bf16.msra.mxu1 %v766_v16 }
  0x2f   : > { %801 = vmatmul.mubr.bf16.vlgmr.msra.gmra.mrb[0].mxu0 %v2040_v17  ;;  %929 = vmatmul.mubr.bf16.vlgmr.msra.gmra.mrb[0].mxu1 %v2043_v18 }
  0x30   : > { %1631 = vmatprep.mubr.msk.bf16.mxu0 %vm664_vm0, %v2046_v19  ;;  %1647 = vmatprep.mubr.msk.bf16.mxu1 %vm664_vm0, %v2048_v20 }
  0x37   : > { %809 = vmatmul.mubr.bf16.gmra.mrb[4].mxu0 %v2050_v21  ;;  %937 = vmatmul.mubr.bf16.gmra.mrb[4].mxu1 %v2051_v22 }
  0x38   : > { %1632 = vmatprep.mubr.msk.bf16.mxu0 %vm664_vm0, %v2052_v23  ;;  %1648 = vmatprep.mubr.msk.bf16.mxu1 %vm664_vm0, %v2054_v24 }
  0x3f   : > { %817 = vmatmul.mubr.bf16.gmra.mrb[8].mxu0 %v2056_v25  ;;  %945 = vmatmul.mubr.bf16.gmra.mrb[8].mxu1 %v2057_v26 }
  0x40   : > { %1633 = vmatprep.mubr.msk.bf16.mxu0 %vm664_vm0, %v2058_v27  ;;  %1649 = vmatprep.mubr.msk.bf16.mxu1 %vm664_vm0, %v2060_v28 }
  0x47   : > { %825 = vmatmul.mubr.bf16.gmra.mrb[12].mxu0 %v2062_v29  ;;  %953 = vmatmul.mubr.bf16.gmra.mrb[12].mxu1 %v2063_v30 }
  0x48   : > { %1634 = vmatprep.mubr.msk.bf16.mxu0 %vm664_vm0, %v2064_v31  ;;  %1650 = vmatprep.mubr.msk.bf16.mxu1 %vm664_vm0, %v2066_v32 }
  0x4f   : > { %833 = vmatmul.mubr.bf16.gmra.mrb[16].mxu0 %v2068_v33  ;;  %961 = vmatmul.mubr.bf16.gmra.mrb[16].mxu1 %v2069_v34 }
  0x50   : > { %1635 = vmatprep.mubr.msk.bf16.mxu0 %vm664_vm0, %v2070_v35  ;;  %1651 = vmatprep.mubr.msk.bf16.mxu1 %vm664_vm0, %v2072_v36 }
  0x57   : > { %841 = vmatmul.mubr.bf16.gmra.mrb[20].mxu0 %v2074_v37  ;;  %969 = vmatmul.mubr.bf16.gmra.mrb[20].mxu1 %v2075_v38 }
  0x58   : > { %1636 = vmatprep.mubr.msk.bf16.mxu0 %vm664_vm0, %v2076_v39  ;;  %1652 = vmatprep.mubr.msk.bf16.mxu1 %vm664_vm0, %v2078_v40 }
  0x5f   : > { %849 = vmatmul.mubr.bf16.gmra.mrb[24].mxu0 %v2080_v41  ;;  %977 = vmatmul.mubr.bf16.gmra.mrb[24].mxu1 %v2081_v42 }
  0x60   : > { %1637 = vmatprep.mubr.msk.bf16.mxu0 %vm664_vm0, %v2082_v43  ;;  %1653 = vmatprep.mubr.msk.bf16.mxu1 %vm664_vm0, %v2084_v44 }
  0x67   : > { %857 = vmatmul.mubr.bf16.gmra.mrb[28].mxu0 %v2086_v45  ;;  %985 = vmatmul.mubr.bf16.gmra.mrb[28].mxu1 %v2087_v46 }
  0x68   : > { %1638 = vmatprep.mubr.msk.bf16.mxu0 %vm664_vm0, %v2088_v47  ;;  %1654 = vmatprep.mubr.msk.bf16.mxu1 %vm664_vm0, %v2090_v48 }
  0x6f   : > { %865 = vmatmul.mubr.bf16.gmra.mrb[32].mxu0 %v2092_v49  ;;  %993 = vmatmul.mubr.bf16.gmra.mrb[32].mxu1 %v2093_v50 }
  0x70   : > { %1639 = vmatprep.mubr.msk.bf16.mxu0 %vm664_vm0, %v2094_v51  ;;  %1655 = vmatprep.mubr.msk.bf16.mxu1 %vm664_vm0, %v2096_v52 }
  0x77   : > { %873 = vmatmul.mubr.bf16.gmra.mrb[36].mxu0 %v2098_v53  ;;  %1001 = vmatmul.mubr.bf16.gmra.mrb[36].mxu1 %v2099_v54 }
  0x78   : > { %1640 = vmatprep.mubr.msk.bf16.mxu0 %vm664_vm0, %v2100_v55  ;;  %1656 = vmatprep.mubr.msk.bf16.mxu1 %vm664_vm0, %v2102_v56 }
  0x7f   : > { %881 = vmatmul.mubr.bf16.gmra.mrb[40].mxu0 %v2104_v57  ;;  %1009 = vmatmul.mubr.bf16.gmra.mrb[40].mxu1 %v2105_v58 }
  0x80   : > { %1641 = vmatprep.mubr.msk.bf16.mxu0 %vm664_vm0, %v2106_v59  ;;  %1657 = vmatprep.mubr.msk.bf16.mxu1 %vm664_vm0, %v2108_v60 }
  0x87   : > { %889 = vmatmul.mubr.bf16.gmra.mrb[44].mxu0 %v2110_v61  ;;  %1017 = vmatmul.mubr.bf16.gmra.mrb[44].mxu1 %v2111_v62 }
  0x88   : > { %1642 = vmatprep.mubr.msk.bf16.mxu0 %vm664_vm0, %v2112_v63  ;;  %1658 = vmatprep.mubr.msk.bf16.mxu1 %vm664_vm0, %v2114_v0 }
  0x8f   : > { %897 = vmatmul.mubr.bf16.gmra.mrb[48].mxu0 %v2116_v1  ;;  %1025 = vmatmul.mubr.bf16.gmra.mrb[48].mxu1 %v2117_v2 }
  0x90   : > { %1643 = vmatprep.mubr.msk.bf16.mxu0 %vm664_vm0, %v2118_v3  ;;  %1659 = vmatprep.mubr.msk.bf16.mxu1 %vm664_vm0, %v2120_v4 }
  0x97   : > { %905 = vmatmul.mubr.bf16.gmra.mrb[52].mxu0 %v2122_v5  ;;  %1033 = vmatmul.mubr.bf16.gmra.mrb[52].mxu1 %v2123_v6 }
  0x98   : > { %1644 = vmatprep.mubr.msk.bf16.mxu0 %vm664_vm0, %v2124_v7  ;;  %1660 = vmatprep.mubr.msk.bf16.mxu1 %vm664_vm0, %v2126_v8 }
  0x9f   : > { %913 = vmatmul.mubr.bf16.gmra.mrb[56].mxu0 %v2128_v9  ;;  %1041 = vmatmul.mubr.bf16.gmra.mrb[56].mxu1 %v2129_v10 }
  0xa0   : > { %1645 = vmatprep.mubr.msk.bf16.mxu0 %vm664_vm0, %v2130_v11  ;;  %1661 = vmatprep.mubr.msk.bf16.mxu1 %vm664_vm0, %v2132_v12 }
  0xa7   : > { %921 = vmatmul.mubr.bf16.gmra.mrb[60].mxu0 %v2134_v13  ;;  %1049 = vmatmul.mubr.bf16.gmra.mrb[60].mxu1 %v2135_v14 }
 0x102   : > { %v802_v16 = vpop.f32.mrb[0].mxu0  ;;  %v930_v17 = vpop.f32.mrb[0].mxu1 }
 0x103   : > { %v803_v18 = vadd.f32 %v2337_v15, %v802_v16  ;;  %v931_v19 = vadd.f32 %v2337_v15, %v930_v17  ;;  %v804_v20 = vpop.f32.mrb[1].mxu0  ;;  %v932_v21 = vpop.f32.mrb[1].mxu1 }
 0x104   : > { %v805_v22 = vpop.f32.mrb[2].mxu0  ;;  %v933_v23 = vpop.f32.mrb[2].mxu1 }
 0x105   : > { %v806_v24 = vadd.f32 %v2337_v15, %v805_v22  ;;  %v934_v25 = vadd.f32 %v2337_v15, %v933_v23  ;;  %v807_v26 = vpop.f32.mrb[3].mxu0  ;;  %v935_v27 = vpop.f32.mrb[3].mxu1  ;;  %v1057_v28 = vmax.f32 %v803_v18, 0.0  ;;  %v1089_v29 = vmax.f32 %v931_v19, 0.0 }
 0x107   : > { %v1058_v30 = vmax.f32 %v806_v24, 0.0  ;;  %v1090_v31 = vmax.f32 %v934_v25, 0.0 }
 0x109   : > { %v1796_v32 = vpack.c.bf16 %v1058_v30, %v1057_v28  ;;  %v1876_v33 = vpack.c.bf16 %v1090_v31, %v1089_v29 }
 0x10a   : > { %v810_v34 = vpop.f32.mrb[4].mxu0  ;;  %v938_v35 = vpop.f32.mrb[4].mxu1 }
 0x10b   : > { %1797 = vst [vmem:[%s2347_s23] sm:$0xff] %v1796_v32   ;;  %1968 = vst [vmem:[%s2347_s23 + $0x80] sm:$0xff] %v1876_v33   ;;  %v811_v36 = vadd.f32 %v2337_v15, %v810_v34  ;;  %v939_v37 = vadd.f32 %v2337_v15, %v938_v35  ;;  %v812_v38 = vpop.f32.mrb[5].mxu0  ;;  %v940_v39 = vpop.f32.mrb[5].mxu1 }
 0x10c   : > { %v813_v40 = vpop.f32.mrb[6].mxu0  ;;  %v941_v41 = vpop.f32.mrb[6].mxu1 }
 0x10d   : > { %v814_v42 = vadd.f32 %v2337_v15, %v813_v40  ;;  %v942_v43 = vadd.f32 %v2337_v15, %v941_v41  ;;  %v815_v44 = vpop.f32.mrb[7].mxu0  ;;  %v943_v45 = vpop.f32.mrb[7].mxu1  ;;  %v1059_v46 = vmax.f32 %v811_v36, 0.0  ;;  %v1091_v47 = vmax.f32 %v939_v37, 0.0 }
 0x10f   : > { %v1060_v48 = vmax.f32 %v814_v42, 0.0  ;;  %v1092_v49 = vmax.f32 %v942_v43, 0.0 }
 0x111   : > { %v1801_v50 = vpack.c.bf16 %v1060_v48, %v1059_v46  ;;  %v1881_v51 = vpack.c.bf16 %v1092_v49, %v1091_v47 }
 0x112   : > { %v818_v52 = vpop.f32.mrb[8].mxu0  ;;  %v946_v53 = vpop.f32.mrb[8].mxu1 }
 0x113   : > { %1953 = vst [vmem:[%s2347_s23 + $0x8] sm:$0xff] %v1801_v50   ;;  %1969 = vst [vmem:[%s2347_s23 + $0x88] sm:$0xff] %v1881_v51   ;;  %v819_v54 = vadd.f32 %v2337_v15, %v818_v52  ;;  %v947_v55 = vadd.f32 %v2337_v15, %v946_v53  ;;  %v820_v56 = vpop.f32.mrb[9].mxu0  ;;  %v948_v57 = vpop.f32.mrb[9].mxu1 }
 0x114   : > { %v821_v58 = vpop.f32.mrb[10].mxu0  ;;  %v949_v59 = vpop.f32.mrb[10].mxu1 }
 0x115   : > { %v822_v60 = vadd.f32 %v2337_v15, %v821_v58  ;;  %v950_v61 = vadd.f32 %v2337_v15, %v949_v59  ;;  %v823_v62 = vpop.f32.mrb[11].mxu0  ;;  %v951_v63 = vpop.f32.mrb[11].mxu1  ;;  %v1061_v0 = vmax.f32 %v819_v54, 0.0  ;;  %v1093_v1 = vmax.f32 %v947_v55, 0.0 }
 0x117   : > { %v1062_v2 = vmax.f32 %v822_v60, 0.0  ;;  %v1094_v3 = vmax.f32 %v950_v61, 0.0 }
 0x119   : > { %v1806_v4 = vpack.c.bf16 %v1062_v2, %v1061_v0  ;;  %v1886_v5 = vpack.c.bf16 %v1094_v3, %v1093_v1 }
 0x11a   : > { %v826_v6 = vpop.f32.mrb[12].mxu0  ;;  %v954_v7 = vpop.f32.mrb[12].mxu1 }
 0x11b   : > { %1954 = vst [vmem:[%s2347_s23 + $0x10] sm:$0xff] %v1806_v4   ;;  %1970 = vst [vmem:[%s2347_s23 + $0x90] sm:$0xff] %v1886_v5   ;;  %v827_v8 = vadd.f32 %v2337_v15, %v826_v6  ;;  %v955_v9 = vadd.f32 %v2337_v15, %v954_v7  ;;  %v828_v10 = vpop.f32.mrb[13].mxu0  ;;  %v956_v11 = vpop.f32.mrb[13].mxu1 }
 0x11c   : > { %v829_v12 = vpop.f32.mrb[14].mxu0  ;;  %v957_v13 = vpop.f32.mrb[14].mxu1 }
 0x11d   : > { %v830_v14 = vadd.f32 %v2337_v15, %v829_v12  ;;  %v958_v16 = vadd.f32 %v2337_v15, %v957_v13  ;;  %v831_v17 = vpop.f32.mrb[15].mxu0  ;;  %v959_v18 = vpop.f32.mrb[15].mxu1  ;;  %v1063_v19 = vmax.f32 %v827_v8, 0.0  ;;  %v1095_v20 = vmax.f32 %v955_v9, 0.0 }
 0x11f   : > { %v1064_v21 = vmax.f32 %v830_v14, 0.0  ;;  %v1096_v22 = vmax.f32 %v958_v16, 0.0 }
 0x121   : > { %v1811_v23 = vpack.c.bf16 %v1064_v21, %v1063_v19  ;;  %v1891_v24 = vpack.c.bf16 %v1096_v22, %v1095_v20 }
 0x122   : > { %v834_v25 = vpop.f32.mrb[16].mxu0  ;;  %v962_v26 = vpop.f32.mrb[16].mxu1 }
 0x123   : > { %1955 = vst [vmem:[%s2347_s23 + $0x18] sm:$0xff] %v1811_v23   ;;  %1971 = vst [vmem:[%s2347_s23 + $0x98] sm:$0xff] %v1891_v24   ;;  %v835_v27 = vadd.f32 %v2337_v15, %v834_v25  ;;  %v963_v28 = vadd.f32 %v2337_v15, %v962_v26  ;;  %v836_v29 = vpop.f32.mrb[17].mxu0  ;;  %v964_v30 = vpop.f32.mrb[17].mxu1 }
 0x124   : > { %v837_v31 = vpop.f32.mrb[18].mxu0  ;;  %v965_v32 = vpop.f32.mrb[18].mxu1 }
 0x125   : > { %v838_v33 = vadd.f32 %v2337_v15, %v837_v31  ;;  %v966_v34 = vadd.f32 %v2337_v15, %v965_v32  ;;  %v839_v35 = vpop.f32.mrb[19].mxu0  ;;  %v967_v36 = vpop.f32.mrb[19].mxu1  ;;  %v1065_v37 = vmax.f32 %v835_v27, 0.0  ;;  %v1097_v38 = vmax.f32 %v963_v28, 0.0 }
 0x127   : > { %v1066_v39 = vmax.f32 %v838_v33, 0.0  ;;  %v1098_v40 = vmax.f32 %v966_v34, 0.0 }
 0x129   : > { %v1816_v41 = vpack.c.bf16 %v1066_v39, %v1065_v37  ;;  %v1896_v42 = vpack.c.bf16 %v1098_v40, %v1097_v38 }
 0x12a   : > { %v842_v43 = vpop.f32.mrb[20].mxu0  ;;  %v970_v44 = vpop.f32.mrb[20].mxu1 }
 0x12b   : > { %1956 = vst [vmem:[%s2347_s23 + $0x20] sm:$0xff] %v1816_v41   ;;  %1972 = vst [vmem:[%s2347_s23 + $0xa0] sm:$0xff] %v1896_v42   ;;  %v843_v45 = vadd.f32 %v2337_v15, %v842_v43  ;;  %v971_v46 = vadd.f32 %v2337_v15, %v970_v44  ;;  %v844_v47 = vpop.f32.mrb[21].mxu0  ;;  %v972_v48 = vpop.f32.mrb[21].mxu1 }
 0x12c   : > { %v845_v49 = vpop.f32.mrb[22].mxu0  ;;  %v973_v50 = vpop.f32.mrb[22].mxu1 }
 0x12d   : > { %v846_v51 = vadd.f32 %v2337_v15, %v845_v49  ;;  %v974_v52 = vadd.f32 %v2337_v15, %v973_v50  ;;  %v847_v53 = vpop.f32.mrb[23].mxu0  ;;  %v975_v54 = vpop.f32.mrb[23].mxu1  ;;  %v1067_v55 = vmax.f32 %v843_v45, 0.0  ;;  %v1099_v56 = vmax.f32 %v971_v46, 0.0 }
 0x12f   : > { %v1068_v57 = vmax.f32 %v846_v51, 0.0  ;;  %v1100_v58 = vmax.f32 %v974_v52, 0.0 }
 0x131   : > { %v1821_v59 = vpack.c.bf16 %v1068_v57, %v1067_v55  ;;  %v1901_v60 = vpack.c.bf16 %v1100_v58, %v1099_v56 }
 0x132   : > { %v850_v61 = vpop.f32.mrb[24].mxu0  ;;  %v978_v62 = vpop.f32.mrb[24].mxu1 }
 0x133   : > { %1957 = vst [vmem:[%s2347_s23 + $0x28] sm:$0xff] %v1821_v59   ;;  %1973 = vst [vmem:[%s2347_s23 + $0xa8] sm:$0xff] %v1901_v60   ;;  %v851_v63 = vadd.f32 %v2337_v15, %v850_v61  ;;  %v979_v0 = vadd.f32 %v2337_v15, %v978_v62  ;;  %v852_v1 = vpop.f32.mrb[25].mxu0  ;;  %v980_v2 = vpop.f32.mrb[25].mxu1 }
 0x134   : > { %v853_v3 = vpop.f32.mrb[26].mxu0  ;;  %v981_v4 = vpop.f32.mrb[26].mxu1 }
 0x135   : > { %v854_v5 = vadd.f32 %v2337_v15, %v853_v3  ;;  %v982_v6 = vadd.f32 %v2337_v15, %v981_v4  ;;  %v855_v7 = vpop.f32.mrb[27].mxu0  ;;  %v983_v8 = vpop.f32.mrb[27].mxu1  ;;  %v1069_v9 = vmax.f32 %v851_v63, 0.0  ;;  %v1101_v10 = vmax.f32 %v979_v0, 0.0 }
 0x137   : > { %v1070_v11 = vmax.f32 %v854_v5, 0.0  ;;  %v1102_v12 = vmax.f32 %v982_v6, 0.0 }
 0x139   : > { %v1826_v13 = vpack.c.bf16 %v1070_v11, %v1069_v9  ;;  %v1906_v14 = vpack.c.bf16 %v1102_v12, %v1101_v10 }
 0x13a   : > { %v858_v16 = vpop.f32.mrb[28].mxu0  ;;  %v986_v17 = vpop.f32.mrb[28].mxu1 }
 0x13b   : > { %1958 = vst [vmem:[%s2347_s23 + $0x30] sm:$0xff] %v1826_v13   ;;  %1974 = vst [vmem:[%s2347_s23 + $0xb0] sm:$0xff] %v1906_v14   ;;  %v859_v18 = vadd.f32 %v2337_v15, %v858_v16  ;;  %v987_v19 = vadd.f32 %v2337_v15, %v986_v17  ;;  %v860_v20 = vpop.f32.mrb[29].mxu0  ;;  %v988_v21 = vpop.f32.mrb[29].mxu1 }
 0x13c   : > { %v861_v22 = vpop.f32.mrb[30].mxu0  ;;  %v989_v23 = vpop.f32.mrb[30].mxu1 }
 0x13d   : > { %v862_v24 = vadd.f32 %v2337_v15, %v861_v22  ;;  %v990_v25 = vadd.f32 %v2337_v15, %v989_v23  ;;  %v863_v26 = vpop.f32.mrb[31].mxu0  ;;  %v991_v27 = vpop.f32.mrb[31].mxu1  ;;  %v1071_v28 = vmax.f32 %v859_v18, 0.0  ;;  %v1103_v29 = vmax.f32 %v987_v19, 0.0 }
 0x13f   : > { %v1072_v30 = vmax.f32 %v862_v24, 0.0  ;;  %v1104_v31 = vmax.f32 %v990_v25, 0.0 }
 0x141   : > { %v1831_v32 = vpack.c.bf16 %v1072_v30, %v1071_v28  ;;  %v1911_v33 = vpack.c.bf16 %v1104_v31, %v1103_v29 }
 0x142   : > { %v866_v34 = vpop.f32.mrb[32].mxu0  ;;  %v994_v35 = vpop.f32.mrb[32].mxu1 }
 0x143   : > { %1959 = vst [vmem:[%s2347_s23 + $0x38] sm:$0xff] %v1831_v32   ;;  %1975 = vst [vmem:[%s2347_s23 + $0xb8] sm:$0xff] %v1911_v33   ;;  %v867_v36 = vadd.f32 %v2337_v15, %v866_v34  ;;  %v995_v37 = vadd.f32 %v2337_v15, %v994_v35  ;;  %v868_v38 = vpop.f32.mrb[33].mxu0  ;;  %v996_v39 = vpop.f32.mrb[33].mxu1 }
 0x144   : > { %v869_v40 = vpop.f32.mrb[34].mxu0  ;;  %v997_v41 = vpop.f32.mrb[34].mxu1 }
 0x145   : > { %v870_v42 = vadd.f32 %v2337_v15, %v869_v40  ;;  %v998_v43 = vadd.f32 %v2337_v15, %v997_v41  ;;  %v871_v44 = vpop.f32.mrb[35].mxu0  ;;  %v999_v45 = vpop.f32.mrb[35].mxu1  ;;  %v1073_v46 = vmax.f32 %v867_v36, 0.0  ;;  %v1105_v47 = vmax.f32 %v995_v37, 0.0 }
 0x147   : > { %v1074_v48 = vmax.f32 %v870_v42, 0.0  ;;  %v1106_v49 = vmax.f32 %v998_v43, 0.0 }
 0x149   : > { %v1836_v50 = vpack.c.bf16 %v1074_v48, %v1073_v46  ;;  %v1916_v51 = vpack.c.bf16 %v1106_v49, %v1105_v47 }
 0x14a   : > { %v874_v52 = vpop.f32.mrb[36].mxu0  ;;  %v1002_v53 = vpop.f32.mrb[36].mxu1 }
 0x14b   : > { %1960 = vst [vmem:[%s2347_s23 + $0x40] sm:$0xff] %v1836_v50   ;;  %1976 = vst [vmem:[%s2347_s23 + $0xc0] sm:$0xff] %v1916_v51   ;;  %v875_v54 = vadd.f32 %v2337_v15, %v874_v52  ;;  %v1003_v55 = vadd.f32 %v2337_v15, %v1002_v53  ;;  %v876_v56 = vpop.f32.mrb[37].mxu0  ;;  %v1004_v57 = vpop.f32.mrb[37].mxu1 }
 0x14c   : > { %v877_v58 = vpop.f32.mrb[38].mxu0  ;;  %v1005_v59 = vpop.f32.mrb[38].mxu1 }
 0x14d   : > { %v878_v60 = vadd.f32 %v2337_v15, %v877_v58  ;;  %v1006_v61 = vadd.f32 %v2337_v15, %v1005_v59  ;;  %v879_v62 = vpop.f32.mrb[39].mxu0  ;;  %v1007_v63 = vpop.f32.mrb[39].mxu1  ;;  %v1075_v0 = vmax.f32 %v875_v54, 0.0  ;;  %v1107_v1 = vmax.f32 %v1003_v55, 0.0 }
 0x14f   : > { %v1076_v2 = vmax.f32 %v878_v60, 0.0  ;;  %v1108_v3 = vmax.f32 %v1006_v61, 0.0 }
 0x151   : > { %v1841_v4 = vpack.c.bf16 %v1076_v2, %v1075_v0  ;;  %v1921_v5 = vpack.c.bf16 %v1108_v3, %v1107_v1 }
 0x152   : > { %v882_v6 = vpop.f32.mrb[40].mxu0  ;;  %v1010_v7 = vpop.f32.mrb[40].mxu1 }
 0x153   : > { %1961 = vst [vmem:[%s2347_s23 + $0x48] sm:$0xff] %v1841_v4   ;;  %1977 = vst [vmem:[%s2347_s23 + $0xc8] sm:$0xff] %v1921_v5   ;;  %v883_v8 = vadd.f32 %v2337_v15, %v882_v6  ;;  %v1011_v9 = vadd.f32 %v2337_v15, %v1010_v7  ;;  %v884_v10 = vpop.f32.mrb[41].mxu0  ;;  %v1012_v11 = vpop.f32.mrb[41].mxu1 }
 0x154   : > { %v885_v12 = vpop.f32.mrb[42].mxu0  ;;  %v1013_v13 = vpop.f32.mrb[42].mxu1 }
 0x155   : > { %v886_v14 = vadd.f32 %v2337_v15, %v885_v12  ;;  %v1014_v16 = vadd.f32 %v2337_v15, %v1013_v13  ;;  %v887_v17 = vpop.f32.mrb[43].mxu0  ;;  %v1015_v18 = vpop.f32.mrb[43].mxu1  ;;  %v1077_v19 = vmax.f32 %v883_v8, 0.0  ;;  %v1109_v20 = vmax.f32 %v1011_v9, 0.0 }
 0x157   : > { %v1078_v21 = vmax.f32 %v886_v14, 0.0  ;;  %v1110_v22 = vmax.f32 %v1014_v16, 0.0 }
 0x159   : > { %v1846_v23 = vpack.c.bf16 %v1078_v21, %v1077_v19  ;;  %v1926_v24 = vpack.c.bf16 %v1110_v22, %v1109_v20 }
 0x15a   : > { %v890_v25 = vpop.f32.mrb[44].mxu0  ;;  %v1018_v26 = vpop.f32.mrb[44].mxu1 }
 0x15b   : > { %1962 = vst [vmem:[%s2347_s23 + $0x50] sm:$0xff] %v1846_v23   ;;  %1978 = vst [vmem:[%s2347_s23 + $0xd0] sm:$0xff] %v1926_v24   ;;  %v891_v27 = vadd.f32 %v2337_v15, %v890_v25  ;;  %v1019_v28 = vadd.f32 %v2337_v15, %v1018_v26  ;;  %v892_v29 = vpop.f32.mrb[45].mxu0  ;;  %v1020_v30 = vpop.f32.mrb[45].mxu1 }
 0x15c   : > { %v893_v31 = vpop.f32.mrb[46].mxu0  ;;  %v1021_v32 = vpop.f32.mrb[46].mxu1 }
 0x15d   : > { %v894_v33 = vadd.f32 %v2337_v15, %v893_v31  ;;  %v1022_v34 = vadd.f32 %v2337_v15, %v1021_v32  ;;  %v895_v35 = vpop.f32.mrb[47].mxu0  ;;  %v1023_v36 = vpop.f32.mrb[47].mxu1  ;;  %v1079_v37 = vmax.f32 %v891_v27, 0.0  ;;  %v1111_v38 = vmax.f32 %v1019_v28, 0.0 }
 0x15f   : > { %v1080_v39 = vmax.f32 %v894_v33, 0.0  ;;  %v1112_v40 = vmax.f32 %v1022_v34, 0.0 }
 0x161   : > { %v1851_v41 = vpack.c.bf16 %v1080_v39, %v1079_v37  ;;  %v1931_v42 = vpack.c.bf16 %v1112_v40, %v1111_v38 }
 0x162   : > { %v898_v43 = vpop.f32.mrb[48].mxu0  ;;  %v1026_v44 = vpop.f32.mrb[48].mxu1 }
 0x163   : > { %1963 = vst [vmem:[%s2347_s23 + $0x58] sm:$0xff] %v1851_v41   ;;  %1979 = vst [vmem:[%s2347_s23 + $0xd8] sm:$0xff] %v1931_v42   ;;  %v899_v45 = vadd.f32 %v2337_v15, %v898_v43  ;;  %v1027_v46 = vadd.f32 %v2337_v15, %v1026_v44  ;;  %v900_v47 = vpop.f32.mrb[49].mxu0  ;;  %v1028_v48 = vpop.f32.mrb[49].mxu1 }
 0x164   : > { %v901_v49 = vpop.f32.mrb[50].mxu0  ;;  %v1029_v50 = vpop.f32.mrb[50].mxu1 }
 0x165   : > { %v902_v51 = vadd.f32 %v2337_v15, %v901_v49  ;;  %v1030_v52 = vadd.f32 %v2337_v15, %v1029_v50  ;;  %v903_v53 = vpop.f32.mrb[51].mxu0  ;;  %v1031_v54 = vpop.f32.mrb[51].mxu1  ;;  %v1081_v55 = vmax.f32 %v899_v45, 0.0  ;;  %v1113_v56 = vmax.f32 %v1027_v46, 0.0 }
 0x167   : > { %v1082_v57 = vmax.f32 %v902_v51, 0.0  ;;  %v1114_v58 = vmax.f32 %v1030_v52, 0.0 }
 0x169   : > { %v1856_v59 = vpack.c.bf16 %v1082_v57, %v1081_v55  ;;  %v1936_v60 = vpack.c.bf16 %v1114_v58, %v1113_v56 }
 0x16a   : > { %v906_v61 = vpop.f32.mrb[52].mxu0  ;;  %v1034_v62 = vpop.f32.mrb[52].mxu1 }
 0x16b   : > { %1964 = vst [vmem:[%s2347_s23 + $0x60] sm:$0xff] %v1856_v59   ;;  %1980 = vst [vmem:[%s2347_s23 + $0xe0] sm:$0xff] %v1936_v60   ;;  %v907_v63 = vadd.f32 %v2337_v15, %v906_v61  ;;  %v1035_v0 = vadd.f32 %v2337_v15, %v1034_v62  ;;  %v908_v1 = vpop.f32.mrb[53].mxu0  ;;  %v1036_v2 = vpop.f32.mrb[53].mxu1 }
 0x16c   : > { %v909_v3 = vpop.f32.mrb[54].mxu0  ;;  %v1037_v4 = vpop.f32.mrb[54].mxu1 }
 0x16d   : > { %v910_v5 = vadd.f32 %v2337_v15, %v909_v3  ;;  %v1038_v6 = vadd.f32 %v2337_v15, %v1037_v4  ;;  %v911_v7 = vpop.f32.mrb[55].mxu0  ;;  %v1039_v8 = vpop.f32.mrb[55].mxu1  ;;  %v1083_v9 = vmax.f32 %v907_v63, 0.0  ;;  %v1115_v10 = vmax.f32 %v1035_v0, 0.0 }
 0x16f   : > { %v1084_v11 = vmax.f32 %v910_v5, 0.0  ;;  %v1116_v12 = vmax.f32 %v1038_v6, 0.0 }
 0x171   : > { %v1861_v13 = vpack.c.bf16 %v1084_v11, %v1083_v9  ;;  %v1941_v14 = vpack.c.bf16 %v1116_v12, %v1115_v10 }
 0x172   : > { %v914_v16 = vpop.f32.mrb[56].mxu0  ;;  %v1042_v17 = vpop.f32.mrb[56].mxu1 }
 0x173   : > { %1965 = vst [vmem:[%s2347_s23 + $0x68] sm:$0xff] %v1861_v13   ;;  %1981 = vst [vmem:[%s2347_s23 + $0xe8] sm:$0xff] %v1941_v14   ;;  %v915_v18 = vadd.f32 %v2337_v15, %v914_v16  ;;  %v1043_v19 = vadd.f32 %v2337_v15, %v1042_v17  ;;  %v916_v20 = vpop.f32.mrb[57].mxu0  ;;  %v1044_v21 = vpop.f32.mrb[57].mxu1 }
 0x174   : > { %v917_v22 = vpop.f32.mrb[58].mxu0  ;;  %v1045_v23 = vpop.f32.mrb[58].mxu1 }
 0x175   : > { %v918_v24 = vadd.f32 %v2337_v15, %v917_v22  ;;  %v1046_v25 = vadd.f32 %v2337_v15, %v1045_v23  ;;  %v919_v26 = vpop.f32.mrb[59].mxu0  ;;  %v1047_v27 = vpop.f32.mrb[59].mxu1  ;;  %v1085_v28 = vmax.f32 %v915_v18, 0.0  ;;  %v1117_v29 = vmax.f32 %v1043_v19, 0.0 }
 0x177   : > { %v1086_v30 = vmax.f32 %v918_v24, 0.0  ;;  %v1118_v31 = vmax.f32 %v1046_v25, 0.0 }
 0x179   : > { %v1866_v32 = vpack.c.bf16 %v1086_v30, %v1085_v28  ;;  %v1946_v33 = vpack.c.bf16 %v1118_v31, %v1117_v29 }
 0x17a   : > { %v922_v34 = vpop.f32.mrb[60].mxu0  ;;  %v1050_v35 = vpop.f32.mrb[60].mxu1 }
 0x17b   : > { %1966 = vst [vmem:[%s2347_s23 + $0x70] sm:$0xff] %v1866_v32   ;;  %1982 = vst [vmem:[%s2347_s23 + $0xf0] sm:$0xff] %v1946_v33   ;;  %v923_v36 = vadd.f32 %v2337_v15, %v922_v34  ;;  %v1051_v37 = vadd.f32 %v2337_v15, %v1050_v35  ;;  %v924_v38 = vpop.f32.mrb[61].mxu0  ;;  %v1052_v39 = vpop.f32.mrb[61].mxu1 }
 0x17c   : > { %v925_v40 = vpop.f32.mrb[62].mxu0  ;;  %v1053_v41 = vpop.f32.mrb[62].mxu1 }
 0x17d   : > { %v926_v42 = vadd.f32 %v2337_v15, %v925_v40  ;;  %v1054_v43 = vadd.f32 %v2337_v15, %v1053_v41  ;;  %v927_v44 = vpop.f32.mrb[63].mxu0  ;;  %v1055_v45 = vpop.f32.mrb[63].mxu1  ;;  %v1087_v46 = vmax.f32 %v923_v36, 0.0  ;;  %v1119_v47 = vmax.f32 %v1051_v37, 0.0 }
 0x17f   : > { %v1088_v48 = vmax.f32 %v926_v42, 0.0  ;;  %v1120_v49 = vmax.f32 %v1054_v43, 0.0 }
 0x181   : > { %v1871_v50 = vpack.c.bf16 %v1088_v48, %v1087_v46  ;;  %v1951_v51 = vpack.c.bf16 %v1120_v49, %v1119_v47 }
 0x183   : > { %1967 = vst [vmem:[%s2347_s23 + $0x78] sm:$0xff] %v1871_v50   ;;  %1983 = vst [vmem:[%s2347_s23 + $0xf8] sm:$0xff] %v1951_v51  }
 0x184 PF: > { %s13_s14 = sadd.s32 1, %s2158_s14   ;;  %s2454_s12 = smov %s2154_s13 }
 0x185   : > { %p10_p5 = scmp.ge.s32.totalorder %s13_s14, 6   ;;  %s2455_s13 = smov %s2457_s15 }
 0x187   :  { %12 = sbr.rel (!%p10_p5) target bundleno = 2 (0x2), region = 68 }

// kernel: model_wrapper_forward.13
= control target key start
LH: loop header
LB: loop body
LE: loop exit
PB: predicated region body
PF: predicated region fallthrough
CT: control target
= control target key end

     0   :  { %s614_s0 = inlined_call_operand.vmem [shape: bf16[32,2048], index: 0, kind: input, shape index: {}]   ;;  %s615_s1 = inlined_call_operand.vmem [shape: bf16[32,2048], index: 1, kind: input, shape index: {}]   ;;  %s616_s2 = inlined_call_operand.vmem [shape: bf16[32,2048], index: 2, kind: input, shape index: {}]   ;;  %s617_s3 = inlined_call_operand.vmem [shape: bf16[32,2048], index: 3, kind: output, shape index: {}]  }
   0x1   :  { %v14_v0 = vld [vmem:[%s614_s0] sm:$0xff]  ;;  %v15_v4 = vld [vmem:[%s614_s0 + $0x8] sm:$0xff]  ;;  %v16_v8 = vld [vmem:[%s614_s0 + $0x10] sm:$0xff] }
   0x2   :  { %v46_v1 = vld [vmem:[%s615_s1] sm:$0xff]  ;;  %v47_v5 = vld [vmem:[%s615_s1 + $0x8] sm:$0xff]  ;;  %v48_v9 = vld [vmem:[%s615_s1 + $0x10] sm:$0xff] }
   0x3   :  { %v78_v2 = vld [vmem:[%s616_s2] sm:$0xff]  ;;  %v79_v6 = vld [vmem:[%s616_s2 + $0x8] sm:$0xff]  ;;  %v80_v10 = vld [vmem:[%s616_s2 + $0x10] sm:$0xff] }
   0x4   :  { %v110_v3 = vmax.bf16 %v78_v2, %v46_v1  ;;  %v111_v7 = vmax.bf16 %v79_v6, %v47_v5  ;;  %v112_v12 = vmax.bf16 %v80_v10, %v48_v9  ;;  %v17_v13 = vld [vmem:[%s614_s0 + $0x18] sm:$0xff]  ;;  %v18_v18 = vld [vmem:[%s614_s0 + $0x20] sm:$0xff]  ;;  %v19_v23 = vld [vmem:[%s614_s0 + $0x28] sm:$0xff] }
   0x5   :  { %v49_v14 = vld [vmem:[%s615_s1 + $0x18] sm:$0xff]  ;;  %v50_v19 = vld [vmem:[%s615_s1 + $0x20] sm:$0xff]  ;;  %v51_v24 = vld [vmem:[%s615_s1 + $0x28] sm:$0xff] }
   0x6   :  { %v142_v11 = vmax.bf16 %v110_v3, %v14_v0  ;;  %v81_v15 = vld [vmem:[%s616_s2 + $0x18] sm:$0xff]  ;;  %v143_v16 = vmax.bf16 %v111_v7, %v15_v4  ;;  %v82_v20 = vld [vmem:[%s616_s2 + $0x20] sm:$0xff]  ;;  %v144_v21 = vmax.bf16 %v112_v12, %v16_v8  ;;  %v83_v25 = vld [vmem:[%s616_s2 + $0x28] sm:$0xff] }
   0x7   :  { %v113_v17 = vmax.bf16 %v81_v15, %v49_v14  ;;  %v114_v22 = vmax.bf16 %v82_v20, %v50_v19  ;;  %v115_v27 = vmax.bf16 %v83_v25, %v51_v24  ;;  %v20_v28 = vld [vmem:[%s614_s0 + $0x30] sm:$0xff]  ;;  %v21_v33 = vld [vmem:[%s614_s0 + $0x38] sm:$0xff]  ;;  %v22_v38 = vld [vmem:[%s614_s0 + $0x40] sm:$0xff] }
   0x8   :  { %174 = vst [vmem:[%s617_s3] sm:$0xff] %v142_v11  ;;  %175 = vst [vmem:[%s617_s3 + $0x8] sm:$0xff] %v143_v16  ;;  %v52_v29 = vld [vmem:[%s615_s1 + $0x30] sm:$0xff]  ;;  %v53_v34 = vld [vmem:[%s615_s1 + $0x38] sm:$0xff] }
   0x9   :  { %v145_v26 = vmax.bf16 %v113_v17, %v17_v13  ;;  %v84_v30 = vld [vmem:[%s616_s2 + $0x30] sm:$0xff]  ;;  %176 = vst [vmem:[%s617_s3 + $0x10] sm:$0xff] %v144_v21  ;;  %v146_v31 = vmax.bf16 %v114_v22, %v18_v18  ;;  %v85_v35 = vld [vmem:[%s616_s2 + $0x38] sm:$0xff]  ;;  %v147_v36 = vmax.bf16 %v115_v27, %v19_v23  ;;  %v54_v39 = vld [vmem:[%s615_s1 + $0x40] sm:$0xff] }
   0xa   :  { %v116_v32 = vmax.bf16 %v84_v30, %v52_v29  ;;  %v117_v37 = vmax.bf16 %v85_v35, %v53_v34  ;;  %v86_v40 = vld [vmem:[%s616_s2 + $0x40] sm:$0xff]  ;;  %v23_v43 = vld [vmem:[%s614_s0 + $0x48] sm:$0xff]  ;;  %v24_v48 = vld [vmem:[%s614_s0 + $0x50] sm:$0xff] }
   0xb   :  { %177 = vst [vmem:[%s617_s3 + $0x18] sm:$0xff] %v145_v26  ;;  %178 = vst [vmem:[%s617_s3 + $0x20] sm:$0xff] %v146_v31  ;;  %v118_v42 = vmax.bf16 %v86_v40, %v54_v39  ;;  %v55_v44 = vld [vmem:[%s615_s1 + $0x48] sm:$0xff]  ;;  %v56_v49 = vld [vmem:[%s615_s1 + $0x50] sm:$0xff] }
   0xc   :  { %v148_v41 = vmax.bf16 %v116_v32, %v20_v28  ;;  %v87_v45 = vld [vmem:[%s616_s2 + $0x48] sm:$0xff]  ;;  %179 = vst [vmem:[%s617_s3 + $0x28] sm:$0xff] %v147_v36  ;;  %v149_v46 = vmax.bf16 %v117_v37, %v21_v33  ;;  %v88_v50 = vld [vmem:[%s616_s2 + $0x50] sm:$0xff]  ;;  %v25_v53 = vld [vmem:[%s614_s0 + $0x58] sm:$0xff] }
   0xd   :  { %v119_v47 = vmax.bf16 %v87_v45, %v55_v44  ;;  %v150_v51 = vmax.bf16 %v118_v42, %v22_v38  ;;  %v120_v52 = vmax.bf16 %v88_v50, %v56_v49  ;;  %v57_v54 = vld [vmem:[%s615_s1 + $0x58] sm:$0xff]  ;;  %v26_v58 = vld [vmem:[%s614_s0 + $0x60] sm:$0xff]  ;;  %v27_v63 = vld [vmem:[%s614_s0 + $0x68] sm:$0xff] }
   0xe   :  { %180 = vst [vmem:[%s617_s3 + $0x30] sm:$0xff] %v148_v41  ;;  %v89_v55 = vld [vmem:[%s616_s2 + $0x58] sm:$0xff]  ;;  %181 = vst [vmem:[%s617_s3 + $0x38] sm:$0xff] %v149_v46  ;;  %v58_v59 = vld [vmem:[%s615_s1 + $0x60] sm:$0xff] }
   0xf   :  { %v151_v56 = vmax.bf16 %v119_v47, %v23_v43  ;;  %v121_v57 = vmax.bf16 %v89_v55, %v57_v54  ;;  %v90_v60 = vld [vmem:[%s616_s2 + $0x60] sm:$0xff]  ;;  %182 = vst [vmem:[%s617_s3 + $0x40] sm:$0xff] %v150_v51  ;;  %v152_v61 = vmax.bf16 %v120_v52, %v24_v48  ;;  %v59_v0 = vld [vmem:[%s615_s1 + $0x68] sm:$0xff]  ;;  %v28_v4 = vld [vmem:[%s614_s0 + $0x70] sm:$0xff] }
  0x10   :  { %v122_v62 = vmax.bf16 %v90_v60, %v58_v59  ;;  %v91_v1 = vld [vmem:[%s616_s2 + $0x68] sm:$0xff]  ;;  %v60_v5 = vld [vmem:[%s615_s1 + $0x70] sm:$0xff]  ;;  %v29_v9 = vld [vmem:[%s614_s0 + $0x78] sm:$0xff] }
  0x11   :  { %183 = vst [vmem:[%s617_s3 + $0x48] sm:$0xff] %v151_v56  ;;  %v153_v2 = vmax.bf16 %v121_v57, %v25_v53  ;;  %v123_v3 = vmax.bf16 %v91_v1, %v59_v0  ;;  %v92_v6 = vld [vmem:[%s616_s2 + $0x70] sm:$0xff]  ;;  %184 = vst [vmem:[%s617_s3 + $0x50] sm:$0xff] %v152_v61  ;;  %v61_v10 = vld [vmem:[%s615_s1 + $0x78] sm:$0xff] }
  0x12   :  { %v154_v7 = vmax.bf16 %v122_v62, %v26_v58  ;;  %v124_v8 = vmax.bf16 %v92_v6, %v60_v5  ;;  %v93_v11 = vld [vmem:[%s616_s2 + $0x78] sm:$0xff]  ;;  %v30_v14 = vld [vmem:[%s614_s0 + $0x80] sm:$0xff]  ;;  %v31_v19 = vld [vmem:[%s614_s0 + $0x88] sm:$0xff] }
  0x13   :  { %185 = vst [vmem:[%s617_s3 + $0x58] sm:$0xff] %v153_v2  ;;  %v155_v12 = vmax.bf16 %v123_v3, %v27_v63  ;;  %v125_v13 = vmax.bf16 %v93_v11, %v61_v10  ;;  %v62_v15 = vld [vmem:[%s615_s1 + $0x80] sm:$0xff]  ;;  %v63_v20 = vld [vmem:[%s615_s1 + $0x88] sm:$0xff]  ;;  %v32_v24 = vld [vmem:[%s614_s0 + $0x90] sm:$0xff] }
  0x14   :  { %v94_v16 = vld [vmem:[%s616_s2 + $0x80] sm:$0xff]  ;;  %186 = vst [vmem:[%s617_s3 + $0x60] sm:$0xff] %v154_v7  ;;  %v156_v17 = vmax.bf16 %v124_v8, %v28_v4  ;;  %v95_v21 = vld [vmem:[%s616_s2 + $0x88] sm:$0xff]  ;;  %v64_v25 = vld [vmem:[%s615_s1 + $0x90] sm:$0xff] }
  0x15   :  { %v126_v18 = vmax.bf16 %v94_v16, %v62_v15  ;;  %187 = vst [vmem:[%s617_s3 + $0x68] sm:$0xff] %v155_v12  ;;  %v157_v22 = vmax.bf16 %v125_v13, %v29_v9  ;;  %v127_v23 = vmax.bf16 %v95_v21, %v63_v20  ;;  %v96_v26 = vld [vmem:[%s616_s2 + $0x90] sm:$0xff]  ;;  %v33_v29 = vld [vmem:[%s614_s0 + $0x98] sm:$0xff]  ;;  %v34_v34 = vld [vmem:[%s614_s0 + $0xa0] sm:$0xff] }
  0x16   :  { %188 = vst [vmem:[%s617_s3 + $0x70] sm:$0xff] %v156_v17  ;;  %v128_v28 = vmax.bf16 %v96_v26, %v64_v25  ;;  %v65_v30 = vld [vmem:[%s615_s1 + $0x98] sm:$0xff]  ;;  %v66_v35 = vld [vmem:[%s615_s1 + $0xa0] sm:$0xff]  ;;  %v35_v39 = vld [vmem:[%s614_s0 + $0xa8] sm:$0xff] }
  0x17   :  { %v158_v27 = vmax.bf16 %v126_v18, %v30_v14  ;;  %v97_v31 = vld [vmem:[%s616_s2 + $0x98] sm:$0xff]  ;;  %189 = vst [vmem:[%s617_s3 + $0x78] sm:$0xff] %v157_v22  ;;  %v159_v32 = vmax.bf16 %v127_v23, %v31_v19  ;;  %v98_v36 = vld [vmem:[%s616_s2 + $0xa0] sm:$0xff]  ;;  %v67_v40 = vld [vmem:[%s615_s1 + $0xa8] sm:$0xff] }
  0x18   :  { %v129_v33 = vmax.bf16 %v97_v31, %v65_v30  ;;  %v160_v37 = vmax.bf16 %v128_v28, %v32_v24  ;;  %v130_v38 = vmax.bf16 %v98_v36, %v66_v35  ;;  %v99_v41 = vld [vmem:[%s616_s2 + $0xa8] sm:$0xff]  ;;  %v36_v44 = vld [vmem:[%s614_s0 + $0xb0] sm:$0xff]  ;;  %v37_v49 = vld [vmem:[%s614_s0 + $0xb8] sm:$0xff] }
  0x19   :  { %190 = vst [vmem:[%s617_s3 + $0x80] sm:$0xff] %v158_v27  ;;  %191 = vst [vmem:[%s617_s3 + $0x88] sm:$0xff] %v159_v32  ;;  %v131_v43 = vmax.bf16 %v99_v41, %v67_v40  ;;  %v68_v45 = vld [vmem:[%s615_s1 + $0xb0] sm:$0xff]  ;;  %v69_v50 = vld [vmem:[%s615_s1 + $0xb8] sm:$0xff] }
  0x1a   :  { %v161_v42 = vmax.bf16 %v129_v33, %v33_v29  ;;  %v100_v46 = vld [vmem:[%s616_s2 + $0xb0] sm:$0xff]  ;;  %192 = vst [vmem:[%s617_s3 + $0x90] sm:$0xff] %v160_v37  ;;  %v162_v47 = vmax.bf16 %v130_v38, %v34_v34  ;;  %v101_v51 = vld [vmem:[%s616_s2 + $0xb8] sm:$0xff]  ;;  %v38_v54 = vld [vmem:[%s614_s0 + $0xc0] sm:$0xff] }
  0x1b   :  { %v132_v48 = vmax.bf16 %v100_v46, %v68_v45  ;;  %v163_v52 = vmax.bf16 %v131_v43, %v35_v39  ;;  %v133_v53 = vmax.bf16 %v101_v51, %v69_v50  ;;  %v70_v55 = vld [vmem:[%s615_s1 + $0xc0] sm:$0xff]  ;;  %v39_v59 = vld [vmem:[%s614_s0 + $0xc8] sm:$0xff]  ;;  %v40_v0 = vld [vmem:[%s614_s0 + $0xd0] sm:$0xff] }
  0x1c   :  { %193 = vst [vmem:[%s617_s3 + $0x98] sm:$0xff] %v161_v42  ;;  %v102_v56 = vld [vmem:[%s616_s2 + $0xc0] sm:$0xff]  ;;  %194 = vst [vmem:[%s617_s3 + $0xa0] sm:$0xff] %v162_v47  ;;  %v71_v60 = vld [vmem:[%s615_s1 + $0xc8] sm:$0xff] }
  0x1d   :  { %v164_v57 = vmax.bf16 %v132_v48, %v36_v44  ;;  %v134_v58 = vmax.bf16 %v102_v56, %v70_v55  ;;  %v103_v61 = vld [vmem:[%s616_s2 + $0xc8] sm:$0xff]  ;;  %195 = vst [vmem:[%s617_s3 + $0xa8] sm:$0xff] %v163_v52  ;;  %v165_v62 = vmax.bf16 %v133_v53, %v37_v49  ;;  %v72_v1 = vld [vmem:[%s615_s1 + $0xd0] sm:$0xff]  ;;  %v41_v5 = vld [vmem:[%s614_s0 + $0xd8] sm:$0xff] }
  0x1e   :  { %v135_v63 = vmax.bf16 %v103_v61, %v71_v60  ;;  %v104_v2 = vld [vmem:[%s616_s2 + $0xd0] sm:$0xff]  ;;  %v73_v6 = vld [vmem:[%s615_s1 + $0xd8] sm:$0xff]  ;;  %v42_v10 = vld [vmem:[%s614_s0 + $0xe0] sm:$0xff] }
  0x1f   :  { %196 = vst [vmem:[%s617_s3 + $0xb0] sm:$0xff] %v164_v57  ;;  %v166_v3 = vmax.bf16 %v134_v58, %v38_v54  ;;  %v136_v4 = vmax.bf16 %v104_v2, %v72_v1  ;;  %v105_v7 = vld [vmem:[%s616_s2 + $0xd8] sm:$0xff]  ;;  %197 = vst [vmem:[%s617_s3 + $0xb8] sm:$0xff] %v165_v62  ;;  %v74_v11 = vld [vmem:[%s615_s1 + $0xe0] sm:$0xff] }
  0x20   :  { %v167_v8 = vmax.bf16 %v135_v63, %v39_v59  ;;  %v137_v9 = vmax.bf16 %v105_v7, %v73_v6  ;;  %v106_v12 = vld [vmem:[%s616_s2 + $0xe0] sm:$0xff]  ;;  %v43_v15 = vld [vmem:[%s614_s0 + $0xe8] sm:$0xff]  ;;  %v44_v20 = vld [vmem:[%s614_s0 + $0xf0] sm:$0xff] }
  0x21   :  { %198 = vst [vmem:[%s617_s3 + $0xc0] sm:$0xff] %v166_v3  ;;  %v168_v13 = vmax.bf16 %v136_v4, %v40_v0  ;;  %v138_v14 = vmax.bf16 %v106_v12, %v74_v11  ;;  %v75_v16 = vld [vmem:[%s615_s1 + $0xe8] sm:$0xff]  ;;  %v76_v21 = vld [vmem:[%s615_s1 + $0xf0] sm:$0xff]  ;;  %v45_v25 = vld [vmem:[%s614_s0 + $0xf8] sm:$0xff] }
  0x22   :  { %v107_v17 = vld [vmem:[%s616_s2 + $0xe8] sm:$0xff]  ;;  %199 = vst [vmem:[%s617_s3 + $0xc8] sm:$0xff] %v167_v8  ;;  %v169_v18 = vmax.bf16 %v137_v9, %v41_v5  ;;  %v108_v22 = vld [vmem:[%s616_s2 + $0xf0] sm:$0xff]  ;;  %v77_v26 = vld [vmem:[%s615_s1 + $0xf8] sm:$0xff] }
  0x23   :  { %v139_v19 = vmax.bf16 %v107_v17, %v75_v16  ;;  %200 = vst [vmem:[%s617_s3 + $0xd0] sm:$0xff] %v168_v13  ;;  %v170_v23 = vmax.bf16 %v138_v14, %v42_v10  ;;  %v140_v24 = vmax.bf16 %v108_v22, %v76_v21  ;;  %v109_v27 = vld [vmem:[%s616_s2 + $0xf8] sm:$0xff] }
  0x24   :  { %201 = vst [vmem:[%s617_s3 + $0xd8] sm:$0xff] %v169_v18  ;;  %v141_v29 = vmax.bf16 %v109_v27, %v77_v26 }
  0x25   :  { %v171_v28 = vmax.bf16 %v139_v19, %v43_v15  ;;  %202 = vst [vmem:[%s617_s3 + $0xe0] sm:$0xff] %v170_v23  ;;  %v172_v30 = vmax.bf16 %v140_v24, %v44_v20 }
  0x26   :  { %v173_v31 = vmax.bf16 %v141_v29, %v45_v25 }
  0x27   :  { %203 = vst [vmem:[%s617_s3 + $0xe8] sm:$0xff] %v171_v28  ;;  %204 = vst [vmem:[%s617_s3 + $0xf0] sm:$0xff] %v172_v30 }
  0x28   :  { %205 = vst [vmem:[%s617_s3 + $0xf8] sm:$0xff] %v173_v31 }

// kernel: model_wrapper_forward.14
= control target key start
LH: loop header
LB: loop body
LE: loop exit
PB: predicated region body
PF: predicated region fallthrough
CT: control target
= control target key end

     0   :  { %s326_s0 = inlined_call_operand.vmem [shape: bf16[16,2048], index: 0, kind: input, shape index: {}]   ;;  %s327_s1 = inlined_call_operand.vmem [shape: bf16[16,2048], index: 1, kind: input, shape index: {}]   ;;  %s328_s2 = inlined_call_operand.vmem [shape: bf16[16,2048], index: 2, kind: input, shape index: {}]   ;;  %s329_s3 = inlined_call_operand.vmem [shape: bf16[16,2048], index: 3, kind: output, shape index: {}]  }
   0x1   :  { %v14_v0 = vld [vmem:[%s326_s0] sm:$0xff]  ;;  %v15_v4 = vld [vmem:[%s326_s0 + $0x8] sm:$0xff]  ;;  %v16_v8 = vld [vmem:[%s326_s0 + $0x10] sm:$0xff] }
   0x2   :  { %v30_v1 = vld [vmem:[%s327_s1] sm:$0xff]  ;;  %v31_v5 = vld [vmem:[%s327_s1 + $0x8] sm:$0xff]  ;;  %v32_v9 = vld [vmem:[%s327_s1 + $0x10] sm:$0xff] }
   0x3   :  { %v46_v2 = vld [vmem:[%s328_s2] sm:$0xff]  ;;  %v47_v6 = vld [vmem:[%s328_s2 + $0x8] sm:$0xff]  ;;  %v48_v10 = vld [vmem:[%s328_s2 + $0x10] sm:$0xff] }
   0x4   :  { %v62_v3 = vmax.bf16 %v46_v2, %v30_v1  ;;  %v63_v7 = vmax.bf16 %v47_v6, %v31_v5  ;;  %v64_v12 = vmax.bf16 %v48_v10, %v32_v9  ;;  %v17_v13 = vld [vmem:[%s326_s0 + $0x18] sm:$0xff]  ;;  %v18_v18 = vld [vmem:[%s326_s0 + $0x20] sm:$0xff]  ;;  %v19_v23 = vld [vmem:[%s326_s0 + $0x28] sm:$0xff] }
   0x5   :  { %v33_v14 = vld [vmem:[%s327_s1 + $0x18] sm:$0xff]  ;;  %v34_v19 = vld [vmem:[%s327_s1 + $0x20] sm:$0xff]  ;;  %v35_v24 = vld [vmem:[%s327_s1 + $0x28] sm:$0xff] }
   0x6   :  { %v78_v11 = vmax.bf16 %v62_v3, %v14_v0  ;;  %v49_v15 = vld [vmem:[%s328_s2 + $0x18] sm:$0xff]  ;;  %v79_v16 = vmax.bf16 %v63_v7, %v15_v4  ;;  %v50_v20 = vld [vmem:[%s328_s2 + $0x20] sm:$0xff]  ;;  %v80_v21 = vmax.bf16 %v64_v12, %v16_v8  ;;  %v51_v25 = vld [vmem:[%s328_s2 + $0x28] sm:$0xff] }
   0x7   :  { %v65_v17 = vmax.bf16 %v49_v15, %v33_v14  ;;  %v66_v22 = vmax.bf16 %v50_v20, %v34_v19  ;;  %v67_v27 = vmax.bf16 %v51_v25, %v35_v24  ;;  %v20_v28 = vld [vmem:[%s326_s0 + $0x30] sm:$0xff]  ;;  %v21_v33 = vld [vmem:[%s326_s0 + $0x38] sm:$0xff]  ;;  %v22_v38 = vld [vmem:[%s326_s0 + $0x40] sm:$0xff] }
   0x8   :  { %94 = vst [vmem:[%s329_s3] sm:$0xff] %v78_v11  ;;  %95 = vst [vmem:[%s329_s3 + $0x8] sm:$0xff] %v79_v16  ;;  %v36_v29 = vld [vmem:[%s327_s1 + $0x30] sm:$0xff]  ;;  %v37_v34 = vld [vmem:[%s327_s1 + $0x38] sm:$0xff] }
   0x9   :  { %v81_v26 = vmax.bf16 %v65_v17, %v17_v13  ;;  %v52_v30 = vld [vmem:[%s328_s2 + $0x30] sm:$0xff]  ;;  %96 = vst [vmem:[%s329_s3 + $0x10] sm:$0xff] %v80_v21  ;;  %v82_v31 = vmax.bf16 %v66_v22, %v18_v18  ;;  %v53_v35 = vld [vmem:[%s328_s2 + $0x38] sm:$0xff]  ;;  %v83_v36 = vmax.bf16 %v67_v27, %v19_v23  ;;  %v38_v39 = vld [vmem:[%s327_s1 + $0x40] sm:$0xff] }
   0xa   :  { %v68_v32 = vmax.bf16 %v52_v30, %v36_v29  ;;  %v69_v37 = vmax.bf16 %v53_v35, %v37_v34  ;;  %v54_v40 = vld [vmem:[%s328_s2 + $0x40] sm:$0xff]  ;;  %v23_v43 = vld [vmem:[%s326_s0 + $0x48] sm:$0xff]  ;;  %v24_v48 = vld [vmem:[%s326_s0 + $0x50] sm:$0xff] }
   0xb   :  { %97 = vst [vmem:[%s329_s3 + $0x18] sm:$0xff] %v81_v26  ;;  %98 = vst [vmem:[%s329_s3 + $0x20] sm:$0xff] %v82_v31  ;;  %v70_v42 = vmax.bf16 %v54_v40, %v38_v39  ;;  %v39_v44 = vld [vmem:[%s327_s1 + $0x48] sm:$0xff]  ;;  %v40_v49 = vld [vmem:[%s327_s1 + $0x50] sm:$0xff] }
   0xc   :  { %v84_v41 = vmax.bf16 %v68_v32, %v20_v28  ;;  %v55_v45 = vld [vmem:[%s328_s2 + $0x48] sm:$0xff]  ;;  %99 = vst [vmem:[%s329_s3 + $0x28] sm:$0xff] %v83_v36  ;;  %v85_v46 = vmax.bf16 %v69_v37, %v21_v33  ;;  %v56_v50 = vld [vmem:[%s328_s2 + $0x50] sm:$0xff]  ;;  %v25_v53 = vld [vmem:[%s326_s0 + $0x58] sm:$0xff] }
   0xd   :  { %v71_v47 = vmax.bf16 %v55_v45, %v39_v44  ;;  %v86_v51 = vmax.bf16 %v70_v42, %v22_v38  ;;  %v72_v52 = vmax.bf16 %v56_v50, %v40_v49  ;;  %v41_v54 = vld [vmem:[%s327_s1 + $0x58] sm:$0xff]  ;;  %v26_v58 = vld [vmem:[%s326_s0 + $0x60] sm:$0xff]  ;;  %v27_v63 = vld [vmem:[%s326_s0 + $0x68] sm:$0xff] }
   0xe   :  { %100 = vst [vmem:[%s329_s3 + $0x30] sm:$0xff] %v84_v41  ;;  %v57_v55 = vld [vmem:[%s328_s2 + $0x58] sm:$0xff]  ;;  %101 = vst [vmem:[%s329_s3 + $0x38] sm:$0xff] %v85_v46  ;;  %v42_v59 = vld [vmem:[%s327_s1 + $0x60] sm:$0xff] }
   0xf   :  { %v87_v56 = vmax.bf16 %v71_v47, %v23_v43  ;;  %v73_v57 = vmax.bf16 %v57_v55, %v41_v54  ;;  %v58_v60 = vld [vmem:[%s328_s2 + $0x60] sm:$0xff]  ;;  %102 = vst [vmem:[%s329_s3 + $0x40] sm:$0xff] %v86_v51  ;;  %v88_v61 = vmax.bf16 %v72_v52, %v24_v48  ;;  %v43_v0 = vld [vmem:[%s327_s1 + $0x68] sm:$0xff]  ;;  %v28_v4 = vld [vmem:[%s326_s0 + $0x70] sm:$0xff] }
  0x10   :  { %v74_v62 = vmax.bf16 %v58_v60, %v42_v59  ;;  %v59_v1 = vld [vmem:[%s328_s2 + $0x68] sm:$0xff]  ;;  %v44_v5 = vld [vmem:[%s327_s1 + $0x70] sm:$0xff]  ;;  %v29_v9 = vld [vmem:[%s326_s0 + $0x78] sm:$0xff] }
  0x11   :  { %103 = vst [vmem:[%s329_s3 + $0x48] sm:$0xff] %v87_v56  ;;  %v89_v2 = vmax.bf16 %v73_v57, %v25_v53  ;;  %v75_v3 = vmax.bf16 %v59_v1, %v43_v0  ;;  %v60_v6 = vld [vmem:[%s328_s2 + $0x70] sm:$0xff]  ;;  %104 = vst [vmem:[%s329_s3 + $0x50] sm:$0xff] %v88_v61  ;;  %v45_v10 = vld [vmem:[%s327_s1 + $0x78] sm:$0xff] }
  0x12   :  { %v90_v7 = vmax.bf16 %v74_v62, %v26_v58  ;;  %v76_v8 = vmax.bf16 %v60_v6, %v44_v5  ;;  %v61_v11 = vld [vmem:[%s328_s2 + $0x78] sm:$0xff] }
  0x13   :  { %105 = vst [vmem:[%s329_s3 + $0x58] sm:$0xff] %v89_v2  ;;  %v91_v12 = vmax.bf16 %v75_v3, %v27_v63  ;;  %v77_v13 = vmax.bf16 %v61_v11, %v45_v10 }
  0x14   :  { %106 = vst [vmem:[%s329_s3 + $0x60] sm:$0xff] %v90_v7  ;;  %v92_v14 = vmax.bf16 %v76_v8, %v28_v4 }
  0x15   :  { %107 = vst [vmem:[%s329_s3 + $0x68] sm:$0xff] %v91_v12  ;;  %v93_v15 = vmax.bf16 %v77_v13, %v29_v9 }
  0x16   :  { %108 = vst [vmem:[%s329_s3 + $0x70] sm:$0xff] %v92_v14 }
  0x17   :  { %109 = vst [vmem:[%s329_s3 + $0x78] sm:$0xff] %v93_v15 }

// kernel: model_wrapper_forward.15
= control target key start
LH: loop header
LB: loop body
LE: loop exit
PB: predicated region body
PF: predicated region fallthrough
CT: control target
= control target key end

     0   :  { %s2668_s12 = smov 0   ;;  %s2670_s13 = smov 0   ;;  %s3077_s0 = inlined_call_operand.vmem [shape: bf16[512,576], index: 0, kind: input, shape index: {}]   ;;  %s3078_s1 = inlined_call_operand.vmem [shape: bf16[576,128], index: 1, kind: input, shape index: {}]   ;;  %s3079_s2 = inlined_call_operand.vmem [shape: f32[1,128], index: 2, kind: input, shape index: {}]   ;;  %s3080_s3 = inlined_call_operand.vmem [shape: bf16[512,128], index: 3, kind: output, shape index: {}]  }
   0x1   :  { %s2672_s14 = smov 0  }
   0x2 LB: > { %s25_s15 = sadd.s32 1, %s2642_s13  ;;  %p1852_p0 = scmp.ge.s32.totalorder %s2646_s14, 1  ;;  %s2646_s14 = sphi %s2672_s14, %s13_s14   ;;  %s2642_s13 = sphi %s2670_s13, %s3082_s13   ;;  %s2638_s12 = sphi %s2668_s12, %s3081_s12  }
   0x3   : > { %p27_p1 = scmp.ge.s32.totalorder %s25_s15, 2  ;;  %p170_p2 = scmp.lt.s32.totalorder %s2646_s14, 3 }
   0x5   : > { %s3084_s15 = smov (%p27_p1, %s25_s15), 0  ;;  %p171_p3 = pnand %p1852_p0, %p170_p2 }
   0x6   : > { %v2476_v0 = vld [vmem:[%s3078_s1 + $0x40] sm:$0xff] (!%p171_p3)   ;;  %s1853_s18 = sshll.u32 (!%p171_p3), %s2638_s12, 5  ;;  %v2478_v2 = vld [vmem:[%s3078_s1 + $0x48] sm:$0xff] (!%p171_p3)   ;;  %v2480_v4 = vld [vmem:[%s3078_s1 + $0x50] sm:$0xff] (!%p171_p3)   ;;  %vm1020_vm0 = vcmask (!%p171_p3), 523264  }
   0x7   : > { %174 = sbr.rel (%p171_p3) target bundleno = 417 (0x1a1), region = 32  ;;  %v2477_v1 = vld [vmem:[%s3078_s1] sm:$0xff] (!%p171_p3)   ;;  %2151 = vmatprep.subr.bf16.mxu0 (!%p171_p3), %v2476_v0  ;;  %2435 = vmatprep.subr.bf16.mxu1 (!%p171_p3), %v2476_v0  ;;  %p206_p4 = scmp.lt.s32.totalorder (!%p171_p3), %s1853_s18, 63  ;;  %v2479_v3 = vld [vmem:[%s3078_s1 + $0x8] sm:$0xff] (!%p171_p3)   ;;  %v2481_v5 = vld [vmem:[%s3078_s1 + $0x10] sm:$0xff] (!%p171_p3)  }
   0x8   : > { %2152 = vmatpush3.bf16.msra.mxu0 (!%p171_p3), %v2477_v1  ;;  %2443 = vmatpush3.bf16.msra.mxu1 (!%p171_p3), %v2477_v1  ;;  %v2482_v6 = vld [vmem:[%s3078_s1 + $0x58] sm:$0xff] (!%p171_p3)   ;;  %v2484_v8 = vld [vmem:[%s3078_s1 + $0x60] sm:$0xff] (!%p171_p3)   ;;  %v2486_v10 = vld [vmem:[%s3078_s1 + $0x68] sm:$0xff] (!%p171_p3)  }
   0x9   : > { %2153 = vmatprep.subr.bf16.mxu0 (!%p171_p3), %v2478_v2  ;;  %2436 = vmatprep.subr.bf16.mxu1 (!%p171_p3), %v2478_v2  ;;  %v2483_v7 = vld [vmem:[%s3078_s1 + $0x18] sm:$0xff] (!%p171_p3)   ;;  %v2485_v9 = vld [vmem:[%s3078_s1 + $0x20] sm:$0xff] (!%p171_p3)   ;;  %v2487_v13 = vld [vmem:[%s3078_s1 + $0x28] sm:$0xff] (!%p171_p3)  }
   0xa   : > { %v2488_v14 = vld [vmem:[%s3078_s1 + $0x70] sm:$0xff] (!%p171_p3)   ;;  %v2490_v16 = vld [vmem:[%s3078_s1 + $0x78] sm:$0xff] (!%p171_p3)   ;;  %v2498_v18 = vld [vmem:[%s3078_s1 + $0xc0] sm:$0xff] (!%p171_p3)  }
   0xb   : > { %v2489_v15 = vld [vmem:[%s3078_s1 + $0x30] sm:$0xff] (!%p171_p3)   ;;  %v2491_v17 = vld [vmem:[%s3078_s1 + $0x38] sm:$0xff] (!%p171_p3)   ;;  %v2501_v19 = vld [vmem:[%s3078_s1 + $0x100] sm:$0xff] (!%p171_p3)  }
   0xc   : > { %2154 = vmatpush3.bf16.msra.mxu0 (!%p171_p3), %v2479_v3  ;;  %2444 = vmatpush3.bf16.msra.mxu1 (!%p171_p3), %v2479_v3  ;;  %v2499_v22 = vld [vmem:[%s3078_s1 + $0x80] sm:$0xff] (!%p171_p3)   ;;  %v2500_v23 = vld [vmem:[%s3078_s1 + $0xc8] sm:$0xff] (!%p171_p3)   ;;  %v2509_v28 = vld [vmem:[%s3078_s1 + $0xd0] sm:$0xff] (!%p171_p3)  }
   0xd   : > { %2155 = vmatprep.subr.bf16.mxu0 (!%p171_p3), %v2480_v4  ;;  %2437 = vmatprep.subr.bf16.mxu1 (!%p171_p3), %v2480_v4  ;;  %v2502_v26 = vld [vmem:[%s3078_s1 + $0x88] sm:$0xff] (!%p171_p3)   ;;  %v2510_v30 = vld [vmem:[%s3078_s1 + $0x90] sm:$0xff] (!%p171_p3)   ;;  %v2511_v31 = vld [vmem:[%s3078_s1 + $0xd8] sm:$0xff] (!%p171_p3)  }
   0xe   : > { %s3086_s18 = smov (!%p206_p4, %s1853_s18), 63  ;;  %v2512_v34 = vld [vmem:[%s3078_s1 + $0x98] sm:$0xff]   ;;  %v2532_v35 = vld [vmem:[%s3078_s1 + $0x108] sm:$0xff]   ;;  %v2519_v37 = vld [vmem:[%s3078_s1 + $0xe0] sm:$0xff]  }
   0xf   : > { %s2451_s4 = smul.u32 20, %s3086_s18  ;;  %v2520_v39 = vld [vmem:[%s3078_s1 + $0xa0] sm:$0xff]   ;;  %v2521_v40 = vld [vmem:[%s3078_s1 + $0xe8] sm:$0xff]   ;;  %v2529_v46 = vld [vmem:[%s3078_s1 + $0xf0] sm:$0xff]   ;;  %s1856_s27 = sshll.u32 %s3086_s18, 2 }
  0x10   : > { %2156 = vmatpush3.bf16.msra.mxu0 %v2481_v5  ;;  %2445 = vmatpush3.bf16.msra.mxu1 %v2481_v5  ;;  %v2522_v43 = vld [vmem:[%s3078_s1 + $0xa8] sm:$0xff]   ;;  %v2552_v47 = vld [vmem:[%s3078_s1 + $0x110] sm:$0xff]   ;;  %v2531_v49 = vld [vmem:[%s3078_s1 + $0xf8] sm:$0xff]   ;;  %s2994_s30 = scalar_lea.vmem %s3080_s3, %s1856_s27 }
  0x11   : > { %2157 = vmatprep.subr.bf16.mxu0 %v2482_v6  ;;  %2438 = vmatprep.subr.bf16.mxu1 %v2482_v6  ;;  %s2719_s11 = scalar_lea.vmem %s3077_s0, %s2451_s4  ;;  %v2530_v48 = vld [vmem:[%s3078_s1 + $0xb0] sm:$0xff]   ;;  %v2533_v52 = vld [vmem:[%s3078_s1 + $0xb8] sm:$0xff]  }
  0x12   : > { %v2494_v11 = vld [vmem:[%s2719_s11 + $0x4] ss:$20 sps:$4 sm:$0xff]   ;;  %v2492_v20 = vld [vmem:[%s2719_s11] ss:$20 sps:$4 sm:$0xff]   ;;  %v2507_v27 = vld [vmem:[%s2719_s11 + $0x28] ss:$20 sps:$4 sm:$0xff]  }
  0x13   : > { %v2497_v12 = vld [vmem:[%s2719_s11 + $0x1e4] ss:$20 sps:$4 sm:$0xff]   ;;  %1101 = vmatprep.mubr.bf16.mxu0 %v2494_v11  ;;  %v2495_v21 = vld [vmem:[%s2719_s11 + $0x1e0] ss:$20 sps:$4 sm:$0xff]   ;;  %v2508_v29 = vld [vmem:[%s2719_s11 + $0x208] ss:$20 sps:$4 sm:$0xff]  }
  0x14   : > { %2158 = vmatpush3.bf16.msra.mxu0 %v2483_v7  ;;  %2446 = vmatpush3.bf16.msra.mxu1 %v2483_v7  ;;  %v2503_v24 = vld [vmem:[%s2719_s11 + $0x2c] ss:$20 sps:$4 sm:$0xff]   ;;  %v2513_v32 = vld [vmem:[%s2719_s11 + $0x54] ss:$20 sps:$4 sm:$0xff]   ;;  %v2517_v36 = vld [vmem:[%s2719_s11 + $0x50] ss:$20 sps:$4 sm:$0xff]  }
  0x15   : > { %2159 = vmatprep.subr.bf16.mxu0 %v2484_v8  ;;  %2439 = vmatprep.subr.bf16.mxu1 %v2484_v8  ;;  %v2505_v25 = vld [vmem:[%s2719_s11 + $0x20c] ss:$20 sps:$4 sm:$0xff]   ;;  %v2515_v33 = vld [vmem:[%s2719_s11 + $0x234] ss:$20 sps:$4 sm:$0xff]   ;;  %v2518_v38 = vld [vmem:[%s2719_s11 + $0x230] ss:$20 sps:$4 sm:$0xff]  }
  0x16   : > { %1197 = vmatprep.mubr.bf16.mxu1 %v2497_v12  ;;  %v2523_v41 = vld [vmem:[%s2719_s11 + $0x7c] ss:$20 sps:$4 sm:$0xff]   ;;  %v2527_v44 = vld [vmem:[%s2719_s11 + $0x78] ss:$20 sps:$4 sm:$0xff]   ;;  %v2539_v54 = vld [vmem:[%s2719_s11 + $0xa0] ss:$20 sps:$4 sm:$0xff]  }
  0x17   : > { %v2525_v42 = vld [vmem:[%s2719_s11 + $0x25c] ss:$20 sps:$4 sm:$0xff]   ;;  %v2528_v45 = vld [vmem:[%s2719_s11 + $0x258] ss:$20 sps:$4 sm:$0xff]   ;;  %v2542_v57 = vld [vmem:[%s2719_s11 + $0x34] ss:$20 sps:$4 sm:$0xff]  }
  0x18   : > { %2160 = vmatpush3.bf16.msra.mxu0 %v2485_v9  ;;  %2447 = vmatpush3.bf16.msra.mxu1 %v2485_v9  ;;  %v2534_v50 = vld [vmem:[%s2719_s11 + $0xa4] ss:$20 sps:$4 sm:$0xff]   ;;  %v2538_v51 = vld [vmem:[%s2719_s11 + $0xc] ss:$20 sps:$4 sm:$0xff]   ;;  %v2536_v53 = vld [vmem:[%s2719_s11 + $0x8] ss:$20 sps:$4 sm:$0xff]  }
  0x19   : > { %2161 = vmatprep.subr.bf16.mxu0 %v2486_v10  ;;  %2440 = vmatprep.subr.bf16.mxu1 %v2486_v10  ;;  %v2540_v55 = vld [vmem:[%s2719_s11 + $0xcc] ss:$20 sps:$4 sm:$0xff]   ;;  %v2571_v56 = vld [vmem:[%s3078_s1 + $0x118] sm:$0xff]   ;;  %v2545_v59 = vld [vmem:[%s2719_s11 + $0x30] ss:$20 sps:$4 sm:$0xff]  }
  0x1a   : > { %v2544_v58 = vld [vmem:[%s2719_s11 + $0xc8] ss:$20 sps:$4 sm:$0xff]   ;;  %v2550_v62 = vld [vmem:[%s2719_s11 + $0xf0] ss:$20 sps:$4 sm:$0xff]   ;;  %v2551_v63 = vld [vmem:[%s2719_s11 + $0x58] ss:$20 sps:$4 sm:$0xff]  }
  0x1b   : > { %v2546_v60 = vld [vmem:[%s2719_s11 + $0xf4] ss:$20 sps:$4 sm:$0xff]   ;;  %v2548_v61 = vld [vmem:[%s2719_s11 + $0x5c] ss:$20 sps:$4 sm:$0xff]   ;;  %v2555_v1 = vld [vmem:[%s2719_s11 + $0x84] ss:$20 sps:$4 sm:$0xff]  }
  0x1c   : > { %2162 = vmatpush3.bf16.msra.mxu0 %v2487_v13  ;;  %2448 = vmatpush3.bf16.msra.mxu1 %v2487_v13  ;;  %v2553_v0 = vld [vmem:[%s2719_s11 + $0x11c] ss:$20 sps:$4 sm:$0xff]   ;;  %v2557_v2 = vld [vmem:[%s2719_s11 + $0x118] ss:$20 sps:$4 sm:$0xff]   ;;  %v2558_v3 = vld [vmem:[%s2719_s11 + $0x80] ss:$20 sps:$4 sm:$0xff]  }
  0x1d   : > { %2163 = vmatprep.subr.bf16.mxu0 %v2488_v14  ;;  %2441 = vmatprep.subr.bf16.mxu1 %v2488_v14  ;;  %v2559_v4 = vld [vmem:[%s2719_s11 + $0x144] ss:$20 sps:$4 sm:$0xff]   ;;  %v2561_v5 = vld [vmem:[%s2719_s11 + $0xac] ss:$20 sps:$4 sm:$0xff]   ;;  %v2564_v7 = vld [vmem:[%s2719_s11 + $0xa8] ss:$20 sps:$4 sm:$0xff]  }
  0x1e   : > { %v2563_v6 = vld [vmem:[%s2719_s11 + $0x140] ss:$20 sps:$4 sm:$0xff]   ;;  %v2569_v10 = vld [vmem:[%s2719_s11 + $0x168] ss:$20 sps:$4 sm:$0xff]   ;;  %v2570_v11 = vld [vmem:[%s2719_s11 + $0xd0] ss:$20 sps:$4 sm:$0xff]  }
  0x1f   : > { %v2565_v8 = vld [vmem:[%s2719_s11 + $0x16c] ss:$20 sps:$4 sm:$0xff]   ;;  %v2567_v9 = vld [vmem:[%s2719_s11 + $0xd4] ss:$20 sps:$4 sm:$0xff]   ;;  %v2574_v13 = vld [vmem:[%s2719_s11 + $0xfc] ss:$20 sps:$4 sm:$0xff]  }
  0x20   : > { %2164 = vmatpush3.bf16.msra.mxu0 %v2489_v15  ;;  %2449 = vmatpush3.bf16.msra.mxu1 %v2489_v15  ;;  %v2572_v12 = vld [vmem:[%s2719_s11 + $0x194] ss:$20 sps:$4 sm:$0xff]   ;;  %v2576_v14 = vld [vmem:[%s2719_s11 + $0x190] ss:$20 sps:$4 sm:$0xff]   ;;  %v2577_v15 = vld [vmem:[%s2719_s11 + $0xf8] ss:$20 sps:$4 sm:$0xff]  }
  0x21   : > { %2165 = vmatprep.subr.bf16.mxu0 %v2490_v16  ;;  %2442 = vmatprep.subr.bf16.mxu1 %v2490_v16  ;;  %v2578_v16 = vld [vmem:[%s2719_s11 + $0x1bc] ss:$20 sps:$4 sm:$0xff]  }
  0x24   : > { %2166 = vmatpush3.bf16.msra.mxu0 %v2491_v17  ;;  %2450 = vmatpush3.bf16.msra.mxu1 %v2491_v17  ;;  %v2580_v17 = vld [vmem:[%s2719_s11 + $0x124] ss:$20 sps:$4 sm:$0xff]  }
  0x25   : > { %2263 = vmatprep.subr.bf16.mxu1 %v2498_v18  ;;  %2395 = vmatprep.subr.bf16.mxu0 %v2501_v19  ;;  %v2582_v18 = vld [vmem:[%s2719_s11 + $0x1b8] ss:$20 sps:$4 sm:$0xff]  }
  0x27   : > { %1102 = vmatmul.mubr.bf16.vlgmr.msra.gmra.mrb[0].mxu0 %v2492_v20  ;;  %1198 = vmatmul.mubr.bf16.vlgmr.msra.gmra.mrb[0].mxu1 %v2495_v21  ;;  %v2584_v20 = vld [vmem:[%s2719_s11 + $0x14c] ss:$20 sps:$4 sm:$0xff]   ;;  %v2586_v21 = vld [vmem:[%s2719_s11 + $0x10] ss:$20 sps:$4 sm:$0xff]  }
  0x28   : > { %2264 = vmatpush3.bf16.msra.mxu1 %v2499_v22  ;;  %2396 = vmatpush3.bf16.msra.mxu0 %v2501_v19  ;;  %v2583_v19 = vld [vmem:[%s2719_s11 + $0x120] ss:$20 sps:$4 sm:$0xff]   ;;  %v2587_v22 = vld [vmem:[%s2719_s11 + $0x148] ss:$20 sps:$4 sm:$0xff]  }
  0x29   : > { %2265 = vmatprep.subr.bf16.mxu1 %v2500_v23  ;;  %1109 = vmatprep.mubr.bf16.mxu0 %v2503_v24  ;;  %v2588_v23 = vld [vmem:[%s2719_s11 + $0x38] ss:$20 sps:$4 sm:$0xff]   ;;  %v2589_v24 = vld [vmem:[%s2719_s11 + $0x174] ss:$20 sps:$4 sm:$0xff]  }
  0x2a   : > { %1205 = vmatprep.mubr.bf16.mxu1 %v2505_v25  ;;  %2397 = vmatprep.subr.bf16.mxu0 %v2532_v35  ;;  %v2591_v25 = vld [vmem:[%s2719_s11 + $0x60] ss:$20 sps:$4 sm:$0xff]  }
  0x2c   : > { %2266 = vmatpush3.bf16.msra.mxu1 %v2502_v26  ;;  %2398 = vmatpush3.bf16.msra.mxu0 %v2532_v35  ;;  %v2592_v26 = vld [vmem:[%s2719_s11 + $0x170] ss:$20 sps:$4 sm:$0xff]   ;;  %v2603_v35 = vld [vmem:[%s2719_s11 + $0x128] ss:$20 sps:$4 sm:$0xff]  }
  0x2d   : > { %2267 = vmatprep.subr.bf16.mxu1 %v2509_v28  ;;  %2399 = vmatprep.subr.bf16.mxu0 %v2552_v47  ;;  %v2594_v28 = vld [vmem:[%s2719_s11 + $0x19c] ss:$20 sps:$4 sm:$0xff]  }
  0x2f   : > { %1110 = vmatmul.mubr.bf16.gmra.mrb[4].mxu0 %v2507_v27  ;;  %1206 = vmatmul.mubr.bf16.gmra.mrb[4].mxu1 %v2508_v29  ;;  %v2593_v27 = vld [vmem:[%s2719_s11 + $0x88] ss:$20 sps:$4 sm:$0xff]   ;;  %v2596_v29 = vld [vmem:[%s2719_s11 + $0xb0] ss:$20 sps:$4 sm:$0xff]  }
  0x30   : > { %2268 = vmatpush3.bf16.msra.mxu1 %v2510_v30  ;;  %1117 = vmatprep.mubr.bf16.mxu0 %v2513_v32  ;;  %v2597_v30 = vld [vmem:[%s2719_s11 + $0x198] ss:$20 sps:$4 sm:$0xff]  }
  0x31   : > { %2269 = vmatprep.subr.bf16.mxu1 %v2511_v31  ;;  %1213 = vmatprep.mubr.bf16.mxu1 %v2515_v33  ;;  %v2598_v31 = vld [vmem:[%s2719_s11 + $0xd8] ss:$20 sps:$4 sm:$0xff]   ;;  %v2601_v33 = vld [vmem:[%s2719_s11 + $0x100] ss:$20 sps:$4 sm:$0xff]  }
  0x32   : > { %2400 = vmatpush3.bf16.msra.mxu0 %v2552_v47  ;;  %v2599_v32 = vld [vmem:[%s2719_s11 + $0x1c4] ss:$20 sps:$4 sm:$0xff]  }
  0x33   : > { %2401 = vmatprep.subr.bf16.mxu0 %v2571_v56  ;;  %v2618_v47 = vld [vmem:[%s2719_s11 + $0x218] ss:$20 sps:$4 sm:$0xff]  }
  0x34   : > { %2270 = vmatpush3.bf16.msra.mxu1 %v2512_v34  ;;  %v2602_v34 = vld [vmem:[%s2719_s11 + $0x1c0] ss:$20 sps:$4 sm:$0xff]  }
  0x35   : > { %2271 = vmatprep.subr.bf16.mxu1 %v2519_v37  ;;  %v2606_v37 = vld [vmem:[%s2719_s11 + $0x150] ss:$20 sps:$4 sm:$0xff]  }
  0x36   : > { %2402 = vmatpush3.bf16.msra.mxu0 %v2571_v56 }
  0x37   : > { %1118 = vmatmul.mubr.bf16.gmra.mrb[8].mxu0 %v2517_v36  ;;  %1214 = vmatmul.mubr.bf16.gmra.mrb[8].mxu1 %v2518_v38  ;;  %v2604_v36 = vld [vmem:[%s2719_s11 + $0x1ec] ss:$20 sps:$4 sm:$0xff]   ;;  %v2607_v38 = vld [vmem:[%s2719_s11 + $0x1e8] ss:$20 sps:$4 sm:$0xff]  }
  0x38   : > { %2272 = vmatpush3.bf16.msra.mxu1 %v2520_v39  ;;  %1125 = vmatprep.mubr.bf16.mxu0 %v2523_v41  ;;  %v2608_v39 = vld [vmem:[%s2719_s11 + $0x178] ss:$20 sps:$4 sm:$0xff]   ;;  %v2611_v41 = vld [vmem:[%s2719_s11 + $0x1a0] ss:$20 sps:$4 sm:$0xff]  }
  0x39   : > { %2273 = vmatprep.subr.bf16.mxu1 %v2521_v40  ;;  %1221 = vmatprep.mubr.bf16.mxu1 %v2525_v42  ;;  %v2609_v40 = vld [vmem:[%s2719_s11 + $0x214] ss:$20 sps:$4 sm:$0xff]   ;;  %v2612_v42 = vld [vmem:[%s2719_s11 + $0x210] ss:$20 sps:$4 sm:$0xff]  }
  0x3c   : > { %2274 = vmatpush3.bf16.msra.mxu1 %v2522_v43  ;;  %v2613_v43 = vld [vmem:[%s2719_s11 + $0x1c8] ss:$20 sps:$4 sm:$0xff]  }
  0x3d   : > { %2275 = vmatprep.subr.bf16.mxu1 %v2529_v46  ;;  %v2617_v46 = vld [vmem:[%s2719_s11 + $0x238] ss:$20 sps:$4 sm:$0xff]  }
  0x3f   : > { %1126 = vmatmul.mubr.bf16.gmra.mrb[12].mxu0 %v2527_v44  ;;  %1222 = vmatmul.mubr.bf16.gmra.mrb[12].mxu1 %v2528_v45  ;;  %v2614_v44 = vld [vmem:[%s2719_s11 + $0x23c] ss:$20 sps:$4 sm:$0xff]  }
  0x40   : > { %2276 = vmatpush3.bf16.msra.mxu1 %v2530_v48  ;;  %1133 = vmatprep.mubr.bf16.mxu0 %v2534_v50  ;;  %v2616_v45 = vld [vmem:[%s2719_s11 + $0x1f0] ss:$20 sps:$4 sm:$0xff]   ;;  %v2622_v50 = vld [vmem:[%s2719_s11 + $0x260] ss:$20 sps:$4 sm:$0xff]  }
  0x41   : > { %2277 = vmatprep.subr.bf16.mxu1 %v2531_v49  ;;  %1262 = vmatprep.mubr.bf16.mxu1 %v2538_v51  ;;  %v2619_v48 = vld [vmem:[%s2719_s11 + $0x264] ss:$20 sps:$4 sm:$0xff]   ;;  %v2621_v49 = vld [vmem:[%s2719_s11 + $0x240] ss:$20 sps:$4 sm:$0xff]   ;;  %v2623_v51 = vld [vmem:[%s2719_s11 + $0x268] ss:$20 sps:$4 sm:$0xff]  }
  0x44   : > { %2278 = vmatpush3.bf16.msra.mxu1 %v2533_v52 }
  0x47   : > { %1134 = vmatmul.mubr.bf16.gmra.mrb[16].mxu0 %v2539_v54  ;;  %1263 = vmatmul.mubr.bf16.vlgmr.msra.gmra.mrb[16].mxu1 %v2536_v53 }
  0x48   : > { %1141 = vmatprep.mubr.bf16.mxu0 %v2540_v55  ;;  %1270 = vmatprep.mubr.bf16.mxu1 %v2542_v57 }
  0x4f   : > { %1142 = vmatmul.mubr.bf16.gmra.mrb[20].mxu0 %v2544_v58  ;;  %1271 = vmatmul.mubr.bf16.gmra.mrb[20].mxu1 %v2545_v59 }
  0x50   : > { %1149 = vmatprep.mubr.bf16.mxu0 %v2546_v60  ;;  %1278 = vmatprep.mubr.bf16.mxu1 %v2548_v61 }
  0x57   : > { %1150 = vmatmul.mubr.bf16.gmra.mrb[24].mxu0 %v2550_v62  ;;  %1279 = vmatmul.mubr.bf16.gmra.mrb[24].mxu1 %v2551_v63 }
  0x58   : > { %1157 = vmatprep.mubr.bf16.mxu0 %v2553_v0  ;;  %1286 = vmatprep.mubr.bf16.mxu1 %v2555_v1 }
  0x5f   : > { %1158 = vmatmul.mubr.bf16.gmra.mrb[28].mxu0 %v2557_v2  ;;  %1287 = vmatmul.mubr.bf16.gmra.mrb[28].mxu1 %v2558_v3 }
  0x60   : > { %1165 = vmatprep.mubr.bf16.mxu0 %v2559_v4  ;;  %1294 = vmatprep.mubr.bf16.mxu1 %v2561_v5 }
  0x67   : > { %1166 = vmatmul.mubr.bf16.gmra.mrb[32].mxu0 %v2563_v6  ;;  %1295 = vmatmul.mubr.bf16.gmra.mrb[32].mxu1 %v2564_v7 }
  0x68   : > { %1173 = vmatprep.mubr.bf16.mxu0 %v2565_v8  ;;  %1302 = vmatprep.mubr.bf16.mxu1 %v2567_v9 }
  0x6f   : > { %1174 = vmatmul.mubr.bf16.gmra.mrb[36].mxu0 %v2569_v10  ;;  %1303 = vmatmul.mubr.bf16.gmra.mrb[36].mxu1 %v2570_v11 }
  0x70   : > { %1181 = vmatprep.mubr.bf16.mxu0 %v2572_v12  ;;  %1310 = vmatprep.mubr.bf16.mxu1 %v2574_v13 }
  0x77   : > { %1182 = vmatmul.mubr.bf16.gmra.mrb[40].mxu0 %v2576_v14  ;;  %1311 = vmatmul.mubr.bf16.gmra.mrb[40].mxu1 %v2577_v15 }
  0x78   : > { %1189 = vmatprep.mubr.bf16.mxu0 %v2578_v16  ;;  %1318 = vmatprep.mubr.bf16.mxu1 %v2580_v17 }
  0x7f   : > { %1190 = vmatmul.mubr.bf16.gmra.mrb[44].mxu0 %v2582_v18  ;;  %1319 = vmatmul.mubr.bf16.gmra.mrb[44].mxu1 %v2583_v19 }
  0x80   : > { %1326 = vmatprep.mubr.bf16.mxu1 %v2584_v20  ;;  %2403 = vmatprep.mubr.msk.bf16.mxu0 %vm1020_vm0, %v2586_v21 }
  0x87   : > { %1327 = vmatmul.mubr.bf16.gmra.mrb[48].mxu1 %v2587_v22  ;;  %2404 = vmatmul.mubr.msk.bf16.vlgmr.msra.gmra.mrb[48].mxu0 %vm1020_vm0, %v2588_v23 }
  0x88   : > { %1334 = vmatprep.mubr.bf16.mxu1 %v2589_v24  ;;  %2407 = vmatprep.mubr.msk.bf16.mxu0 %vm1020_vm0, %v2591_v25 }
  0x8f   : > { %1335 = vmatmul.mubr.bf16.gmra.mrb[52].mxu1 %v2592_v26  ;;  %2408 = vmatmul.mubr.msk.bf16.gmra.mrb[52].mxu0 %vm1020_vm0, %v2593_v27 }
  0x90   : > { %1342 = vmatprep.mubr.bf16.mxu1 %v2594_v28  ;;  %2411 = vmatprep.mubr.msk.bf16.mxu0 %vm1020_vm0, %v2596_v29 }
  0x97   : > { %1343 = vmatmul.mubr.bf16.gmra.mrb[56].mxu1 %v2597_v30  ;;  %2412 = vmatmul.mubr.msk.bf16.gmra.mrb[56].mxu0 %vm1020_vm0, %v2598_v31 }
  0x98   : > { %1350 = vmatprep.mubr.bf16.mxu1 %v2599_v32  ;;  %2415 = vmatprep.mubr.msk.bf16.mxu0 %vm1020_vm0, %v2601_v33 }
  0x9f   : > { %1351 = vmatmul.mubr.bf16.gmra.mrb[60].mxu1 %v2602_v34  ;;  %2416 = vmatmul.mubr.msk.bf16.gmra.mrb[60].mxu0 %vm1020_vm0, %v2603_v35 }
  0xa0   : > { %1358 = vmatprep.mubr.bf16.mxu1 %v2604_v36  ;;  %2419 = vmatprep.mubr.msk.bf16.mxu0 %vm1020_vm0, %v2606_v37 }
  0xa7   : > { %1359 = vmatmul.mubr.bf16.gmra.mrb[64].mxu1 %v2607_v38  ;;  %2420 = vmatmul.mubr.msk.bf16.gmra.mrb[64].mxu0 %vm1020_vm0, %v2608_v39  ;;  %v2917_v38 = vld [vmem:[%s3079_s2] ss:$0 sm:$0xff] }
  0xa8   : > { %1366 = vmatprep.mubr.bf16.mxu1 %v2609_v40  ;;  %2423 = vmatprep.mubr.msk.bf16.mxu0 %vm1020_vm0, %v2611_v41 }
  0xaf   : > { %1367 = vmatmul.mubr.bf16.gmra.mrb[68].mxu1 %v2612_v42  ;;  %2424 = vmatmul.mubr.msk.bf16.gmra.mrb[68].mxu0 %vm1020_vm0, %v2613_v43 }
  0xb0   : > { %1374 = vmatprep.mubr.bf16.mxu1 %v2614_v44  ;;  %2427 = vmatprep.mubr.msk.bf16.mxu0 %vm1020_vm0, %v2616_v45 }
  0xb7   : > { %1375 = vmatmul.mubr.bf16.gmra.mrb[72].mxu1 %v2617_v46  ;;  %2428 = vmatmul.mubr.msk.bf16.gmra.mrb[72].mxu0 %vm1020_vm0, %v2618_v47 }
  0xb8   : > { %1382 = vmatprep.mubr.bf16.mxu1 %v2619_v48  ;;  %2431 = vmatprep.mubr.msk.bf16.mxu0 %vm1020_vm0, %v2621_v49 }
  0xbf   : > { %1383 = vmatmul.mubr.bf16.gmra.mrb[76].mxu1 %v2622_v50  ;;  %2432 = vmatmul.mubr.msk.bf16.gmra.mrb[76].mxu0 %vm1020_vm0, %v2623_v51 }
  0xfa   : > { %v2239_v52 = vpop.f32.mrb[0].mxu1  ;;  %v2167_v53 = vpop.f32.mrb[0].mxu0 }
  0xfb   : > { %v2240_v54 = vpop.f32.mrb[1].mxu1  ;;  %v2168_v55 = vpop.f32.mrb[1].mxu0 }
  0xfc   : > { %v2898_v56 = vadd.f32 %v2240_v54, %v2239_v52  ;;  %v2242_v57 = vpop.f32.mrb[2].mxu1  ;;  %v2169_v58 = vadd.f32 %v2168_v55, %v2167_v53  ;;  %v2170_v59 = vpop.f32.mrb[2].mxu0 }
  0xfd   : > { %v2243_v60 = vpop.f32.mrb[3].mxu1  ;;  %v2171_v61 = vpop.f32.mrb[3].mxu0 }
  0xfe   : > { %v2900_v62 = vadd.f32 %v2243_v60, %v2242_v57  ;;  %v2172_v63 = vadd.f32 %v2171_v61, %v2170_v59  ;;  %v1104_v41 = vadd.f32 %v2169_v58, %v2917_v38 }
 0x100   : > { %v1107_v48 = vadd.f32 %v2172_v63, %v2917_v38 }
 0x102   : > { %v2245_v0 = vpop.f32.mrb[4].mxu1  ;;  %v2173_v1 = vpop.f32.mrb[4].mxu0 }
 0x103   : > { %v2246_v2 = vpop.f32.mrb[5].mxu1  ;;  %v2174_v3 = vpop.f32.mrb[5].mxu0 }
 0x104   : > { %v2902_v4 = vadd.f32 %v2246_v2, %v2245_v0  ;;  %v2248_v5 = vpop.f32.mrb[6].mxu1  ;;  %v2175_v6 = vadd.f32 %v2174_v3, %v2173_v1  ;;  %v2176_v7 = vpop.f32.mrb[6].mxu0 }
 0x105   : > { %v2249_v8 = vpop.f32.mrb[7].mxu1  ;;  %v2177_v9 = vpop.f32.mrb[7].mxu0 }
 0x106   : > { %v2904_v10 = vadd.f32 %v2249_v8, %v2248_v5  ;;  %v2178_v11 = vadd.f32 %v2177_v9, %v2176_v7  ;;  %v1112_v58 = vadd.f32 %v2175_v6, %v2917_v38 }
 0x108   : > { %v1115_v63 = vadd.f32 %v2178_v11, %v2917_v38 }
 0x10a   : > { %v2251_v12 = vpop.f32.mrb[8].mxu1  ;;  %v2179_v13 = vpop.f32.mrb[8].mxu0 }
 0x10b   : > { %v2252_v14 = vpop.f32.mrb[9].mxu1  ;;  %v2180_v15 = vpop.f32.mrb[9].mxu0 }
 0x10c   : > { %v2906_v16 = vadd.f32 %v2252_v14, %v2251_v12  ;;  %v2254_v17 = vpop.f32.mrb[10].mxu1  ;;  %v2181_v18 = vadd.f32 %v2180_v15, %v2179_v13  ;;  %v2182_v19 = vpop.f32.mrb[10].mxu0 }
 0x10d   : > { %v2255_v20 = vpop.f32.mrb[11].mxu1  ;;  %v2183_v21 = vpop.f32.mrb[11].mxu0 }
 0x10e   : > { %v2908_v22 = vadd.f32 %v2255_v20, %v2254_v17  ;;  %v2184_v23 = vadd.f32 %v2183_v21, %v2182_v19  ;;  %v1120_v6 = vadd.f32 %v2181_v18, %v2917_v38 }
 0x110   : > { %v1123_v11 = vadd.f32 %v2184_v23, %v2917_v38 }
 0x112   : > { %v2257_v24 = vpop.f32.mrb[12].mxu1  ;;  %v2185_v25 = vpop.f32.mrb[12].mxu0 }
 0x113   : > { %v2258_v26 = vpop.f32.mrb[13].mxu1  ;;  %v2186_v27 = vpop.f32.mrb[13].mxu0 }
 0x114   : > { %v2910_v28 = vadd.f32 %v2258_v26, %v2257_v24  ;;  %v2260_v29 = vpop.f32.mrb[14].mxu1  ;;  %v2187_v30 = vadd.f32 %v2186_v27, %v2185_v25  ;;  %v2188_v31 = vpop.f32.mrb[14].mxu0 }
 0x115   : > { %v2261_v32 = vpop.f32.mrb[15].mxu1  ;;  %v2189_v33 = vpop.f32.mrb[15].mxu0 }
 0x116   : > { %v2912_v34 = vadd.f32 %v2261_v32, %v2260_v29  ;;  %v2190_v35 = vadd.f32 %v2189_v33, %v2188_v31  ;;  %v1128_v18 = vadd.f32 %v2187_v30, %v2917_v38 }
 0x118   : > { %v1131_v23 = vadd.f32 %v2190_v35, %v2917_v38 }
 0x11a   : > { %v2279_v36 = vpop.f32.mrb[16].mxu1  ;;  %v2191_v37 = vpop.f32.mrb[16].mxu0 }
 0x11b   : > { %v2280_v39 = vpop.f32.mrb[17].mxu1  ;;  %v2192_v40 = vpop.f32.mrb[17].mxu0 }
 0x11c   : > { %v2281_v42 = vadd.f32 %v2280_v39, %v2279_v36  ;;  %v2282_v43 = vpop.f32.mrb[18].mxu1  ;;  %v2193_v44 = vadd.f32 %v2192_v40, %v2191_v37  ;;  %v2194_v45 = vpop.f32.mrb[18].mxu0 }
 0x11d   : > { %v2283_v46 = vpop.f32.mrb[19].mxu1  ;;  %v2195_v47 = vpop.f32.mrb[19].mxu0 }
 0x11e   : > { %v2284_v49 = vadd.f32 %v2283_v46, %v2282_v43  ;;  %v2196_v50 = vadd.f32 %v2195_v47, %v2194_v45  ;;  %v2921_v51 = vadd.f32 %v2281_v42, %v1104_v41  ;;  %v1136_v30 = vadd.f32 %v2193_v44, %v2917_v38 }
 0x120   : > { %v2923_v52 = vadd.f32 %v2284_v49, %v1107_v48  ;;  %v1139_v35 = vadd.f32 %v2196_v50, %v2917_v38 }
 0x122   : > { %v2285_v53 = vpop.f32.mrb[20].mxu1  ;;  %v2197_v54 = vpop.f32.mrb[20].mxu0 }
 0x123   : > { %v2286_v55 = vpop.f32.mrb[21].mxu1  ;;  %v2198_v57 = vpop.f32.mrb[21].mxu0 }
 0x124   : > { %v2287_v59 = vadd.f32 %v2286_v55, %v2285_v53  ;;  %v2288_v60 = vpop.f32.mrb[22].mxu1  ;;  %v2199_v61 = vadd.f32 %v2198_v57, %v2197_v54  ;;  %v2200_v0 = vpop.f32.mrb[22].mxu0 }
 0x125   : > { %v2289_v1 = vpop.f32.mrb[23].mxu1  ;;  %v2201_v2 = vpop.f32.mrb[23].mxu0 }
 0x126   : > { %v2290_v3 = vadd.f32 %v2289_v1, %v2288_v60  ;;  %v2202_v5 = vadd.f32 %v2201_v2, %v2200_v0  ;;  %v2927_v7 = vadd.f32 %v2287_v59, %v1112_v58  ;;  %v1144_v44 = vadd.f32 %v2199_v61, %v2917_v38 }
 0x128   : > { %v2929_v8 = vadd.f32 %v2290_v3, %v1115_v63 }
 0x12a   : > { %v2291_v9 = vpop.f32.mrb[24].mxu1  ;;  %v2203_v12 = vpop.f32.mrb[24].mxu0 }
 0x12b   : > { %v2292_v13 = vpop.f32.mrb[25].mxu1  ;;  %v2204_v14 = vpop.f32.mrb[25].mxu0 }
 0x12c   : > { %v2293_v15 = vadd.f32 %v2292_v13, %v2291_v9  ;;  %v2294_v17 = vpop.f32.mrb[26].mxu1  ;;  %v2205_v19 = vadd.f32 %v2204_v14, %v2203_v12  ;;  %v2206_v20 = vpop.f32.mrb[26].mxu0 }
 0x12d   : > { %v2295_v21 = vpop.f32.mrb[27].mxu1  ;;  %v2207_v24 = vpop.f32.mrb[27].mxu0 }
 0x12e   : > { %v2296_v25 = vadd.f32 %v2295_v21, %v2294_v17  ;;  %v2208_v26 = vadd.f32 %v2207_v24, %v2206_v20  ;;  %v2933_v27 = vadd.f32 %v2293_v15, %v1120_v6 }
 0x130   : > { %v2935_v29 = vadd.f32 %v2296_v25, %v1123_v11  ;;  %v1147_v11 = vadd.f32 %v2202_v5, %v2917_v38 }
 0x132   : > { %v2297_v31 = vpop.f32.mrb[28].mxu1  ;;  %v2209_v32 = vpop.f32.mrb[28].mxu0 }
 0x133   : > { %v2298_v33 = vpop.f32.mrb[29].mxu1  ;;  %v2210_v36 = vpop.f32.mrb[29].mxu0 }
 0x134   : > { %v2299_v37 = vadd.f32 %v2298_v33, %v2297_v31  ;;  %v2300_v39 = vpop.f32.mrb[30].mxu1  ;;  %v2211_v40 = vadd.f32 %v2210_v36, %v2209_v32  ;;  %v2212_v41 = vpop.f32.mrb[30].mxu0 }
 0x135   : > { %v2301_v42 = vpop.f32.mrb[31].mxu1  ;;  %v2213_v43 = vpop.f32.mrb[31].mxu0 }
 0x136   : > { %v2302_v45 = vadd.f32 %v2301_v42, %v2300_v39  ;;  %v2214_v46 = vadd.f32 %v2213_v43, %v2212_v41  ;;  %v2939_v47 = vadd.f32 %v2299_v37, %v1128_v18  ;;  %v1152_v39 = vadd.f32 %v2205_v19, %v2917_v38 }
 0x138   : > { %v2941_v48 = vadd.f32 %v2302_v45, %v1131_v23 }
 0x13a   : > { %v2303_v49 = vpop.f32.mrb[32].mxu1  ;;  %v2215_v53 = vpop.f32.mrb[32].mxu0 }
 0x13b   : > { %v2304_v54 = vpop.f32.mrb[33].mxu1  ;;  %v2216_v55 = vpop.f32.mrb[33].mxu0 }
 0x13c   : > { %v2305_v57 = vadd.f32 %v2304_v54, %v2303_v49  ;;  %v2306_v58 = vpop.f32.mrb[34].mxu1  ;;  %v2217_v59 = vadd.f32 %v2216_v55, %v2215_v53  ;;  %v2218_v60 = vpop.f32.mrb[34].mxu0  ;;  %v1155_v49 = vadd.f32 %v2208_v26, %v2917_v38 }
 0x13d   : > { %v2307_v0 = vpop.f32.mrb[35].mxu1  ;;  %v2219_v1 = vpop.f32.mrb[35].mxu0 }
 0x13e   : > { %v2308_v2 = vadd.f32 %v2307_v0, %v2306_v58  ;;  %v2945_v63 = vadd.f32 %v2219_v1, %v2218_v60  ;;  %v2947_v3 = vadd.f32 %v2305_v57, %v1136_v30  ;;  %v1160_v0 = vadd.f32 %v2211_v40, %v2917_v38 }
 0x140   : > { %v2949_v9 = vadd.f32 %v2308_v2, %v1139_v35 }
 0x142   : > { %v2309_v12 = vpop.f32.mrb[36].mxu1  ;;  %v2221_v13 = vpop.f32.mrb[36].mxu0 }
 0x143   : > { %v2310_v14 = vpop.f32.mrb[37].mxu1  ;;  %v2222_v6 = vpop.f32.mrb[37].mxu0 }
 0x144   : > { %v2311_v15 = vadd.f32 %v2310_v14, %v2309_v12  ;;  %v2312_v17 = vpop.f32.mrb[38].mxu1  ;;  %v2952_v20 = vadd.f32 %v2222_v6, %v2221_v13  ;;  %v2224_v21 = vpop.f32.mrb[38].mxu0  ;;  %v1163_v14 = vadd.f32 %v2214_v46, %v2917_v38 }
 0x145   : > { %v2313_v24 = vpop.f32.mrb[39].mxu1  ;;  %v2225_v50 = vpop.f32.mrb[39].mxu0 }
 0x146   : > { %v2314_v25 = vadd.f32 %v2313_v24, %v2312_v17  ;;  %v2955_v31 = vadd.f32 %v2225_v50, %v2224_v21  ;;  %v2957_v32 = vadd.f32 %v2311_v15, %v1144_v44 }
 0x148   : > { %v2959_v33 = vadd.f32 %v2314_v25, %v1147_v11  ;;  %v1168_v25 = vadd.f32 %v2217_v59, %v2917_v38 }
 0x14a   : > { %v2315_v36 = vpop.f32.mrb[40].mxu1  ;;  %v2227_v18 = vpop.f32.mrb[40].mxu0 }
 0x14b   : > { %v2316_v37 = vpop.f32.mrb[41].mxu1  ;;  %v2228_v61 = vpop.f32.mrb[41].mxu0 }
 0x14c   : > { %v2317_v41 = vadd.f32 %v2316_v37, %v2315_v36  ;;  %v2318_v42 = vpop.f32.mrb[42].mxu1  ;;  %v2962_v43 = vadd.f32 %v2228_v61, %v2227_v18  ;;  %v2230_v23 = vpop.f32.mrb[42].mxu0 }
 0x14d   : > { %v2319_v45 = vpop.f32.mrb[43].mxu1  ;;  %v2231_v5 = vpop.f32.mrb[43].mxu0 }
 0x14e   : > { %v2320_v53 = vadd.f32 %v2319_v45, %v2318_v42  ;;  %v2965_v54 = vadd.f32 %v2231_v5, %v2230_v23  ;;  %v2967_v55 = vadd.f32 %v2317_v41, %v1152_v39  ;;  %v1171_v42 = vadd.f32 %v2945_v63, %v2917_v38 }
 0x150   : > { %v2969_v30 = vadd.f32 %v2320_v53, %v1155_v49 }
 0x152   : > { %v2321_v57 = vpop.f32.mrb[44].mxu1  ;;  %v2233_v58 = vpop.f32.mrb[44].mxu0 }
 0x153   : > { %v2322_v60 = vpop.f32.mrb[45].mxu1  ;;  %v2234_v19 = vpop.f32.mrb[45].mxu0 }
 0x154   : > { %v2323_v1 = vadd.f32 %v2322_v60, %v2321_v57  ;;  %v2324_v35 = vpop.f32.mrb[46].mxu1  ;;  %v2972_v2 = vadd.f32 %v2234_v19, %v2233_v58  ;;  %v2236_v12 = vpop.f32.mrb[46].mxu0 }
 0x155   : > { %v2325_v13 = vpop.f32.mrb[47].mxu1  ;;  %v2237_v26 = vpop.f32.mrb[47].mxu0 }
 0x156   : > { %v2326_v6 = vadd.f32 %v2325_v13, %v2324_v35  ;;  %v2975_v44 = vadd.f32 %v2237_v26, %v2236_v12  ;;  %v2977_v15 = vadd.f32 %v2323_v1, %v1160_v0  ;;  %v1176_v0 = vadd.f32 %v2952_v20, %v2917_v38 }
 0x158   : > { %v2979_v17 = vadd.f32 %v2326_v6, %v1163_v14 }
 0x15a   : > { %v2327_v21 = vpop.f32.mrb[48].mxu1  ;;  %v2405_v24 = vpop.f32.mrb[48].mxu0 }
 0x15b   : > { %v1434_v40 = vadd.f32 %v2405_v24, %v2927_v7  ;;  %v2328_v50 = vpop.f32.mrb[49].mxu1  ;;  %v1425_v11 = vpop.f32.mrb[49].mxu0 }
 0x15c   : > { %v2329_v36 = vadd.f32 %v2328_v50, %v2327_v21  ;;  %v1426_v18 = vadd.f32 %v1425_v11, %v2921_v51  ;;  %v2330_v37 = vpop.f32.mrb[50].mxu1  ;;  %v2406_v46 = vpop.f32.mrb[50].mxu0  ;;  %v1179_v21 = vadd.f32 %v2955_v31, %v2917_v38 }
 0x15d   : > { %v1437_v61 = vadd.f32 %v2406_v46, %v2929_v8  ;;  %v2331_v39 = vpop.f32.mrb[51].mxu1  ;;  %v1428_v41 = vpop.f32.mrb[51].mxu0  ;;  %v1554_v5 = vmax.f32 %v1434_v40, 0.0 }
 0x15e   : > { %v2332_v23 = vadd.f32 %v2331_v39, %v2330_v37  ;;  %v1429_v7 = vadd.f32 %v1428_v41, %v2923_v52  ;;  %v2989_v45 = vadd.f32 %v2329_v36, %v1168_v25  ;;  %v1552_v49 = vmax.f32 %v1426_v18, 0.0 }
 0x15f   : > { %v1555_v59 = vmax.f32 %v1437_v61, 0.0 }
 0x160   : > { %v1553_v51 = vmax.f32 %v1429_v7, 0.0  ;;  %v2996_v8 = vadd.f32 %v2332_v23, %v1171_v42 }
 0x161   : > { %v2064_v53 = vpack.c.bf16 %v1555_v59, %v1554_v5 }
 0x162   : > { %v2059_v63 = vpack.c.bf16 %v1553_v51, %v1552_v49  ;;  %v2333_v57 = vpop.f32.mrb[52].mxu1  ;;  %v2409_v58 = vpop.f32.mrb[52].mxu0  ;;  %v1187_v49 = vadd.f32 %v2965_v54, %v2917_v38 }
 0x163   : > { %2136 = vst [vmem:[%s2994_s30 + $0x8] sm:$0xff] %v2064_v53   ;;  %v1450_v52 = vadd.f32 %v2409_v58, %v2939_v47  ;;  %v2334_v60 = vpop.f32.mrb[53].mxu1  ;;  %v1441_v19 = vpop.f32.mrb[53].mxu0 }
 0x164   : > { %2060 = vst [vmem:[%s2994_s30] sm:$0xff] %v2059_v63   ;;  %v2335_v1 = vadd.f32 %v2334_v60, %v2333_v57  ;;  %v1442_v35 = vadd.f32 %v1441_v19, %v2933_v27  ;;  %v2336_v12 = vpop.f32.mrb[54].mxu1  ;;  %v2410_v13 = vpop.f32.mrb[54].mxu0 }
 0x165   : > { %v1453_v26 = vadd.f32 %v2410_v13, %v2941_v48  ;;  %v2337_v14 = vpop.f32.mrb[55].mxu1  ;;  %v1444_v6 = vpop.f32.mrb[55].mxu0  ;;  %v1558_v20 = vmax.f32 %v1450_v52, 0.0 }
 0x166   : > { %v2338_v47 = vadd.f32 %v2337_v14, %v2336_v12  ;;  %v1445_v24 = vadd.f32 %v1444_v6, %v2935_v29  ;;  %v3008_v40 = vadd.f32 %v2335_v1, %v1176_v0  ;;  %v1556_v11 = vmax.f32 %v1442_v35, 0.0 }
 0x167   : > { %v1559_v50 = vmax.f32 %v1453_v26, 0.0  ;;  %v1184_v29 = vadd.f32 %v2962_v43, %v2917_v38 }
 0x168   : > { %v1557_v27 = vmax.f32 %v1445_v24, 0.0  ;;  %v3010_v25 = vadd.f32 %v2338_v47, %v1179_v21  ;;  %v1195_v47 = vadd.f32 %v2975_v44, %v2917_v38  ;;  %v1200_v44 = vadd.f32 %v2898_v56, %v2917_v38 }
 0x169   : > { %v2074_v36 = vpack.c.bf16 %v1559_v50, %v1558_v20 }
 0x16a   : > { %v2069_v48 = vpack.c.bf16 %v1557_v27, %v1556_v11  ;;  %v2339_v18 = vpop.f32.mrb[56].mxu1  ;;  %v2413_v37 = vpop.f32.mrb[56].mxu0 }
 0x16b   : > { %2138 = vst [vmem:[%s2994_s30 + $0x18] sm:$0xff] %v2074_v36   ;;  %v1466_v46 = vadd.f32 %v2413_v37, %v2957_v32  ;;  %v2340_v31 = vpop.f32.mrb[57].mxu1  ;;  %v1457_v61 = vpop.f32.mrb[57].mxu0 }
 0x16c   : > { %2137 = vst [vmem:[%s2994_s30 + $0x10] sm:$0xff] %v2069_v48   ;;  %v2341_v39 = vadd.f32 %v2340_v31, %v2339_v18  ;;  %v1458_v41 = vadd.f32 %v1457_v61, %v2947_v3  ;;  %v2342_v42 = vpop.f32.mrb[58].mxu1  ;;  %v2414_v23 = vpop.f32.mrb[58].mxu0 }
 0x16d   : > { %v1469_v7 = vadd.f32 %v2414_v23, %v2959_v33  ;;  %v2343_v5 = vpop.f32.mrb[59].mxu1  ;;  %v1460_v59 = vpop.f32.mrb[59].mxu0  ;;  %v1562_v43 = vmax.f32 %v1466_v46, 0.0 }
 0x16e   : > { %v2344_v32 = vadd.f32 %v2343_v5, %v2342_v42  ;;  %v1461_v51 = vadd.f32 %v1460_v59, %v2949_v9  ;;  %v3022_v53 = vadd.f32 %v2341_v39, %v1184_v29  ;;  %v1560_v57 = vmax.f32 %v1458_v41, 0.0 }
 0x16f   : > { %v1563_v63 = vmax.f32 %v1469_v7, 0.0  ;;  %v1192_v9 = vadd.f32 %v2972_v2, %v2917_v38  ;;  %v1203_v7 = vadd.f32 %v2900_v62, %v2917_v38  ;;  %v1208_v62 = vadd.f32 %v2902_v4, %v2917_v38 }
 0x170   : > { %v1561_v3 = vmax.f32 %v1461_v51, 0.0  ;;  %v3024_v58 = vadd.f32 %v2344_v32, %v1187_v49 }
 0x171   : > { %v2084_v52 = vpack.c.bf16 %v1563_v63, %v1562_v43 }
 0x172   : > { %v2079_v33 = vpack.c.bf16 %v1561_v3, %v1560_v57  ;;  %v2345_v60 = vpop.f32.mrb[60].mxu1  ;;  %v2417_v19 = vpop.f32.mrb[60].mxu0 }
 0x173   : > { %2140 = vst [vmem:[%s2994_s30 + $0x28] sm:$0xff] %v2084_v52   ;;  %v1482_v0 = vadd.f32 %v2417_v19, %v2977_v15  ;;  %v2346_v54 = vpop.f32.mrb[61].mxu1  ;;  %v1473_v1 = vpop.f32.mrb[61].mxu0 }
 0x174   : > { %2139 = vst [vmem:[%s2994_s30 + $0x20] sm:$0xff] %v2079_v33   ;;  %v2347_v35 = vadd.f32 %v2346_v54, %v2345_v60  ;;  %v1474_v12 = vadd.f32 %v1473_v1, %v2967_v55  ;;  %v2348_v13 = vpop.f32.mrb[62].mxu1  ;;  %v2418_v26 = vpop.f32.mrb[62].mxu0 }
 0x175   : > { %v1485_v14 = vadd.f32 %v2418_v26, %v2979_v17  ;;  %v2349_v6 = vpop.f32.mrb[63].mxu1  ;;  %v1476_v21 = vpop.f32.mrb[63].mxu0  ;;  %v1566_v2 = vmax.f32 %v1482_v0, 0.0 }
 0x176   : > { %v2350_v15 = vadd.f32 %v2349_v6, %v2348_v13  ;;  %v1477_v24 = vadd.f32 %v1476_v21, %v2969_v30  ;;  %v1353_v20 = vadd.f32 %v2347_v35, %v1192_v9  ;;  %v1564_v11 = vmax.f32 %v1474_v12, 0.0 }
 0x177   : > { %v1567_v50 = vmax.f32 %v1485_v14, 0.0  ;;  %v1211_v35 = vadd.f32 %v2904_v10, %v2917_v38  ;;  %v1216_v10 = vadd.f32 %v2906_v16, %v2917_v38 }
 0x178   : > { %v1565_v27 = vmax.f32 %v1477_v24, 0.0  ;;  %v1356_v55 = vadd.f32 %v2350_v15, %v1195_v47 }
 0x179   : > { %v2094_v36 = vpack.c.bf16 %v1567_v50, %v1566_v2 }
 0x17a   : > { %v2089_v48 = vpack.c.bf16 %v1565_v27, %v1564_v11  ;;  %v2351_v18 = vpop.f32.mrb[64].mxu1  ;;  %v2421_v17 = vpop.f32.mrb[64].mxu0 }
 0x17b   : > { %2142 = vst [vmem:[%s2994_s30 + $0x38] sm:$0xff] %v2094_v36   ;;  %v1498_v37 = vadd.f32 %v2421_v17, %v3008_v40  ;;  %v2352_v46 = vpop.f32.mrb[65].mxu1  ;;  %v1489_v31 = vpop.f32.mrb[65].mxu0 }
 0x17c   : > { %2141 = vst [vmem:[%s2994_s30 + $0x30] sm:$0xff] %v2089_v48   ;;  %v2353_v30 = vadd.f32 %v2352_v46, %v2351_v18  ;;  %v1490_v61 = vadd.f32 %v1489_v31, %v2989_v45  ;;  %v2354_v29 = vpop.f32.mrb[66].mxu1  ;;  %v2422_v39 = vpop.f32.mrb[66].mxu0 }
 0x17d   : > { %v1501_v41 = vadd.f32 %v2422_v39, %v3010_v25  ;;  %v2355_v42 = vpop.f32.mrb[67].mxu1  ;;  %v1492_v23 = vpop.f32.mrb[67].mxu0  ;;  %v1570_v56 = vmax.f32 %v1498_v37, 0.0  ;;  %v1219_v37 = vadd.f32 %v2908_v22, %v2917_v38 }
 0x17e   : > { %v2356_v40 = vadd.f32 %v2355_v42, %v2354_v29  ;;  %v1493_v5 = vadd.f32 %v1492_v23, %v2996_v8  ;;  %v1361_v59 = vadd.f32 %v2353_v30, %v1200_v44  ;;  %v1568_v32 = vmax.f32 %v1490_v61, 0.0 }
 0x17f   : > { %v1571_v49 = vmax.f32 %v1501_v41, 0.0 }
 0x180   : > { %v1569_v51 = vmax.f32 %v1493_v5, 0.0  ;;  %v1364_v45 = vadd.f32 %v2356_v40, %v1203_v7 }
 0x181   : > { %v2104_v43 = vpack.c.bf16 %v1571_v49, %v1570_v56 }
 0x182   : > { %v2099_v63 = vpack.c.bf16 %v1569_v51, %v1568_v32  ;;  %v2357_v57 = vpop.f32.mrb[68].mxu1  ;;  %v2425_v25 = vpop.f32.mrb[68].mxu0 }
 0x183   : > { %2144 = vst [vmem:[%s2994_s30 + $0x48] sm:$0xff] %v2104_v43   ;;  %v1514_v3 = vadd.f32 %v2425_v25, %v1353_v20  ;;  %v2358_v52 = vpop.f32.mrb[69].mxu1  ;;  %v1505_v33 = vpop.f32.mrb[69].mxu0  ;;  %v1227_v43 = vadd.f32 %v2912_v34, %v2917_v38 }
 0x184   : > { %2143 = vst [vmem:[%s2994_s30 + $0x40] sm:$0xff] %v2099_v63   ;;  %v2359_v8 = vadd.f32 %v2358_v52, %v2357_v57  ;;  %v1506_v60 = vadd.f32 %v1505_v33, %v3022_v53  ;;  %v2360_v19 = vpop.f32.mrb[70].mxu1  ;;  %v2426_v0 = vpop.f32.mrb[70].mxu0 }
 0x185   : > { %v1517_v54 = vadd.f32 %v2426_v0, %v1356_v55  ;;  %v2361_v1 = vpop.f32.mrb[71].mxu1  ;;  %v1508_v9 = vpop.f32.mrb[71].mxu0  ;;  %v1574_v14 = vmax.f32 %v1514_v3, 0.0 }
 0x186   : > { %v2362_v12 = vadd.f32 %v2361_v1, %v2360_v19  ;;  %v1509_v13 = vadd.f32 %v1508_v9, %v3024_v58  ;;  %v1369_v26 = vadd.f32 %v2359_v8, %v1208_v62  ;;  %v1572_v6 = vmax.f32 %v1506_v60, 0.0 }
 0x187   : > { %v1575_v4 = vmax.f32 %v1517_v54, 0.0 }
 0x188   : > { %v1573_v21 = vmax.f32 %v1509_v13, 0.0  ;;  %v1372_v47 = vadd.f32 %v2362_v12, %v1211_v35 }
 0x189   : > { %v2114_v53 = vpack.c.bf16 %v1575_v4, %v1574_v14 }
 0x18a   : > { %v2109_v15 = vpack.c.bf16 %v1573_v21, %v1572_v6  ;;  %v2363_v24 = vpop.f32.mrb[72].mxu1  ;;  %v2429_v20 = vpop.f32.mrb[72].mxu0 }
 0x18b   : > { %2146 = vst [vmem:[%s2994_s30 + $0x58] sm:$0xff] %v2114_v53   ;;  %v1530_v2 = vadd.f32 %v2429_v20, %v1369_v26  ;;  %v2364_v50 = vpop.f32.mrb[73].mxu1  ;;  %v1521_v11 = vpop.f32.mrb[73].mxu0 }
 0x18c   : > { %2145 = vst [vmem:[%s2994_s30 + $0x50] sm:$0xff] %v2109_v15   ;;  %v2365_v58 = vadd.f32 %v2364_v50, %v2363_v24  ;;  %v1522_v27 = vadd.f32 %v1521_v11, %v1361_v59  ;;  %v2366_v55 = vpop.f32.mrb[74].mxu1  ;;  %v2430_v36 = vpop.f32.mrb[74].mxu0  ;;  %v1224_v59 = vadd.f32 %v2910_v28, %v2917_v38 }
 0x18d   : > { %v1533_v48 = vadd.f32 %v2430_v36, %v1372_v47  ;;  %v2367_v18 = vpop.f32.mrb[75].mxu1  ;;  %v1524_v17 = vpop.f32.mrb[75].mxu0  ;;  %v1578_v30 = vmax.f32 %v1530_v2, 0.0 }
 0x18e   : > { %v2368_v46 = vadd.f32 %v2367_v18, %v2366_v55  ;;  %v1525_v31 = vadd.f32 %v1524_v17, %v1364_v45  ;;  %v1377_v44 = vadd.f32 %v2365_v58, %v1216_v10  ;;  %v1576_v29 = vmax.f32 %v1522_v27, 0.0 }
 0x18f   : > { %v1579_v61 = vmax.f32 %v1533_v48, 0.0 }
 0x190   : > { %v1577_v16 = vmax.f32 %v1525_v31, 0.0  ;;  %v1380_v39 = vadd.f32 %v2368_v46, %v1219_v37 }
 0x191   : > { %v2124_v41 = vpack.c.bf16 %v1579_v61, %v1578_v30 }
 0x192   : > { %v2119_v42 = vpack.c.bf16 %v1577_v16, %v1576_v29  ;;  %v2369_v23 = vpop.f32.mrb[76].mxu1  ;;  %v2433_v7 = vpop.f32.mrb[76].mxu0 }
 0x193   : > { %2148 = vst [vmem:[%s2994_s30 + $0x68] sm:$0xff] %v2124_v41   ;;  %v2370_v40 = vpop.f32.mrb[77].mxu1  ;;  %v1537_v5 = vpop.f32.mrb[77].mxu0 }
 0x194   : > { %2147 = vst [vmem:[%s2994_s30 + $0x60] sm:$0xff] %v2119_v42   ;;  %v2371_v22 = vadd.f32 %v2370_v40, %v2369_v23  ;;  %v1538_v56 = vadd.f32 %v1537_v5, %v1377_v44  ;;  %v2372_v49 = vpop.f32.mrb[78].mxu1  ;;  %v2434_v32 = vpop.f32.mrb[78].mxu0 }
 0x195   : > { %v2373_v51 = vpop.f32.mrb[79].mxu1  ;;  %v1540_v45 = vpop.f32.mrb[79].mxu0 }
 0x196   : > { %v1385_v63 = vadd.f32 %v2371_v22, %v1224_v59  ;;  %v2374_v57 = vadd.f32 %v2373_v51, %v2372_v49  ;;  %v1541_v25 = vadd.f32 %v1540_v45, %v1380_v39  ;;  %v1580_v52 = vmax.f32 %v1538_v56, 0.0 }
 0x198   : > { %v1546_v3 = vadd.f32 %v2433_v7, %v1385_v63  ;;  %v1388_v33 = vadd.f32 %v2374_v57, %v1227_v43  ;;  %v1581_v62 = vmax.f32 %v1541_v25, 0.0 }
 0x19a   : > { %v1549_v28 = vadd.f32 %v2434_v32, %v1388_v33  ;;  %v2129_v8 = vpack.c.bf16 %v1581_v62, %v1580_v52  ;;  %v1582_v60 = vmax.f32 %v1546_v3, 0.0 }
 0x19c   : > { %v1583_v19 = vmax.f32 %v1549_v28, 0.0  ;;  %2149 = vst [vmem:[%s2994_s30 + $0x70] sm:$0xff] %v2129_v8  }
 0x19e   : > { %v2134_v0 = vpack.c.bf16 %v1583_v19, %v1582_v60 }
 0x1a0   : > { %2150 = vst [vmem:[%s2994_s30 + $0x78] sm:$0xff] %v2134_v0  }
 0x1a1 PF: > { %s13_s14 = sadd.s32 1, %s2646_s14   ;;  %s3081_s12 = smov %s2642_s13 }
 0x1a2   : > { %p10_p5 = scmp.ge.s32.totalorder %s13_s14, 4   ;;  %s3082_s13 = smov %s3084_s15 }
 0x1a4   :  { %12 = sbr.rel (!%p10_p5) target bundleno = 2 (0x2), region = 68 }

// kernel: model_wrapper_forward.18
= control target key start
LH: loop header
LB: loop body
LE: loop exit
PB: predicated region body
PF: predicated region fallthrough
CT: control target
= control target key end

     0   :  { %s1364_s12 = smov 0   ;;  %s1366_s13 = smov 0   ;;  %s1537_s0 = inlined_call_operand.vmem [shape: bf16[128,576], index: 0, kind: input, shape index: {}]   ;;  %s1538_s1 = inlined_call_operand.vmem [shape: bf16[576,128], index: 1, kind: input, shape index: {}]   ;;  %s1539_s2 = inlined_call_operand.vmem [shape: f32[1,128], index: 2, kind: input, shape index: {}]   ;;  %s1540_s3 = inlined_call_operand.vmem [shape: bf16[128,128], index: 3, kind: output, shape index: {}]  }
   0x1   :  { %s1368_s14 = smov 0  }
   0x2 LB: > { %s25_s15 = sadd.s32 1, %s1338_s13  ;;  %p1012_p0 = scmp.ge.s32.totalorder %s1342_s14, 1  ;;  %s1342_s14 = sphi %s1368_s14, %s13_s14   ;;  %s1338_s13 = sphi %s1366_s13, %s1542_s13   ;;  %s1334_s12 = sphi %s1364_s12, %s1541_s12  }
   0x3   : > { %p27_p1 = scmp.ge.s32.totalorder %s25_s15, 2  ;;  %p170_p2 = scmp.lt.s32.totalorder %s1342_s14, 3 }
   0x5   : > { %s1544_s15 = smov (%p27_p1, %s25_s15), 0  ;;  %p171_p3 = pnand %p1012_p0, %p170_p2 }
   0x6   : > { %v1256_v0 = vld [vmem:[%s1538_s1 + $0x40] sm:$0xff] (!%p171_p3)   ;;  %v1260_v4 = vld [vmem:[%s1538_s1 + $0x48] sm:$0xff] (!%p171_p3)   ;;  %v1264_v8 = vld [vmem:[%s1538_s1 + $0x50] sm:$0xff] (!%p171_p3)   ;;  %s1013_s23 = sshll.u32 (!%p171_p3), %s1334_s12, 3  ;;  %vm648_vm0 = vcmask (!%p171_p3), 523264  }
   0x7   : > { %174 = sbr.rel (%p171_p3) target bundleno = 295 (0x127), region = 32  ;;  %v1257_v1 = vld [vmem:[%s1538_s1 + $0xc0] sm:$0xff] (!%p171_p3)   ;;  %1119 = vmatprep.subr.bf16.mxu0 (!%p171_p3), %v1256_v0  ;;  %v1261_v5 = vld [vmem:[%s1538_s1 + $0xc8] sm:$0xff] (!%p171_p3)   ;;  %v1265_v9 = vld [vmem:[%s1538_s1 + $0xd0] sm:$0xff] (!%p171_p3)   ;;  %p206_p4 = scmp.lt.s32.totalorder (!%p171_p3), %s1013_s23, 15 }
   0x8   : > { %v1258_v2 = vld [vmem:[%s1538_s1] sm:$0xff] (!%p171_p3)   ;;  %1159 = vmatprep.subr.bf16.mxu1 (!%p171_p3), %v1257_v1  ;;  %v1262_v6 = vld [vmem:[%s1538_s1 + $0x8] sm:$0xff] (!%p171_p3)   ;;  %v1266_v10 = vld [vmem:[%s1538_s1 + $0x10] sm:$0xff] (!%p171_p3)  }
   0x9   : > { %v1259_v3 = vld [vmem:[%s1538_s1 + $0x80] sm:$0xff] (!%p171_p3)   ;;  %1120 = vmatpush3.bf16.msra.mxu0 (!%p171_p3), %v1258_v2  ;;  %v1263_v7 = vld [vmem:[%s1538_s1 + $0x88] sm:$0xff] (!%p171_p3)   ;;  %v1267_v11 = vld [vmem:[%s1538_s1 + $0x90] sm:$0xff] (!%p171_p3)  }
   0xa   : > { %1160 = vmatpush3.bf16.msra.mxu1 (!%p171_p3), %v1259_v3  ;;  %1121 = vmatprep.subr.bf16.mxu0 (!%p171_p3), %v1260_v4  ;;  %v1268_v12 = vld [vmem:[%s1538_s1 + $0x58] sm:$0xff] (!%p171_p3)   ;;  %v1272_v16 = vld [vmem:[%s1538_s1 + $0x60] sm:$0xff] (!%p171_p3)   ;;  %v1276_v20 = vld [vmem:[%s1538_s1 + $0x68] sm:$0xff] (!%p171_p3)  }
   0xb   : > { %1161 = vmatprep.subr.bf16.mxu1 (!%p171_p3), %v1261_v5  ;;  %v1269_v13 = vld [vmem:[%s1538_s1 + $0xd8] sm:$0xff] (!%p171_p3)   ;;  %v1273_v17 = vld [vmem:[%s1538_s1 + $0xe0] sm:$0xff] (!%p171_p3)   ;;  %v1277_v21 = vld [vmem:[%s1538_s1 + $0xe8] sm:$0xff] (!%p171_p3)  }
   0xc   : > { %v1270_v14 = vld [vmem:[%s1538_s1 + $0x18] sm:$0xff] (!%p171_p3)   ;;  %v1274_v18 = vld [vmem:[%s1538_s1 + $0x20] sm:$0xff] (!%p171_p3)   ;;  %v1278_v22 = vld [vmem:[%s1538_s1 + $0x28] sm:$0xff] (!%p171_p3)  }
   0xd   : > { %1122 = vmatpush3.bf16.msra.mxu0 (!%p171_p3), %v1262_v6  ;;  %v1271_v15 = vld [vmem:[%s1538_s1 + $0x98] sm:$0xff] (!%p171_p3)   ;;  %v1275_v19 = vld [vmem:[%s1538_s1 + $0xa0] sm:$0xff] (!%p171_p3)   ;;  %v1279_v23 = vld [vmem:[%s1538_s1 + $0xa8] sm:$0xff] (!%p171_p3)  }
   0xe   : > { %1162 = vmatpush3.bf16.msra.mxu1 %v1263_v7  ;;  %1123 = vmatprep.subr.bf16.mxu0 %v1264_v8  ;;  %s1546_s23 = smov (!%p206_p4, %s1013_s23), 15  ;;  %v1280_v24 = vld [vmem:[%s1538_s1 + $0x70] sm:$0xff]   ;;  %v1284_v28 = vld [vmem:[%s1538_s1 + $0x78] sm:$0xff]   ;;  %v1294_v36 = vld [vmem:[%s1538_s1 + $0x100] sm:$0xff]  }
   0xf   : > { %1163 = vmatprep.subr.bf16.mxu1 %v1265_v9  ;;  %v1281_v25 = vld [vmem:[%s1538_s1 + $0xf0] sm:$0xff]   ;;  %s1231_s22 = smul.u32 20, %s1546_s23  ;;  %v1285_v29 = vld [vmem:[%s1538_s1 + $0xf8] sm:$0xff]   ;;  %v1301_v39 = vld [vmem:[%s1538_s1 + $0x108] sm:$0xff]   ;;  %s1016_s26 = sshll.u32 %s1546_s23, 2 }
  0x10   : > { %v1282_v26 = vld [vmem:[%s1538_s1 + $0x30] sm:$0xff]   ;;  %v1286_v30 = vld [vmem:[%s1538_s1 + $0x38] sm:$0xff]   ;;  %v1017_v58 = vld [vmem:[%s1539_s2] ss:$0 sm:$0xff]  ;;  %s226_s29 = scalar_lea.vmem %s1540_s3, %s1016_s26 }
  0x11   : > { %1124 = vmatpush3.bf16.msra.mxu0 %v1266_v10  ;;  %v1283_v27 = vld [vmem:[%s1538_s1 + $0xb0] sm:$0xff]   ;;  %s1481_s6 = scalar_lea.vmem %s1537_s0, %s1231_s22  ;;  %v1287_v31 = vld [vmem:[%s1538_s1 + $0xb8] sm:$0xff]  }
  0x12   : > { %1164 = vmatpush3.bf16.msra.mxu1 %v1267_v11  ;;  %1125 = vmatprep.subr.bf16.mxu0 %v1268_v12  ;;  %v1288_v32 = vld [vmem:[%s1481_s6] ss:$20 sps:$4 sm:$0xff]   ;;  %v1290_v33 = vld [vmem:[%s1481_s6 + $0x4] ss:$20 sps:$4 sm:$0xff]   ;;  %v1291_v34 = vld [vmem:[%s1481_s6 + $0x8] ss:$20 sps:$4 sm:$0xff]  }
  0x13   : > { %1165 = vmatprep.subr.bf16.mxu1 %v1269_v13  ;;  %v1293_v35 = vld [vmem:[%s1481_s6 + $0xc] ss:$20 sps:$4 sm:$0xff]   ;;  %693 = vmatprep.mubr.bf16.mxu0 %v1290_v33  ;;  %v1297_v38 = vld [vmem:[%s1481_s6 + $0x34] ss:$20 sps:$4 sm:$0xff]   ;;  %v1300_v41 = vld [vmem:[%s1481_s6 + $0x30] ss:$20 sps:$4 sm:$0xff]  }
  0x14   : > { %758 = vmatprep.mubr.bf16.mxu1 %v1293_v35  ;;  %v1295_v37 = vld [vmem:[%s1481_s6 + $0x2c] ss:$20 sps:$4 sm:$0xff]   ;;  %v1299_v40 = vld [vmem:[%s1481_s6 + $0x28] ss:$20 sps:$4 sm:$0xff]   ;;  %v1308_v44 = vld [vmem:[%s1538_s1 + $0x110] sm:$0xff]  }
  0x15   : > { %1126 = vmatpush3.bf16.msra.mxu0 %v1270_v14  ;;  %v1302_v42 = vld [vmem:[%s1481_s6 + $0x54] ss:$20 sps:$4 sm:$0xff]   ;;  %v1304_v43 = vld [vmem:[%s1481_s6 + $0x5c] ss:$20 sps:$4 sm:$0xff]   ;;  %v1307_v47 = vld [vmem:[%s1481_s6 + $0x58] ss:$20 sps:$4 sm:$0xff]  }
  0x16   : > { %1166 = vmatpush3.bf16.msra.mxu1 %v1271_v15  ;;  %1127 = vmatprep.subr.bf16.mxu0 %v1272_v16  ;;  %v1315_v45 = vld [vmem:[%s1538_s1 + $0x118] sm:$0xff]   ;;  %v1306_v46 = vld [vmem:[%s1481_s6 + $0x50] ss:$20 sps:$4 sm:$0xff]   ;;  %v1314_v51 = vld [vmem:[%s1481_s6 + $0x80] ss:$20 sps:$4 sm:$0xff]  }
  0x17   : > { %1167 = vmatprep.subr.bf16.mxu1 %v1273_v17  ;;  %v1309_v48 = vld [vmem:[%s1481_s6 + $0x7c] ss:$20 sps:$4 sm:$0xff]   ;;  %v1311_v49 = vld [vmem:[%s1481_s6 + $0x84] ss:$20 sps:$4 sm:$0xff]   ;;  %v1317_v53 = vld [vmem:[%s1481_s6 + $0x60] ss:$20 sps:$4 sm:$0xff]  }
  0x18   : > { %v1313_v50 = vld [vmem:[%s1481_s6 + $0x78] ss:$20 sps:$4 sm:$0xff]   ;;  %v1316_v52 = vld [vmem:[%s1481_s6 + $0x10] ss:$20 sps:$4 sm:$0xff]   ;;  %v1319_v55 = vld [vmem:[%s1481_s6 + $0x88] ss:$20 sps:$4 sm:$0xff]  }
  0x19   : > { %1128 = vmatpush3.bf16.msra.mxu0 %v1274_v18  ;;  %v1318_v54 = vld [vmem:[%s1481_s6 + $0x38] ss:$20 sps:$4 sm:$0xff]  }
  0x1a   : > { %1168 = vmatpush3.bf16.msra.mxu1 %v1275_v19  ;;  %1129 = vmatprep.subr.bf16.mxu0 %v1276_v20 }
  0x1b   : > { %1169 = vmatprep.subr.bf16.mxu1 %v1277_v21 }
  0x1d   : > { %1130 = vmatpush3.bf16.msra.mxu0 %v1278_v22 }
  0x1e   : > { %1170 = vmatpush3.bf16.msra.mxu1 %v1279_v23  ;;  %1131 = vmatprep.subr.bf16.mxu0 %v1280_v24 }
  0x1f   : > { %1171 = vmatprep.subr.bf16.mxu1 %v1281_v25 }
  0x21   : > { %1132 = vmatpush3.bf16.msra.mxu0 %v1282_v26 }
  0x22   : > { %1172 = vmatpush3.bf16.msra.mxu1 %v1283_v27  ;;  %1133 = vmatprep.subr.bf16.mxu0 %v1284_v28 }
  0x23   : > { %1173 = vmatprep.subr.bf16.mxu1 %v1285_v29 }
  0x25   : > { %1134 = vmatpush3.bf16.msra.mxu0 %v1286_v30 }
  0x26   : > { %1174 = vmatpush3.bf16.msra.mxu1 %v1287_v31  ;;  %1207 = vmatprep.subr.bf16.mxu0 %v1294_v36 }
  0x27   : > { %1223 = vmatprep.subr.bf16.mxu1 %v1294_v36 }
  0x28   : > { %694 = vmatmul.mubr.bf16.vlgmr.msra.gmra.mrb[0].mxu0 %v1288_v32 }
  0x29   : > { %759 = vmatmul.mubr.bf16.vlgmr.msra.gmra.mrb[0].mxu1 %v1291_v34  ;;  %1208 = vmatpush3.bf16.msra.mxu0 %v1294_v36 }
  0x2a   : > { %1227 = vmatpush3.bf16.msra.mxu1 %v1294_v36  ;;  %701 = vmatprep.mubr.bf16.mxu0 %v1295_v37 }
  0x2b   : > { %766 = vmatprep.mubr.bf16.mxu1 %v1297_v38  ;;  %1209 = vmatprep.subr.bf16.mxu0 %v1301_v39 }
  0x2c   : > { %1224 = vmatprep.subr.bf16.mxu1 %v1301_v39 }
  0x2d   : > { %1210 = vmatpush3.bf16.msra.mxu0 %v1301_v39 }
  0x2e   : > { %1228 = vmatpush3.bf16.msra.mxu1 %v1301_v39  ;;  %1211 = vmatprep.subr.bf16.mxu0 %v1308_v44 }
  0x2f   : > { %1225 = vmatprep.subr.bf16.mxu1 %v1308_v44 }
  0x30   : > { %702 = vmatmul.mubr.bf16.gmra.mrb[4].mxu0 %v1299_v40 }
  0x31   : > { %767 = vmatmul.mubr.bf16.gmra.mrb[4].mxu1 %v1300_v41  ;;  %709 = vmatprep.mubr.bf16.mxu0 %v1302_v42 }
  0x32   : > { %774 = vmatprep.mubr.bf16.mxu1 %v1304_v43  ;;  %1212 = vmatpush3.bf16.msra.mxu0 %v1308_v44 }
  0x33   : > { %1229 = vmatpush3.bf16.msra.mxu1 %v1308_v44  ;;  %1213 = vmatprep.subr.bf16.mxu0 %v1315_v45 }
  0x34   : > { %1226 = vmatprep.subr.bf16.mxu1 %v1315_v45 }
  0x36   : > { %1214 = vmatpush3.bf16.msra.mxu0 %v1315_v45 }
  0x37   : > { %1230 = vmatpush3.bf16.msra.mxu1 %v1315_v45 }
  0x38   : > { %710 = vmatmul.mubr.bf16.gmra.mrb[8].mxu0 %v1306_v46 }
  0x39   : > { %775 = vmatmul.mubr.bf16.gmra.mrb[8].mxu1 %v1307_v47  ;;  %717 = vmatprep.mubr.bf16.mxu0 %v1309_v48 }
  0x3a   : > { %782 = vmatprep.mubr.bf16.mxu1 %v1311_v49 }
  0x40   : > { %718 = vmatmul.mubr.bf16.gmra.mrb[12].mxu0 %v1313_v50 }
  0x41   : > { %783 = vmatmul.mubr.bf16.gmra.mrb[12].mxu1 %v1314_v51  ;;  %1215 = vmatprep.mubr.msk.bf16.mxu0 %vm648_vm0, %v1316_v52 }
  0x42   : > { %1219 = vmatprep.mubr.msk.bf16.mxu1 %vm648_vm0, %v1317_v53 }
  0x48   : > { %1216 = vmatmul.mubr.msk.bf16.vlgmr.msra.gmra.mrb[16].mxu0 %vm648_vm0, %v1318_v54 }
  0x49   : > { %1220 = vmatmul.mubr.msk.bf16.vlgmr.msra.gmra.mrb[16].mxu1 %vm648_vm0, %v1319_v55 }
  0xfb   : > { %v1135_v56 = vpop.f32.mrb[0].mxu0 }
  0xfc   : > { %v1175_v57 = vpop.f32.mrb[0].mxu1  ;;  %v1136_v59 = vpop.f32.mrb[1].mxu0 }
  0xfd   : > { %v1137_v60 = vadd.f32 %v1136_v59, %v1135_v56  ;;  %v1176_v61 = vpop.f32.mrb[1].mxu1  ;;  %v1138_v62 = vpop.f32.mrb[2].mxu0 }
  0xfe   : > { %v1177_v63 = vadd.f32 %v1176_v61, %v1175_v57  ;;  %v1178_v0 = vpop.f32.mrb[2].mxu1  ;;  %v1139_v1 = vpop.f32.mrb[3].mxu0 }
  0xff   : > { %v696_v2 = vadd.f32 %v1137_v60, %v1017_v58  ;;  %v1140_v3 = vadd.f32 %v1139_v1, %v1138_v62  ;;  %v1179_v4 = vpop.f32.mrb[3].mxu1 }
 0x100   : > { %v1180_v5 = vadd.f32 %v1179_v4, %v1178_v0 }
 0x101   : > { %v699_v6 = vadd.f32 %v1140_v3, %v1017_v58  ;;  %v761_v7 = vadd.f32 %v1177_v63, %v696_v2 }
 0x103   : > { %v1141_v8 = vpop.f32.mrb[4].mxu0  ;;  %v764_v9 = vadd.f32 %v1180_v5, %v699_v6 }
 0x104   : > { %v1181_v10 = vpop.f32.mrb[4].mxu1  ;;  %v1142_v11 = vpop.f32.mrb[5].mxu0 }
 0x105   : > { %v1143_v12 = vadd.f32 %v1142_v11, %v1141_v8  ;;  %v1182_v13 = vpop.f32.mrb[5].mxu1  ;;  %v1144_v14 = vpop.f32.mrb[6].mxu0 }
 0x106   : > { %v1183_v15 = vadd.f32 %v1182_v13, %v1181_v10  ;;  %v1184_v16 = vpop.f32.mrb[6].mxu1  ;;  %v1145_v17 = vpop.f32.mrb[7].mxu0 }
 0x107   : > { %v704_v18 = vadd.f32 %v1143_v12, %v1017_v58  ;;  %v1146_v19 = vadd.f32 %v1145_v17, %v1144_v14  ;;  %v1185_v20 = vpop.f32.mrb[7].mxu1 }
 0x108   : > { %v1186_v21 = vadd.f32 %v1185_v20, %v1184_v16 }
 0x109   : > { %v707_v22 = vadd.f32 %v1146_v19, %v1017_v58  ;;  %v769_v23 = vadd.f32 %v1183_v15, %v704_v18 }
 0x10b   : > { %v1147_v24 = vpop.f32.mrb[8].mxu0  ;;  %v772_v25 = vadd.f32 %v1186_v21, %v707_v22 }
 0x10c   : > { %v1187_v26 = vpop.f32.mrb[8].mxu1  ;;  %v1148_v27 = vpop.f32.mrb[9].mxu0 }
 0x10d   : > { %v1149_v28 = vadd.f32 %v1148_v27, %v1147_v24  ;;  %v1188_v29 = vpop.f32.mrb[9].mxu1  ;;  %v1150_v30 = vpop.f32.mrb[10].mxu0 }
 0x10e   : > { %v1189_v31 = vadd.f32 %v1188_v29, %v1187_v26  ;;  %v1190_v32 = vpop.f32.mrb[10].mxu1  ;;  %v1151_v33 = vpop.f32.mrb[11].mxu0 }
 0x10f   : > { %v712_v34 = vadd.f32 %v1149_v28, %v1017_v58  ;;  %v1152_v35 = vadd.f32 %v1151_v33, %v1150_v30  ;;  %v1191_v36 = vpop.f32.mrb[11].mxu1 }
 0x110   : > { %v1192_v37 = vadd.f32 %v1191_v36, %v1190_v32 }
 0x111   : > { %v715_v38 = vadd.f32 %v1152_v35, %v1017_v58  ;;  %v777_v39 = vadd.f32 %v1189_v31, %v712_v34 }
 0x113   : > { %v1153_v40 = vpop.f32.mrb[12].mxu0  ;;  %v780_v41 = vadd.f32 %v1192_v37, %v715_v38 }
 0x114   : > { %v1193_v42 = vpop.f32.mrb[12].mxu1  ;;  %v1154_v43 = vpop.f32.mrb[13].mxu0 }
 0x115   : > { %v1155_v44 = vadd.f32 %v1154_v43, %v1153_v40  ;;  %v1194_v45 = vpop.f32.mrb[13].mxu1  ;;  %v1156_v46 = vpop.f32.mrb[14].mxu0 }
 0x116   : > { %v1195_v47 = vadd.f32 %v1194_v45, %v1193_v42  ;;  %v1196_v48 = vpop.f32.mrb[14].mxu1  ;;  %v1157_v49 = vpop.f32.mrb[15].mxu0 }
 0x117   : > { %v720_v50 = vadd.f32 %v1155_v44, %v1017_v58  ;;  %v1158_v51 = vadd.f32 %v1157_v49, %v1156_v46  ;;  %v1197_v52 = vpop.f32.mrb[15].mxu1 }
 0x118   : > { %v1198_v53 = vadd.f32 %v1197_v52, %v1196_v48 }
 0x119   : > { %v723_v54 = vadd.f32 %v1158_v51, %v1017_v58  ;;  %v785_v55 = vadd.f32 %v1195_v47, %v720_v50 }
 0x11b   : > { %v1217_v56 = vpop.f32.mrb[16].mxu0  ;;  %v788_v57 = vadd.f32 %v1198_v53, %v723_v54 }
 0x11c   : > { %v834_v59 = vadd.f32 %v1217_v56, %v769_v23  ;;  %v1221_v60 = vpop.f32.mrb[16].mxu1  ;;  %v825_v61 = vpop.f32.mrb[17].mxu0 }
 0x11d   : > { %v850_v62 = vadd.f32 %v1221_v60, %v785_v55  ;;  %v826_v63 = vadd.f32 %v825_v61, %v761_v7  ;;  %v841_v0 = vpop.f32.mrb[17].mxu1  ;;  %v1218_v1 = vpop.f32.mrb[18].mxu0 }
 0x11e   : > { %v842_v2 = vadd.f32 %v841_v0, %v777_v39  ;;  %v837_v3 = vadd.f32 %v1218_v1, %v772_v25  ;;  %v1222_v4 = vpop.f32.mrb[18].mxu1  ;;  %v828_v5 = vpop.f32.mrb[19].mxu0  ;;  %v858_v11 = vmax.f32 %v834_v59, 0.0 }
 0x11f   : > { %v853_v6 = vadd.f32 %v1222_v4, %v788_v57  ;;  %v829_v8 = vadd.f32 %v828_v5, %v764_v9  ;;  %v844_v10 = vpop.f32.mrb[19].mxu1  ;;  %v862_v13 = vmax.f32 %v850_v62, 0.0  ;;  %v856_v14 = vmax.f32 %v826_v63, 0.0 }
 0x120   : > { %v859_v58 = vmax.f32 %v837_v3, 0.0  ;;  %v845_v12 = vadd.f32 %v844_v10, %v780_v41  ;;  %v860_v16 = vmax.f32 %v842_v2, 0.0 }
 0x121   : > { %v863_v7 = vmax.f32 %v853_v6, 0.0  ;;  %v857_v15 = vmax.f32 %v829_v8, 0.0 }
 0x122   : > { %v1104_v17 = vpack.c.bf16 %v859_v58, %v858_v11  ;;  %v861_v18 = vmax.f32 %v845_v12, 0.0 }
 0x123   : > { %v1114_v19 = vpack.c.bf16 %v863_v7, %v862_v13  ;;  %v1099_v20 = vpack.c.bf16 %v857_v15, %v856_v14 }
 0x124   : > { %1116 = vst [vmem:[%s226_s29 + $0x8] sm:$0xff] %v1104_v17   ;;  %v1109_v21 = vpack.c.bf16 %v861_v18, %v860_v16 }
 0x125   : > { %1118 = vst [vmem:[%s226_s29 + $0x18] sm:$0xff] %v1114_v19   ;;  %1100 = vst [vmem:[%s226_s29] sm:$0xff] %v1099_v20  }
 0x126   : > { %1117 = vst [vmem:[%s226_s29 + $0x10] sm:$0xff] %v1109_v21  }
 0x127 PF: > { %s13_s14 = sadd.s32 1, %s1342_s14   ;;  %s1541_s12 = smov %s1338_s13 }
 0x128   : > { %p10_p5 = scmp.ge.s32.totalorder %s13_s14, 4   ;;  %s1542_s13 = smov %s1544_s15 }
 0x12a   :  { %12 = sbr.rel (!%p10_p5) target bundleno = 2 (0x2), region = 68 }

// kernel: model_wrapper_forward.16
= control target key start
LH: loop header
LB: loop body
LE: loop exit
PB: predicated region body
PF: predicated region fallthrough
CT: control target
= control target key end

     0   :  { %s2925_s15 = smov 0   ;;  %s2927_s16 = smov 0   ;;  %s3371_s0 = inlined_call_operand.vmem [shape: bf16[512,576], index: 0, kind: input, shape index: {}]   ;;  %s3372_s1 = inlined_call_operand.vmem [shape: bf16[576,128], index: 1, kind: input, shape index: {}]   ;;  %s3373_s2 = inlined_call_operand.vmem [shape: f32[1,128], index: 2, kind: input, shape index: {}]   ;;  %s3374_s3 = inlined_call_operand.vmem [shape: bf16[512,128], index: 3, kind: input, shape index: {}]   ;;  %s3375_s4 = inlined_call_operand.vmem [shape: bf16[512,128], index: 4, kind: output, shape index: {}]  }
   0x1   :  { %s2929_s17 = smov 0  }
   0x2 LB: > { %s26_s18 = sadd.s32 1, %s2894_s16  ;;  %p2023_p0 = scmp.ge.s32.totalorder %s2898_s17, 1  ;;  %s2898_s17 = sphi %s2929_s17, %s14_s17   ;;  %s2894_s16 = sphi %s2927_s16, %s3377_s16   ;;  %s2890_s15 = sphi %s2925_s15, %s3376_s15  }
   0x3   : > { %p28_p1 = scmp.ge.s32.totalorder %s26_s18, 2  ;;  %p211_p2 = scmp.lt.s32.totalorder %s2898_s17, 3 }
   0x5   : > { %s3379_s18 = smov (%p28_p1, %s26_s18), 0  ;;  %p212_p3 = pnand %p2023_p0, %p211_p2 }
   0x6   : > { %v2728_v0 = vld [vmem:[%s3372_s1 + $0x40] sm:$0xff] (!%p212_p3)   ;;  %s2024_s21 = sshll.u32 (!%p212_p3), %s2890_s15, 5  ;;  %v2730_v2 = vld [vmem:[%s3372_s1 + $0x48] sm:$0xff] (!%p212_p3)   ;;  %v2732_v4 = vld [vmem:[%s3372_s1 + $0x50] sm:$0xff] (!%p212_p3)   ;;  %vm1080_vm0 = vcmask (!%p212_p3), 523264  }
   0x7   : > { %215 = sbr.rel (%p212_p3) target bundleno = 419 (0x1a3), region = 36  ;;  %v2729_v1 = vld [vmem:[%s3372_s1] sm:$0xff] (!%p212_p3)   ;;  %2403 = vmatprep.subr.bf16.mxu0 (!%p212_p3), %v2728_v0  ;;  %2687 = vmatprep.subr.bf16.mxu1 (!%p212_p3), %v2728_v0  ;;  %p257_p4 = scmp.lt.s32.totalorder (!%p212_p3), %s2024_s21, 63  ;;  %v2731_v3 = vld [vmem:[%s3372_s1 + $0x8] sm:$0xff] (!%p212_p3)   ;;  %v2733_v5 = vld [vmem:[%s3372_s1 + $0x10] sm:$0xff] (!%p212_p3)  }
   0x8   : > { %2404 = vmatpush3.bf16.msra.mxu0 (!%p212_p3), %v2729_v1  ;;  %2695 = vmatpush3.bf16.msra.mxu1 (!%p212_p3), %v2729_v1  ;;  %v2734_v6 = vld [vmem:[%s3372_s1 + $0x58] sm:$0xff] (!%p212_p3)   ;;  %v2736_v8 = vld [vmem:[%s3372_s1 + $0x60] sm:$0xff] (!%p212_p3)   ;;  %v2738_v10 = vld [vmem:[%s3372_s1 + $0x68] sm:$0xff] (!%p212_p3)  }
   0x9   : > { %2405 = vmatprep.subr.bf16.mxu0 (!%p212_p3), %v2730_v2  ;;  %2688 = vmatprep.subr.bf16.mxu1 (!%p212_p3), %v2730_v2  ;;  %v2735_v7 = vld [vmem:[%s3372_s1 + $0x18] sm:$0xff] (!%p212_p3)   ;;  %v2737_v9 = vld [vmem:[%s3372_s1 + $0x20] sm:$0xff] (!%p212_p3)   ;;  %v2739_v13 = vld [vmem:[%s3372_s1 + $0x28] sm:$0xff] (!%p212_p3)  }
   0xa   : > { %v2740_v14 = vld [vmem:[%s3372_s1 + $0x70] sm:$0xff] (!%p212_p3)   ;;  %v2742_v16 = vld [vmem:[%s3372_s1 + $0x78] sm:$0xff] (!%p212_p3)   ;;  %v2750_v18 = vld [vmem:[%s3372_s1 + $0xc0] sm:$0xff] (!%p212_p3)  }
   0xb   : > { %v2741_v15 = vld [vmem:[%s3372_s1 + $0x30] sm:$0xff] (!%p212_p3)   ;;  %v2743_v17 = vld [vmem:[%s3372_s1 + $0x38] sm:$0xff] (!%p212_p3)   ;;  %v2753_v19 = vld [vmem:[%s3372_s1 + $0x100] sm:$0xff] (!%p212_p3)  }
   0xc   : > { %2406 = vmatpush3.bf16.msra.mxu0 (!%p212_p3), %v2731_v3  ;;  %2696 = vmatpush3.bf16.msra.mxu1 (!%p212_p3), %v2731_v3  ;;  %v2751_v22 = vld [vmem:[%s3372_s1 + $0x80] sm:$0xff] (!%p212_p3)   ;;  %v2752_v23 = vld [vmem:[%s3372_s1 + $0xc8] sm:$0xff] (!%p212_p3)   ;;  %v2761_v28 = vld [vmem:[%s3372_s1 + $0xd0] sm:$0xff] (!%p212_p3)  }
   0xd   : > { %2407 = vmatprep.subr.bf16.mxu0 (!%p212_p3), %v2732_v4  ;;  %2689 = vmatprep.subr.bf16.mxu1 (!%p212_p3), %v2732_v4  ;;  %v2754_v26 = vld [vmem:[%s3372_s1 + $0x88] sm:$0xff] (!%p212_p3)   ;;  %v2762_v30 = vld [vmem:[%s3372_s1 + $0x90] sm:$0xff] (!%p212_p3)   ;;  %v2763_v31 = vld [vmem:[%s3372_s1 + $0xd8] sm:$0xff] (!%p212_p3)  }
   0xe   : > { %s3381_s21 = smov (!%p257_p4, %s2024_s21), 63  ;;  %v2764_v34 = vld [vmem:[%s3372_s1 + $0x98] sm:$0xff]   ;;  %v2784_v35 = vld [vmem:[%s3372_s1 + $0x108] sm:$0xff]   ;;  %v2771_v37 = vld [vmem:[%s3372_s1 + $0xe0] sm:$0xff]  }
   0xf   : > { %s2703_s8 = smul.u32 20, %s3381_s21  ;;  %v2772_v39 = vld [vmem:[%s3372_s1 + $0xa0] sm:$0xff]   ;;  %v2773_v40 = vld [vmem:[%s3372_s1 + $0xe8] sm:$0xff]   ;;  %v2781_v46 = vld [vmem:[%s3372_s1 + $0xf0] sm:$0xff]   ;;  %s2027_s7 = sshll.u32 %s3381_s21, 2 }
  0x10   : > { %2408 = vmatpush3.bf16.msra.mxu0 %v2733_v5  ;;  %2697 = vmatpush3.bf16.msra.mxu1 %v2733_v5  ;;  %v2774_v43 = vld [vmem:[%s3372_s1 + $0xa8] sm:$0xff]   ;;  %v2804_v47 = vld [vmem:[%s3372_s1 + $0x110] sm:$0xff]   ;;  %v2783_v49 = vld [vmem:[%s3372_s1 + $0xf8] sm:$0xff]   ;;  %s3240_s10 = scalar_lea.vmem %s3374_s3, %s2027_s7  ;;  %s3275_s13 = scalar_lea.vmem %s3375_s4, %s2027_s7 }
  0x11   : > { %2409 = vmatprep.subr.bf16.mxu0 %v2734_v6  ;;  %2690 = vmatprep.subr.bf16.mxu1 %v2734_v6  ;;  %s2976_s15 = scalar_lea.vmem %s3371_s0, %s2703_s8  ;;  %v2782_v48 = vld [vmem:[%s3372_s1 + $0xb0] sm:$0xff]   ;;  %v2785_v52 = vld [vmem:[%s3372_s1 + $0xb8] sm:$0xff]  }
  0x12   : > { %v2746_v11 = vld [vmem:[%s2976_s15 + $0x4] ss:$20 sps:$4 sm:$0xff]   ;;  %v2744_v20 = vld [vmem:[%s2976_s15] ss:$20 sps:$4 sm:$0xff]   ;;  %v2759_v27 = vld [vmem:[%s2976_s15 + $0x28] ss:$20 sps:$4 sm:$0xff]  }
  0x13   : > { %v2749_v12 = vld [vmem:[%s2976_s15 + $0x1e4] ss:$20 sps:$4 sm:$0xff]   ;;  %1161 = vmatprep.mubr.bf16.mxu0 %v2746_v11  ;;  %v2747_v21 = vld [vmem:[%s2976_s15 + $0x1e0] ss:$20 sps:$4 sm:$0xff]   ;;  %v2760_v29 = vld [vmem:[%s2976_s15 + $0x208] ss:$20 sps:$4 sm:$0xff]  }
  0x14   : > { %2410 = vmatpush3.bf16.msra.mxu0 %v2735_v7  ;;  %2698 = vmatpush3.bf16.msra.mxu1 %v2735_v7  ;;  %v2755_v24 = vld [vmem:[%s2976_s15 + $0x2c] ss:$20 sps:$4 sm:$0xff]   ;;  %v2765_v32 = vld [vmem:[%s2976_s15 + $0x54] ss:$20 sps:$4 sm:$0xff]   ;;  %v2769_v36 = vld [vmem:[%s2976_s15 + $0x50] ss:$20 sps:$4 sm:$0xff]  }
  0x15   : > { %2411 = vmatprep.subr.bf16.mxu0 %v2736_v8  ;;  %2691 = vmatprep.subr.bf16.mxu1 %v2736_v8  ;;  %v2757_v25 = vld [vmem:[%s2976_s15 + $0x20c] ss:$20 sps:$4 sm:$0xff]   ;;  %v2767_v33 = vld [vmem:[%s2976_s15 + $0x234] ss:$20 sps:$4 sm:$0xff]   ;;  %v2770_v38 = vld [vmem:[%s2976_s15 + $0x230] ss:$20 sps:$4 sm:$0xff]  }
  0x16   : > { %1257 = vmatprep.mubr.bf16.mxu1 %v2749_v12  ;;  %v2775_v41 = vld [vmem:[%s2976_s15 + $0x7c] ss:$20 sps:$4 sm:$0xff]   ;;  %v2779_v44 = vld [vmem:[%s2976_s15 + $0x78] ss:$20 sps:$4 sm:$0xff]   ;;  %v2791_v54 = vld [vmem:[%s2976_s15 + $0xa0] ss:$20 sps:$4 sm:$0xff]  }
  0x17   : > { %v2777_v42 = vld [vmem:[%s2976_s15 + $0x25c] ss:$20 sps:$4 sm:$0xff]   ;;  %v2780_v45 = vld [vmem:[%s2976_s15 + $0x258] ss:$20 sps:$4 sm:$0xff]   ;;  %v2794_v57 = vld [vmem:[%s2976_s15 + $0x34] ss:$20 sps:$4 sm:$0xff]  }
  0x18   : > { %2412 = vmatpush3.bf16.msra.mxu0 %v2737_v9  ;;  %2699 = vmatpush3.bf16.msra.mxu1 %v2737_v9  ;;  %v2786_v50 = vld [vmem:[%s2976_s15 + $0xa4] ss:$20 sps:$4 sm:$0xff]   ;;  %v2790_v51 = vld [vmem:[%s2976_s15 + $0xc] ss:$20 sps:$4 sm:$0xff]   ;;  %v2788_v53 = vld [vmem:[%s2976_s15 + $0x8] ss:$20 sps:$4 sm:$0xff]  }
  0x19   : > { %2413 = vmatprep.subr.bf16.mxu0 %v2738_v10  ;;  %2692 = vmatprep.subr.bf16.mxu1 %v2738_v10  ;;  %v2792_v55 = vld [vmem:[%s2976_s15 + $0xcc] ss:$20 sps:$4 sm:$0xff]   ;;  %v2823_v56 = vld [vmem:[%s3372_s1 + $0x118] sm:$0xff]   ;;  %v2797_v59 = vld [vmem:[%s2976_s15 + $0x30] ss:$20 sps:$4 sm:$0xff]  }
  0x1a   : > { %v2796_v58 = vld [vmem:[%s2976_s15 + $0xc8] ss:$20 sps:$4 sm:$0xff]   ;;  %v2802_v62 = vld [vmem:[%s2976_s15 + $0xf0] ss:$20 sps:$4 sm:$0xff]   ;;  %v2803_v63 = vld [vmem:[%s2976_s15 + $0x58] ss:$20 sps:$4 sm:$0xff]  }
  0x1b   : > { %v2798_v60 = vld [vmem:[%s2976_s15 + $0xf4] ss:$20 sps:$4 sm:$0xff]   ;;  %v2800_v61 = vld [vmem:[%s2976_s15 + $0x5c] ss:$20 sps:$4 sm:$0xff]   ;;  %v2807_v1 = vld [vmem:[%s2976_s15 + $0x84] ss:$20 sps:$4 sm:$0xff]  }
  0x1c   : > { %2414 = vmatpush3.bf16.msra.mxu0 %v2739_v13  ;;  %2700 = vmatpush3.bf16.msra.mxu1 %v2739_v13  ;;  %v2805_v0 = vld [vmem:[%s2976_s15 + $0x11c] ss:$20 sps:$4 sm:$0xff]   ;;  %v2809_v2 = vld [vmem:[%s2976_s15 + $0x118] ss:$20 sps:$4 sm:$0xff]   ;;  %v2810_v3 = vld [vmem:[%s2976_s15 + $0x80] ss:$20 sps:$4 sm:$0xff]  }
  0x1d   : > { %2415 = vmatprep.subr.bf16.mxu0 %v2740_v14  ;;  %2693 = vmatprep.subr.bf16.mxu1 %v2740_v14  ;;  %v2811_v4 = vld [vmem:[%s2976_s15 + $0x144] ss:$20 sps:$4 sm:$0xff]   ;;  %v2813_v5 = vld [vmem:[%s2976_s15 + $0xac] ss:$20 sps:$4 sm:$0xff]   ;;  %v2816_v7 = vld [vmem:[%s2976_s15 + $0xa8] ss:$20 sps:$4 sm:$0xff]  }
  0x1e   : > { %v2815_v6 = vld [vmem:[%s2976_s15 + $0x140] ss:$20 sps:$4 sm:$0xff]   ;;  %v2821_v10 = vld [vmem:[%s2976_s15 + $0x168] ss:$20 sps:$4 sm:$0xff]   ;;  %v2822_v11 = vld [vmem:[%s2976_s15 + $0xd0] ss:$20 sps:$4 sm:$0xff]  }
  0x1f   : > { %v2817_v8 = vld [vmem:[%s2976_s15 + $0x16c] ss:$20 sps:$4 sm:$0xff]   ;;  %v2819_v9 = vld [vmem:[%s2976_s15 + $0xd4] ss:$20 sps:$4 sm:$0xff]   ;;  %v2826_v13 = vld [vmem:[%s2976_s15 + $0xfc] ss:$20 sps:$4 sm:$0xff]  }
  0x20   : > { %2416 = vmatpush3.bf16.msra.mxu0 %v2741_v15  ;;  %2701 = vmatpush3.bf16.msra.mxu1 %v2741_v15  ;;  %v2824_v12 = vld [vmem:[%s2976_s15 + $0x194] ss:$20 sps:$4 sm:$0xff]   ;;  %v2828_v14 = vld [vmem:[%s2976_s15 + $0x190] ss:$20 sps:$4 sm:$0xff]   ;;  %v2829_v15 = vld [vmem:[%s2976_s15 + $0xf8] ss:$20 sps:$4 sm:$0xff]  }
  0x21   : > { %2417 = vmatprep.subr.bf16.mxu0 %v2742_v16  ;;  %2694 = vmatprep.subr.bf16.mxu1 %v2742_v16  ;;  %v2830_v16 = vld [vmem:[%s2976_s15 + $0x1bc] ss:$20 sps:$4 sm:$0xff]  }
  0x24   : > { %2418 = vmatpush3.bf16.msra.mxu0 %v2743_v17  ;;  %2702 = vmatpush3.bf16.msra.mxu1 %v2743_v17  ;;  %v2832_v17 = vld [vmem:[%s2976_s15 + $0x124] ss:$20 sps:$4 sm:$0xff]  }
  0x25   : > { %2515 = vmatprep.subr.bf16.mxu1 %v2750_v18  ;;  %2647 = vmatprep.subr.bf16.mxu0 %v2753_v19  ;;  %v2834_v18 = vld [vmem:[%s2976_s15 + $0x1b8] ss:$20 sps:$4 sm:$0xff]  }
  0x27   : > { %1162 = vmatmul.mubr.bf16.vlgmr.msra.gmra.mrb[0].mxu0 %v2744_v20  ;;  %1258 = vmatmul.mubr.bf16.vlgmr.msra.gmra.mrb[0].mxu1 %v2747_v21  ;;  %v2836_v20 = vld [vmem:[%s2976_s15 + $0x14c] ss:$20 sps:$4 sm:$0xff]   ;;  %v2838_v21 = vld [vmem:[%s2976_s15 + $0x10] ss:$20 sps:$4 sm:$0xff]  }
  0x28   : > { %2516 = vmatpush3.bf16.msra.mxu1 %v2751_v22  ;;  %2648 = vmatpush3.bf16.msra.mxu0 %v2753_v19  ;;  %v2835_v19 = vld [vmem:[%s2976_s15 + $0x120] ss:$20 sps:$4 sm:$0xff]   ;;  %v2839_v22 = vld [vmem:[%s2976_s15 + $0x148] ss:$20 sps:$4 sm:$0xff]  }
  0x29   : > { %2517 = vmatprep.subr.bf16.mxu1 %v2752_v23  ;;  %1169 = vmatprep.mubr.bf16.mxu0 %v2755_v24  ;;  %v2840_v23 = vld [vmem:[%s2976_s15 + $0x38] ss:$20 sps:$4 sm:$0xff]   ;;  %v2841_v24 = vld [vmem:[%s2976_s15 + $0x174] ss:$20 sps:$4 sm:$0xff]  }
  0x2a   : > { %1265 = vmatprep.mubr.bf16.mxu1 %v2757_v25  ;;  %2649 = vmatprep.subr.bf16.mxu0 %v2784_v35  ;;  %v2843_v25 = vld [vmem:[%s2976_s15 + $0x60] ss:$20 sps:$4 sm:$0xff]  }
  0x2c   : > { %2518 = vmatpush3.bf16.msra.mxu1 %v2754_v26  ;;  %2650 = vmatpush3.bf16.msra.mxu0 %v2784_v35  ;;  %v2844_v26 = vld [vmem:[%s2976_s15 + $0x170] ss:$20 sps:$4 sm:$0xff]   ;;  %v2855_v35 = vld [vmem:[%s2976_s15 + $0x128] ss:$20 sps:$4 sm:$0xff]  }
  0x2d   : > { %2519 = vmatprep.subr.bf16.mxu1 %v2761_v28  ;;  %2651 = vmatprep.subr.bf16.mxu0 %v2804_v47  ;;  %v2846_v28 = vld [vmem:[%s2976_s15 + $0x19c] ss:$20 sps:$4 sm:$0xff]  }
  0x2f   : > { %1170 = vmatmul.mubr.bf16.gmra.mrb[4].mxu0 %v2759_v27  ;;  %1266 = vmatmul.mubr.bf16.gmra.mrb[4].mxu1 %v2760_v29  ;;  %v2845_v27 = vld [vmem:[%s2976_s15 + $0x88] ss:$20 sps:$4 sm:$0xff]   ;;  %v2848_v29 = vld [vmem:[%s2976_s15 + $0xb0] ss:$20 sps:$4 sm:$0xff]  }
  0x30   : > { %2520 = vmatpush3.bf16.msra.mxu1 %v2762_v30  ;;  %1177 = vmatprep.mubr.bf16.mxu0 %v2765_v32  ;;  %v2849_v30 = vld [vmem:[%s2976_s15 + $0x198] ss:$20 sps:$4 sm:$0xff]  }
  0x31   : > { %2521 = vmatprep.subr.bf16.mxu1 %v2763_v31  ;;  %1273 = vmatprep.mubr.bf16.mxu1 %v2767_v33  ;;  %v2850_v31 = vld [vmem:[%s2976_s15 + $0xd8] ss:$20 sps:$4 sm:$0xff]   ;;  %v2853_v33 = vld [vmem:[%s2976_s15 + $0x100] ss:$20 sps:$4 sm:$0xff]  }
  0x32   : > { %2652 = vmatpush3.bf16.msra.mxu0 %v2804_v47  ;;  %v2851_v32 = vld [vmem:[%s2976_s15 + $0x1c4] ss:$20 sps:$4 sm:$0xff]  }
  0x33   : > { %2653 = vmatprep.subr.bf16.mxu0 %v2823_v56  ;;  %v2870_v47 = vld [vmem:[%s2976_s15 + $0x218] ss:$20 sps:$4 sm:$0xff]  }
  0x34   : > { %2522 = vmatpush3.bf16.msra.mxu1 %v2764_v34  ;;  %v2854_v34 = vld [vmem:[%s2976_s15 + $0x1c0] ss:$20 sps:$4 sm:$0xff]  }
  0x35   : > { %2523 = vmatprep.subr.bf16.mxu1 %v2771_v37  ;;  %v2858_v37 = vld [vmem:[%s2976_s15 + $0x150] ss:$20 sps:$4 sm:$0xff]  }
  0x36   : > { %2654 = vmatpush3.bf16.msra.mxu0 %v2823_v56 }
  0x37   : > { %1178 = vmatmul.mubr.bf16.gmra.mrb[8].mxu0 %v2769_v36  ;;  %1274 = vmatmul.mubr.bf16.gmra.mrb[8].mxu1 %v2770_v38  ;;  %v2856_v36 = vld [vmem:[%s2976_s15 + $0x1ec] ss:$20 sps:$4 sm:$0xff]   ;;  %v2859_v38 = vld [vmem:[%s2976_s15 + $0x1e8] ss:$20 sps:$4 sm:$0xff]  }
  0x38   : > { %2524 = vmatpush3.bf16.msra.mxu1 %v2772_v39  ;;  %1185 = vmatprep.mubr.bf16.mxu0 %v2775_v41  ;;  %v2860_v39 = vld [vmem:[%s2976_s15 + $0x178] ss:$20 sps:$4 sm:$0xff]   ;;  %v2863_v41 = vld [vmem:[%s2976_s15 + $0x1a0] ss:$20 sps:$4 sm:$0xff]  }
  0x39   : > { %2525 = vmatprep.subr.bf16.mxu1 %v2773_v40  ;;  %1281 = vmatprep.mubr.bf16.mxu1 %v2777_v42  ;;  %v2861_v40 = vld [vmem:[%s2976_s15 + $0x214] ss:$20 sps:$4 sm:$0xff]   ;;  %v2864_v42 = vld [vmem:[%s2976_s15 + $0x210] ss:$20 sps:$4 sm:$0xff]  }
  0x3c   : > { %2526 = vmatpush3.bf16.msra.mxu1 %v2774_v43  ;;  %v2865_v43 = vld [vmem:[%s2976_s15 + $0x1c8] ss:$20 sps:$4 sm:$0xff]  }
  0x3d   : > { %2527 = vmatprep.subr.bf16.mxu1 %v2781_v46  ;;  %v2869_v46 = vld [vmem:[%s2976_s15 + $0x238] ss:$20 sps:$4 sm:$0xff]  }
  0x3f   : > { %1186 = vmatmul.mubr.bf16.gmra.mrb[12].mxu0 %v2779_v44  ;;  %1282 = vmatmul.mubr.bf16.gmra.mrb[12].mxu1 %v2780_v45  ;;  %v2866_v44 = vld [vmem:[%s2976_s15 + $0x23c] ss:$20 sps:$4 sm:$0xff]  }
  0x40   : > { %2528 = vmatpush3.bf16.msra.mxu1 %v2782_v48  ;;  %1193 = vmatprep.mubr.bf16.mxu0 %v2786_v50  ;;  %v2868_v45 = vld [vmem:[%s2976_s15 + $0x1f0] ss:$20 sps:$4 sm:$0xff]   ;;  %v2874_v50 = vld [vmem:[%s2976_s15 + $0x260] ss:$20 sps:$4 sm:$0xff]  }
  0x41   : > { %2529 = vmatprep.subr.bf16.mxu1 %v2783_v49  ;;  %1322 = vmatprep.mubr.bf16.mxu1 %v2790_v51  ;;  %v2871_v48 = vld [vmem:[%s2976_s15 + $0x264] ss:$20 sps:$4 sm:$0xff]   ;;  %v2873_v49 = vld [vmem:[%s2976_s15 + $0x240] ss:$20 sps:$4 sm:$0xff]   ;;  %v2875_v51 = vld [vmem:[%s2976_s15 + $0x268] ss:$20 sps:$4 sm:$0xff]  }
  0x44   : > { %2530 = vmatpush3.bf16.msra.mxu1 %v2785_v52 }
  0x47   : > { %1194 = vmatmul.mubr.bf16.gmra.mrb[16].mxu0 %v2791_v54  ;;  %1323 = vmatmul.mubr.bf16.vlgmr.msra.gmra.mrb[16].mxu1 %v2788_v53 }
  0x48   : > { %1201 = vmatprep.mubr.bf16.mxu0 %v2792_v55  ;;  %1330 = vmatprep.mubr.bf16.mxu1 %v2794_v57 }
  0x4f   : > { %1202 = vmatmul.mubr.bf16.gmra.mrb[20].mxu0 %v2796_v58  ;;  %1331 = vmatmul.mubr.bf16.gmra.mrb[20].mxu1 %v2797_v59 }
  0x50   : > { %1209 = vmatprep.mubr.bf16.mxu0 %v2798_v60  ;;  %1338 = vmatprep.mubr.bf16.mxu1 %v2800_v61 }
  0x57   : > { %1210 = vmatmul.mubr.bf16.gmra.mrb[24].mxu0 %v2802_v62  ;;  %1339 = vmatmul.mubr.bf16.gmra.mrb[24].mxu1 %v2803_v63 }
  0x58   : > { %1217 = vmatprep.mubr.bf16.mxu0 %v2805_v0  ;;  %1346 = vmatprep.mubr.bf16.mxu1 %v2807_v1 }
  0x5f   : > { %1218 = vmatmul.mubr.bf16.gmra.mrb[28].mxu0 %v2809_v2  ;;  %1347 = vmatmul.mubr.bf16.gmra.mrb[28].mxu1 %v2810_v3 }
  0x60   : > { %1225 = vmatprep.mubr.bf16.mxu0 %v2811_v4  ;;  %1354 = vmatprep.mubr.bf16.mxu1 %v2813_v5 }
  0x67   : > { %1226 = vmatmul.mubr.bf16.gmra.mrb[32].mxu0 %v2815_v6  ;;  %1355 = vmatmul.mubr.bf16.gmra.mrb[32].mxu1 %v2816_v7 }
  0x68   : > { %1233 = vmatprep.mubr.bf16.mxu0 %v2817_v8  ;;  %1362 = vmatprep.mubr.bf16.mxu1 %v2819_v9 }
  0x6f   : > { %1234 = vmatmul.mubr.bf16.gmra.mrb[36].mxu0 %v2821_v10  ;;  %1363 = vmatmul.mubr.bf16.gmra.mrb[36].mxu1 %v2822_v11 }
  0x70   : > { %1241 = vmatprep.mubr.bf16.mxu0 %v2824_v12  ;;  %1370 = vmatprep.mubr.bf16.mxu1 %v2826_v13 }
  0x77   : > { %1242 = vmatmul.mubr.bf16.gmra.mrb[40].mxu0 %v2828_v14  ;;  %1371 = vmatmul.mubr.bf16.gmra.mrb[40].mxu1 %v2829_v15 }
  0x78   : > { %1249 = vmatprep.mubr.bf16.mxu0 %v2830_v16  ;;  %1378 = vmatprep.mubr.bf16.mxu1 %v2832_v17 }
  0x7f   : > { %1250 = vmatmul.mubr.bf16.gmra.mrb[44].mxu0 %v2834_v18  ;;  %1379 = vmatmul.mubr.bf16.gmra.mrb[44].mxu1 %v2835_v19 }
  0x80   : > { %1386 = vmatprep.mubr.bf16.mxu1 %v2836_v20  ;;  %2655 = vmatprep.mubr.msk.bf16.mxu0 %vm1080_vm0, %v2838_v21 }
  0x87   : > { %1387 = vmatmul.mubr.bf16.gmra.mrb[48].mxu1 %v2839_v22  ;;  %2656 = vmatmul.mubr.msk.bf16.vlgmr.msra.gmra.mrb[48].mxu0 %vm1080_vm0, %v2840_v23 }
  0x88   : > { %1394 = vmatprep.mubr.bf16.mxu1 %v2841_v24  ;;  %2659 = vmatprep.mubr.msk.bf16.mxu0 %vm1080_vm0, %v2843_v25 }
  0x8f   : > { %1395 = vmatmul.mubr.bf16.gmra.mrb[52].mxu1 %v2844_v26  ;;  %2660 = vmatmul.mubr.msk.bf16.gmra.mrb[52].mxu0 %vm1080_vm0, %v2845_v27 }
  0x90   : > { %1402 = vmatprep.mubr.bf16.mxu1 %v2846_v28  ;;  %2663 = vmatprep.mubr.msk.bf16.mxu0 %vm1080_vm0, %v2848_v29 }
  0x97   : > { %1403 = vmatmul.mubr.bf16.gmra.mrb[56].mxu1 %v2849_v30  ;;  %2664 = vmatmul.mubr.msk.bf16.gmra.mrb[56].mxu0 %vm1080_vm0, %v2850_v31 }
  0x98   : > { %1410 = vmatprep.mubr.bf16.mxu1 %v2851_v32  ;;  %2667 = vmatprep.mubr.msk.bf16.mxu0 %vm1080_vm0, %v2853_v33 }
  0x9f   : > { %1411 = vmatmul.mubr.bf16.gmra.mrb[60].mxu1 %v2854_v34  ;;  %2668 = vmatmul.mubr.msk.bf16.gmra.mrb[60].mxu0 %vm1080_vm0, %v2855_v35 }
  0xa0   : > { %1418 = vmatprep.mubr.bf16.mxu1 %v2856_v36  ;;  %2671 = vmatprep.mubr.msk.bf16.mxu0 %vm1080_vm0, %v2858_v37 }
  0xa7   : > { %1419 = vmatmul.mubr.bf16.gmra.mrb[64].mxu1 %v2859_v38  ;;  %2672 = vmatmul.mubr.msk.bf16.gmra.mrb[64].mxu0 %vm1080_vm0, %v2860_v39  ;;  %v3174_v38 = vld [vmem:[%s3373_s2] ss:$0 sm:$0xff] }
  0xa8   : > { %1426 = vmatprep.mubr.bf16.mxu1 %v2861_v40  ;;  %2675 = vmatprep.mubr.msk.bf16.mxu0 %vm1080_vm0, %v2863_v41 }
  0xaf   : > { %1427 = vmatmul.mubr.bf16.gmra.mrb[68].mxu1 %v2864_v42  ;;  %2676 = vmatmul.mubr.msk.bf16.gmra.mrb[68].mxu0 %vm1080_vm0, %v2865_v43 }
  0xb0   : > { %1434 = vmatprep.mubr.bf16.mxu1 %v2866_v44  ;;  %2679 = vmatprep.mubr.msk.bf16.mxu0 %vm1080_vm0, %v2868_v45 }
  0xb7   : > { %1435 = vmatmul.mubr.bf16.gmra.mrb[72].mxu1 %v2869_v46  ;;  %2680 = vmatmul.mubr.msk.bf16.gmra.mrb[72].mxu0 %vm1080_vm0, %v2870_v47 }
  0xb8   : > { %1442 = vmatprep.mubr.bf16.mxu1 %v2871_v48  ;;  %2683 = vmatprep.mubr.msk.bf16.mxu0 %vm1080_vm0, %v2873_v49 }
  0xbf   : > { %1443 = vmatmul.mubr.bf16.gmra.mrb[76].mxu1 %v2874_v50  ;;  %2684 = vmatmul.mubr.msk.bf16.gmra.mrb[76].mxu0 %vm1080_vm0, %v2875_v51 }
  0xfa   : > { %v2491_v52 = vpop.f32.mrb[0].mxu1  ;;  %v2419_v53 = vpop.f32.mrb[0].mxu0 }
  0xfb   : > { %v2492_v54 = vpop.f32.mrb[1].mxu1  ;;  %v2420_v55 = vpop.f32.mrb[1].mxu0 }
  0xfc   : > { %v3155_v56 = vadd.f32 %v2492_v54, %v2491_v52  ;;  %v2494_v57 = vpop.f32.mrb[2].mxu1  ;;  %v2421_v58 = vadd.f32 %v2420_v55, %v2419_v53  ;;  %v2422_v59 = vpop.f32.mrb[2].mxu0 }
  0xfd   : > { %v2495_v60 = vpop.f32.mrb[3].mxu1  ;;  %v2423_v61 = vpop.f32.mrb[3].mxu0 }
  0xfe   : > { %v3157_v62 = vadd.f32 %v2495_v60, %v2494_v57  ;;  %v2424_v63 = vadd.f32 %v2423_v61, %v2422_v59  ;;  %v1164_v41 = vadd.f32 %v2421_v58, %v3174_v38 }
 0x100   : > { %v1167_v48 = vadd.f32 %v2424_v63, %v3174_v38 }
 0x102   : > { %v2497_v0 = vpop.f32.mrb[4].mxu1  ;;  %v2425_v1 = vpop.f32.mrb[4].mxu0 }
 0x103   : > { %v2498_v2 = vpop.f32.mrb[5].mxu1  ;;  %v2426_v3 = vpop.f32.mrb[5].mxu0 }
 0x104   : > { %v3159_v4 = vadd.f32 %v2498_v2, %v2497_v0  ;;  %v2500_v5 = vpop.f32.mrb[6].mxu1  ;;  %v2427_v6 = vadd.f32 %v2426_v3, %v2425_v1  ;;  %v2428_v7 = vpop.f32.mrb[6].mxu0 }
 0x105   : > { %v2501_v8 = vpop.f32.mrb[7].mxu1  ;;  %v2429_v9 = vpop.f32.mrb[7].mxu0 }
 0x106   : > { %v3161_v10 = vadd.f32 %v2501_v8, %v2500_v5  ;;  %v2430_v11 = vadd.f32 %v2429_v9, %v2428_v7  ;;  %v1172_v58 = vadd.f32 %v2427_v6, %v3174_v38 }
 0x108   : > { %v1175_v63 = vadd.f32 %v2430_v11, %v3174_v38 }
 0x10a   : > { %v2503_v12 = vpop.f32.mrb[8].mxu1  ;;  %v2431_v13 = vpop.f32.mrb[8].mxu0 }
 0x10b   : > { %v2504_v14 = vpop.f32.mrb[9].mxu1  ;;  %v2432_v15 = vpop.f32.mrb[9].mxu0 }
 0x10c   : > { %v3163_v16 = vadd.f32 %v2504_v14, %v2503_v12  ;;  %v2506_v17 = vpop.f32.mrb[10].mxu1  ;;  %v2433_v18 = vadd.f32 %v2432_v15, %v2431_v13  ;;  %v2434_v19 = vpop.f32.mrb[10].mxu0 }
 0x10d   : > { %v2507_v20 = vpop.f32.mrb[11].mxu1  ;;  %v2435_v21 = vpop.f32.mrb[11].mxu0 }
 0x10e   : > { %v3165_v22 = vadd.f32 %v2507_v20, %v2506_v17  ;;  %v2436_v23 = vadd.f32 %v2435_v21, %v2434_v19  ;;  %v1180_v6 = vadd.f32 %v2433_v18, %v3174_v38 }
 0x110   : > { %v1183_v11 = vadd.f32 %v2436_v23, %v3174_v38 }
 0x112   : > { %v2509_v24 = vpop.f32.mrb[12].mxu1  ;;  %v2437_v25 = vpop.f32.mrb[12].mxu0 }
 0x113   : > { %v2510_v26 = vpop.f32.mrb[13].mxu1  ;;  %v2438_v27 = vpop.f32.mrb[13].mxu0 }
 0x114   : > { %v3167_v28 = vadd.f32 %v2510_v26, %v2509_v24  ;;  %v2512_v29 = vpop.f32.mrb[14].mxu1  ;;  %v2439_v30 = vadd.f32 %v2438_v27, %v2437_v25  ;;  %v2440_v31 = vpop.f32.mrb[14].mxu0 }
 0x115   : > { %v2513_v32 = vpop.f32.mrb[15].mxu1  ;;  %v2441_v33 = vpop.f32.mrb[15].mxu0 }
 0x116   : > { %v3169_v34 = vadd.f32 %v2513_v32, %v2512_v29  ;;  %v2442_v35 = vadd.f32 %v2441_v33, %v2440_v31  ;;  %v1188_v18 = vadd.f32 %v2439_v30, %v3174_v38 }
 0x118   : > { %v1191_v23 = vadd.f32 %v2442_v35, %v3174_v38 }
 0x11a   : > { %v2531_v36 = vpop.f32.mrb[16].mxu1  ;;  %v2443_v37 = vpop.f32.mrb[16].mxu0 }
 0x11b   : > { %v2532_v39 = vpop.f32.mrb[17].mxu1  ;;  %v2444_v40 = vpop.f32.mrb[17].mxu0 }
 0x11c   : > { %v2533_v42 = vadd.f32 %v2532_v39, %v2531_v36  ;;  %v2534_v43 = vpop.f32.mrb[18].mxu1  ;;  %v2445_v44 = vadd.f32 %v2444_v40, %v2443_v37  ;;  %v2446_v45 = vpop.f32.mrb[18].mxu0 }
 0x11d   : > { %v2535_v46 = vpop.f32.mrb[19].mxu1  ;;  %v2447_v47 = vpop.f32.mrb[19].mxu0 }
 0x11e   : > { %v2536_v49 = vadd.f32 %v2535_v46, %v2534_v43  ;;  %v2448_v50 = vadd.f32 %v2447_v47, %v2446_v45  ;;  %v3178_v51 = vadd.f32 %v2533_v42, %v1164_v41 }
 0x120   : > { %v3180_v52 = vadd.f32 %v2536_v49, %v1167_v48 }
 0x122   : > { %v2537_v53 = vpop.f32.mrb[20].mxu1  ;;  %v2449_v54 = vpop.f32.mrb[20].mxu0 }
 0x123   : > { %v2538_v55 = vpop.f32.mrb[21].mxu1  ;;  %v2450_v57 = vpop.f32.mrb[21].mxu0 }
 0x124   : > { %v2539_v59 = vadd.f32 %v2538_v55, %v2537_v53  ;;  %v2540_v60 = vpop.f32.mrb[22].mxu1  ;;  %v2451_v61 = vadd.f32 %v2450_v57, %v2449_v54  ;;  %v2452_v0 = vpop.f32.mrb[22].mxu0  ;;  %v1196_v55 = vadd.f32 %v2445_v44, %v3174_v38 }
 0x125   : > { %v2541_v1 = vpop.f32.mrb[23].mxu1  ;;  %v2453_v2 = vpop.f32.mrb[23].mxu0 }
 0x126   : > { %v2542_v3 = vadd.f32 %v2541_v1, %v2540_v60  ;;  %v2454_v5 = vadd.f32 %v2453_v2, %v2452_v0  ;;  %v3184_v7 = vadd.f32 %v2539_v59, %v1172_v58  ;;  %v1199_v1 = vadd.f32 %v2448_v50, %v3174_v38 }
 0x128   : > { %v3186_v8 = vadd.f32 %v2542_v3, %v1175_v63 }
 0x12a   : > { %v2543_v9 = vpop.f32.mrb[24].mxu1  ;;  %v2455_v12 = vpop.f32.mrb[24].mxu0 }
 0x12b   : > { %v2544_v13 = vpop.f32.mrb[25].mxu1  ;;  %v2456_v14 = vpop.f32.mrb[25].mxu0 }
 0x12c   : > { %v2545_v15 = vadd.f32 %v2544_v13, %v2543_v9  ;;  %v2546_v17 = vpop.f32.mrb[26].mxu1  ;;  %v2457_v19 = vadd.f32 %v2456_v14, %v2455_v12  ;;  %v2458_v20 = vpop.f32.mrb[26].mxu0 }
 0x12d   : > { %v2547_v21 = vpop.f32.mrb[27].mxu1  ;;  %v2459_v24 = vpop.f32.mrb[27].mxu0 }
 0x12e   : > { %v2548_v25 = vadd.f32 %v2547_v21, %v2546_v17  ;;  %v2460_v26 = vadd.f32 %v2459_v24, %v2458_v20  ;;  %v3190_v27 = vadd.f32 %v2545_v15, %v1180_v6  ;;  %v1204_v6 = vadd.f32 %v2451_v61, %v3174_v38 }
 0x130   : > { %v3192_v29 = vadd.f32 %v2548_v25, %v1183_v11  ;;  %v1207_v11 = vadd.f32 %v2454_v5, %v3174_v38 }
 0x132   : > { %v2549_v31 = vpop.f32.mrb[28].mxu1  ;;  %v2461_v32 = vpop.f32.mrb[28].mxu0 }
 0x133   : > { %v2550_v33 = vpop.f32.mrb[29].mxu1  ;;  %v2462_v36 = vpop.f32.mrb[29].mxu0 }
 0x134   : > { %v2551_v37 = vadd.f32 %v2550_v33, %v2549_v31  ;;  %v2552_v39 = vpop.f32.mrb[30].mxu1  ;;  %v3195_v40 = vadd.f32 %v2462_v36, %v2461_v32  ;;  %v2464_v41 = vpop.f32.mrb[30].mxu0 }
 0x135   : > { %v2553_v42 = vpop.f32.mrb[31].mxu1  ;;  %v2465_v43 = vpop.f32.mrb[31].mxu0 }
 0x136   : > { %v2554_v45 = vadd.f32 %v2553_v42, %v2552_v39  ;;  %v3198_v46 = vadd.f32 %v2465_v43, %v2464_v41  ;;  %v3200_v47 = vadd.f32 %v2551_v37, %v1188_v18  ;;  %v1212_v39 = vadd.f32 %v2457_v19, %v3174_v38 }
 0x138   : > { %v3202_v48 = vadd.f32 %v2554_v45, %v1191_v23 }
 0x13a   : > { %v2555_v49 = vpop.f32.mrb[32].mxu1  ;;  %v2467_v53 = vpop.f32.mrb[32].mxu0 }
 0x13b   : > { %v2556_v54 = vpop.f32.mrb[33].mxu1  ;;  %v2468_v30 = vpop.f32.mrb[33].mxu0 }
 0x13c   : > { %v2557_v57 = vadd.f32 %v2556_v54, %v2555_v49  ;;  %v2558_v58 = vpop.f32.mrb[34].mxu1  ;;  %v3205_v59 = vadd.f32 %v2468_v30, %v2467_v53  ;;  %v2470_v60 = vpop.f32.mrb[34].mxu0  ;;  %v1215_v49 = vadd.f32 %v2460_v26, %v3174_v38  ;;  %v1220_v26 = vadd.f32 %v3195_v40, %v3174_v38 }
 0x13d   : > { %v2559_v0 = vpop.f32.mrb[35].mxu1  ;;  %v2471_v35 = vpop.f32.mrb[35].mxu0 }
 0x13e   : > { %v2560_v2 = vadd.f32 %v2559_v0, %v2558_v58  ;;  %v3208_v63 = vadd.f32 %v2471_v35, %v2470_v60  ;;  %v3210_v3 = vadd.f32 %v2557_v57, %v1196_v55 }
 0x140   : > { %v3212_v9 = vadd.f32 %v2560_v2, %v1199_v1 }
 0x142   : > { %v2561_v12 = vpop.f32.mrb[36].mxu1  ;;  %v2473_v13 = vpop.f32.mrb[36].mxu0 }
 0x143   : > { %v2562_v14 = vpop.f32.mrb[37].mxu1  ;;  %v2474_v44 = vpop.f32.mrb[37].mxu0 }
 0x144   : > { %v2563_v15 = vadd.f32 %v2562_v14, %v2561_v12  ;;  %v2564_v17 = vpop.f32.mrb[38].mxu1  ;;  %v3215_v20 = vadd.f32 %v2474_v44, %v2473_v13  ;;  %v2476_v21 = vpop.f32.mrb[38].mxu0  ;;  %v1223_v14 = vadd.f32 %v3198_v46, %v3174_v38  ;;  %v1228_v46 = vadd.f32 %v3205_v59, %v3174_v38 }
 0x145   : > { %v2565_v24 = vpop.f32.mrb[39].mxu1  ;;  %v2477_v50 = vpop.f32.mrb[39].mxu0 }
 0x146   : > { %v2566_v25 = vadd.f32 %v2565_v24, %v2564_v17  ;;  %v3218_v31 = vadd.f32 %v2477_v50, %v2476_v21  ;;  %v3220_v32 = vadd.f32 %v2563_v15, %v1204_v6  ;;  %v2373_v15 = vld [vmem:[%s3240_s10 + $0x8] sm:$0xff]   ;;  %v2230_v21 = vld [vmem:[%s3240_s10] sm:$0xff]  }
 0x147   : > { %v2235_v40 = vunpack.c.l.bf16 %v2373_v15 }
 0x148   : > { %v3222_v33 = vadd.f32 %v2566_v25, %v1207_v11  ;;  %v2231_v25 = vunpack.c.l.bf16 %v2230_v21 }
 0x14a   : > { %v2567_v36 = vpop.f32.mrb[40].mxu1  ;;  %v2479_v18 = vpop.f32.mrb[40].mxu0 }
 0x14b   : > { %v2568_v61 = vpop.f32.mrb[41].mxu1  ;;  %v2480_v37 = vpop.f32.mrb[41].mxu0 }
 0x14c   : > { %v2569_v41 = vadd.f32 %v2568_v61, %v2567_v36  ;;  %v2570_v42 = vpop.f32.mrb[42].mxu1  ;;  %v3225_v43 = vadd.f32 %v2480_v37, %v2479_v18  ;;  %v2482_v5 = vpop.f32.mrb[42].mxu0  ;;  %v2236_v37 = vunpack.c.h.bf16 %v2373_v15 }
 0x14d   : > { %v2571_v23 = vpop.f32.mrb[43].mxu1  ;;  %v2483_v45 = vpop.f32.mrb[43].mxu0 }
 0x14e   : > { %v2572_v53 = vadd.f32 %v2571_v23, %v2570_v42  ;;  %v3228_v54 = vadd.f32 %v2483_v45, %v2482_v5  ;;  %v3230_v30 = vadd.f32 %v2569_v41, %v1212_v39  ;;  %v2232_v23 = vunpack.c.h.bf16 %v2230_v21 }
 0x14f   : > { %v1231_v45 = vadd.f32 %v3208_v63, %v3174_v38 }
 0x150   : > { %v3233_v55 = vadd.f32 %v2572_v53, %v1215_v49 }
 0x152   : > { %v2573_v57 = vpop.f32.mrb[44].mxu1  ;;  %v2485_v19 = vpop.f32.mrb[44].mxu0 }
 0x153   : > { %v2574_v58 = vpop.f32.mrb[45].mxu1  ;;  %v2486_v60 = vpop.f32.mrb[45].mxu0 }
 0x154   : > { %v2575_v0 = vadd.f32 %v2574_v58, %v2573_v57  ;;  %v2576_v35 = vpop.f32.mrb[46].mxu1  ;;  %v3244_v1 = vadd.f32 %v2486_v60, %v2485_v19  ;;  %v2488_v2 = vpop.f32.mrb[46].mxu0  ;;  %v2375_v60 = vld [vmem:[%s3240_s10 + $0x18] sm:$0xff]  }
 0x155   : > { %v2577_v12 = vpop.f32.mrb[47].mxu1  ;;  %v2489_v13 = vpop.f32.mrb[47].mxu0 }
 0x156   : > { %v2578_v44 = vadd.f32 %v2577_v12, %v2576_v35  ;;  %v3248_v6 = vadd.f32 %v2489_v13, %v2488_v2  ;;  %v3251_v17 = vadd.f32 %v2575_v0, %v1220_v26  ;;  %v2374_v0 = vld [vmem:[%s3240_s10 + $0x10] sm:$0xff]   ;;  %v2243_v13 = vunpack.c.l.bf16 %v2375_v60 }
 0x157   : > { %v2239_v15 = vunpack.c.l.bf16 %v2374_v0 }
 0x158   : > { %v3254_v24 = vadd.f32 %v2578_v44, %v1223_v14 }
 0x15a   : > { %v2579_v50 = vpop.f32.mrb[48].mxu1  ;;  %v2657_v11 = vpop.f32.mrb[48].mxu0 }
 0x15b   : > { %v1494_v36 = vadd.f32 %v2657_v11, %v3184_v7  ;;  %v2580_v18 = vpop.f32.mrb[49].mxu1  ;;  %v1485_v61 = vpop.f32.mrb[49].mxu0 }
 0x15c   : > { %v2581_v39 = vadd.f32 %v2580_v18, %v2579_v50  ;;  %v1486_v41 = vadd.f32 %v1485_v61, %v3178_v51  ;;  %v2582_v42 = vpop.f32.mrb[50].mxu1  ;;  %v2658_v5 = vpop.f32.mrb[50].mxu0  ;;  %v1236_v18 = vadd.f32 %v3215_v20, %v3174_v38 }
 0x15d   : > { %v1678_v49 = vadd.f32 %v2235_v40, %v1494_v36  ;;  %v1497_v7 = vadd.f32 %v2658_v5, %v3186_v8  ;;  %v2583_v53 = vpop.f32.mrb[51].mxu1  ;;  %v1488_v57 = vpop.f32.mrb[51].mxu0  ;;  %v2240_v36 = vunpack.c.h.bf16 %v2374_v0 }
 0x15e   : > { %v1676_v19 = vadd.f32 %v2231_v25, %v1486_v41  ;;  %v2584_v58 = vadd.f32 %v2583_v53, %v2582_v42  ;;  %v1489_v59 = vadd.f32 %v1488_v57, %v3180_v52  ;;  %v3265_v26 = vadd.f32 %v2581_v39, %v1228_v46  ;;  %v2377_v53 = vld [vmem:[%s3240_s10 + $0x28] sm:$0xff]  }
 0x15f   : > { %v1679_v51 = vadd.f32 %v2236_v37, %v1497_v7  ;;  %v1710_v12 = vmax.f32 %v1678_v49, 0.0  ;;  %v2244_v25 = vunpack.c.h.bf16 %v2375_v60  ;;  %v1239_v42 = vadd.f32 %v3218_v31, %v3174_v38 }
 0x160   : > { %v1677_v35 = vadd.f32 %v2232_v23, %v1489_v59  ;;  %v3268_v2 = vadd.f32 %v2584_v58, %v1231_v45  ;;  %v1708_v14 = vmax.f32 %v1676_v19, 0.0  ;;  %v2376_v19 = vld [vmem:[%s3240_s10 + $0x20] sm:$0xff]  }
 0x161   : > { %v1711_v63 = vmax.f32 %v1679_v51, 0.0  ;;  %v2251_v51 = vunpack.c.l.bf16 %v2377_v53 }
 0x162   : > { %v1709_v8 = vmax.f32 %v1677_v35, 0.0  ;;  %v2585_v52 = vpop.f32.mrb[52].mxu1  ;;  %v2661_v44 = vpop.f32.mrb[52].mxu0 }
 0x163   : > { %v2301_v21 = vpack.c.bf16 %v1711_v63, %v1710_v12  ;;  %v1510_v40 = vadd.f32 %v2661_v44, %v3200_v47  ;;  %v2586_v50 = vpop.f32.mrb[53].mxu1  ;;  %v1501_v11 = vpop.f32.mrb[53].mxu0  ;;  %v2247_v63 = vunpack.c.l.bf16 %v2376_v19  ;;  %v2248_v44 = vunpack.c.h.bf16 %v2376_v19 }
 0x164   : > { %v2296_v61 = vpack.c.bf16 %v1709_v8, %v1708_v14  ;;  %v2587_v37 = vadd.f32 %v2586_v50, %v2585_v52  ;;  %v1502_v46 = vadd.f32 %v1501_v11, %v3190_v27  ;;  %v2588_v39 = vpop.f32.mrb[54].mxu1  ;;  %v2662_v41 = vpop.f32.mrb[54].mxu0  ;;  %v2252_v52 = vunpack.c.h.bf16 %v2377_v53 }
 0x165   : > { %2388 = vst [vmem:[%s3275_s13 + $0x8] sm:$0xff] %v2301_v21   ;;  %v1682_v47 = vadd.f32 %v2243_v13, %v1510_v40  ;;  %v1513_v5 = vadd.f32 %v2662_v41, %v3202_v48  ;;  %v2589_v23 = vpop.f32.mrb[55].mxu1  ;;  %v1504_v45 = vpop.f32.mrb[55].mxu0  ;;  %v2379_v41 = vld [vmem:[%s3240_s10 + $0x38] sm:$0xff]  }
 0x166   : > { %2297 = vst [vmem:[%s3275_s13] sm:$0xff] %v2296_v61   ;;  %v1680_v49 = vadd.f32 %v2239_v15, %v1502_v46  ;;  %v2590_v20 = vadd.f32 %v2589_v23, %v2588_v39  ;;  %v1505_v7 = vadd.f32 %v1504_v45, %v3192_v29  ;;  %v3288_v57 = vadd.f32 %v2587_v37, %v1236_v18 }
 0x167   : > { %v1683_v27 = vadd.f32 %v2244_v25, %v1513_v5  ;;  %v1714_v31 = vmax.f32 %v1682_v47, 0.0  ;;  %v1244_v15 = vadd.f32 %v3225_v43, %v3174_v38  ;;  %v2378_v47 = vld [vmem:[%s3240_s10 + $0x30] sm:$0xff]  }
 0x168   : > { %v1681_v58 = vadd.f32 %v2240_v36, %v1505_v7  ;;  %v3291_v59 = vadd.f32 %v2590_v20, %v1239_v42  ;;  %v1712_v0 = vmax.f32 %v1680_v49, 0.0  ;;  %v1247_v36 = vadd.f32 %v3228_v54, %v3174_v38 }
 0x169   : > { %v1715_v60 = vmax.f32 %v1683_v27, 0.0  ;;  %v2259_v49 = vunpack.c.l.bf16 %v2379_v41  ;;  %v2255_v27 = vunpack.c.l.bf16 %v2378_v47 }
 0x16a   : > { %v1713_v48 = vmax.f32 %v1681_v58, 0.0  ;;  %v2591_v35 = vpop.f32.mrb[56].mxu1  ;;  %v2665_v12 = vpop.f32.mrb[56].mxu0 }
 0x16b   : > { %v2311_v13 = vpack.c.bf16 %v1715_v60, %v1714_v31  ;;  %v1526_v29 = vadd.f32 %v2665_v12, %v3220_v32  ;;  %v2592_v14 = vpop.f32.mrb[57].mxu1  ;;  %v1517_v8 = vpop.f32.mrb[57].mxu0  ;;  %v2260_v60 = vunpack.c.h.bf16 %v2379_v41 }
 0x16c   : > { %v2306_v21 = vpack.c.bf16 %v1713_v48, %v1712_v0  ;;  %v2593_v40 = vadd.f32 %v2592_v14, %v2591_v35  ;;  %v1518_v50 = vadd.f32 %v1517_v8, %v3210_v3  ;;  %v2594_v11 = vpop.f32.mrb[58].mxu1  ;;  %v2666_v25 = vpop.f32.mrb[58].mxu0  ;;  %v1252_v0 = vadd.f32 %v3244_v1, %v3174_v38 }
 0x16d   : > { %2390 = vst [vmem:[%s3275_s13 + $0x18] sm:$0xff] %v2311_v13   ;;  %v1686_v32 = vadd.f32 %v2251_v51, %v1526_v29  ;;  %v1529_v18 = vadd.f32 %v2666_v25, %v3222_v33  ;;  %v2595_v61 = vpop.f32.mrb[59].mxu1  ;;  %v1520_v37 = vpop.f32.mrb[59].mxu0  ;;  %v2256_v51 = vunpack.c.h.bf16 %v2378_v47  ;;  %v1255_v29 = vadd.f32 %v3248_v6, %v3174_v38 }
 0x16e   : > { %2389 = vst [vmem:[%s3275_s13 + $0x10] sm:$0xff] %v2306_v21   ;;  %v1684_v46 = vadd.f32 %v2247_v63, %v1518_v50  ;;  %v2596_v43 = vadd.f32 %v2595_v61, %v2594_v11  ;;  %v1521_v39 = vadd.f32 %v1520_v37, %v3212_v9  ;;  %v3304_v42 = vadd.f32 %v2593_v40, %v1244_v15  ;;  %v2381_v21 = vld [vmem:[%s3240_s10 + $0x48] sm:$0xff]   ;;  %v2380_v50 = vld [vmem:[%s3240_s10 + $0x40] sm:$0xff]  }
 0x16f   : > { %v1687_v3 = vadd.f32 %v2252_v52, %v1529_v18  ;;  %v1718_v54 = vmax.f32 %v1686_v32, 0.0  ;;  %v2267_v6 = vunpack.c.l.bf16 %v2381_v21  ;;  %v2268_v47 = vunpack.c.h.bf16 %v2381_v21 }
 0x170   : > { %v1685_v5 = vadd.f32 %v2248_v44, %v1521_v39  ;;  %v3307_v23 = vadd.f32 %v2596_v43, %v1247_v36  ;;  %v1716_v20 = vmax.f32 %v1684_v46, 0.0  ;;  %v2263_v46 = vunpack.c.l.bf16 %v2380_v50 }
 0x171   : > { %v1719_v45 = vmax.f32 %v1687_v3, 0.0  ;;  %v1260_v43 = vadd.f32 %v3155_v56, %v3174_v38 }
 0x172   : > { %v1717_v33 = vmax.f32 %v1685_v5, 0.0  ;;  %v2597_v7 = vpop.f32.mrb[60].mxu1  ;;  %v2669_v53 = vpop.f32.mrb[60].mxu0 }
 0x173   : > { %v2321_v19 = vpack.c.bf16 %v1719_v45, %v1718_v54  ;;  %v1542_v9 = vadd.f32 %v2669_v53, %v3251_v17  ;;  %v2598_v58 = vpop.f32.mrb[61].mxu1  ;;  %v1533_v31 = vpop.f32.mrb[61].mxu0 }
 0x174   : > { %v2316_v48 = vpack.c.bf16 %v1717_v33, %v1716_v20  ;;  %v2599_v35 = vadd.f32 %v2598_v58, %v2597_v7  ;;  %v1534_v12 = vadd.f32 %v1533_v31, %v3230_v30  ;;  %v2600_v63 = vpop.f32.mrb[62].mxu1  ;;  %v2670_v13 = vpop.f32.mrb[62].mxu0  ;;  %v2264_v33 = vunpack.c.h.bf16 %v2380_v50  ;;  %v2383_v31 = vld [vmem:[%s3240_s10 + $0x58] sm:$0xff]  }
 0x175   : > { %2392 = vst [vmem:[%s3275_s13 + $0x28] sm:$0xff] %v2321_v19   ;;  %v1690_v17 = vadd.f32 %v2259_v49, %v1542_v9  ;;  %v1545_v14 = vadd.f32 %v2670_v13, %v3254_v24  ;;  %v2601_v8 = vpop.f32.mrb[63].mxu1  ;;  %v1536_v52 = vpop.f32.mrb[63].mxu0  ;;  %v1263_v7 = vadd.f32 %v3157_v62, %v3174_v38 }
 0x176   : > { %2391 = vst [vmem:[%s3275_s13 + $0x20] sm:$0xff] %v2316_v48   ;;  %v1688_v44 = vadd.f32 %v2255_v27, %v1534_v12  ;;  %v2602_v1 = vadd.f32 %v2601_v8, %v2600_v63  ;;  %v1537_v15 = vadd.f32 %v1536_v52, %v3233_v55  ;;  %v1413_v40 = vadd.f32 %v2599_v35, %v1252_v0 }
 0x177   : > { %v1691_v30 = vadd.f32 %v2260_v60, %v1545_v14  ;;  %v1722_v36 = vmax.f32 %v1690_v17, 0.0  ;;  %v2275_v12 = vunpack.c.l.bf16 %v2383_v31  ;;  %v1268_v14 = vadd.f32 %v3159_v4, %v3174_v38 }
 0x178   : > { %v1689_v11 = vadd.f32 %v2256_v51, %v1537_v15  ;;  %v1416_v25 = vadd.f32 %v2602_v1, %v1255_v29  ;;  %v1720_v18 = vmax.f32 %v1688_v44, 0.0  ;;  %v2382_v51 = vld [vmem:[%s3240_s10 + $0x50] sm:$0xff]   ;;  %v2276_v1 = vunpack.c.h.bf16 %v2383_v31 }
 0x179   : > { %v1723_v32 = vmax.f32 %v1691_v30, 0.0  ;;  %v2271_v17 = vunpack.c.l.bf16 %v2382_v51 }
 0x17a   : > { %v1721_v61 = vmax.f32 %v1689_v11, 0.0  ;;  %v2603_v37 = vpop.f32.mrb[64].mxu1  ;;  %v2673_v24 = vpop.f32.mrb[64].mxu0 }
 0x17b   : > { %v2331_v39 = vpack.c.bf16 %v1723_v32, %v1722_v36  ;;  %v1558_v55 = vadd.f32 %v2673_v24, %v3288_v57  ;;  %v2604_v41 = vpop.f32.mrb[65].mxu1  ;;  %v1549_v3 = vpop.f32.mrb[65].mxu0  ;;  %v2272_v36 = vunpack.c.h.bf16 %v2382_v51  ;;  %v1271_v32 = vadd.f32 %v3161_v10, %v3174_v38 }
 0x17c   : > { %v2326_v5 = vpack.c.bf16 %v1721_v61, %v1720_v18  ;;  %v2605_v54 = vadd.f32 %v2604_v41, %v2603_v37  ;;  %v1550_v45 = vadd.f32 %v1549_v3, %v3265_v26  ;;  %v2606_v49 = vpop.f32.mrb[66].mxu1  ;;  %v2674_v20 = vpop.f32.mrb[66].mxu0 }
 0x17d   : > { %2394 = vst [vmem:[%s3275_s13 + $0x38] sm:$0xff] %v2331_v39   ;;  %v1694_v56 = vadd.f32 %v2267_v6, %v1558_v55  ;;  %v1561_v57 = vadd.f32 %v2674_v20, %v3291_v59  ;;  %v2607_v53 = vpop.f32.mrb[67].mxu1  ;;  %v1552_v27 = vpop.f32.mrb[67].mxu0  ;;  %v2384_v39 = vld [vmem:[%s3240_s10 + $0x60] sm:$0xff]   ;;  %v1276_v20 = vadd.f32 %v3163_v16, %v3174_v38 }
 0x17e   : > { %2393 = vst [vmem:[%s3275_s13 + $0x30] sm:$0xff] %v2326_v5   ;;  %v1692_v19 = vadd.f32 %v2263_v46, %v1550_v45  ;;  %v2608_v9 = vadd.f32 %v2607_v53, %v2606_v49  ;;  %v1553_v58 = vadd.f32 %v1552_v27, %v3268_v2  ;;  %v1421_v26 = vadd.f32 %v2605_v54, %v1260_v43  ;;  %v2385_v43 = vld [vmem:[%s3240_s10 + $0x68] sm:$0xff]  }
 0x17f   : > { %v1695_v60 = vadd.f32 %v2268_v47, %v1561_v57  ;;  %v1726_v35 = vmax.f32 %v1694_v56, 0.0  ;;  %v2283_v5 = vunpack.c.l.bf16 %v2385_v43  ;;  %v2279_v49 = vunpack.c.l.bf16 %v2384_v39 }
 0x180   : > { %v1693_v0 = vadd.f32 %v2264_v33, %v1553_v58  ;;  %v3333_v48 = vadd.f32 %v2608_v9, %v1263_v7  ;;  %v1724_v63 = vmax.f32 %v1692_v19, 0.0  ;;  %v2284_v57 = vunpack.c.h.bf16 %v2385_v43 }
 0x181   : > { %v1727_v62 = vmax.f32 %v1695_v60, 0.0  ;;  %v2280_v31 = vunpack.c.h.bf16 %v2384_v39  ;;  %v1279_v60 = vadd.f32 %v3165_v22, %v3174_v38 }
 0x182   : > { %v1725_v13 = vmax.f32 %v1693_v0, 0.0  ;;  %v2609_v59 = vpop.f32.mrb[68].mxu1  ;;  %v2677_v29 = vpop.f32.mrb[68].mxu0 }
 0x183   : > { %v2341_v2 = vpack.c.bf16 %v1727_v62, %v1726_v35  ;;  %v1574_v8 = vadd.f32 %v2677_v29, %v1413_v40  ;;  %v2610_v52 = vpop.f32.mrb[69].mxu1  ;;  %v1565_v44 = vpop.f32.mrb[69].mxu0 }
 0x184   : > { %v2336_v15 = vpack.c.bf16 %v1725_v13, %v1724_v63  ;;  %v2611_v21 = vadd.f32 %v2610_v52, %v2609_v59  ;;  %v1566_v30 = vadd.f32 %v1565_v44, %v3304_v42  ;;  %v2612_v50 = vpop.f32.mrb[70].mxu1  ;;  %v2678_v11 = vpop.f32.mrb[70].mxu0  ;;  %v2386_v59 = vld [vmem:[%s3240_s10 + $0x70] sm:$0xff]  }
 0x185   : > { %2396 = vst [vmem:[%s3275_s13 + $0x48] sm:$0xff] %v2341_v2   ;;  %v1698_v4 = vadd.f32 %v2275_v12, %v1574_v8  ;;  %v1577_v6 = vadd.f32 %v2678_v11, %v1416_v25  ;;  %v2613_v40 = vpop.f32.mrb[71].mxu1  ;;  %v1568_v18 = vpop.f32.mrb[71].mxu0 }
 0x186   : > { %2395 = vst [vmem:[%s3275_s13 + $0x40] sm:$0xff] %v2336_v15   ;;  %v1696_v61 = vadd.f32 %v2271_v17, %v1566_v30  ;;  %v2614_v37 = vadd.f32 %v2613_v40, %v2612_v50  ;;  %v1569_v24 = vadd.f32 %v1568_v18, %v3307_v23  ;;  %v1429_v46 = vadd.f32 %v2611_v21, %v1268_v14 }
 0x187   : > { %v1699_v42 = vadd.f32 %v2276_v1, %v1577_v6  ;;  %v1730_v3 = vmax.f32 %v1698_v4, 0.0  ;;  %v2387_v1 = vld [vmem:[%s3240_s10 + $0x78] sm:$0xff]   ;;  %v2287_v15 = vunpack.c.l.bf16 %v2386_v59  ;;  %v1284_v21 = vadd.f32 %v3167_v28, %v3174_v38 }
 0x188   : > { %v1697_v55 = vadd.f32 %v2272_v36, %v1569_v24  ;;  %v1432_v41 = vadd.f32 %v2614_v37, %v1271_v32  ;;  %v1728_v10 = vmax.f32 %v1696_v61, 0.0  ;;  %v2288_v40 = vunpack.c.h.bf16 %v2386_v59 }
 0x189   : > { %v1731_v47 = vmax.f32 %v1699_v42, 0.0  ;;  %v1287_v18 = vadd.f32 %v3169_v34, %v3174_v38  ;;  %v2291_v61 = vunpack.c.l.bf16 %v2387_v1 }
 0x18a   : > { %v1729_v54 = vmax.f32 %v1697_v55, 0.0  ;;  %v2615_v45 = vpop.f32.mrb[72].mxu1  ;;  %v2681_v25 = vpop.f32.mrb[72].mxu0 }
 0x18b   : > { %v2351_v33 = vpack.c.bf16 %v1731_v47, %v1730_v3  ;;  %v1590_v23 = vadd.f32 %v2681_v25, %v1429_v46  ;;  %v2616_v7 = vpop.f32.mrb[73].mxu1  ;;  %v1581_v56 = vpop.f32.mrb[73].mxu0 }
 0x18c   : > { %v2346_v53 = vpack.c.bf16 %v1729_v54, %v1728_v10  ;;  %v2617_v27 = vadd.f32 %v2616_v7, %v2615_v45  ;;  %v1582_v19 = vadd.f32 %v1581_v56, %v1421_v26  ;;  %v2618_v9 = vpop.f32.mrb[74].mxu1  ;;  %v2682_v58 = vpop.f32.mrb[74].mxu0 }
 0x18d   : > { %2398 = vst [vmem:[%s3275_s13 + $0x58] sm:$0xff] %v2351_v33   ;;  %v1702_v51 = vadd.f32 %v2283_v5, %v1590_v23  ;;  %v1593_v0 = vadd.f32 %v2682_v58, %v1432_v41  ;;  %v2619_v16 = vpop.f32.mrb[75].mxu1  ;;  %v1584_v35 = vpop.f32.mrb[75].mxu0  ;;  %v2292_v41 = vunpack.c.h.bf16 %v2387_v1 }
 0x18e   : > { %2397 = vst [vmem:[%s3275_s13 + $0x50] sm:$0xff] %v2346_v53   ;;  %v1700_v62 = vadd.f32 %v2279_v49, %v1582_v19  ;;  %v2620_v12 = vadd.f32 %v2619_v16, %v2618_v9  ;;  %v1585_v63 = vadd.f32 %v1584_v35, %v3333_v48  ;;  %v1437_v13 = vadd.f32 %v2617_v27, %v1276_v20 }
 0x18f   : > { %v1703_v26 = vadd.f32 %v2284_v57, %v1593_v0  ;;  %v1734_v14 = vmax.f32 %v1702_v51, 0.0 }
 0x190   : > { %v1701_v29 = vadd.f32 %v2280_v31, %v1585_v63  ;;  %v1440_v17 = vadd.f32 %v2620_v12, %v1279_v60  ;;  %v1732_v8 = vmax.f32 %v1700_v62, 0.0 }
 0x191   : > { %v1735_v2 = vmax.f32 %v1703_v26, 0.0 }
 0x192   : > { %v1733_v22 = vmax.f32 %v1701_v29, 0.0  ;;  %v2621_v52 = vpop.f32.mrb[76].mxu1  ;;  %v2685_v44 = vpop.f32.mrb[76].mxu0 }
 0x193   : > { %v2361_v30 = vpack.c.bf16 %v1735_v2, %v1734_v14  ;;  %v2622_v48 = vpop.f32.mrb[77].mxu1  ;;  %v1597_v50 = vpop.f32.mrb[77].mxu0 }
 0x194   : > { %v2356_v11 = vpack.c.bf16 %v1733_v22, %v1732_v8  ;;  %v2623_v36 = vadd.f32 %v2622_v48, %v2621_v52  ;;  %v1598_v32 = vadd.f32 %v1597_v50, %v1437_v13  ;;  %v2624_v4 = vpop.f32.mrb[78].mxu1  ;;  %v2686_v6 = vpop.f32.mrb[78].mxu0 }
 0x195   : > { %2400 = vst [vmem:[%s3275_s13 + $0x68] sm:$0xff] %v2361_v30   ;;  %v2625_v37 = vpop.f32.mrb[79].mxu1  ;;  %v1600_v24 = vpop.f32.mrb[79].mxu0 }
 0x196   : > { %2399 = vst [vmem:[%s3275_s13 + $0x60] sm:$0xff] %v2356_v11   ;;  %v1445_v46 = vadd.f32 %v2623_v36, %v1284_v21  ;;  %v1704_v28 = vadd.f32 %v2287_v15, %v1598_v32  ;;  %v2626_v43 = vadd.f32 %v2625_v37, %v2624_v4  ;;  %v1601_v42 = vadd.f32 %v1600_v24, %v1440_v17 }
 0x198   : > { %v1606_v39 = vadd.f32 %v2685_v44, %v1445_v46  ;;  %v1448_v55 = vadd.f32 %v2626_v43, %v1287_v18  ;;  %v1705_v3 = vadd.f32 %v2288_v40, %v1601_v42  ;;  %v1736_v5 = vmax.f32 %v1704_v28, 0.0 }
 0x19a   : > { %v1706_v47 = vadd.f32 %v2291_v61, %v1606_v39  ;;  %v1609_v10 = vadd.f32 %v2686_v6, %v1448_v55  ;;  %v1737_v54 = vmax.f32 %v1705_v3, 0.0 }
 0x19c   : > { %v1707_v34 = vadd.f32 %v2292_v41, %v1609_v10  ;;  %v2366_v38 = vpack.c.bf16 %v1737_v54, %v1736_v5  ;;  %v1738_v45 = vmax.f32 %v1706_v47, 0.0 }
 0x19e   : > { %v1739_v25 = vmax.f32 %v1707_v34, 0.0  ;;  %2401 = vst [vmem:[%s3275_s13 + $0x70] sm:$0xff] %v2366_v38  }
 0x1a0   : > { %v2371_v49 = vpack.c.bf16 %v1739_v25, %v1738_v45 }
 0x1a2   : > { %2402 = vst [vmem:[%s3275_s13 + $0x78] sm:$0xff] %v2371_v49  }
 0x1a3 PF: > { %s14_s17 = sadd.s32 1, %s2898_s17   ;;  %s3376_s15 = smov %s2894_s16 }
 0x1a4   : > { %p11_p5 = scmp.ge.s32.totalorder %s14_s17, 4   ;;  %s3377_s16 = smov %s3379_s18 }
 0x1a6   :  { %13 = sbr.rel (!%p11_p5) target bundleno = 2 (0x2), region = 75 }

// kernel: model_wrapper_forward.17
= control target key start
LH: loop header
LB: loop body
LE: loop exit
PB: predicated region body
PF: predicated region fallthrough
CT: control target
= control target key end

     0   :  { %s686_s12 = smov 0   ;;  %s688_s13 = smov 0   ;;  %s745_s0 = inlined_call_operand.vmem [shape: bf16[128,64], index: 0, kind: input, shape index: {}]   ;;  %s746_s1 = inlined_call_operand.vmem [shape: bf16[64,128], index: 1, kind: input, shape index: {}]   ;;  %s747_s2 = inlined_call_operand.vmem [shape: f32[1,128], index: 2, kind: input, shape index: {}]   ;;  %s748_s3 = inlined_call_operand.vmem [shape: bf16[128,128], index: 3, kind: output, shape index: {}]  }
   0x1   :  { %s690_s14 = smov 0  }
   0x2 LB: > { %s25_s15 = sadd.s32 1, %s660_s13  ;;  %p519_p0 = scmp.ge.s32.totalorder %s664_s14, 1  ;;  %s664_s14 = sphi %s690_s14, %s13_s14   ;;  %s660_s13 = sphi %s688_s13, %s750_s13   ;;  %s656_s12 = sphi %s686_s12, %s749_s12  }
   0x3   : > { %p27_p1 = scmp.ge.s32.totalorder %s25_s15, 2  ;;  %p169_p2 = scmp.lt.s32.totalorder %s664_s14, 3 }
   0x5   : > { %s752_s15 = smov (%p27_p1, %s25_s15), 0  ;;  %p170_p3 = pnand %p519_p0, %p169_p2 }
   0x6   : > { %v634_v0 = vld [vmem:[%s746_s1] sm:$0xff] (!%p170_p3)   ;;  %s520_s18 = sshll.u32 (!%p170_p3), %s656_s12, 3  ;;  %v635_v1 = vld [vmem:[%s746_s1 + $0x8] sm:$0xff] (!%p170_p3)   ;;  %v636_v2 = vld [vmem:[%s746_s1 + $0x10] sm:$0xff] (!%p170_p3)   ;;  %vm293_vm0 = vcmask (!%p170_p3), 523264  }
   0x7   : > { %173 = sbr.rel (%p170_p3) target bundleno = 243 (0xf3), region = 32  ;;  %p204_p4 = scmp.lt.s32.totalorder (!%p170_p3), %s520_s18, 15  ;;  %586 = vmatprep.subr.bf16.mxu0 (!%p170_p3), %v634_v0  ;;  %602 = vmatprep.subr.bf16.mxu1 (!%p170_p3), %v634_v0  ;;  %v637_v3 = vld [vmem:[%s746_s1 + $0x18] sm:$0xff] (!%p170_p3)   ;;  %v524_v9 = vld [vmem:[%s747_s2] ss:$0 sm:$0xff] (!%p170_p3) }
   0x8   : > { %587 = vmatpush3.bf16.msra.mxu0 (!%p170_p3), %v634_v0  ;;  %606 = vmatpush3.bf16.msra.mxu1 (!%p170_p3), %v634_v0 }
   0x9   : > { %588 = vmatprep.subr.bf16.mxu0 (!%p170_p3), %v635_v1  ;;  %603 = vmatprep.subr.bf16.mxu1 (!%p170_p3), %v635_v1 }
   0xc   : > { %589 = vmatpush3.bf16.msra.mxu0 (!%p170_p3), %v635_v1  ;;  %607 = vmatpush3.bf16.msra.mxu1 (!%p170_p3), %v635_v1 }
   0xd   : > { %590 = vmatprep.subr.bf16.mxu0 (!%p170_p3), %v636_v2  ;;  %604 = vmatprep.subr.bf16.mxu1 (!%p170_p3), %v636_v2 }
   0xe   : > { %s754_s18 = smov (!%p204_p4, %s520_s18), 15 }
   0xf   : > { %s521_s23 = sshll.u32 %s754_s18, 2 }
  0x10   : > { %s207_s28 = scalar_lea.vmem %s745_s0, %s521_s23  ;;  %591 = vmatpush3.bf16.msra.mxu0 %v636_v2  ;;  %608 = vmatpush3.bf16.msra.mxu1 %v636_v2  ;;  %s223_s6 = scalar_lea.vmem %s748_s3, %s521_s23 }
  0x11   : > { %v638_v4 = vld [vmem:[%s207_s28] sm:$0xff]   ;;  %v639_v5 = vld [vmem:[%s207_s28 + $0x10] sm:$0xff]   ;;  %592 = vmatprep.subr.bf16.mxu0 %v637_v3  ;;  %605 = vmatprep.subr.bf16.mxu1 %v637_v3  ;;  %v640_v6 = vld [vmem:[%s207_s28 + $0x8] sm:$0xff]  }
  0x12   : > { %594 = vmatprep.mubr.msk.bf16.mxu0 %vm293_vm0, %v638_v4  ;;  %598 = vmatprep.mubr.msk.bf16.mxu1 %vm293_vm0, %v639_v5  ;;  %v641_v7 = vld [vmem:[%s207_s28 + $0x18] sm:$0xff]  }
  0x14   : > { %593 = vmatpush3.bf16.msra.mxu0 %v637_v3  ;;  %609 = vmatpush3.bf16.msra.mxu1 %v637_v3 }
  0x17   : > { %595 = vmatmul.mubr.msk.bf16.vlgmr.msra.gmra.mrb[0].mxu0 %vm293_vm0, %v640_v6  ;;  %599 = vmatmul.mubr.msk.bf16.vlgmr.msra.gmra.mrb[0].mxu1 %vm293_vm0, %v641_v7 }
  0xea   : > { %v596_v8 = vpop.f32.mrb[0].mxu0  ;;  %v600_v10 = vpop.f32.mrb[0].mxu1 }
  0xeb   : > { %v340_v11 = vpop.f32.mrb[1].mxu0  ;;  %v356_v12 = vpop.f32.mrb[1].mxu1  ;;  %v349_v15 = vadd.f32 %v596_v8, %v524_v9  ;;  %v365_v16 = vadd.f32 %v600_v10, %v524_v9 }
  0xec   : > { %v597_v13 = vpop.f32.mrb[2].mxu0  ;;  %v601_v14 = vpop.f32.mrb[2].mxu1  ;;  %v341_v21 = vadd.f32 %v524_v9, %v340_v11  ;;  %v357_v22 = vadd.f32 %v524_v9, %v356_v12 }
  0xed   : > { %v352_v17 = vadd.f32 %v597_v13, %v524_v9  ;;  %v368_v18 = vadd.f32 %v601_v14, %v524_v9  ;;  %v343_v19 = vpop.f32.mrb[3].mxu0  ;;  %v359_v20 = vpop.f32.mrb[3].mxu1 }
  0xee   : > { %v344_v23 = vadd.f32 %v524_v9, %v343_v19  ;;  %v360_v24 = vadd.f32 %v524_v9, %v359_v20 }
  0xef   : > { %v563_v25 = vpack.c.bf16 %v352_v17, %v349_v15  ;;  %v573_v26 = vpack.c.bf16 %v368_v18, %v365_v16 }
  0xf0   : > { %v558_v27 = vpack.c.bf16 %v344_v23, %v341_v21  ;;  %v568_v28 = vpack.c.bf16 %v360_v24, %v357_v22 }
  0xf1   : > { %575 = vst [vmem:[%s223_s6 + $0x8] sm:$0xff] %v563_v25   ;;  %577 = vst [vmem:[%s223_s6 + $0x18] sm:$0xff] %v573_v26  }
  0xf2   : > { %559 = vst [vmem:[%s223_s6] sm:$0xff] %v558_v27   ;;  %576 = vst [vmem:[%s223_s6 + $0x10] sm:$0xff] %v568_v28  }
  0xf3 PF: > { %s13_s14 = sadd.s32 1, %s664_s14   ;;  %s749_s12 = smov %s660_s13 }
  0xf4   : > { %p10_p5 = scmp.ge.s32.totalorder %s13_s14, 4   ;;  %s750_s13 = smov %s752_s15 }
  0xf6   :  { %12 = sbr.rel (!%p10_p5) target bundleno = 2 (0x2), region = 68 }

// kernel: model_wrapper_forward.19
= control target key start
LH: loop header
LB: loop body
LE: loop exit
PB: predicated region body
PF: predicated region fallthrough
CT: control target
= control target key end

     0   :  { %s2202_s15 = smov 0   ;;  %s2204_s16 = smov 0   ;;  %s2515_s0 = inlined_call_operand.vmem [shape: bf16[128,1152], index: 0, kind: input, shape index: {}]   ;;  %s2516_s1 = inlined_call_operand.vmem [shape: bf16[1152,128], index: 1, kind: input, shape index: {}]   ;;  %s2517_s2 = inlined_call_operand.vmem [shape: f32[1,128], index: 2, kind: input, shape index: {}]   ;;  %s2518_s3 = inlined_call_operand.vmem [shape: bf16[128,128], index: 3, kind: input, shape index: {}]   ;;  %s2519_s4 = inlined_call_operand.vmem [shape: bf16[128,128], index: 4, kind: output, shape index: {}]  }
   0x1   :  { %s2206_s17 = smov 0  }
   0x2 LB: > { %s26_s18 = sadd.s32 1, %s2171_s16  ;;  %p1616_p0 = scmp.ge.s32.totalorder %s2175_s17, 1  ;;  %s2175_s17 = sphi %s2206_s17, %s14_s17   ;;  %s2171_s16 = sphi %s2204_s16, %s2521_s16   ;;  %s2167_s15 = sphi %s2202_s15, %s2520_s15  }
   0x3   : > { %p28_p1 = scmp.ge.s32.totalorder %s26_s18, 2  ;;  %p211_p2 = scmp.lt.s32.totalorder %s2175_s17, 3 }
   0x5   : > { %s2523_s18 = smov (%p28_p1, %s26_s18), 0  ;;  %p212_p3 = pnand %p1616_p0, %p211_p2 }
   0x6   : > { %v2029_v0 = vld [vmem:[%s2516_s1 + $0x40] sm:$0xff] (!%p212_p3)   ;;  %v2033_v4 = vld [vmem:[%s2516_s1 + $0x48] sm:$0xff] (!%p212_p3)   ;;  %v2037_v8 = vld [vmem:[%s2516_s1 + $0x50] sm:$0xff] (!%p212_p3)   ;;  %s1617_s27 = sshll.u32 (!%p212_p3), %s2167_s15, 3 }
   0x7   : > { %215 = sbr.rel (%p212_p3) target bundleno = 330 (0x14a), region = 36  ;;  %v2030_v1 = vld [vmem:[%s2516_s1 + $0xc0] sm:$0xff] (!%p212_p3)   ;;  %1792 = vmatprep.subr.bf16.mxu0 (!%p212_p3), %v2029_v0  ;;  %v2034_v5 = vld [vmem:[%s2516_s1 + $0xc8] sm:$0xff] (!%p212_p3)   ;;  %v2038_v9 = vld [vmem:[%s2516_s1 + $0xd0] sm:$0xff] (!%p212_p3)   ;;  %p257_p4 = scmp.lt.s32.totalorder (!%p212_p3), %s1617_s27, 15 }
   0x8   : > { %v2031_v2 = vld [vmem:[%s2516_s1] sm:$0xff] (!%p212_p3)   ;;  %1832 = vmatprep.subr.bf16.mxu1 (!%p212_p3), %v2030_v1  ;;  %v2035_v6 = vld [vmem:[%s2516_s1 + $0x8] sm:$0xff] (!%p212_p3)   ;;  %v2039_v10 = vld [vmem:[%s2516_s1 + $0x10] sm:$0xff] (!%p212_p3)  }
   0x9   : > { %v2032_v3 = vld [vmem:[%s2516_s1 + $0x80] sm:$0xff] (!%p212_p3)   ;;  %1793 = vmatpush3.bf16.msra.mxu0 (!%p212_p3), %v2031_v2  ;;  %v2036_v7 = vld [vmem:[%s2516_s1 + $0x88] sm:$0xff] (!%p212_p3)   ;;  %v2040_v11 = vld [vmem:[%s2516_s1 + $0x90] sm:$0xff] (!%p212_p3)  }
   0xa   : > { %1833 = vmatpush3.bf16.msra.mxu1 (!%p212_p3), %v2032_v3  ;;  %1794 = vmatprep.subr.bf16.mxu0 (!%p212_p3), %v2033_v4  ;;  %v2041_v12 = vld [vmem:[%s2516_s1 + $0x58] sm:$0xff] (!%p212_p3)   ;;  %v2045_v16 = vld [vmem:[%s2516_s1 + $0x60] sm:$0xff] (!%p212_p3)   ;;  %v2049_v20 = vld [vmem:[%s2516_s1 + $0x68] sm:$0xff] (!%p212_p3)  }
   0xb   : > { %1834 = vmatprep.subr.bf16.mxu1 (!%p212_p3), %v2034_v5  ;;  %v2042_v13 = vld [vmem:[%s2516_s1 + $0xd8] sm:$0xff] (!%p212_p3)   ;;  %v2046_v17 = vld [vmem:[%s2516_s1 + $0xe0] sm:$0xff] (!%p212_p3)   ;;  %v2050_v21 = vld [vmem:[%s2516_s1 + $0xe8] sm:$0xff] (!%p212_p3)  }
   0xc   : > { %v2043_v14 = vld [vmem:[%s2516_s1 + $0x18] sm:$0xff] (!%p212_p3)   ;;  %v2047_v18 = vld [vmem:[%s2516_s1 + $0x20] sm:$0xff] (!%p212_p3)   ;;  %v2051_v22 = vld [vmem:[%s2516_s1 + $0x28] sm:$0xff] (!%p212_p3)  }
   0xd   : > { %1795 = vmatpush3.bf16.msra.mxu0 (!%p212_p3), %v2035_v6  ;;  %v2044_v15 = vld [vmem:[%s2516_s1 + $0x98] sm:$0xff] (!%p212_p3)   ;;  %v2048_v19 = vld [vmem:[%s2516_s1 + $0xa0] sm:$0xff] (!%p212_p3)   ;;  %v2052_v23 = vld [vmem:[%s2516_s1 + $0xa8] sm:$0xff] (!%p212_p3)  }
   0xe   : > { %1835 = vmatpush3.bf16.msra.mxu1 %v2036_v7  ;;  %1796 = vmatprep.subr.bf16.mxu0 %v2037_v8  ;;  %s2525_s27 = smov (!%p257_p4, %s1617_s27), 15  ;;  %v2053_v24 = vld [vmem:[%s2516_s1 + $0x70] sm:$0xff]   ;;  %v2057_v28 = vld [vmem:[%s2516_s1 + $0x78] sm:$0xff]   ;;  %v2067_v36 = vld [vmem:[%s2516_s1 + $0x140] sm:$0xff]  }
   0xf   : > { %1836 = vmatprep.subr.bf16.mxu1 %v2038_v9  ;;  %v2054_v25 = vld [vmem:[%s2516_s1 + $0xf0] sm:$0xff]   ;;  %s2004_s28 = smul.u32 36, %s2525_s27  ;;  %v2058_v29 = vld [vmem:[%s2516_s1 + $0xf8] sm:$0xff]   ;;  %v2068_v37 = vld [vmem:[%s2516_s1 + $0x1c0] sm:$0xff]  }
  0x10   : > { %v2055_v26 = vld [vmem:[%s2516_s1 + $0x30] sm:$0xff]   ;;  %v2059_v30 = vld [vmem:[%s2516_s1 + $0x38] sm:$0xff]   ;;  %v2069_v38 = vld [vmem:[%s2516_s1 + $0x100] sm:$0xff]  }
  0x11   : > { %1797 = vmatpush3.bf16.msra.mxu0 %v2039_v10  ;;  %v2056_v27 = vld [vmem:[%s2516_s1 + $0xb0] sm:$0xff]   ;;  %s2319_s12 = scalar_lea.vmem %s2515_s0, %s2004_s28  ;;  %v2060_v31 = vld [vmem:[%s2516_s1 + $0xb8] sm:$0xff]   ;;  %v2070_v39 = vld [vmem:[%s2516_s1 + $0x180] sm:$0xff]  }
  0x12   : > { %1837 = vmatpush3.bf16.msra.mxu1 %v2040_v11  ;;  %1798 = vmatprep.subr.bf16.mxu0 %v2041_v12  ;;  %v2061_v32 = vld [vmem:[%s2319_s12] ss:$36 sps:$4 sm:$0xff]   ;;  %v2064_v34 = vld [vmem:[%s2319_s12 + $0x8] ss:$36 sps:$4 sm:$0xff]   ;;  %v2077_v45 = vld [vmem:[%s2319_s12 + $0x54] ss:$36 sps:$4 sm:$0xff]  }
  0x13   : > { %1838 = vmatprep.subr.bf16.mxu1 %v2042_v13  ;;  %v2063_v33 = vld [vmem:[%s2319_s12 + $0x4] ss:$36 sps:$4 sm:$0xff]   ;;  %v2066_v35 = vld [vmem:[%s2319_s12 + $0xc] ss:$36 sps:$4 sm:$0xff]   ;;  %v2085_v52 = vld [vmem:[%s2516_s1 + $0x158] sm:$0xff]  }
  0x14   : > { %1128 = vmatprep.mubr.bf16.mxu0 %v2063_v33  ;;  %1193 = vmatprep.mubr.bf16.mxu1 %v2066_v35  ;;  %v2071_v40 = vld [vmem:[%s2516_s1 + $0x148] sm:$0xff]   ;;  %v2080_v47 = vld [vmem:[%s2319_s12 + $0x50] ss:$36 sps:$4 sm:$0xff]   ;;  %v2086_v53 = vld [vmem:[%s2516_s1 + $0x1d8] sm:$0xff]  }
  0x15   : > { %1799 = vmatpush3.bf16.msra.mxu0 %v2043_v14  ;;  %v2072_v41 = vld [vmem:[%s2516_s1 + $0x1c8] sm:$0xff]   ;;  %v2081_v48 = vld [vmem:[%s2516_s1 + $0x150] sm:$0xff]   ;;  %v2087_v54 = vld [vmem:[%s2516_s1 + $0x118] sm:$0xff]  }
  0x16   : > { %1839 = vmatpush3.bf16.msra.mxu1 %v2044_v15  ;;  %1800 = vmatprep.subr.bf16.mxu0 %v2045_v16  ;;  %v2073_v42 = vld [vmem:[%s2516_s1 + $0x108] sm:$0xff]   ;;  %v2082_v49 = vld [vmem:[%s2516_s1 + $0x1d0] sm:$0xff]   ;;  %v2088_v55 = vld [vmem:[%s2516_s1 + $0x198] sm:$0xff]  }
  0x17   : > { %1840 = vmatprep.subr.bf16.mxu1 %v2046_v17  ;;  %v2074_v43 = vld [vmem:[%s2516_s1 + $0x188] sm:$0xff]   ;;  %v2083_v50 = vld [vmem:[%s2516_s1 + $0x110] sm:$0xff]   ;;  %v2091_v57 = vld [vmem:[%s2319_s12 + $0x9c] ss:$36 sps:$4 sm:$0xff]  }
  0x18   : > { %v2075_v44 = vld [vmem:[%s2319_s12 + $0x4c] ss:$36 sps:$4 sm:$0xff]   ;;  %v2089_v56 = vld [vmem:[%s2319_s12 + $0x94] ss:$36 sps:$4 sm:$0xff]   ;;  %v2095_v60 = vld [vmem:[%s2516_s1 + $0x160] sm:$0xff]  }
  0x19   : > { %1801 = vmatpush3.bf16.msra.mxu0 %v2047_v18  ;;  %v2079_v46 = vld [vmem:[%s2319_s12 + $0x48] ss:$36 sps:$4 sm:$0xff]   ;;  %v2084_v51 = vld [vmem:[%s2516_s1 + $0x190] sm:$0xff]   ;;  %v2094_v59 = vld [vmem:[%s2319_s12 + $0x98] ss:$36 sps:$4 sm:$0xff]  }
  0x1a   : > { %1841 = vmatpush3.bf16.msra.mxu1 %v2048_v19  ;;  %1802 = vmatprep.subr.bf16.mxu0 %v2049_v20  ;;  %v2093_v58 = vld [vmem:[%s2319_s12 + $0x90] ss:$36 sps:$4 sm:$0xff]   ;;  %v2096_v61 = vld [vmem:[%s2516_s1 + $0x1e0] sm:$0xff]   ;;  %v2099_v0 = vld [vmem:[%s2516_s1 + $0x168] sm:$0xff]  }
  0x1b   : > { %1842 = vmatprep.subr.bf16.mxu1 %v2050_v21  ;;  %v2097_v62 = vld [vmem:[%s2516_s1 + $0x120] sm:$0xff]   ;;  %v2100_v1 = vld [vmem:[%s2516_s1 + $0x1e8] sm:$0xff]   ;;  %v2107_v6 = vld [vmem:[%s2319_s12 + $0xd8] ss:$36 sps:$4 sm:$0xff]  }
  0x1c   : > { %v2098_v63 = vld [vmem:[%s2516_s1 + $0x1a0] sm:$0xff]   ;;  %v2101_v2 = vld [vmem:[%s2516_s1 + $0x128] sm:$0xff]   ;;  %v2109_v8 = vld [vmem:[%s2516_s1 + $0x170] sm:$0xff]  }
  0x1d   : > { %1803 = vmatpush3.bf16.msra.mxu0 %v2051_v22  ;;  %v2102_v3 = vld [vmem:[%s2516_s1 + $0x1a8] sm:$0xff]   ;;  %v2103_v4 = vld [vmem:[%s2319_s12 + $0xdc] ss:$36 sps:$4 sm:$0xff]   ;;  %v2110_v9 = vld [vmem:[%s2516_s1 + $0x1f0] sm:$0xff]  }
  0x1e   : > { %1843 = vmatpush3.bf16.msra.mxu1 %v2052_v23  ;;  %1804 = vmatprep.subr.bf16.mxu0 %v2053_v24  ;;  %v2105_v5 = vld [vmem:[%s2319_s12 + $0xe4] ss:$36 sps:$4 sm:$0xff]   ;;  %v2111_v10 = vld [vmem:[%s2516_s1 + $0x130] sm:$0xff]   ;;  %v2113_v12 = vld [vmem:[%s2516_s1 + $0x178] sm:$0xff]  }
  0x1f   : > { %1844 = vmatprep.subr.bf16.mxu1 %v2054_v25  ;;  %v2108_v7 = vld [vmem:[%s2319_s12 + $0xe0] ss:$36 sps:$4 sm:$0xff]   ;;  %v2112_v11 = vld [vmem:[%s2516_s1 + $0x1b0] sm:$0xff]   ;;  %v2114_v13 = vld [vmem:[%s2516_s1 + $0x1f8] sm:$0xff]  }
  0x20   : > { %v2115_v14 = vld [vmem:[%s2516_s1 + $0x138] sm:$0xff]   ;;  %v2117_v16 = vld [vmem:[%s2319_s12 + $0x10] ss:$36 sps:$4 sm:$0xff]   ;;  %v2123_v20 = vld [vmem:[%s2516_s1 + $0x200] sm:$0xff]  }
  0x21   : > { %1805 = vmatpush3.bf16.msra.mxu0 %v2055_v26  ;;  %v2116_v15 = vld [vmem:[%s2516_s1 + $0x1b8] sm:$0xff]   ;;  %v2124_v21 = vld [vmem:[%s2516_s1 + $0x208] sm:$0xff]   ;;  %v2130_v25 = vld [vmem:[%s2319_s12 + $0x60] ss:$36 sps:$4 sm:$0xff]  }
  0x22   : > { %1845 = vmatpush3.bf16.msra.mxu1 %v2056_v27  ;;  %1806 = vmatprep.subr.bf16.mxu0 %v2057_v28  ;;  %v2119_v17 = vld [vmem:[%s2319_s12 + $0x14] ss:$36 sps:$4 sm:$0xff]   ;;  %v2122_v19 = vld [vmem:[%s2319_s12 + $0x1c] ss:$36 sps:$4 sm:$0xff]   ;;  %v2127_v23 = vld [vmem:[%s2319_s12 + $0x64] ss:$36 sps:$4 sm:$0xff]  }
  0x23   : > { %1846 = vmatprep.subr.bf16.mxu1 %v2058_v29  ;;  %v2120_v18 = vld [vmem:[%s2319_s12 + $0x18] ss:$36 sps:$4 sm:$0xff]   ;;  %v2131_v26 = vld [vmem:[%s2516_s1 + $0x210] sm:$0xff]   ;;  %v2133_v27 = vld [vmem:[%s2319_s12 + $0xa4] ss:$36 sps:$4 sm:$0xff]  }
  0x24   : > { %v2125_v22 = vld [vmem:[%s2319_s12 + $0x5c] ss:$36 sps:$4 sm:$0xff]   ;;  %v2135_v28 = vld [vmem:[%s2319_s12 + $0xac] ss:$36 sps:$4 sm:$0xff]  }
  0x25   : > { %1807 = vmatpush3.bf16.msra.mxu0 %v2059_v30  ;;  %v2129_v24 = vld [vmem:[%s2319_s12 + $0x58] ss:$36 sps:$4 sm:$0xff]   ;;  %v2137_v30 = vld [vmem:[%s2319_s12 + $0xa0] ss:$36 sps:$4 sm:$0xff]   ;;  %v2141_v33 = vld [vmem:[%s2319_s12 + $0xec] ss:$36 sps:$4 sm:$0xff]  }
  0x26   : > { %1847 = vmatpush3.bf16.msra.mxu1 %v2060_v31  ;;  %1872 = vmatprep.subr.bf16.mxu0 %v2067_v36  ;;  %v2132_v29 = vld [vmem:[%s2516_s1 + $0x218] sm:$0xff]   ;;  %v2138_v31 = vld [vmem:[%s2319_s12 + $0xa8] ss:$36 sps:$4 sm:$0xff]  }
  0x27   : > { %1912 = vmatprep.subr.bf16.mxu1 %v2068_v37  ;;  %v2140_v35 = vld [vmem:[%s2516_s1 + $0x228] sm:$0xff]   ;;  %v2147_v37 = vld [vmem:[%s2516_s1 + $0x230] sm:$0xff]  }
  0x28   : > { %1129 = vmatmul.mubr.bf16.vlgmr.msra.gmra.mrb[0].mxu0 %v2061_v32  ;;  %v2139_v32 = vld [vmem:[%s2516_s1 + $0x220] sm:$0xff]   ;;  %v2145_v36 = vld [vmem:[%s2319_s12 + $0xe8] ss:$36 sps:$4 sm:$0xff]  }
  0x29   : > { %1194 = vmatmul.mubr.bf16.vlgmr.msra.gmra.mrb[0].mxu1 %v2064_v34  ;;  %1873 = vmatpush3.bf16.msra.mxu0 %v2069_v38  ;;  %v2143_v34 = vld [vmem:[%s2319_s12 + $0xf4] ss:$36 sps:$4 sm:$0xff]  }
  0x2a   : > { %1913 = vmatpush3.bf16.msra.mxu1 %v2070_v39  ;;  %1874 = vmatprep.subr.bf16.mxu0 %v2071_v40  ;;  %v2146_v38 = vld [vmem:[%s2319_s12 + $0xf0] ss:$36 sps:$4 sm:$0xff]   ;;  %v2149_v39 = vld [vmem:[%s2319_s12 + $0x20] ss:$36 sps:$4 sm:$0xff]  }
  0x2b   : > { %1914 = vmatprep.subr.bf16.mxu1 %v2072_v41  ;;  %1136 = vmatprep.mubr.bf16.mxu0 %v2075_v44  ;;  %v2150_v40 = vld [vmem:[%s2319_s12 + $0xb0] ss:$36 sps:$4 sm:$0xff]   ;;  %v2148_v41 = vld [vmem:[%s2516_s1 + $0x238] sm:$0xff]  }
  0x2c   : > { %1201 = vmatprep.mubr.bf16.mxu1 %v2077_v45 }
  0x2d   : > { %1875 = vmatpush3.bf16.msra.mxu0 %v2073_v42  ;;  %v2151_v42 = vld [vmem:[%s2319_s12 + $0x68] ss:$36 sps:$4 sm:$0xff]  }
  0x2e   : > { %1915 = vmatpush3.bf16.msra.mxu1 %v2074_v43  ;;  %1876 = vmatprep.subr.bf16.mxu0 %v2081_v48  ;;  %v2152_v43 = vld [vmem:[%s2319_s12 + $0xf8] ss:$36 sps:$4 sm:$0xff]   ;;  %s1620_s12 = sshll.u32 %s2525_s27, 2 }
  0x2f   : > { %1916 = vmatprep.subr.bf16.mxu1 %v2082_v49  ;;  %s277_s21 = scalar_lea.vmem %s2518_s3, %s1620_s12  ;;  %s286_s24 = scalar_lea.vmem %s2519_s4, %s1620_s12 }
  0x30   : > { %1137 = vmatmul.mubr.bf16.gmra.mrb[4].mxu0 %v2079_v46  ;;  %v1623_v46 = vld [vmem:[%s2517_s2] ss:$0 sm:$0xff] }
  0x31   : > { %1202 = vmatmul.mubr.bf16.gmra.mrb[4].mxu1 %v2080_v47  ;;  %1877 = vmatpush3.bf16.msra.mxu0 %v2083_v50 }
  0x32   : > { %1917 = vmatpush3.bf16.msra.mxu1 %v2084_v51  ;;  %1878 = vmatprep.subr.bf16.mxu0 %v2085_v52 }
  0x33   : > { %1918 = vmatprep.subr.bf16.mxu1 %v2086_v53  ;;  %1144 = vmatprep.mubr.bf16.mxu0 %v2089_v56 }
  0x34   : > { %1209 = vmatprep.mubr.bf16.mxu1 %v2091_v57 }
  0x35   : > { %1879 = vmatpush3.bf16.msra.mxu0 %v2087_v54 }
  0x36   : > { %1919 = vmatpush3.bf16.msra.mxu1 %v2088_v55  ;;  %1880 = vmatprep.subr.bf16.mxu0 %v2095_v60 }
  0x37   : > { %1920 = vmatprep.subr.bf16.mxu1 %v2096_v61 }
  0x38   : > { %1145 = vmatmul.mubr.bf16.gmra.mrb[8].mxu0 %v2093_v58 }
  0x39   : > { %1210 = vmatmul.mubr.bf16.gmra.mrb[8].mxu1 %v2094_v59  ;;  %1881 = vmatpush3.bf16.msra.mxu0 %v2097_v62 }
  0x3a   : > { %1921 = vmatpush3.bf16.msra.mxu1 %v2098_v63  ;;  %1882 = vmatprep.subr.bf16.mxu0 %v2099_v0 }
  0x3b   : > { %1922 = vmatprep.subr.bf16.mxu1 %v2100_v1  ;;  %1152 = vmatprep.mubr.bf16.mxu0 %v2103_v4 }
  0x3c   : > { %1217 = vmatprep.mubr.bf16.mxu1 %v2105_v5 }
  0x3d   : > { %1883 = vmatpush3.bf16.msra.mxu0 %v2101_v2 }
  0x3e   : > { %1923 = vmatpush3.bf16.msra.mxu1 %v2102_v3  ;;  %1884 = vmatprep.subr.bf16.mxu0 %v2109_v8 }
  0x3f   : > { %1924 = vmatprep.subr.bf16.mxu1 %v2110_v9 }
  0x40   : > { %1153 = vmatmul.mubr.bf16.gmra.mrb[12].mxu0 %v2107_v6 }
  0x41   : > { %1218 = vmatmul.mubr.bf16.gmra.mrb[12].mxu1 %v2108_v7  ;;  %1885 = vmatpush3.bf16.msra.mxu0 %v2111_v10 }
  0x42   : > { %1925 = vmatpush3.bf16.msra.mxu1 %v2112_v11  ;;  %1886 = vmatprep.subr.bf16.mxu0 %v2113_v12 }
  0x43   : > { %1926 = vmatprep.subr.bf16.mxu1 %v2114_v13  ;;  %1258 = vmatprep.mubr.bf16.mxu0 %v2119_v17 }
  0x44   : > { %1323 = vmatprep.mubr.bf16.mxu1 %v2122_v19 }
  0x45   : > { %1887 = vmatpush3.bf16.msra.mxu0 %v2115_v14 }
  0x46   : > { %1927 = vmatpush3.bf16.msra.mxu1 %v2116_v15  ;;  %1964 = vmatprep.subr.bf16.mxu0 %v2123_v20 }
  0x47   : > { %1988 = vmatprep.subr.bf16.mxu1 %v2123_v20 }
  0x48   : > { %1259 = vmatmul.mubr.bf16.vlgmr.msra.gmra.mrb[16].mxu0 %v2117_v16 }
  0x49   : > { %1324 = vmatmul.mubr.bf16.vlgmr.msra.gmra.mrb[16].mxu1 %v2120_v18  ;;  %1965 = vmatpush3.bf16.msra.mxu0 %v2123_v20 }
  0x4a   : > { %1996 = vmatpush3.bf16.msra.mxu1 %v2123_v20  ;;  %1966 = vmatprep.subr.bf16.mxu0 %v2124_v21 }
  0x4b   : > { %1989 = vmatprep.subr.bf16.mxu1 %v2124_v21  ;;  %1266 = vmatprep.mubr.bf16.mxu0 %v2125_v22 }
  0x4c   : > { %1331 = vmatprep.mubr.bf16.mxu1 %v2127_v23 }
  0x4d   : > { %1967 = vmatpush3.bf16.msra.mxu0 %v2124_v21 }
  0x4e   : > { %1997 = vmatpush3.bf16.msra.mxu1 %v2124_v21  ;;  %1968 = vmatprep.subr.bf16.mxu0 %v2131_v26 }
  0x4f   : > { %1990 = vmatprep.subr.bf16.mxu1 %v2131_v26 }
  0x50   : > { %1267 = vmatmul.mubr.bf16.gmra.mrb[20].mxu0 %v2129_v24 }
  0x51   : > { %1332 = vmatmul.mubr.bf16.gmra.mrb[20].mxu1 %v2130_v25  ;;  %1274 = vmatprep.mubr.bf16.mxu0 %v2133_v27 }
  0x52   : > { %1969 = vmatpush3.bf16.msra.mxu0 %v2131_v26  ;;  %1339 = vmatprep.mubr.bf16.mxu1 %v2135_v28 }
  0x53   : > { %1998 = vmatpush3.bf16.msra.mxu1 %v2131_v26  ;;  %1970 = vmatprep.subr.bf16.mxu0 %v2132_v29 }
  0x54   : > { %1991 = vmatprep.subr.bf16.mxu1 %v2132_v29 }
  0x56   : > { %1971 = vmatpush3.bf16.msra.mxu0 %v2132_v29 }
  0x57   : > { %1999 = vmatpush3.bf16.msra.mxu1 %v2132_v29  ;;  %1972 = vmatprep.subr.bf16.mxu0 %v2139_v32 }
  0x58   : > { %1275 = vmatmul.mubr.bf16.gmra.mrb[24].mxu0 %v2137_v30  ;;  %1992 = vmatprep.subr.bf16.mxu1 %v2139_v32 }
  0x59   : > { %1340 = vmatmul.mubr.bf16.gmra.mrb[24].mxu1 %v2138_v31  ;;  %1282 = vmatprep.mubr.bf16.mxu0 %v2141_v33 }
  0x5a   : > { %1973 = vmatpush3.bf16.msra.mxu0 %v2139_v32  ;;  %1347 = vmatprep.mubr.bf16.mxu1 %v2143_v34 }
  0x5b   : > { %2000 = vmatpush3.bf16.msra.mxu1 %v2139_v32  ;;  %1974 = vmatprep.subr.bf16.mxu0 %v2140_v35 }
  0x5c   : > { %1993 = vmatprep.subr.bf16.mxu1 %v2140_v35 }
  0x5e   : > { %1975 = vmatpush3.bf16.msra.mxu0 %v2140_v35 }
  0x5f   : > { %2001 = vmatpush3.bf16.msra.mxu1 %v2140_v35  ;;  %1976 = vmatprep.subr.bf16.mxu0 %v2147_v37 }
  0x60   : > { %1283 = vmatmul.mubr.bf16.gmra.mrb[28].mxu0 %v2145_v36  ;;  %1994 = vmatprep.subr.bf16.mxu1 %v2147_v37 }
  0x61   : > { %1348 = vmatmul.mubr.bf16.gmra.mrb[28].mxu1 %v2146_v38  ;;  %1980 = vmatprep.mubr.bf16.mxu0 %v2149_v39 }
  0x62   : > { %1977 = vmatpush3.bf16.msra.mxu0 %v2147_v37  ;;  %1984 = vmatprep.mubr.bf16.mxu1 %v2150_v40 }
  0x63   : > { %2002 = vmatpush3.bf16.msra.mxu1 %v2147_v37  ;;  %1978 = vmatprep.subr.bf16.mxu0 %v2148_v41 }
  0x64   : > { %1995 = vmatprep.subr.bf16.mxu1 %v2148_v41 }
  0x66   : > { %1979 = vmatpush3.bf16.msra.mxu0 %v2148_v41 }
  0x67   : > { %2003 = vmatpush3.bf16.msra.mxu1 %v2148_v41 }
  0x69   : > { %1981 = vmatmul.mubr.bf16.vlgmr.msra.gmra.mrb[32].mxu0 %v2151_v42 }
  0x6a   : > { %1985 = vmatmul.mubr.bf16.vlgmr.msra.gmra.mrb[32].mxu1 %v2152_v43 }
  0xfb   : > { %v1808_v44 = vpop.f32.mrb[0].mxu0 }
  0xfc   : > { %v1848_v45 = vpop.f32.mrb[0].mxu1  ;;  %v1809_v47 = vpop.f32.mrb[1].mxu0 }
  0xfd   : > { %v1810_v48 = vadd.f32 %v1809_v47, %v1808_v44  ;;  %v1849_v49 = vpop.f32.mrb[1].mxu1  ;;  %v1811_v50 = vpop.f32.mrb[2].mxu0 }
  0xfe   : > { %v1850_v51 = vadd.f32 %v1849_v49, %v1848_v45  ;;  %v1851_v52 = vpop.f32.mrb[2].mxu1  ;;  %v1812_v53 = vpop.f32.mrb[3].mxu0 }
  0xff   : > { %v1131_v54 = vadd.f32 %v1810_v48, %v1623_v46  ;;  %v1813_v55 = vadd.f32 %v1812_v53, %v1811_v50  ;;  %v1852_v56 = vpop.f32.mrb[3].mxu1 }
 0x100   : > { %v1853_v57 = vadd.f32 %v1852_v56, %v1851_v52 }
 0x101   : > { %v1196_v58 = vadd.f32 %v1850_v51, %v1131_v54  ;;  %v1134_v59 = vadd.f32 %v1813_v55, %v1623_v46 }
 0x103   : > { %v1199_v60 = vadd.f32 %v1853_v57, %v1134_v59  ;;  %v1814_v61 = vpop.f32.mrb[4].mxu0 }
 0x104   : > { %v1854_v62 = vpop.f32.mrb[4].mxu1  ;;  %v1815_v63 = vpop.f32.mrb[5].mxu0 }
 0x105   : > { %v1816_v0 = vadd.f32 %v1815_v63, %v1814_v61  ;;  %v1855_v1 = vpop.f32.mrb[5].mxu1  ;;  %v1817_v2 = vpop.f32.mrb[6].mxu0 }
 0x106   : > { %v1856_v3 = vadd.f32 %v1855_v1, %v1854_v62  ;;  %v1857_v4 = vpop.f32.mrb[6].mxu1  ;;  %v1818_v5 = vpop.f32.mrb[7].mxu0 }
 0x107   : > { %v1139_v6 = vadd.f32 %v1816_v0, %v1623_v46  ;;  %v1819_v7 = vadd.f32 %v1818_v5, %v1817_v2  ;;  %v1858_v8 = vpop.f32.mrb[7].mxu1 }
 0x108   : > { %v1859_v9 = vadd.f32 %v1858_v8, %v1857_v4 }
 0x109   : > { %v1204_v10 = vadd.f32 %v1856_v3, %v1139_v6  ;;  %v1142_v11 = vadd.f32 %v1819_v7, %v1623_v46 }
 0x10b   : > { %v1207_v12 = vadd.f32 %v1859_v9, %v1142_v11  ;;  %v1820_v13 = vpop.f32.mrb[8].mxu0 }
 0x10c   : > { %v1860_v14 = vpop.f32.mrb[8].mxu1  ;;  %v1821_v15 = vpop.f32.mrb[9].mxu0 }
 0x10d   : > { %v1822_v16 = vadd.f32 %v1821_v15, %v1820_v13  ;;  %v1861_v17 = vpop.f32.mrb[9].mxu1  ;;  %v1823_v18 = vpop.f32.mrb[10].mxu0 }
 0x10e   : > { %v1862_v19 = vadd.f32 %v1861_v17, %v1860_v14  ;;  %v1863_v20 = vpop.f32.mrb[10].mxu1  ;;  %v1824_v21 = vpop.f32.mrb[11].mxu0 }
 0x10f   : > { %v1147_v22 = vadd.f32 %v1822_v16, %v1623_v46  ;;  %v1825_v23 = vadd.f32 %v1824_v21, %v1823_v18  ;;  %v1864_v24 = vpop.f32.mrb[11].mxu1 }
 0x110   : > { %v1865_v25 = vadd.f32 %v1864_v24, %v1863_v20 }
 0x111   : > { %v1212_v26 = vadd.f32 %v1862_v19, %v1147_v22  ;;  %v1150_v27 = vadd.f32 %v1825_v23, %v1623_v46 }
 0x113   : > { %v1215_v28 = vadd.f32 %v1865_v25, %v1150_v27  ;;  %v1826_v29 = vpop.f32.mrb[12].mxu0 }
 0x114   : > { %v1866_v30 = vpop.f32.mrb[12].mxu1  ;;  %v1827_v31 = vpop.f32.mrb[13].mxu0 }
 0x115   : > { %v1867_v32 = vpop.f32.mrb[13].mxu1  ;;  %v1828_v33 = vadd.f32 %v1827_v31, %v1826_v29  ;;  %v1829_v35 = vpop.f32.mrb[14].mxu0 }
 0x116   : > { %v1868_v34 = vadd.f32 %v1867_v32, %v1866_v30  ;;  %v1869_v36 = vpop.f32.mrb[14].mxu1  ;;  %v1830_v37 = vpop.f32.mrb[15].mxu0 }
 0x117   : > { %v1870_v38 = vpop.f32.mrb[15].mxu1  ;;  %v1155_v39 = vadd.f32 %v1828_v33, %v1623_v46  ;;  %v1831_v40 = vadd.f32 %v1830_v37, %v1829_v35 }
 0x118   : > { %v1871_v41 = vadd.f32 %v1870_v38, %v1869_v36 }
 0x119   : > { %v1220_v42 = vadd.f32 %v1868_v34, %v1155_v39  ;;  %v1158_v43 = vadd.f32 %v1831_v40, %v1623_v46 }
 0x11b   : > { %v2486_v44 = vadd.f32 %v1871_v41, %v1158_v43  ;;  %v1888_v45 = vpop.f32.mrb[16].mxu0 }
 0x11c   : > { %v1889_v47 = vpop.f32.mrb[17].mxu0  ;;  %v1928_v48 = vpop.f32.mrb[16].mxu1 }
 0x11d   : > { %v1890_v49 = vadd.f32 %v1889_v47, %v1888_v45  ;;  %v1891_v50 = vpop.f32.mrb[18].mxu0  ;;  %v1929_v51 = vpop.f32.mrb[17].mxu1  ;;  %v1786_v45 = vld [vmem:[%s277_s21 + $0x8] sm:$0xff]  }
 0x11e   : > { %v1892_v52 = vpop.f32.mrb[19].mxu0  ;;  %v1930_v54 = vadd.f32 %v1929_v51, %v1928_v48  ;;  %v1931_v55 = vpop.f32.mrb[18].mxu1  ;;  %v1788_v48 = vld [vmem:[%s277_s21 + $0x18] sm:$0xff]  }
 0x11f   : > { %v1261_v53 = vadd.f32 %v1890_v49, %v1196_v58  ;;  %v1893_v56 = vadd.f32 %v1892_v52, %v1891_v50  ;;  %v1932_v57 = vpop.f32.mrb[19].mxu1  ;;  %v1751_v49 = vld [vmem:[%s277_s21] sm:$0xff]   ;;  %v1787_v50 = vld [vmem:[%s277_s21 + $0x10] sm:$0xff]   ;;  %v1756_v52 = vunpack.c.l.bf16 %v1786_v45 }
 0x120   : > { %v1933_v61 = vadd.f32 %v1932_v57, %v1931_v55  ;;  %v1752_v55 = vunpack.c.l.bf16 %v1751_v49 }
 0x121   : > { %v1264_v59 = vadd.f32 %v1893_v56, %v1199_v60  ;;  %v2488_v62 = vadd.f32 %v1930_v54, %v1261_v53  ;;  %v1764_v54 = vunpack.c.l.bf16 %v1788_v48 }
 0x123   : > { %v1894_v63 = vpop.f32.mrb[20].mxu0  ;;  %v2490_v46 = vadd.f32 %v1933_v61, %v1264_v59  ;;  %v1760_v59 = vunpack.c.l.bf16 %v1787_v50  ;;  %v1757_v61 = vunpack.c.h.bf16 %v1786_v45 }
 0x124   : > { %v1895_v0 = vpop.f32.mrb[21].mxu0  ;;  %v1934_v1 = vpop.f32.mrb[20].mxu1 }
 0x125   : > { %v1896_v2 = vadd.f32 %v1895_v0, %v1894_v63  ;;  %v1897_v3 = vpop.f32.mrb[22].mxu0  ;;  %v1935_v4 = vpop.f32.mrb[21].mxu1 }
 0x126   : > { %v1898_v5 = vpop.f32.mrb[23].mxu0  ;;  %v1936_v7 = vadd.f32 %v1935_v4, %v1934_v1  ;;  %v1937_v58 = vpop.f32.mrb[22].mxu1 }
 0x127   : > { %v1269_v6 = vadd.f32 %v1896_v2, %v1204_v10  ;;  %v1899_v8 = vadd.f32 %v1898_v5, %v1897_v3  ;;  %v1938_v9 = vpop.f32.mrb[23].mxu1  ;;  %v1765_v2 = vunpack.c.h.bf16 %v1788_v48  ;;  %v1753_v3 = vunpack.c.h.bf16 %v1751_v49 }
 0x128   : > { %v1939_v13 = vadd.f32 %v1938_v9, %v1937_v58 }
 0x129   : > { %v1272_v11 = vadd.f32 %v1899_v8, %v1207_v12  ;;  %v1334_v60 = vadd.f32 %v1936_v7, %v1269_v6  ;;  %v1761_v8 = vunpack.c.h.bf16 %v1787_v50 }
 0x12b   : > { %v1900_v14 = vpop.f32.mrb[24].mxu0  ;;  %v1337_v15 = vadd.f32 %v1939_v13, %v1272_v11 }
 0x12c   : > { %v1901_v16 = vpop.f32.mrb[25].mxu0  ;;  %v1940_v17 = vpop.f32.mrb[24].mxu1 }
 0x12d   : > { %v1902_v18 = vadd.f32 %v1901_v16, %v1900_v14  ;;  %v1903_v19 = vpop.f32.mrb[26].mxu0  ;;  %v1941_v20 = vpop.f32.mrb[25].mxu1 }
 0x12e   : > { %v1904_v21 = vpop.f32.mrb[27].mxu0  ;;  %v1942_v23 = vadd.f32 %v1941_v20, %v1940_v17  ;;  %v1943_v10 = vpop.f32.mrb[26].mxu1 }
 0x12f   : > { %v1277_v22 = vadd.f32 %v1902_v18, %v1212_v26  ;;  %v1905_v24 = vadd.f32 %v1904_v21, %v1903_v19  ;;  %v1944_v25 = vpop.f32.mrb[27].mxu1 }
 0x130   : > { %v1945_v29 = vadd.f32 %v1944_v25, %v1943_v10 }
 0x131   : > { %v1280_v27 = vadd.f32 %v1905_v24, %v1215_v28  ;;  %v1342_v12 = vadd.f32 %v1942_v23, %v1277_v22 }
 0x133   : > { %v1906_v30 = vpop.f32.mrb[28].mxu0  ;;  %v1345_v31 = vadd.f32 %v1945_v29, %v1280_v27 }
 0x134   : > { %v1907_v32 = vpop.f32.mrb[29].mxu0  ;;  %v1946_v33 = vpop.f32.mrb[28].mxu1 }
 0x135   : > { %v1908_v34 = vadd.f32 %v1907_v32, %v1906_v30  ;;  %v1909_v35 = vpop.f32.mrb[30].mxu0  ;;  %v1947_v36 = vpop.f32.mrb[29].mxu1 }
 0x136   : > { %v1910_v37 = vpop.f32.mrb[31].mxu0  ;;  %v1948_v38 = vadd.f32 %v1947_v36, %v1946_v33  ;;  %v1949_v39 = vpop.f32.mrb[30].mxu1 }
 0x137   : > { %v1285_v26 = vadd.f32 %v1908_v34, %v1220_v42  ;;  %v1911_v28 = vadd.f32 %v1910_v37, %v1909_v35  ;;  %v1950_v40 = vpop.f32.mrb[31].mxu1 }
 0x138   : > { %v1951_v43 = vadd.f32 %v1950_v40, %v1949_v39 }
 0x139   : > { %v1288_v41 = vadd.f32 %v1911_v28, %v2486_v44  ;;  %v1350_v47 = vadd.f32 %v1948_v38, %v1285_v26 }
 0x13b   : > { %v1353_v51 = vadd.f32 %v1951_v43, %v1288_v41 }
 0x13c   : > { %v1982_v53 = vpop.f32.mrb[32].mxu0 }
 0x13d   : > { %v1399_v56 = vadd.f32 %v1982_v53, %v1334_v60  ;;  %v1986_v57 = vpop.f32.mrb[32].mxu1  ;;  %v1390_v42 = vpop.f32.mrb[33].mxu0 }
 0x13e   : > { %v1415_v63 = vadd.f32 %v1986_v57, %v1350_v47  ;;  %v1391_v0 = vadd.f32 %v1390_v42, %v2488_v62  ;;  %v1406_v44 = vpop.f32.mrb[33].mxu1  ;;  %v1983_v1 = vpop.f32.mrb[34].mxu0 }
 0x13f   : > { %v1439_v4 = vadd.f32 %v1756_v52, %v1399_v56  ;;  %v1407_v5 = vadd.f32 %v1406_v44, %v1342_v12  ;;  %v1402_v6 = vadd.f32 %v1983_v1, %v1337_v15  ;;  %v1987_v7 = vpop.f32.mrb[34].mxu1  ;;  %v1393_v58 = vpop.f32.mrb[35].mxu0 }
 0x140   : > { %v1443_v9 = vadd.f32 %v1764_v54, %v1415_v63  ;;  %v1437_v11 = vadd.f32 %v1752_v55, %v1391_v0  ;;  %v1418_v13 = vadd.f32 %v1987_v7, %v1353_v51  ;;  %v1394_v60 = vadd.f32 %v1393_v58, %v2490_v46  ;;  %v1409_v14 = vpop.f32.mrb[35].mxu1 }
 0x141   : > { %v1441_v16 = vadd.f32 %v1760_v59, %v1407_v5  ;;  %v1440_v17 = vadd.f32 %v1757_v61, %v1402_v6  ;;  %v1410_v62 = vadd.f32 %v1409_v14, %v1345_v31  ;;  %v1447_v20 = vmax.f32 %v1439_v4, 0.0 }
 0x142   : > { %v1444_v18 = vadd.f32 %v1765_v2, %v1418_v13  ;;  %v1438_v19 = vadd.f32 %v1753_v3, %v1394_v60  ;;  %v1451_v23 = vmax.f32 %v1443_v9, 0.0  ;;  %v1445_v15 = vmax.f32 %v1437_v11, 0.0 }
 0x143   : > { %v1448_v21 = vmax.f32 %v1440_v17, 0.0  ;;  %v1442_v22 = vadd.f32 %v1761_v8, %v1410_v62  ;;  %v1449_v25 = vmax.f32 %v1441_v16, 0.0 }
 0x144   : > { %v1452_v10 = vmax.f32 %v1444_v18, 0.0  ;;  %v1446_v24 = vmax.f32 %v1438_v19, 0.0 }
 0x145   : > { %v1774_v46 = vpack.c.bf16 %v1448_v21, %v1447_v20  ;;  %v1450_v27 = vmax.f32 %v1442_v22, 0.0 }
 0x146   : > { %v1784_v29 = vpack.c.bf16 %v1452_v10, %v1451_v23  ;;  %v1769_v12 = vpack.c.bf16 %v1446_v24, %v1445_v15 }
 0x147   : > { %1789 = vst [vmem:[%s286_s24 + $0x8] sm:$0xff] %v1774_v46   ;;  %v1779_v30 = vpack.c.bf16 %v1450_v27, %v1449_v25 }
 0x148   : > { %1791 = vst [vmem:[%s286_s24 + $0x18] sm:$0xff] %v1784_v29   ;;  %1770 = vst [vmem:[%s286_s24] sm:$0xff] %v1769_v12  }
 0x149   : > { %1790 = vst [vmem:[%s286_s24 + $0x10] sm:$0xff] %v1779_v30  }
 0x14a PF: > { %s14_s17 = sadd.s32 1, %s2175_s17   ;;  %s2520_s15 = smov %s2171_s16 }
 0x14b   : > { %p11_p5 = scmp.ge.s32.totalorder %s14_s17, 4   ;;  %s2521_s16 = smov %s2523_s18 }
 0x14d   :  { %13 = sbr.rel (!%p11_p5) target bundleno = 2 (0x2), region = 75 }

// kernel: model_wrapper_forward.21
= control target key start
LH: loop header
LB: loop body
LE: loop exit
PB: predicated region body
PF: predicated region fallthrough
CT: control target
= control target key end

     0   :  { %s2415_s12 = smov 0   ;;  %s2417_s13 = smov 0   ;;  %s2916_s0 = inlined_call_operand.vmem [shape: bf16[32,1152], index: 0, kind: input, shape index: {}]   ;;  %s2917_s1 = inlined_call_operand.vmem [shape: bf16[1152,256], index: 1, kind: input, shape index: {}]   ;;  %s2918_s2 = inlined_call_operand.vmem [shape: f32[1,256], index: 2, kind: input, shape index: {}]   ;;  %s2919_s3 = inlined_call_operand.vmem [shape: bf16[32,256], index: 3, kind: output, shape index: {}]  }
   0x1   :  { %s2419_s14 = smov 0   ;;  %s2421_s15 = smov 0  }
   0x2   :  { %s2423_s16 = smov 0  }
   0x3 LB: > { %s22_s17 = sadd.s32 1, %s2389_s15  ;;  %s1951_s18 = sadd.s32 4294967295, %s2393_s16   ;;  %s2393_s16 = sphi %s2423_s16, %s13_s16   ;;  %s2389_s15 = sphi %s2421_s15, %s2924_s15   ;;  %s2385_s14 = sphi %s2419_s14, %s2923_s14   ;;  %s2381_s13 = sphi %s2417_s13, %s2922_s13   ;;  %s2377_s12 = sphi %s2415_s12, %s2921_s12  }
   0x4   : > { %p23_p0 = scmp.ge.s32.totalorder %s22_s17, 2  ;;  %p65_p1 = scmp.ne.s32.totalorder %s2381_s13, %s2377_s12 }
   0x5   : > { %p66_p2 = scmp.eq.s32.totalorder %s2393_s16, 0  ;;  %p123_p4 = scmp.eq.s32.totalorder %s1951_s18, 1 }
   0x6   : > { %s2926_s17 = smov (%p23_p0, %s22_s17), 0  ;;  %s58_s20 = sadd.s32 1, %s2381_s13 }
   0x7   : > { %p67_p3 = por %p66_p2, %p65_p1  ;;  %s55_s19 = ssub.s32 %s2389_s15, %s2926_s17 }
   0x8   : > { %p56_p5 = scmp.eq.s32.totalorder %s55_s19, 0  ;;  %p2450_p6 = por %p123_p4, %p65_p1 }
   0x9   : > { %p1955_p7 = scmp.ge.s32.totalorder %s2393_s16, 2 }
   0xa   : > { %s2455_s22 = scalar_select %p56_p5, %s2381_s13, %s58_s20  }
   0xb   : > { %155 = sbr.rel (%p1955_p7) target bundleno = 118 (0x76), region = 20 }
  0x12   : > { %158 = sbr.rel (!%p67_p3) target bundleno = 118 (0x76), region = 24  ;;  %s160_s23 = sand.u32 (%p67_p3), 1, %s2381_s13  }
  0x13   : > { %s1956_s24 = sshll.u32 (%p67_p3), %s2389_s15, 2  ;;  %s2215_s25 = smul.u32 (%p67_p3), 576, %s160_s23 }
  0x14   : > { %s2463_s28 = scalar_lea.vmem (%p67_p3), %s2917_s1, %s1956_s24 }
  0x15   : > { %v180_v0 = vld [vmem:[%s2463_s28] sm:$0xf] (%p67_p3)  ;;  %v182_v1 = vld [vmem:[%s2463_s28 + $0x8] sm:$0xf] (%p67_p3)  ;;  %v184_v2 = vld [vmem:[%s2463_s28 + $0x10] sm:$0xf] (%p67_p3) }
  0x16   : > { %v186_v3 = vld [vmem:[%s2463_s28 + $0x18] sm:$0xf] (%p67_p3)  ;;  %v188_v4 = vld [vmem:[%s2463_s28 + $0x20] sm:$0xf] (%p67_p3)  ;;  %s2470_s29 = scalar_lea.vmem (%p67_p3), [#allocation2], %s2215_s25 }
  0x17   : > { %181 = vst [vmem:[%s2470_s29] sm:$0xf] (%p67_p3), %v180_v0  ;;  %183 = vst [vmem:[%s2470_s29 + $0x4] sm:$0xf] (%p67_p3), %v182_v1  ;;  %v190_v5 = vld [vmem:[%s2463_s28 + $0x28] sm:$0xf] (%p67_p3) }
  0x18   : > { %185 = vst [vmem:[%s2470_s29 + $0x8] sm:$0xf] (%p67_p3), %v184_v2  ;;  %187 = vst [vmem:[%s2470_s29 + $0xc] sm:$0xf] (%p67_p3), %v186_v3  ;;  %v192_v6 = vld [vmem:[%s2463_s28 + $0x30] sm:$0xf] (%p67_p3) }
  0x19   : > { %189 = vst [vmem:[%s2470_s29 + $0x10] sm:$0xf] %v188_v4  ;;  %v194_v7 = vld [vmem:[%s2463_s28 + $0x38] sm:$0xf]  ;;  %191 = vst [vmem:[%s2470_s29 + $0x14] sm:$0xf] %v190_v5 }
  0x1a   : > { %193 = vst [vmem:[%s2470_s29 + $0x18] sm:$0xf] %v192_v6  ;;  %195 = vst [vmem:[%s2470_s29 + $0x1c] sm:$0xf] %v194_v7  ;;  %v196_v8 = vld [vmem:[%s2463_s28 + $0x40] sm:$0xf] }
  0x1b   : > { %v198_v9 = vld [vmem:[%s2463_s28 + $0x48] sm:$0xf]  ;;  %v200_v10 = vld [vmem:[%s2463_s28 + $0x50] sm:$0xf]  ;;  %197 = vst [vmem:[%s2470_s29 + $0x20] sm:$0xf] %v196_v8 }
  0x1c   : > { %199 = vst [vmem:[%s2470_s29 + $0x24] sm:$0xf] %v198_v9  ;;  %201 = vst [vmem:[%s2470_s29 + $0x28] sm:$0xf] %v200_v10  ;;  %v202_v11 = vld [vmem:[%s2463_s28 + $0x58] sm:$0xf] }
  0x1d   : > { %v204_v12 = vld [vmem:[%s2463_s28 + $0x60] sm:$0xf]  ;;  %v206_v13 = vld [vmem:[%s2463_s28 + $0x68] sm:$0xf]  ;;  %203 = vst [vmem:[%s2470_s29 + $0x2c] sm:$0xf] %v202_v11 }
  0x1e   : > { %205 = vst [vmem:[%s2470_s29 + $0x30] sm:$0xf] %v204_v12  ;;  %207 = vst [vmem:[%s2470_s29 + $0x34] sm:$0xf] %v206_v13  ;;  %v208_v14 = vld [vmem:[%s2463_s28 + $0x70] sm:$0xf] }
  0x1f   : > { %v210_v15 = vld [vmem:[%s2463_s28 + $0x78] sm:$0xf]  ;;  %v212_v16 = vld [vmem:[%s2463_s28 + $0x80] sm:$0xf]  ;;  %209 = vst [vmem:[%s2470_s29 + $0x38] sm:$0xf] %v208_v14 }
  0x20   : > { %211 = vst [vmem:[%s2470_s29 + $0x3c] sm:$0xf] %v210_v15  ;;  %213 = vst [vmem:[%s2470_s29 + $0x40] sm:$0xf] %v212_v16  ;;  %v214_v17 = vld [vmem:[%s2463_s28 + $0x88] sm:$0xf] }
  0x21   : > { %v216_v18 = vld [vmem:[%s2463_s28 + $0x90] sm:$0xf]  ;;  %v218_v19 = vld [vmem:[%s2463_s28 + $0x98] sm:$0xf]  ;;  %215 = vst [vmem:[%s2470_s29 + $0x44] sm:$0xf] %v214_v17 }
  0x22   : > { %217 = vst [vmem:[%s2470_s29 + $0x48] sm:$0xf] %v216_v18  ;;  %219 = vst [vmem:[%s2470_s29 + $0x4c] sm:$0xf] %v218_v19  ;;  %v220_v20 = vld [vmem:[%s2463_s28 + $0xa0] sm:$0xf] }
  0x23   : > { %v222_v21 = vld [vmem:[%s2463_s28 + $0xa8] sm:$0xf]  ;;  %v224_v22 = vld [vmem:[%s2463_s28 + $0xb0] sm:$0xf]  ;;  %221 = vst [vmem:[%s2470_s29 + $0x50] sm:$0xf] %v220_v20 }
  0x24   : > { %223 = vst [vmem:[%s2470_s29 + $0x54] sm:$0xf] %v222_v21  ;;  %225 = vst [vmem:[%s2470_s29 + $0x58] sm:$0xf] %v224_v22  ;;  %v226_v23 = vld [vmem:[%s2463_s28 + $0xb8] sm:$0xf] }
  0x25   : > { %v228_v24 = vld [vmem:[%s2463_s28 + $0xc0] sm:$0xf]  ;;  %v230_v25 = vld [vmem:[%s2463_s28 + $0xc8] sm:$0xf]  ;;  %227 = vst [vmem:[%s2470_s29 + $0x5c] sm:$0xf] %v226_v23 }
  0x26   : > { %229 = vst [vmem:[%s2470_s29 + $0x60] sm:$0xf] %v228_v24  ;;  %231 = vst [vmem:[%s2470_s29 + $0x64] sm:$0xf] %v230_v25  ;;  %v232_v26 = vld [vmem:[%s2463_s28 + $0xd0] sm:$0xf] }
  0x27   : > { %v234_v27 = vld [vmem:[%s2463_s28 + $0xd8] sm:$0xf]  ;;  %v236_v28 = vld [vmem:[%s2463_s28 + $0xe0] sm:$0xf]  ;;  %233 = vst [vmem:[%s2470_s29 + $0x68] sm:$0xf] %v232_v26 }
  0x28   : > { %235 = vst [vmem:[%s2470_s29 + $0x6c] sm:$0xf] %v234_v27  ;;  %237 = vst [vmem:[%s2470_s29 + $0x70] sm:$0xf] %v236_v28  ;;  %v238_v29 = vld [vmem:[%s2463_s28 + $0xe8] sm:$0xf] }
  0x29   : > { %v240_v30 = vld [vmem:[%s2463_s28 + $0xf0] sm:$0xf]  ;;  %v242_v31 = vld [vmem:[%s2463_s28 + $0xf8] sm:$0xf]  ;;  %239 = vst [vmem:[%s2470_s29 + $0x74] sm:$0xf] %v238_v29 }
  0x2a   : > { %241 = vst [vmem:[%s2470_s29 + $0x78] sm:$0xf] %v240_v30  ;;  %243 = vst [vmem:[%s2470_s29 + $0x7c] sm:$0xf] %v242_v31  ;;  %v244_v32 = vld [vmem:[%s2463_s28 + $0x100] sm:$0xf] }
  0x2b   : > { %v246_v33 = vld [vmem:[%s2463_s28 + $0x108] sm:$0xf]  ;;  %v248_v34 = vld [vmem:[%s2463_s28 + $0x110] sm:$0xf]  ;;  %245 = vst [vmem:[%s2470_s29 + $0x80] sm:$0xf] %v244_v32 }
  0x2c   : > { %247 = vst [vmem:[%s2470_s29 + $0x84] sm:$0xf] %v246_v33  ;;  %249 = vst [vmem:[%s2470_s29 + $0x88] sm:$0xf] %v248_v34  ;;  %v250_v35 = vld [vmem:[%s2463_s28 + $0x118] sm:$0xf] }
  0x2d   : > { %v252_v36 = vld [vmem:[%s2463_s28 + $0x120] sm:$0xf]  ;;  %v254_v37 = vld [vmem:[%s2463_s28 + $0x128] sm:$0xf]  ;;  %251 = vst [vmem:[%s2470_s29 + $0x8c] sm:$0xf] %v250_v35 }
  0x2e   : > { %253 = vst [vmem:[%s2470_s29 + $0x90] sm:$0xf] %v252_v36  ;;  %255 = vst [vmem:[%s2470_s29 + $0x94] sm:$0xf] %v254_v37  ;;  %v256_v38 = vld [vmem:[%s2463_s28 + $0x130] sm:$0xf] }
  0x2f   : > { %v258_v39 = vld [vmem:[%s2463_s28 + $0x138] sm:$0xf]  ;;  %v260_v40 = vld [vmem:[%s2463_s28 + $0x140] sm:$0xf]  ;;  %257 = vst [vmem:[%s2470_s29 + $0x98] sm:$0xf] %v256_v38 }
  0x30   : > { %259 = vst [vmem:[%s2470_s29 + $0x9c] sm:$0xf] %v258_v39  ;;  %261 = vst [vmem:[%s2470_s29 + $0xa0] sm:$0xf] %v260_v40  ;;  %v262_v41 = vld [vmem:[%s2463_s28 + $0x148] sm:$0xf] }
  0x31   : > { %v264_v42 = vld [vmem:[%s2463_s28 + $0x150] sm:$0xf]  ;;  %v266_v43 = vld [vmem:[%s2463_s28 + $0x158] sm:$0xf]  ;;  %263 = vst [vmem:[%s2470_s29 + $0xa4] sm:$0xf] %v262_v41 }
  0x32   : > { %265 = vst [vmem:[%s2470_s29 + $0xa8] sm:$0xf] %v264_v42  ;;  %267 = vst [vmem:[%s2470_s29 + $0xac] sm:$0xf] %v266_v43  ;;  %v268_v44 = vld [vmem:[%s2463_s28 + $0x160] sm:$0xf] }
  0x33   : > { %v270_v45 = vld [vmem:[%s2463_s28 + $0x168] sm:$0xf]  ;;  %v272_v46 = vld [vmem:[%s2463_s28 + $0x170] sm:$0xf]  ;;  %269 = vst [vmem:[%s2470_s29 + $0xb0] sm:$0xf] %v268_v44 }
  0x34   : > { %271 = vst [vmem:[%s2470_s29 + $0xb4] sm:$0xf] %v270_v45  ;;  %273 = vst [vmem:[%s2470_s29 + $0xb8] sm:$0xf] %v272_v46  ;;  %v274_v47 = vld [vmem:[%s2463_s28 + $0x178] sm:$0xf] }
  0x35   : > { %v276_v48 = vld [vmem:[%s2463_s28 + $0x180] sm:$0xf]  ;;  %v278_v49 = vld [vmem:[%s2463_s28 + $0x188] sm:$0xf]  ;;  %275 = vst [vmem:[%s2470_s29 + $0xbc] sm:$0xf] %v274_v47 }
  0x36   : > { %277 = vst [vmem:[%s2470_s29 + $0xc0] sm:$0xf] %v276_v48  ;;  %279 = vst [vmem:[%s2470_s29 + $0xc4] sm:$0xf] %v278_v49  ;;  %v280_v50 = vld [vmem:[%s2463_s28 + $0x190] sm:$0xf] }
  0x37   : > { %v282_v51 = vld [vmem:[%s2463_s28 + $0x198] sm:$0xf]  ;;  %v284_v52 = vld [vmem:[%s2463_s28 + $0x1a0] sm:$0xf]  ;;  %281 = vst [vmem:[%s2470_s29 + $0xc8] sm:$0xf] %v280_v50 }
  0x38   : > { %283 = vst [vmem:[%s2470_s29 + $0xcc] sm:$0xf] %v282_v51  ;;  %285 = vst [vmem:[%s2470_s29 + $0xd0] sm:$0xf] %v284_v52  ;;  %v286_v53 = vld [vmem:[%s2463_s28 + $0x1a8] sm:$0xf] }
  0x39   : > { %v288_v54 = vld [vmem:[%s2463_s28 + $0x1b0] sm:$0xf]  ;;  %v290_v55 = vld [vmem:[%s2463_s28 + $0x1b8] sm:$0xf]  ;;  %287 = vst [vmem:[%s2470_s29 + $0xd4] sm:$0xf] %v286_v53 }
  0x3a   : > { %289 = vst [vmem:[%s2470_s29 + $0xd8] sm:$0xf] %v288_v54  ;;  %291 = vst [vmem:[%s2470_s29 + $0xdc] sm:$0xf] %v290_v55  ;;  %v292_v56 = vld [vmem:[%s2463_s28 + $0x1c0] sm:$0xf] }
  0x3b   : > { %v294_v57 = vld [vmem:[%s2463_s28 + $0x1c8] sm:$0xf]  ;;  %v296_v58 = vld [vmem:[%s2463_s28 + $0x1d0] sm:$0xf]  ;;  %293 = vst [vmem:[%s2470_s29 + $0xe0] sm:$0xf] %v292_v56 }
  0x3c   : > { %295 = vst [vmem:[%s2470_s29 + $0xe4] sm:$0xf] %v294_v57  ;;  %297 = vst [vmem:[%s2470_s29 + $0xe8] sm:$0xf] %v296_v58  ;;  %v298_v59 = vld [vmem:[%s2463_s28 + $0x1d8] sm:$0xf] }
  0x3d   : > { %v300_v60 = vld [vmem:[%s2463_s28 + $0x1e0] sm:$0xf]  ;;  %v302_v61 = vld [vmem:[%s2463_s28 + $0x1e8] sm:$0xf]  ;;  %299 = vst [vmem:[%s2470_s29 + $0xec] sm:$0xf] %v298_v59 }
  0x3e   : > { %301 = vst [vmem:[%s2470_s29 + $0xf0] sm:$0xf] %v300_v60  ;;  %303 = vst [vmem:[%s2470_s29 + $0xf4] sm:$0xf] %v302_v61  ;;  %v304_v62 = vld [vmem:[%s2463_s28 + $0x1f0] sm:$0xf] }
  0x3f   : > { %v306_v63 = vld [vmem:[%s2463_s28 + $0x1f8] sm:$0xf]  ;;  %v308_v0 = vld [vmem:[%s2463_s28 + $0x200] sm:$0xf]  ;;  %305 = vst [vmem:[%s2470_s29 + $0xf8] sm:$0xf] %v304_v62 }
  0x40   : > { %307 = vst [vmem:[%s2470_s29 + $0xfc] sm:$0xf] %v306_v63  ;;  %309 = vst [vmem:[%s2470_s29 + $0x100] sm:$0xf] %v308_v0  ;;  %v310_v1 = vld [vmem:[%s2463_s28 + $0x208] sm:$0xf] }
  0x41   : > { %v312_v2 = vld [vmem:[%s2463_s28 + $0x210] sm:$0xf]  ;;  %v314_v3 = vld [vmem:[%s2463_s28 + $0x218] sm:$0xf]  ;;  %311 = vst [vmem:[%s2470_s29 + $0x104] sm:$0xf] %v310_v1 }
  0x42   : > { %313 = vst [vmem:[%s2470_s29 + $0x108] sm:$0xf] %v312_v2  ;;  %315 = vst [vmem:[%s2470_s29 + $0x10c] sm:$0xf] %v314_v3  ;;  %v316_v4 = vld [vmem:[%s2463_s28 + $0x220] sm:$0xf] }
  0x43   : > { %v318_v5 = vld [vmem:[%s2463_s28 + $0x228] sm:$0xf]  ;;  %v320_v6 = vld [vmem:[%s2463_s28 + $0x230] sm:$0xf]  ;;  %317 = vst [vmem:[%s2470_s29 + $0x110] sm:$0xf] %v316_v4 }
  0x44   : > { %319 = vst [vmem:[%s2470_s29 + $0x114] sm:$0xf] %v318_v5  ;;  %321 = vst [vmem:[%s2470_s29 + $0x118] sm:$0xf] %v320_v6  ;;  %v322_v7 = vld [vmem:[%s2463_s28 + $0x238] sm:$0xf] }
  0x45   : > { %v324_v8 = vld [vmem:[%s2463_s28 + $0x240] sm:$0xf]  ;;  %v326_v9 = vld [vmem:[%s2463_s28 + $0x248] sm:$0xf]  ;;  %323 = vst [vmem:[%s2470_s29 + $0x11c] sm:$0xf] %v322_v7 }
  0x46   : > { %325 = vst [vmem:[%s2470_s29 + $0x120] sm:$0xf] %v324_v8  ;;  %327 = vst [vmem:[%s2470_s29 + $0x124] sm:$0xf] %v326_v9  ;;  %v328_v10 = vld [vmem:[%s2463_s28 + $0x250] sm:$0xf] }
  0x47   : > { %v330_v11 = vld [vmem:[%s2463_s28 + $0x258] sm:$0xf]  ;;  %v332_v12 = vld [vmem:[%s2463_s28 + $0x260] sm:$0xf]  ;;  %329 = vst [vmem:[%s2470_s29 + $0x128] sm:$0xf] %v328_v10 }
  0x48   : > { %331 = vst [vmem:[%s2470_s29 + $0x12c] sm:$0xf] %v330_v11  ;;  %333 = vst [vmem:[%s2470_s29 + $0x130] sm:$0xf] %v332_v12  ;;  %v334_v13 = vld [vmem:[%s2463_s28 + $0x268] sm:$0xf] }
  0x49   : > { %v336_v14 = vld [vmem:[%s2463_s28 + $0x270] sm:$0xf]  ;;  %v338_v15 = vld [vmem:[%s2463_s28 + $0x278] sm:$0xf]  ;;  %335 = vst [vmem:[%s2470_s29 + $0x134] sm:$0xf] %v334_v13 }
  0x4a   : > { %337 = vst [vmem:[%s2470_s29 + $0x138] sm:$0xf] %v336_v14  ;;  %339 = vst [vmem:[%s2470_s29 + $0x13c] sm:$0xf] %v338_v15  ;;  %v340_v16 = vld [vmem:[%s2463_s28 + $0x280] sm:$0xf] }
  0x4b   : > { %v342_v17 = vld [vmem:[%s2463_s28 + $0x288] sm:$0xf]  ;;  %v344_v18 = vld [vmem:[%s2463_s28 + $0x290] sm:$0xf]  ;;  %341 = vst [vmem:[%s2470_s29 + $0x140] sm:$0xf] %v340_v16 }
  0x4c   : > { %343 = vst [vmem:[%s2470_s29 + $0x144] sm:$0xf] %v342_v17  ;;  %345 = vst [vmem:[%s2470_s29 + $0x148] sm:$0xf] %v344_v18  ;;  %v346_v19 = vld [vmem:[%s2463_s28 + $0x298] sm:$0xf] }
  0x4d   : > { %v348_v20 = vld [vmem:[%s2463_s28 + $0x2a0] sm:$0xf]  ;;  %v350_v21 = vld [vmem:[%s2463_s28 + $0x2a8] sm:$0xf]  ;;  %347 = vst [vmem:[%s2470_s29 + $0x14c] sm:$0xf] %v346_v19 }
  0x4e   : > { %349 = vst [vmem:[%s2470_s29 + $0x150] sm:$0xf] %v348_v20  ;;  %351 = vst [vmem:[%s2470_s29 + $0x154] sm:$0xf] %v350_v21  ;;  %v352_v22 = vld [vmem:[%s2463_s28 + $0x2b0] sm:$0xf] }
  0x4f   : > { %v354_v23 = vld [vmem:[%s2463_s28 + $0x2b8] sm:$0xf]  ;;  %v356_v24 = vld [vmem:[%s2463_s28 + $0x2c0] sm:$0xf]  ;;  %353 = vst [vmem:[%s2470_s29 + $0x158] sm:$0xf] %v352_v22 }
  0x50   : > { %355 = vst [vmem:[%s2470_s29 + $0x15c] sm:$0xf] %v354_v23  ;;  %357 = vst [vmem:[%s2470_s29 + $0x160] sm:$0xf] %v356_v24  ;;  %v358_v25 = vld [vmem:[%s2463_s28 + $0x2c8] sm:$0xf] }
  0x51   : > { %v360_v26 = vld [vmem:[%s2463_s28 + $0x2d0] sm:$0xf]  ;;  %v362_v27 = vld [vmem:[%s2463_s28 + $0x2d8] sm:$0xf]  ;;  %359 = vst [vmem:[%s2470_s29 + $0x164] sm:$0xf] %v358_v25 }
  0x52   : > { %361 = vst [vmem:[%s2470_s29 + $0x168] sm:$0xf] %v360_v26  ;;  %363 = vst [vmem:[%s2470_s29 + $0x16c] sm:$0xf] %v362_v27  ;;  %v364_v28 = vld [vmem:[%s2463_s28 + $0x2e0] sm:$0xf] }
  0x53   : > { %v366_v29 = vld [vmem:[%s2463_s28 + $0x2e8] sm:$0xf]  ;;  %v368_v30 = vld [vmem:[%s2463_s28 + $0x2f0] sm:$0xf]  ;;  %365 = vst [vmem:[%s2470_s29 + $0x170] sm:$0xf] %v364_v28 }
  0x54   : > { %367 = vst [vmem:[%s2470_s29 + $0x174] sm:$0xf] %v366_v29  ;;  %369 = vst [vmem:[%s2470_s29 + $0x178] sm:$0xf] %v368_v30  ;;  %v370_v31 = vld [vmem:[%s2463_s28 + $0x2f8] sm:$0xf] }
  0x55   : > { %v372_v32 = vld [vmem:[%s2463_s28 + $0x300] sm:$0xf]  ;;  %v374_v33 = vld [vmem:[%s2463_s28 + $0x308] sm:$0xf]  ;;  %371 = vst [vmem:[%s2470_s29 + $0x17c] sm:$0xf] %v370_v31 }
  0x56   : > { %373 = vst [vmem:[%s2470_s29 + $0x180] sm:$0xf] %v372_v32  ;;  %375 = vst [vmem:[%s2470_s29 + $0x184] sm:$0xf] %v374_v33  ;;  %v376_v34 = vld [vmem:[%s2463_s28 + $0x310] sm:$0xf] }
  0x57   : > { %v378_v35 = vld [vmem:[%s2463_s28 + $0x318] sm:$0xf]  ;;  %v380_v36 = vld [vmem:[%s2463_s28 + $0x320] sm:$0xf]  ;;  %377 = vst [vmem:[%s2470_s29 + $0x188] sm:$0xf] %v376_v34 }
  0x58   : > { %379 = vst [vmem:[%s2470_s29 + $0x18c] sm:$0xf] %v378_v35  ;;  %381 = vst [vmem:[%s2470_s29 + $0x190] sm:$0xf] %v380_v36  ;;  %v382_v37 = vld [vmem:[%s2463_s28 + $0x328] sm:$0xf] }
  0x59   : > { %v384_v38 = vld [vmem:[%s2463_s28 + $0x330] sm:$0xf]  ;;  %v386_v39 = vld [vmem:[%s2463_s28 + $0x338] sm:$0xf]  ;;  %383 = vst [vmem:[%s2470_s29 + $0x194] sm:$0xf] %v382_v37 }
  0x5a   : > { %385 = vst [vmem:[%s2470_s29 + $0x198] sm:$0xf] %v384_v38  ;;  %387 = vst [vmem:[%s2470_s29 + $0x19c] sm:$0xf] %v386_v39  ;;  %v388_v40 = vld [vmem:[%s2463_s28 + $0x340] sm:$0xf] }
  0x5b   : > { %v390_v41 = vld [vmem:[%s2463_s28 + $0x348] sm:$0xf]  ;;  %v392_v42 = vld [vmem:[%s2463_s28 + $0x350] sm:$0xf]  ;;  %389 = vst [vmem:[%s2470_s29 + $0x1a0] sm:$0xf] %v388_v40 }
  0x5c   : > { %391 = vst [vmem:[%s2470_s29 + $0x1a4] sm:$0xf] %v390_v41  ;;  %393 = vst [vmem:[%s2470_s29 + $0x1a8] sm:$0xf] %v392_v42  ;;  %v394_v43 = vld [vmem:[%s2463_s28 + $0x358] sm:$0xf] }
  0x5d   : > { %v396_v44 = vld [vmem:[%s2463_s28 + $0x360] sm:$0xf]  ;;  %v398_v45 = vld [vmem:[%s2463_s28 + $0x368] sm:$0xf]  ;;  %395 = vst [vmem:[%s2470_s29 + $0x1ac] sm:$0xf] %v394_v43 }
  0x5e   : > { %397 = vst [vmem:[%s2470_s29 + $0x1b0] sm:$0xf] %v396_v44  ;;  %399 = vst [vmem:[%s2470_s29 + $0x1b4] sm:$0xf] %v398_v45  ;;  %v400_v46 = vld [vmem:[%s2463_s28 + $0x370] sm:$0xf] }
  0x5f   : > { %v402_v47 = vld [vmem:[%s2463_s28 + $0x378] sm:$0xf]  ;;  %v404_v48 = vld [vmem:[%s2463_s28 + $0x380] sm:$0xf]  ;;  %401 = vst [vmem:[%s2470_s29 + $0x1b8] sm:$0xf] %v400_v46 }
  0x60   : > { %403 = vst [vmem:[%s2470_s29 + $0x1bc] sm:$0xf] %v402_v47  ;;  %405 = vst [vmem:[%s2470_s29 + $0x1c0] sm:$0xf] %v404_v48  ;;  %v406_v49 = vld [vmem:[%s2463_s28 + $0x388] sm:$0xf] }
  0x61   : > { %v408_v50 = vld [vmem:[%s2463_s28 + $0x390] sm:$0xf]  ;;  %v410_v51 = vld [vmem:[%s2463_s28 + $0x398] sm:$0xf]  ;;  %407 = vst [vmem:[%s2470_s29 + $0x1c4] sm:$0xf] %v406_v49 }
  0x62   : > { %409 = vst [vmem:[%s2470_s29 + $0x1c8] sm:$0xf] %v408_v50  ;;  %411 = vst [vmem:[%s2470_s29 + $0x1cc] sm:$0xf] %v410_v51  ;;  %v412_v52 = vld [vmem:[%s2463_s28 + $0x3a0] sm:$0xf] }
  0x63   : > { %v414_v53 = vld [vmem:[%s2463_s28 + $0x3a8] sm:$0xf]  ;;  %v416_v54 = vld [vmem:[%s2463_s28 + $0x3b0] sm:$0xf]  ;;  %413 = vst [vmem:[%s2470_s29 + $0x1d0] sm:$0xf] %v412_v52 }
  0x64   : > { %415 = vst [vmem:[%s2470_s29 + $0x1d4] sm:$0xf] %v414_v53  ;;  %417 = vst [vmem:[%s2470_s29 + $0x1d8] sm:$0xf] %v416_v54  ;;  %v418_v55 = vld [vmem:[%s2463_s28 + $0x3b8] sm:$0xf] }
  0x65   : > { %v420_v56 = vld [vmem:[%s2463_s28 + $0x3c0] sm:$0xf]  ;;  %v422_v57 = vld [vmem:[%s2463_s28 + $0x3c8] sm:$0xf]  ;;  %419 = vst [vmem:[%s2470_s29 + $0x1dc] sm:$0xf] %v418_v55 }
  0x66   : > { %421 = vst [vmem:[%s2470_s29 + $0x1e0] sm:$0xf] %v420_v56  ;;  %423 = vst [vmem:[%s2470_s29 + $0x1e4] sm:$0xf] %v422_v57  ;;  %v424_v58 = vld [vmem:[%s2463_s28 + $0x3d0] sm:$0xf] }
  0x67   : > { %v426_v59 = vld [vmem:[%s2463_s28 + $0x3d8] sm:$0xf]  ;;  %v428_v60 = vld [vmem:[%s2463_s28 + $0x3e0] sm:$0xf]  ;;  %425 = vst [vmem:[%s2470_s29 + $0x1e8] sm:$0xf] %v424_v58 }
  0x68   : > { %427 = vst [vmem:[%s2470_s29 + $0x1ec] sm:$0xf] %v426_v59  ;;  %429 = vst [vmem:[%s2470_s29 + $0x1f0] sm:$0xf] %v428_v60  ;;  %v430_v61 = vld [vmem:[%s2463_s28 + $0x3e8] sm:$0xf] }
  0x69   : > { %v432_v62 = vld [vmem:[%s2463_s28 + $0x3f0] sm:$0xf]  ;;  %v434_v63 = vld [vmem:[%s2463_s28 + $0x3f8] sm:$0xf]  ;;  %431 = vst [vmem:[%s2470_s29 + $0x1f4] sm:$0xf] %v430_v61 }
  0x6a   : > { %433 = vst [vmem:[%s2470_s29 + $0x1f8] sm:$0xf] %v432_v62  ;;  %435 = vst [vmem:[%s2470_s29 + $0x1fc] sm:$0xf] %v434_v63  ;;  %v436_v0 = vld [vmem:[%s2463_s28 + $0x400] sm:$0xf] }
  0x6b   : > { %v438_v1 = vld [vmem:[%s2463_s28 + $0x408] sm:$0xf]  ;;  %v440_v2 = vld [vmem:[%s2463_s28 + $0x410] sm:$0xf]  ;;  %437 = vst [vmem:[%s2470_s29 + $0x200] sm:$0xf] %v436_v0 }
  0x6c   : > { %439 = vst [vmem:[%s2470_s29 + $0x204] sm:$0xf] %v438_v1  ;;  %441 = vst [vmem:[%s2470_s29 + $0x208] sm:$0xf] %v440_v2  ;;  %v442_v3 = vld [vmem:[%s2463_s28 + $0x418] sm:$0xf] }
  0x6d   : > { %v444_v4 = vld [vmem:[%s2463_s28 + $0x420] sm:$0xf]  ;;  %v446_v5 = vld [vmem:[%s2463_s28 + $0x428] sm:$0xf]  ;;  %443 = vst [vmem:[%s2470_s29 + $0x20c] sm:$0xf] %v442_v3 }
  0x6e   : > { %445 = vst [vmem:[%s2470_s29 + $0x210] sm:$0xf] %v444_v4  ;;  %447 = vst [vmem:[%s2470_s29 + $0x214] sm:$0xf] %v446_v5  ;;  %v448_v6 = vld [vmem:[%s2463_s28 + $0x430] sm:$0xf] }
  0x6f   : > { %v450_v7 = vld [vmem:[%s2463_s28 + $0x438] sm:$0xf]  ;;  %v452_v8 = vld [vmem:[%s2463_s28 + $0x440] sm:$0xf]  ;;  %449 = vst [vmem:[%s2470_s29 + $0x218] sm:$0xf] %v448_v6 }
  0x70   : > { %451 = vst [vmem:[%s2470_s29 + $0x21c] sm:$0xf] %v450_v7  ;;  %453 = vst [vmem:[%s2470_s29 + $0x220] sm:$0xf] %v452_v8  ;;  %v454_v9 = vld [vmem:[%s2463_s28 + $0x448] sm:$0xf] }
  0x71   : > { %v456_v10 = vld [vmem:[%s2463_s28 + $0x450] sm:$0xf]  ;;  %v458_v11 = vld [vmem:[%s2463_s28 + $0x458] sm:$0xf]  ;;  %455 = vst [vmem:[%s2470_s29 + $0x224] sm:$0xf] %v454_v9 }
  0x72   : > { %457 = vst [vmem:[%s2470_s29 + $0x228] sm:$0xf] %v456_v10  ;;  %459 = vst [vmem:[%s2470_s29 + $0x22c] sm:$0xf] %v458_v11  ;;  %v460_v12 = vld [vmem:[%s2463_s28 + $0x460] sm:$0xf] }
  0x73   : > { %v462_v13 = vld [vmem:[%s2463_s28 + $0x468] sm:$0xf]  ;;  %v464_v14 = vld [vmem:[%s2463_s28 + $0x470] sm:$0xf]  ;;  %461 = vst [vmem:[%s2470_s29 + $0x230] sm:$0xf] %v460_v12 }
  0x74   : > { %463 = vst [vmem:[%s2470_s29 + $0x234] sm:$0xf] %v462_v13  ;;  %465 = vst [vmem:[%s2470_s29 + $0x238] sm:$0xf] %v464_v14  ;;  %v466_v15 = vld [vmem:[%s2463_s28 + $0x478] sm:$0xf] }
  0x75   : > { %467 = vst [vmem:[%s2470_s29 + $0x23c] sm:$0xf] %v466_v15 }
  0x76 PF: > { %p1957_p8 = scmp.ge.s32.totalorder %s2393_s16, 1  ;;  %p783_p9 = scmp.lt.s32.totalorder %s2393_s16, 3 }
  0x78   : > { %p784_p10 = pnand %p1957_p8, %p783_p9 }
  0x79   : > { %s790_s30 = sand.u32 (!%p784_p10), 1, %s2377_s12   ;;  %v2290_v16 = vld [vmem:[%s2916_s0 + $0x4] ss:$36 sps:$4 sm:$0xff] (!%p784_p10)   ;;  %v2295_v17 = vld [vmem:[%s2916_s0 + $0xc] ss:$36 sps:$4 sm:$0xff] (!%p784_p10)   ;;  %p828_p11 = scmp.lt.s32.totalorder (!%p784_p10), %s2385_s14, 1 }
  0x7a   : > { %787 = sbr.rel (%p784_p10) target bundleno = 454 (0x1c6), region = 69  ;;  %1560 = vmatprep.mubr.bf16.mxu0 (!%p784_p10), %v2290_v16  ;;  %1609 = vmatprep.mubr.bf16.mxu1 (!%p784_p10), %v2295_v17  ;;  %v2288_v47 = vld [vmem:[%s2916_s0] ss:$36 sps:$4 sm:$0xff] (!%p784_p10)   ;;  %v2316_v49 = vld [vmem:[%s2916_s0 + $0x4c] ss:$36 sps:$4 sm:$0xff] (!%p784_p10)  }
  0x7b   : > { %s2216_s4 = smul.u32 (!%p784_p10), 576, %s790_s30  ;;  %v2293_v51 = vld [vmem:[%s2916_s0 + $0x8] ss:$36 sps:$4 sm:$0xff] (!%p784_p10)   ;;  %v2321_v13 = vld [vmem:[%s2916_s0 + $0x54] ss:$36 sps:$4 sm:$0xff] (!%p784_p10)  }
  0x7c   : > { %v2319_v58 = vld [vmem:[%s2916_s0 + $0x48] ss:$36 sps:$4 sm:$0xff] (!%p784_p10)   ;;  %v2324_v15 = vld [vmem:[%s2916_s0 + $0x50] ss:$36 sps:$4 sm:$0xff] (!%p784_p10)  }
  0x7d   : > { %s2766_s9 = scalar_lea.vmem (!%p784_p10), [#allocation2], %s2216_s4 }
  0x7e   : > { %v2257_v18 = vld [vmem:[%s2766_s9 + $0x40] sm:$0xff] (!%p784_p10)   ;;  %v2261_v22 = vld [vmem:[%s2766_s9 + $0x48] sm:$0xff] (!%p784_p10)   ;;  %v2265_v26 = vld [vmem:[%s2766_s9 + $0x50] sm:$0xff] (!%p784_p10)  }
  0x7f   : > { %v2258_v19 = vld [vmem:[%s2766_s9] sm:$0xff] (!%p784_p10)   ;;  %2073 = vmatprep.subr.bf16.mxu0 (!%p784_p10), %v2257_v18  ;;  %v2262_v23 = vld [vmem:[%s2766_s9 + $0x8] sm:$0xff] (!%p784_p10)   ;;  %v2266_v27 = vld [vmem:[%s2766_s9 + $0x10] sm:$0xff] (!%p784_p10)  }
  0x80   : > { %v2259_v20 = vld [vmem:[%s2766_s9 + $0xc0] sm:$0xff] (!%p784_p10)   ;;  %2074 = vmatpush3.bf16.msra.mxu0 (!%p784_p10), %v2258_v19  ;;  %v2263_v24 = vld [vmem:[%s2766_s9 + $0xc8] sm:$0xff] (!%p784_p10)   ;;  %v2267_v28 = vld [vmem:[%s2766_s9 + $0xd0] sm:$0xff] (!%p784_p10)  }
  0x81   : > { %v2260_v21 = vld [vmem:[%s2766_s9 + $0x80] sm:$0xff]   ;;  %2101 = vmatprep.subr.bf16.mxu1 %v2259_v20  ;;  %2075 = vmatprep.subr.bf16.mxu0 %v2261_v22  ;;  %v2264_v25 = vld [vmem:[%s2766_s9 + $0x88] sm:$0xff]   ;;  %v2268_v29 = vld [vmem:[%s2766_s9 + $0x90] sm:$0xff]   ;;  %s829_s7 = scalar_select %p828_p11, %s2385_s14, 1 }
  0x82   : > { %2102 = vmatpush3.bf16.msra.mxu1 %v2260_v21  ;;  %v2269_v30 = vld [vmem:[%s2766_s9 + $0x58] sm:$0xff]   ;;  %v2273_v34 = vld [vmem:[%s2766_s9 + $0x60] sm:$0xff]   ;;  %v2277_v38 = vld [vmem:[%s2766_s9 + $0x68] sm:$0xff]   ;;  %s2055_s19 = sshll.u32 (%p2450_p6), %s2385_s14, 2 }
  0x83   : > { %2103 = vmatprep.subr.bf16.mxu1 %v2263_v24  ;;  %v2270_v31 = vld [vmem:[%s2766_s9 + $0x18] sm:$0xff]   ;;  %v2274_v35 = vld [vmem:[%s2766_s9 + $0x20] sm:$0xff]   ;;  %v2278_v39 = vld [vmem:[%s2766_s9 + $0x28] sm:$0xff]   ;;  %s830_s11 = scalar_lea.vmem %s2918_s2, %s829_s7  ;;  %s1808_s20 = scalar_lea.vmem (%p2450_p6), %s2919_s3, %s2055_s19 }
  0x84   : > { %2076 = vmatpush3.bf16.msra.mxu0 %v2262_v23  ;;  %v2271_v32 = vld [vmem:[%s2766_s9 + $0xd8] sm:$0xff]   ;;  %v2275_v36 = vld [vmem:[%s2766_s9 + $0xe0] sm:$0xff]   ;;  %v2279_v40 = vld [vmem:[%s2766_s9 + $0xe8] sm:$0xff]  }
  0x85   : > { %2077 = vmatprep.subr.bf16.mxu0 %v2265_v26  ;;  %v2272_v33 = vld [vmem:[%s2766_s9 + $0x98] sm:$0xff]   ;;  %v2276_v37 = vld [vmem:[%s2766_s9 + $0xa0] sm:$0xff]   ;;  %v2280_v41 = vld [vmem:[%s2766_s9 + $0xa8] sm:$0xff]  }
  0x86   : > { %2104 = vmatpush3.bf16.msra.mxu1 %v2264_v25  ;;  %v2281_v42 = vld [vmem:[%s2766_s9 + $0x70] sm:$0xff]   ;;  %v2285_v46 = vld [vmem:[%s2766_s9 + $0x78] sm:$0xff]   ;;  %v2292_v53 = vld [vmem:[%s2766_s9 + $0x140] sm:$0xff]  }
  0x87   : > { %2105 = vmatprep.subr.bf16.mxu1 %v2267_v28  ;;  %v2282_v43 = vld [vmem:[%s2766_s9 + $0x30] sm:$0xff]   ;;  %v2286_v48 = vld [vmem:[%s2766_s9 + $0x38] sm:$0xff]   ;;  %v2296_v54 = vld [vmem:[%s2766_s9 + $0x100] sm:$0xff]  }
  0x88   : > { %2078 = vmatpush3.bf16.msra.mxu0 %v2266_v27  ;;  %v2283_v44 = vld [vmem:[%s2766_s9 + $0xf0] sm:$0xff]   ;;  %v2287_v50 = vld [vmem:[%s2766_s9 + $0xf8] sm:$0xff]   ;;  %v2297_v55 = vld [vmem:[%s2766_s9 + $0x1c0] sm:$0xff]  }
  0x89   : > { %2079 = vmatprep.subr.bf16.mxu0 %v2269_v30  ;;  %v2284_v45 = vld [vmem:[%s2766_s9 + $0xb0] sm:$0xff]   ;;  %v2291_v52 = vld [vmem:[%s2766_s9 + $0xb8] sm:$0xff]   ;;  %v2298_v56 = vld [vmem:[%s2766_s9 + $0x180] sm:$0xff]  }
  0x8a   : > { %2106 = vmatpush3.bf16.msra.mxu1 %v2268_v29  ;;  %v2299_v57 = vld [vmem:[%s2766_s9 + $0x148] sm:$0xff]   ;;  %v2303_v62 = vld [vmem:[%s2766_s9 + $0x150] sm:$0xff]   ;;  %v2307_v2 = vld [vmem:[%s2766_s9 + $0x158] sm:$0xff]  }
  0x8b   : > { %2107 = vmatprep.subr.bf16.mxu1 %v2271_v32  ;;  %v2300_v59 = vld [vmem:[%s2766_s9 + $0x108] sm:$0xff]   ;;  %v2304_v63 = vld [vmem:[%s2766_s9 + $0x110] sm:$0xff]   ;;  %v2308_v3 = vld [vmem:[%s2766_s9 + $0x118] sm:$0xff]  }
  0x8c   : > { %2080 = vmatpush3.bf16.msra.mxu0 %v2270_v31  ;;  %v2301_v60 = vld [vmem:[%s2766_s9 + $0x1c8] sm:$0xff]   ;;  %v2305_v0 = vld [vmem:[%s2766_s9 + $0x1d0] sm:$0xff]   ;;  %v2309_v4 = vld [vmem:[%s2766_s9 + $0x1d8] sm:$0xff]  }
  0x8d   : > { %2081 = vmatprep.subr.bf16.mxu0 %v2273_v34  ;;  %v2302_v61 = vld [vmem:[%s2766_s9 + $0x188] sm:$0xff]   ;;  %v2306_v1 = vld [vmem:[%s2766_s9 + $0x190] sm:$0xff]   ;;  %v2310_v5 = vld [vmem:[%s2766_s9 + $0x198] sm:$0xff]  }
  0x8e   : > { %2108 = vmatpush3.bf16.msra.mxu1 %v2272_v33  ;;  %v2311_v6 = vld [vmem:[%s2766_s9 + $0x160] sm:$0xff]   ;;  %v2315_v10 = vld [vmem:[%s2766_s9 + $0x168] sm:$0xff]   ;;  %v2325_v16 = vld [vmem:[%s2766_s9 + $0x170] sm:$0xff]  }
  0x8f   : > { %2109 = vmatprep.subr.bf16.mxu1 %v2275_v36  ;;  %v2312_v7 = vld [vmem:[%s2766_s9 + $0x120] sm:$0xff]   ;;  %v2318_v11 = vld [vmem:[%s2766_s9 + $0x128] sm:$0xff]   ;;  %v2326_v17 = vld [vmem:[%s2766_s9 + $0x130] sm:$0xff]  }
  0x90   : > { %2082 = vmatpush3.bf16.msra.mxu0 %v2274_v35  ;;  %v2313_v8 = vld [vmem:[%s2766_s9 + $0x1e0] sm:$0xff]   ;;  %v2320_v12 = vld [vmem:[%s2766_s9 + $0x1e8] sm:$0xff]   ;;  %v2327_v18 = vld [vmem:[%s2766_s9 + $0x1f0] sm:$0xff]  }
  0x91   : > { %2083 = vmatprep.subr.bf16.mxu0 %v2277_v38  ;;  %v2314_v9 = vld [vmem:[%s2766_s9 + $0x1a0] sm:$0xff]   ;;  %v2323_v14 = vld [vmem:[%s2766_s9 + $0x1a8] sm:$0xff]   ;;  %v2328_v19 = vld [vmem:[%s2766_s9 + $0x1b0] sm:$0xff]  }
  0x92   : > { %2110 = vmatpush3.bf16.msra.mxu1 %v2276_v37  ;;  %v2329_v20 = vld [vmem:[%s2766_s9 + $0x178] sm:$0xff]   ;;  %v2332_v23 = vld [vmem:[%s2916_s0 + $0x10] ss:$36 sps:$4 sm:$0xff]   ;;  %v2336_v26 = vld [vmem:[%s2766_s9 + $0x200] sm:$0xff]  }
  0x93   : > { %2111 = vmatprep.subr.bf16.mxu1 %v2279_v40  ;;  %v2330_v21 = vld [vmem:[%s2766_s9 + $0x138] sm:$0xff]   ;;  %v2340_v29 = vld [vmem:[%s2766_s9 + $0x208] sm:$0xff]   ;;  %v2344_v32 = vld [vmem:[%s2766_s9 + $0x210] sm:$0xff]  }
  0x94   : > { %2084 = vmatpush3.bf16.msra.mxu0 %v2278_v39  ;;  %v2331_v22 = vld [vmem:[%s2766_s9 + $0x1f8] sm:$0xff]   ;;  %v2345_v33 = vld [vmem:[%s2916_s0 + $0x64] ss:$36 sps:$4 sm:$0xff]   ;;  %v2351_v39 = vld [vmem:[%s2766_s9 + $0x230] sm:$0xff]  }
  0x95   : > { %2085 = vmatprep.subr.bf16.mxu0 %v2281_v42  ;;  %v2334_v24 = vld [vmem:[%s2916_s0 + $0x14] ss:$36 sps:$4 sm:$0xff]   ;;  %v2339_v28 = vld [vmem:[%s2916_s0 + $0x1c] ss:$36 sps:$4 sm:$0xff]   ;;  %v2350_v38 = vld [vmem:[%s2766_s9 + $0x228] sm:$0xff]  }
  0x96   : > { %2112 = vmatpush3.bf16.msra.mxu1 %v2280_v41  ;;  %v2335_v25 = vld [vmem:[%s2766_s9 + $0x1b8] sm:$0xff]   ;;  %v2347_v34 = vld [vmem:[%s2916_s0 + $0x60] ss:$36 sps:$4 sm:$0xff]   ;;  %v2354_v41 = vld [vmem:[%s2916_s0 + $0x68] ss:$36 sps:$4 sm:$0xff]  }
  0x97   : > { %2113 = vmatprep.subr.bf16.mxu1 %v2283_v44  ;;  %v2337_v27 = vld [vmem:[%s2916_s0 + $0x18] ss:$36 sps:$4 sm:$0xff]   ;;  %v2349_v36 = vld [vmem:[%s2766_s9 + $0x220] sm:$0xff]  }
  0x98   : > { %2086 = vmatpush3.bf16.msra.mxu0 %v2282_v43  ;;  %v2341_v30 = vld [vmem:[%s2916_s0 + $0x5c] ss:$36 sps:$4 sm:$0xff]  }
  0x99   : > { %2087 = vmatprep.subr.bf16.mxu0 %v2285_v46  ;;  %v2343_v31 = vld [vmem:[%s2916_s0 + $0x58] ss:$36 sps:$4 sm:$0xff]   ;;  %v2353_v37 = vld [vmem:[%s2916_s0 + $0x20] ss:$36 sps:$4 sm:$0xff]  }
  0x9a   : > { %2114 = vmatpush3.bf16.msra.mxu1 %v2284_v45  ;;  %v2348_v35 = vld [vmem:[%s2766_s9 + $0x218] sm:$0xff]   ;;  %v1959_v43 = vld [vmem:[%s830_s11] ss:$0 sm:$0xff] }
  0x9b   : > { %2115 = vmatprep.subr.bf16.mxu1 %v2287_v50  ;;  %v2352_v40 = vld [vmem:[%s2766_s9 + $0x238] sm:$0xff]   ;;  %s1958_s9 = sshll.u32 %s790_s30, 4 }
  0x9c   : > { %2088 = vmatpush3.bf16.msra.mxu0 %v2286_v48  ;;  %s820_s18 = scalar_lea.vmem [#allocation3], %s1958_s9 }
  0x9d   : > { %2129 = vmatprep.subr.bf16.mxu0 %v2292_v53 }
  0x9e   : > { %2116 = vmatpush3.bf16.msra.mxu1 %v2291_v52 }
  0x9f   : > { %1561 = vmatmul.mubr.bf16.vlgmr.msra.gmra.mrb[0].mxu0 %v2288_v47  ;;  %2157 = vmatprep.subr.bf16.mxu1 %v2297_v55 }
  0xa0   : > { %2130 = vmatpush3.bf16.msra.mxu0 %v2296_v54  ;;  %1568 = vmatprep.mubr.bf16.mxu0 %v2316_v49 }
  0xa1   : > { %1610 = vmatmul.mubr.bf16.vlgmr.msra.gmra.mrb[0].mxu1 %v2293_v51  ;;  %2131 = vmatprep.subr.bf16.mxu0 %v2299_v57 }
  0xa2   : > { %2158 = vmatpush3.bf16.msra.mxu1 %v2298_v56  ;;  %1617 = vmatprep.mubr.bf16.mxu1 %v2321_v13 }
  0xa3   : > { %2159 = vmatprep.subr.bf16.mxu1 %v2301_v60 }
  0xa4   : > { %2132 = vmatpush3.bf16.msra.mxu0 %v2300_v59 }
  0xa5   : > { %2133 = vmatprep.subr.bf16.mxu0 %v2303_v62 }
  0xa6   : > { %2160 = vmatpush3.bf16.msra.mxu1 %v2302_v61 }
  0xa7   : > { %1569 = vmatmul.mubr.bf16.gmra.mrb[4].mxu0 %v2319_v58  ;;  %2161 = vmatprep.subr.bf16.mxu1 %v2305_v0 }
  0xa8   : > { %2134 = vmatpush3.bf16.msra.mxu0 %v2304_v63  ;;  %1658 = vmatprep.mubr.bf16.mxu0 %v2334_v24 }
  0xa9   : > { %2135 = vmatprep.subr.bf16.mxu0 %v2307_v2  ;;  %1618 = vmatmul.mubr.bf16.gmra.mrb[4].mxu1 %v2324_v15 }
  0xaa   : > { %2162 = vmatpush3.bf16.msra.mxu1 %v2306_v1  ;;  %1707 = vmatprep.mubr.bf16.mxu1 %v2339_v28 }
  0xab   : > { %2163 = vmatprep.subr.bf16.mxu1 %v2309_v4 }
  0xac   : > { %2136 = vmatpush3.bf16.msra.mxu0 %v2308_v3 }
  0xad   : > { %2137 = vmatprep.subr.bf16.mxu0 %v2311_v6 }
  0xae   : > { %2164 = vmatpush3.bf16.msra.mxu1 %v2310_v5 }
  0xaf   : > { %2165 = vmatprep.subr.bf16.mxu1 %v2313_v8 }
  0xb0   : > { %2138 = vmatpush3.bf16.msra.mxu0 %v2312_v7 }
  0xb1   : > { %2139 = vmatprep.subr.bf16.mxu0 %v2315_v10 }
  0xb2   : > { %2166 = vmatpush3.bf16.msra.mxu1 %v2314_v9 }
  0xb3   : > { %2167 = vmatprep.subr.bf16.mxu1 %v2320_v12 }
  0xb4   : > { %2140 = vmatpush3.bf16.msra.mxu0 %v2318_v11 }
  0xb5   : > { %2141 = vmatprep.subr.bf16.mxu0 %v2325_v16 }
  0xb6   : > { %2168 = vmatpush3.bf16.msra.mxu1 %v2323_v14 }
  0xb7   : > { %2169 = vmatprep.subr.bf16.mxu1 %v2327_v18 }
  0xb8   : > { %2142 = vmatpush3.bf16.msra.mxu0 %v2326_v17 }
  0xb9   : > { %2143 = vmatprep.subr.bf16.mxu0 %v2329_v20 }
  0xba   : > { %2170 = vmatpush3.bf16.msra.mxu1 %v2328_v19 }
  0xbb   : > { %2171 = vmatprep.subr.bf16.mxu1 %v2331_v22 }
  0xbc   : > { %2144 = vmatpush3.bf16.msra.mxu0 %v2330_v21 }
  0xbd   : > { %2195 = vmatprep.subr.bf16.mxu0 %v2336_v26 }
  0xbe   : > { %2172 = vmatpush3.bf16.msra.mxu1 %v2335_v25 }
  0xbf   : > { %1659 = vmatmul.mubr.bf16.vlgmr.msra.gmra.mrb[8].mxu0 %v2332_v23 }
  0xc0   : > { %2196 = vmatpush3.bf16.msra.mxu0 %v2336_v26  ;;  %1666 = vmatprep.mubr.bf16.mxu0 %v2341_v30 }
  0xc1   : > { %1708 = vmatmul.mubr.bf16.vlgmr.msra.gmra.mrb[8].mxu1 %v2337_v27  ;;  %2197 = vmatprep.subr.bf16.mxu0 %v2340_v29 }
  0xc2   : > { %1715 = vmatprep.mubr.bf16.mxu1 %v2345_v33 }
  0xc4   : > { %2198 = vmatpush3.bf16.msra.mxu0 %v2340_v29 }
  0xc5   : > { %2199 = vmatprep.subr.bf16.mxu0 %v2344_v32 }
  0xc7   : > { %1667 = vmatmul.mubr.bf16.gmra.mrb[12].mxu0 %v2343_v31 }
  0xc8   : > { %2200 = vmatpush3.bf16.msra.mxu0 %v2344_v32  ;;  %2211 = vmatprep.mubr.bf16.mxu0 %v2353_v37 }
  0xc9   : > { %1716 = vmatmul.mubr.bf16.gmra.mrb[12].mxu1 %v2347_v34  ;;  %2201 = vmatprep.subr.bf16.mxu0 %v2348_v35 }
  0xcc   : > { %2202 = vmatpush3.bf16.msra.mxu0 %v2348_v35 }
  0xcd   : > { %2203 = vmatprep.subr.bf16.mxu0 %v2349_v36 }
  0xd0   : > { %2204 = vmatpush3.bf16.msra.mxu0 %v2349_v36 }
  0xd1   : > { %2205 = vmatprep.subr.bf16.mxu0 %v2350_v38 }
  0xd4   : > { %2206 = vmatpush3.bf16.msra.mxu0 %v2350_v38 }
  0xd5   : > { %2207 = vmatprep.subr.bf16.mxu0 %v2351_v39 }
  0xd8   : > { %2208 = vmatpush3.bf16.msra.mxu0 %v2351_v39 }
  0xd9   : > { %2209 = vmatprep.subr.bf16.mxu0 %v2352_v40 }
  0xdc   : > { %2210 = vmatpush3.bf16.msra.mxu0 %v2352_v40 }
  0xdf   : > { %2212 = vmatmul.mubr.bf16.vlgmr.msra.gmra.mrb[16].mxu0 %v2354_v41 }
 0x172   : > { %v2089_v42 = vpop.f32.mrb[0].mxu0 }
 0x173   : > { %v2090_v44 = vpop.f32.mrb[1].mxu0 }
 0x174   : > { %v2091_v45 = vadd.f32 %v2090_v44, %v2089_v42  ;;  %v2092_v46 = vpop.f32.mrb[2].mxu0  ;;  %v2117_v47 = vpop.f32.mrb[0].mxu1 }
 0x175   : > { %v2093_v48 = vpop.f32.mrb[3].mxu0  ;;  %v2118_v49 = vpop.f32.mrb[1].mxu1 }
 0x176   : > { %v1563_v50 = vadd.f32 %v2091_v45, %v1959_v43  ;;  %v2094_v51 = vadd.f32 %v2093_v48, %v2092_v46  ;;  %v2119_v52 = vadd.f32 %v2118_v49, %v2117_v47  ;;  %v2120_v53 = vpop.f32.mrb[2].mxu1 }
 0x177   : > { %v2121_v54 = vpop.f32.mrb[3].mxu1 }
 0x178   : > { %v1566_v55 = vadd.f32 %v2094_v51, %v1959_v43  ;;  %v1612_v56 = vadd.f32 %v2119_v52, %v1563_v50  ;;  %v2122_v57 = vadd.f32 %v2121_v54, %v2120_v53 }
 0x17a   : > { %v1615_v58 = vadd.f32 %v2122_v57, %v1566_v55  ;;  %v2095_v59 = vpop.f32.mrb[4].mxu0 }
 0x17b   : > { %v2096_v60 = vpop.f32.mrb[5].mxu0 }
 0x17c   : > { %v2097_v61 = vadd.f32 %v2096_v60, %v2095_v59  ;;  %v2098_v62 = vpop.f32.mrb[6].mxu0  ;;  %v2123_v2 = vpop.f32.mrb[4].mxu1 }
 0x17d   : > { %v2099_v63 = vpop.f32.mrb[7].mxu0  ;;  %v2124_v3 = vpop.f32.mrb[5].mxu1 }
 0x17e   : > { %v2100_v0 = vadd.f32 %v2099_v63, %v2098_v62  ;;  %v1571_v1 = vadd.f32 %v2097_v61, %v1959_v43  ;;  %v2125_v5 = vadd.f32 %v2124_v3, %v2123_v2  ;;  %v2126_v6 = vpop.f32.mrb[6].mxu1 }
 0x17f   : > { %v2127_v7 = vpop.f32.mrb[7].mxu1 }
 0x180   : > { %v1574_v4 = vadd.f32 %v2100_v0, %v1959_v43  ;;  %v1620_v8 = vadd.f32 %v2125_v5, %v1571_v1  ;;  %v2128_v9 = vadd.f32 %v2127_v7, %v2126_v6 }
 0x182   : > { %v1623_v10 = vadd.f32 %v2128_v9, %v1574_v4 }
 0x192   : > { %v2145_v11 = vpop.f32.mrb[8].mxu0 }
 0x193   : > { %v2146_v12 = vpop.f32.mrb[9].mxu0 }
 0x194   : > { %v2147_v13 = vadd.f32 %v2146_v12, %v2145_v11  ;;  %v2148_v14 = vpop.f32.mrb[10].mxu0  ;;  %v2173_v15 = vpop.f32.mrb[8].mxu1 }
 0x195   : > { %v2149_v16 = vpop.f32.mrb[11].mxu0  ;;  %v2174_v19 = vpop.f32.mrb[9].mxu1 }
 0x196   : > { %v1661_v17 = vadd.f32 %v2147_v13, %v1612_v56  ;;  %v2150_v18 = vadd.f32 %v2149_v16, %v2148_v14  ;;  %v2175_v20 = vadd.f32 %v2174_v19, %v2173_v15  ;;  %v2176_v21 = vpop.f32.mrb[10].mxu1 }
 0x197   : > { %v2177_v23 = vpop.f32.mrb[11].mxu1 }
 0x198   : > { %v1664_v22 = vadd.f32 %v2150_v18, %v1615_v58  ;;  %v2178_v24 = vadd.f32 %v2177_v23, %v2176_v21  ;;  %v1710_v25 = vadd.f32 %v2175_v20, %v1661_v17 }
 0x19a   : > { %v2151_v26 = vpop.f32.mrb[12].mxu0  ;;  %v1713_v28 = vadd.f32 %v2178_v24, %v1664_v22 }
 0x19b   : > { %v2152_v27 = vpop.f32.mrb[13].mxu0 }
 0x19c   : > { %v2153_v29 = vadd.f32 %v2152_v27, %v2151_v26  ;;  %v2154_v30 = vpop.f32.mrb[14].mxu0  ;;  %v2179_v31 = vpop.f32.mrb[12].mxu1 }
 0x19d   : > { %v2155_v32 = vpop.f32.mrb[15].mxu0  ;;  %v2180_v35 = vpop.f32.mrb[13].mxu1 }
 0x19e   : > { %v1669_v33 = vadd.f32 %v2153_v29, %v1620_v8  ;;  %v2156_v34 = vadd.f32 %v2155_v32, %v2154_v30  ;;  %v2181_v36 = vadd.f32 %v2180_v35, %v2179_v31  ;;  %v2182_v37 = vpop.f32.mrb[14].mxu1 }
 0x19f   : > { %v2183_v39 = vpop.f32.mrb[15].mxu1 }
 0x1a0   : > { %v1672_v38 = vadd.f32 %v2156_v34, %v1623_v10  ;;  %v2184_v40 = vadd.f32 %v2183_v39, %v2182_v37  ;;  %v1718_v41 = vadd.f32 %v2181_v36, %v1669_v33 }
 0x1a2   : > { %v1721_v42 = vadd.f32 %v2184_v40, %v1672_v38 }
 0x1b2   : > { %v2213_v43 = vpop.f32.mrb[16].mxu0 }
 0x1b3   : > { %v1767_v44 = vadd.f32 %v2213_v43, %v1718_v41  ;;  %v1758_v45 = vpop.f32.mrb[17].mxu0 }
 0x1b4   : > { %v1759_v46 = vadd.f32 %v1758_v45, %v1710_v25  ;;  %v2214_v47 = vpop.f32.mrb[18].mxu0 }
 0x1b5   : > { %v1770_v48 = vadd.f32 %v2214_v47, %v1721_v42  ;;  %v1761_v49 = vpop.f32.mrb[19].mxu0  ;;  %v1775_v51 = vmax.f32 %v1767_v44, 0.0 }
 0x1b6   : > { %v1762_v50 = vadd.f32 %v1761_v49, %v1713_v28  ;;  %v1773_v53 = vmax.f32 %v1759_v46, 0.0  ;;  %1803 = sbr.rel (!%p2450_p6) target bundleno = 454 (0x1c6), region = 77 }
 0x1b7   : > { %v1776_v52 = vmax.f32 %v1770_v48, 0.0 }
 0x1b8   : > { %v1774_v54 = vmax.f32 %v1762_v50, 0.0 }
 0x1b9   : > { %v2070_v55 = vpack.c.bf16 %v1776_v52, %v1775_v51 }
 0x1ba   : > { %v2065_v56 = vpack.c.bf16 %v1774_v54, %v1773_v53 }
 0x1bb   : > { %2072 = vst [vmem:[%s820_s18 + $0x8] sm:$0xff] %v2070_v55  }
 0x1bc   : > { %2066 = vst [vmem:[%s820_s18] sm:$0xff] %v2065_v56  }
 0x1c2   : > { %v1828_v59 = vld [vmem:[%s820_s18 + $0x8] sm:$0xf]  ;;  %v1830_v60 = vld [vmem:[%s820_s18 + $0xc] sm:$0xf] }
 0x1c3   : > { %v1824_v57 = vld [vmem:[%s820_s18] sm:$0xf]  ;;  %v1826_v58 = vld [vmem:[%s820_s18 + $0x4] sm:$0xf]  ;;  %1829 = vst [vmem:[%s1808_s20 + $0x10] sm:$0xf] %v1828_v59 }
 0x1c4   : > { %1825 = vst [vmem:[%s1808_s20] sm:$0xf] %v1824_v57  ;;  %1827 = vst [vmem:[%s1808_s20 + $0x8] sm:$0xf] %v1826_v58 }
 0x1c5   : > { %1831 = vst [vmem:[%s1808_s20 + $0x18] sm:$0xf] %v1830_v60 }
 0x1c6 PF: > { %s13_s16 = sadd.s32 1, %s2393_s16   ;;  %s2921_s12 = smov %s2381_s13 }
 0x1c7   : > { %p10_p12 = scmp.ge.s32.totalorder %s13_s16, 4   ;;  %s2922_s13 = smov %s2455_s22 }
 0x1c8   : > { %s2923_s14 = smov %s2389_s15  ;;  %s2924_s15 = smov %s2926_s17 }
 0x1c9   :  { %12 = sbr.rel (!%p10_p12) target bundleno = 3 (0x3), region = 155 }

// kernel: model_wrapper_forward.20
= control target key start
LH: loop header
LB: loop body
LE: loop exit
PB: predicated region body
PF: predicated region fallthrough
CT: control target
= control target key end

     0   :  { %s812_s12 = smov 0   ;;  %s814_s13 = smov 0   ;;  %s917_s0 = inlined_call_operand.vmem [shape: bf16[32,128], index: 0, kind: input, shape index: {}]   ;;  %s918_s1 = inlined_call_operand.vmem [shape: bf16[128,256], index: 1, kind: input, shape index: {}]   ;;  %s919_s2 = inlined_call_operand.vmem [shape: f32[1,256], index: 2, kind: input, shape index: {}]   ;;  %s920_s3 = inlined_call_operand.vmem [shape: bf16[32,256], index: 3, kind: output, shape index: {}]  }
   0x1   :  { %s816_s14 = smov 0   ;;  %s818_s15 = smov 0  }
   0x2   :  { %s820_s16 = smov 0  }
   0x3 LB: > { %s22_s17 = sadd.s32 1, %s786_s15  ;;  %s628_s18 = sadd.s32 4294967295, %s790_s16   ;;  %s790_s16 = sphi %s820_s16, %s13_s16   ;;  %s786_s15 = sphi %s818_s15, %s925_s15   ;;  %s782_s14 = sphi %s816_s14, %s924_s14   ;;  %s778_s13 = sphi %s814_s13, %s923_s13   ;;  %s774_s12 = sphi %s812_s12, %s922_s12  }
   0x4   : > { %p23_p0 = scmp.ge.s32.totalorder %s22_s17, 2  ;;  %p65_p1 = scmp.ne.s32.totalorder %s778_s13, %s774_s12 }
   0x5   : > { %p66_p2 = scmp.eq.s32.totalorder %s790_s16, 0  ;;  %p123_p4 = scmp.eq.s32.totalorder %s628_s18, 1 }
   0x6   : > { %s927_s17 = smov (%p23_p0, %s22_s17), 0  ;;  %s58_s20 = sadd.s32 1, %s778_s13 }
   0x7   : > { %p67_p3 = por %p66_p2, %p65_p1  ;;  %s55_s19 = ssub.s32 %s786_s15, %s927_s17 }
   0x8   : > { %p56_p5 = scmp.eq.s32.totalorder %s55_s19, 0  ;;  %p847_p6 = por %p123_p4, %p65_p1 }
   0x9   : > { %p632_p7 = scmp.ge.s32.totalorder %s790_s16, 2 }
   0xa   : > { %s852_s22 = scalar_select %p56_p5, %s778_s13, %s58_s20  }
   0xb   : > { %154 = sbr.rel (%p632_p7) target bundleno = 32 (0x20), region = 20 }
  0x12   : > { %157 = sbr.rel (!%p67_p3) target bundleno = 32 (0x20), region = 24  ;;  %s159_s23 = sand.u32 (%p67_p3), 1, %s778_s13  }
  0x13   : > { %s634_s24 = sshll.u32 (%p67_p3), %s786_s15, 2  ;;  %s633_s25 = sshll.u32 (%p67_p3), %s159_s23, 6 }
  0x14   : > { %s860_s28 = scalar_lea.vmem (%p67_p3), %s918_s1, %s634_s24  ;;  %s161_s29 = scalar_lea.vmem (%p67_p3), [#allocation2], %s633_s25 }
  0x15   : > { %v179_v0 = vld [vmem:[%s860_s28] sm:$0xf] (%p67_p3)  ;;  %v181_v1 = vld [vmem:[%s860_s28 + $0x8] sm:$0xf] (%p67_p3)  ;;  %v183_v2 = vld [vmem:[%s860_s28 + $0x10] sm:$0xf] (%p67_p3) }
  0x16   : > { %180 = vst [vmem:[%s161_s29] sm:$0xf] (%p67_p3), %v179_v0  ;;  %182 = vst [vmem:[%s161_s29 + $0x4] sm:$0xf] (%p67_p3), %v181_v1  ;;  %v185_v3 = vld [vmem:[%s860_s28 + $0x18] sm:$0xf] (%p67_p3) }
  0x17   : > { %v187_v4 = vld [vmem:[%s860_s28 + $0x20] sm:$0xf] (%p67_p3)  ;;  %184 = vst [vmem:[%s161_s29 + $0x8] sm:$0xf] (%p67_p3), %v183_v2  ;;  %186 = vst [vmem:[%s161_s29 + $0xc] sm:$0xf] (%p67_p3), %v185_v3 }
  0x18   : > { %188 = vst [vmem:[%s161_s29 + $0x10] sm:$0xf] (%p67_p3), %v187_v4  ;;  %v189_v5 = vld [vmem:[%s860_s28 + $0x28] sm:$0xf] (%p67_p3)  ;;  %v191_v6 = vld [vmem:[%s860_s28 + $0x30] sm:$0xf] (%p67_p3) }
  0x19   : > { %v193_v7 = vld [vmem:[%s860_s28 + $0x38] sm:$0xf]  ;;  %190 = vst [vmem:[%s161_s29 + $0x14] sm:$0xf] %v189_v5  ;;  %192 = vst [vmem:[%s161_s29 + $0x18] sm:$0xf] %v191_v6 }
  0x1a   : > { %194 = vst [vmem:[%s161_s29 + $0x1c] sm:$0xf] %v193_v7  ;;  %v195_v8 = vld [vmem:[%s860_s28 + $0x40] sm:$0xf]  ;;  %v197_v9 = vld [vmem:[%s860_s28 + $0x48] sm:$0xf] }
  0x1b   : > { %v199_v10 = vld [vmem:[%s860_s28 + $0x50] sm:$0xf]  ;;  %196 = vst [vmem:[%s161_s29 + $0x20] sm:$0xf] %v195_v8  ;;  %198 = vst [vmem:[%s161_s29 + $0x24] sm:$0xf] %v197_v9 }
  0x1c   : > { %200 = vst [vmem:[%s161_s29 + $0x28] sm:$0xf] %v199_v10  ;;  %v201_v11 = vld [vmem:[%s860_s28 + $0x58] sm:$0xf]  ;;  %v203_v12 = vld [vmem:[%s860_s28 + $0x60] sm:$0xf] }
  0x1d   : > { %v205_v13 = vld [vmem:[%s860_s28 + $0x68] sm:$0xf]  ;;  %202 = vst [vmem:[%s161_s29 + $0x2c] sm:$0xf] %v201_v11  ;;  %204 = vst [vmem:[%s161_s29 + $0x30] sm:$0xf] %v203_v12 }
  0x1e   : > { %206 = vst [vmem:[%s161_s29 + $0x34] sm:$0xf] %v205_v13  ;;  %v207_v14 = vld [vmem:[%s860_s28 + $0x70] sm:$0xf]  ;;  %v209_v15 = vld [vmem:[%s860_s28 + $0x78] sm:$0xf] }
  0x1f   : > { %208 = vst [vmem:[%s161_s29 + $0x38] sm:$0xf] %v207_v14  ;;  %210 = vst [vmem:[%s161_s29 + $0x3c] sm:$0xf] %v209_v15 }
  0x20 PF: > { %p635_p8 = scmp.ge.s32.totalorder %s790_s16, 1  ;;  %p270_p9 = scmp.lt.s32.totalorder %s790_s16, 3 }
  0x22   : > { %p271_p10 = pnand %p635_p8, %p270_p9 }
  0x23   : > { %s277_s30 = sand.u32 (!%p271_p10), 1, %s774_s12   ;;  %v750_v16 = vld [vmem:[%s917_s0] sm:$0xff] (!%p271_p10)   ;;  %v751_v25 = vld [vmem:[%s917_s0 + $0x8] sm:$0xff] (!%p271_p10)   ;;  %p313_p11 = scmp.lt.s32.totalorder (!%p271_p10), %s782_s14, 1 }
  0x24   : > { %274 = sbr.rel (%p271_p10) target bundleno = 300 (0x12c), region = 69  ;;  %s636_s6 = sshll.u32 (!%p271_p10), %s277_s30, 6  ;;  %698 = vmatprep.mubr.bf16.mxu0 (!%p271_p10), %v750_v16 }
  0x25   : > { %s279_s7 = scalar_lea.vmem (!%p271_p10), [#allocation2], %s636_s6  ;;  %s637_s20 = sshll.u32 (!%p271_p10), %s277_s30, 4 }
  0x26   : > { %v742_v17 = vld [vmem:[%s279_s7] sm:$0xff] (!%p271_p10)   ;;  %v743_v18 = vld [vmem:[%s279_s7 + $0x8] sm:$0xff] (!%p271_p10)   ;;  %v744_v19 = vld [vmem:[%s279_s7 + $0x10] sm:$0xff] (!%p271_p10)   ;;  %s306_s23 = scalar_lea.vmem (!%p271_p10), [#allocation3], %s637_s20 }
  0x27   : > { %682 = vmatprep.subr.bf16.mxu0 (!%p271_p10), %v742_v17  ;;  %v745_v20 = vld [vmem:[%s279_s7 + $0x18] sm:$0xff] (!%p271_p10)   ;;  %v746_v21 = vld [vmem:[%s279_s7 + $0x20] sm:$0xff] (!%p271_p10)   ;;  %v747_v22 = vld [vmem:[%s279_s7 + $0x28] sm:$0xff] (!%p271_p10)  }
  0x28   : > { %683 = vmatpush3.bf16.msra.mxu0 (!%p271_p10), %v742_v17  ;;  %v748_v23 = vld [vmem:[%s279_s7 + $0x30] sm:$0xff] (!%p271_p10)   ;;  %v749_v24 = vld [vmem:[%s279_s7 + $0x38] sm:$0xff] (!%p271_p10)  }
  0x29   : > { %684 = vmatprep.subr.bf16.mxu0 (!%p271_p10), %v743_v18 }
  0x2b   : > { %s314_s10 = scalar_select %p313_p11, %s782_s14, 1 }
  0x2c   : > { %685 = vmatpush3.bf16.msra.mxu0 %v743_v18  ;;  %s654_s24 = sshll.u32 (%p847_p6), %s782_s14, 2 }
  0x2d   : > { %686 = vmatprep.subr.bf16.mxu0 %v744_v19  ;;  %s315_s19 = scalar_lea.vmem %s919_s2, %s314_s10  ;;  %s485_s26 = scalar_lea.vmem (%p847_p6), %s920_s3, %s654_s24 }
  0x2e   : > { %v638_v27 = vld [vmem:[%s315_s19] ss:$0 sm:$0xff] }
  0x30   : > { %687 = vmatpush3.bf16.msra.mxu0 %v744_v19 }
  0x31   : > { %688 = vmatprep.subr.bf16.mxu0 %v745_v20 }
  0x34   : > { %689 = vmatpush3.bf16.msra.mxu0 %v745_v20 }
  0x35   : > { %690 = vmatprep.subr.bf16.mxu0 %v746_v21 }
  0x38   : > { %691 = vmatpush3.bf16.msra.mxu0 %v746_v21 }
  0x39   : > { %692 = vmatprep.subr.bf16.mxu0 %v747_v22 }
  0x3c   : > { %693 = vmatpush3.bf16.msra.mxu0 %v747_v22 }
  0x3d   : > { %694 = vmatprep.subr.bf16.mxu0 %v748_v23 }
  0x40   : > { %695 = vmatpush3.bf16.msra.mxu0 %v748_v23 }
  0x41   : > { %696 = vmatprep.subr.bf16.mxu0 %v749_v24 }
  0x44   : > { %697 = vmatpush3.bf16.msra.mxu0 %v749_v24 }
  0x47   : > { %699 = vmatmul.mubr.bf16.vlgmr.msra.gmra.mrb[0].mxu0 %v751_v25 }
 0x11a   : > { %v700_v26 = vpop.f32.mrb[0].mxu0 }
 0x11b   : > { %v439_v28 = vpop.f32.mrb[1].mxu0  ;;  %v448_v30 = vadd.f32 %v700_v26, %v638_v27 }
 0x11c   : > { %v701_v29 = vpop.f32.mrb[2].mxu0  ;;  %v440_v33 = vadd.f32 %v638_v27, %v439_v28  ;;  %480 = sbr.rel (!%p847_p6) target bundleno = 300 (0x12c), region = 77 }
 0x11d   : > { %v451_v31 = vadd.f32 %v701_v29, %v638_v27  ;;  %v442_v32 = vpop.f32.mrb[3].mxu0 }
 0x11e   : > { %v443_v34 = vadd.f32 %v638_v27, %v442_v32 }
 0x11f   : > { %v669_v35 = vpack.c.bf16 %v451_v31, %v448_v30 }
 0x120   : > { %v664_v36 = vpack.c.bf16 %v443_v34, %v440_v33 }
 0x121   : > { %671 = vst [vmem:[%s306_s23 + $0x8] sm:$0xff] %v669_v35  }
 0x122   : > { %665 = vst [vmem:[%s306_s23] sm:$0xff] %v664_v36  }
 0x128   : > { %v505_v39 = vld [vmem:[%s306_s23 + $0x8] sm:$0xf]  ;;  %v507_v40 = vld [vmem:[%s306_s23 + $0xc] sm:$0xf] }
 0x129   : > { %v501_v37 = vld [vmem:[%s306_s23] sm:$0xf]  ;;  %v503_v38 = vld [vmem:[%s306_s23 + $0x4] sm:$0xf]  ;;  %506 = vst [vmem:[%s485_s26 + $0x10] sm:$0xf] %v505_v39 }
 0x12a   : > { %502 = vst [vmem:[%s485_s26] sm:$0xf] %v501_v37  ;;  %504 = vst [vmem:[%s485_s26 + $0x8] sm:$0xf] %v503_v38 }
 0x12b   : > { %508 = vst [vmem:[%s485_s26 + $0x18] sm:$0xf] %v507_v40 }
 0x12c PF: > { %s13_s16 = sadd.s32 1, %s790_s16   ;;  %s922_s12 = smov %s778_s13 }
 0x12d   : > { %p10_p12 = scmp.ge.s32.totalorder %s13_s16, 4   ;;  %s923_s13 = smov %s852_s22 }
 0x12e   : > { %s924_s14 = smov %s786_s15  ;;  %s925_s15 = smov %s927_s17 }
 0x12f   :  { %12 = sbr.rel (!%p10_p12) target bundleno = 3 (0x3), region = 155 }

// kernel: model_wrapper_forward.22
= control target key start
LH: loop header
LB: loop body
LE: loop exit
PB: predicated region body
PF: predicated region fallthrough
CT: control target
= control target key end

     0   :  { %s4338_s15 = smov 0   ;;  %s4340_s16 = smov 0   ;;  %s5270_s0 = inlined_call_operand.vmem [shape: bf16[32,2304], index: 0, kind: input, shape index: {}]   ;;  %s5271_s1 = inlined_call_operand.vmem [shape: bf16[2304,256], index: 1, kind: input, shape index: {}]   ;;  %s5272_s2 = inlined_call_operand.vmem [shape: f32[1,256], index: 2, kind: input, shape index: {}]   ;;  %s5273_s3 = inlined_call_operand.vmem [shape: bf16[32,256], index: 3, kind: input, shape index: {}]   ;;  %s5274_s4 = inlined_call_operand.vmem [shape: bf16[32,256], index: 4, kind: output, shape index: {}]  }
   0x1   :  { %s4342_s17 = smov 0   ;;  %s4344_s18 = smov 0  }
   0x2   :  { %s4346_s19 = smov 0  }
   0x3 LB: > { %s23_s20 = sadd.s32 1, %s4307_s18  ;;  %s3541_s21 = sadd.s32 4294967295, %s4311_s19   ;;  %s4311_s19 = sphi %s4346_s19, %s14_s19   ;;  %s4307_s18 = sphi %s4344_s18, %s5280_s18   ;;  %s4303_s17 = sphi %s4342_s17, %s5279_s17   ;;  %s4299_s16 = sphi %s4340_s16, %s5278_s16   ;;  %s4295_s15 = sphi %s4338_s15, %s5277_s15  }
   0x4   : > { %p24_p0 = scmp.ge.s32.totalorder %s23_s20, 2  ;;  %p66_p1 = scmp.ne.s32.totalorder %s4299_s16, %s4295_s15 }
   0x5   : > { %p67_p2 = scmp.eq.s32.totalorder %s4311_s19, 0  ;;  %p152_p4 = scmp.eq.s32.totalorder %s3541_s21, 1 }
   0x6   : > { %s5282_s20 = smov (%p24_p0, %s23_s20), 0  ;;  %s59_s24 = sadd.s32 1, %s4299_s16 }
   0x7   : > { %p4370_p3 = por %p67_p2, %p66_p1  ;;  %s56_s23 = ssub.s32 %s4307_s18, %s5282_s20 }
   0x8   : > { %p57_p5 = scmp.eq.s32.totalorder %s56_s23, 0  ;;  %p4377_p6 = por %p152_p4, %p66_p1 }
   0x9   : > { %p3545_p7 = scmp.ge.s32.totalorder %s4311_s19, 2 }
   0xa   : > { %s4382_s26 = scalar_select %p57_p5, %s4299_s16, %s59_s24  }
   0xb   : > { %184 = sbr.rel (%p3545_p7) target bundleno = 221 (0xdd), region = 20 }
  0x12   : > { %187 = sbr.rel (!%p4370_p3) target bundleno = 214 (0xd6), region = 24  ;;  %s189_s27 = sand.u32 (%p4370_p3), 1, %s4299_s16  }
  0x13   : > { %s3546_s28 = sshll.u32 (%p4370_p3), %s4307_s18, 2  ;;  %s4033_s29 = smul.u32 (%p4370_p3), 1152, %s189_s27 }
  0x14   : > { %s4392_s6 = scalar_lea.vmem (%p4370_p3), %s5271_s1, %s3546_s28 }
  0x15   : > { %v209_v0 = vld [vmem:[%s4392_s6] sm:$0xf] (%p4370_p3)  ;;  %v211_v1 = vld [vmem:[%s4392_s6 + $0x8] sm:$0xf] (%p4370_p3)  ;;  %v213_v2 = vld [vmem:[%s4392_s6 + $0x10] sm:$0xf] (%p4370_p3) }
  0x16   : > { %v215_v3 = vld [vmem:[%s4392_s6 + $0x18] sm:$0xf] (%p4370_p3)  ;;  %v217_v4 = vld [vmem:[%s4392_s6 + $0x20] sm:$0xf] (%p4370_p3)  ;;  %s4399_s7 = scalar_lea.vmem (%p4370_p3), [#allocation2], %s4033_s29 }
  0x17   : > { %210 = vst [vmem:[%s4399_s7] sm:$0xf] (%p4370_p3), %v209_v0  ;;  %212 = vst [vmem:[%s4399_s7 + $0x4] sm:$0xf] (%p4370_p3), %v211_v1  ;;  %v219_v5 = vld [vmem:[%s4392_s6 + $0x28] sm:$0xf] (%p4370_p3) }
  0x18   : > { %214 = vst [vmem:[%s4399_s7 + $0x8] sm:$0xf] (%p4370_p3), %v213_v2  ;;  %216 = vst [vmem:[%s4399_s7 + $0xc] sm:$0xf] (%p4370_p3), %v215_v3  ;;  %v221_v6 = vld [vmem:[%s4392_s6 + $0x30] sm:$0xf] (%p4370_p3) }
  0x19   : > { %218 = vst [vmem:[%s4399_s7 + $0x10] sm:$0xf] %v217_v4  ;;  %v223_v7 = vld [vmem:[%s4392_s6 + $0x38] sm:$0xf]  ;;  %220 = vst [vmem:[%s4399_s7 + $0x14] sm:$0xf] %v219_v5 }
  0x1a   : > { %222 = vst [vmem:[%s4399_s7 + $0x18] sm:$0xf] %v221_v6  ;;  %224 = vst [vmem:[%s4399_s7 + $0x1c] sm:$0xf] %v223_v7  ;;  %v225_v8 = vld [vmem:[%s4392_s6 + $0x40] sm:$0xf] }
  0x1b   : > { %v227_v9 = vld [vmem:[%s4392_s6 + $0x48] sm:$0xf]  ;;  %v229_v10 = vld [vmem:[%s4392_s6 + $0x50] sm:$0xf]  ;;  %226 = vst [vmem:[%s4399_s7 + $0x20] sm:$0xf] %v225_v8 }
  0x1c   : > { %228 = vst [vmem:[%s4399_s7 + $0x24] sm:$0xf] %v227_v9  ;;  %230 = vst [vmem:[%s4399_s7 + $0x28] sm:$0xf] %v229_v10  ;;  %v231_v11 = vld [vmem:[%s4392_s6 + $0x58] sm:$0xf] }
  0x1d   : > { %v233_v12 = vld [vmem:[%s4392_s6 + $0x60] sm:$0xf]  ;;  %v235_v13 = vld [vmem:[%s4392_s6 + $0x68] sm:$0xf]  ;;  %232 = vst [vmem:[%s4399_s7 + $0x2c] sm:$0xf] %v231_v11 }
  0x1e   : > { %234 = vst [vmem:[%s4399_s7 + $0x30] sm:$0xf] %v233_v12  ;;  %236 = vst [vmem:[%s4399_s7 + $0x34] sm:$0xf] %v235_v13  ;;  %v237_v14 = vld [vmem:[%s4392_s6 + $0x70] sm:$0xf] }
  0x1f   : > { %v239_v15 = vld [vmem:[%s4392_s6 + $0x78] sm:$0xf]  ;;  %v241_v16 = vld [vmem:[%s4392_s6 + $0x80] sm:$0xf]  ;;  %238 = vst [vmem:[%s4399_s7 + $0x38] sm:$0xf] %v237_v14 }
  0x20   : > { %240 = vst [vmem:[%s4399_s7 + $0x3c] sm:$0xf] %v239_v15  ;;  %242 = vst [vmem:[%s4399_s7 + $0x40] sm:$0xf] %v241_v16  ;;  %v243_v17 = vld [vmem:[%s4392_s6 + $0x88] sm:$0xf] }
  0x21   : > { %v245_v18 = vld [vmem:[%s4392_s6 + $0x90] sm:$0xf]  ;;  %v247_v19 = vld [vmem:[%s4392_s6 + $0x98] sm:$0xf]  ;;  %244 = vst [vmem:[%s4399_s7 + $0x44] sm:$0xf] %v243_v17 }
  0x22   : > { %246 = vst [vmem:[%s4399_s7 + $0x48] sm:$0xf] %v245_v18  ;;  %248 = vst [vmem:[%s4399_s7 + $0x4c] sm:$0xf] %v247_v19  ;;  %v249_v20 = vld [vmem:[%s4392_s6 + $0xa0] sm:$0xf] }
  0x23   : > { %v251_v21 = vld [vmem:[%s4392_s6 + $0xa8] sm:$0xf]  ;;  %v253_v22 = vld [vmem:[%s4392_s6 + $0xb0] sm:$0xf]  ;;  %250 = vst [vmem:[%s4399_s7 + $0x50] sm:$0xf] %v249_v20 }
  0x24   : > { %252 = vst [vmem:[%s4399_s7 + $0x54] sm:$0xf] %v251_v21  ;;  %254 = vst [vmem:[%s4399_s7 + $0x58] sm:$0xf] %v253_v22  ;;  %v255_v23 = vld [vmem:[%s4392_s6 + $0xb8] sm:$0xf] }
  0x25   : > { %v257_v24 = vld [vmem:[%s4392_s6 + $0xc0] sm:$0xf]  ;;  %v259_v25 = vld [vmem:[%s4392_s6 + $0xc8] sm:$0xf]  ;;  %256 = vst [vmem:[%s4399_s7 + $0x5c] sm:$0xf] %v255_v23 }
  0x26   : > { %258 = vst [vmem:[%s4399_s7 + $0x60] sm:$0xf] %v257_v24  ;;  %260 = vst [vmem:[%s4399_s7 + $0x64] sm:$0xf] %v259_v25  ;;  %v261_v26 = vld [vmem:[%s4392_s6 + $0xd0] sm:$0xf] }
  0x27   : > { %v263_v27 = vld [vmem:[%s4392_s6 + $0xd8] sm:$0xf]  ;;  %v265_v28 = vld [vmem:[%s4392_s6 + $0xe0] sm:$0xf]  ;;  %262 = vst [vmem:[%s4399_s7 + $0x68] sm:$0xf] %v261_v26 }
  0x28   : > { %264 = vst [vmem:[%s4399_s7 + $0x6c] sm:$0xf] %v263_v27  ;;  %266 = vst [vmem:[%s4399_s7 + $0x70] sm:$0xf] %v265_v28  ;;  %v267_v29 = vld [vmem:[%s4392_s6 + $0xe8] sm:$0xf] }
  0x29   : > { %v269_v30 = vld [vmem:[%s4392_s6 + $0xf0] sm:$0xf]  ;;  %v271_v31 = vld [vmem:[%s4392_s6 + $0xf8] sm:$0xf]  ;;  %268 = vst [vmem:[%s4399_s7 + $0x74] sm:$0xf] %v267_v29 }
  0x2a   : > { %270 = vst [vmem:[%s4399_s7 + $0x78] sm:$0xf] %v269_v30  ;;  %272 = vst [vmem:[%s4399_s7 + $0x7c] sm:$0xf] %v271_v31  ;;  %v273_v32 = vld [vmem:[%s4392_s6 + $0x100] sm:$0xf] }
  0x2b   : > { %v275_v33 = vld [vmem:[%s4392_s6 + $0x108] sm:$0xf]  ;;  %v277_v34 = vld [vmem:[%s4392_s6 + $0x110] sm:$0xf]  ;;  %274 = vst [vmem:[%s4399_s7 + $0x80] sm:$0xf] %v273_v32 }
  0x2c   : > { %276 = vst [vmem:[%s4399_s7 + $0x84] sm:$0xf] %v275_v33  ;;  %278 = vst [vmem:[%s4399_s7 + $0x88] sm:$0xf] %v277_v34  ;;  %v279_v35 = vld [vmem:[%s4392_s6 + $0x118] sm:$0xf] }
  0x2d   : > { %v281_v36 = vld [vmem:[%s4392_s6 + $0x120] sm:$0xf]  ;;  %v283_v37 = vld [vmem:[%s4392_s6 + $0x128] sm:$0xf]  ;;  %280 = vst [vmem:[%s4399_s7 + $0x8c] sm:$0xf] %v279_v35 }
  0x2e   : > { %282 = vst [vmem:[%s4399_s7 + $0x90] sm:$0xf] %v281_v36  ;;  %284 = vst [vmem:[%s4399_s7 + $0x94] sm:$0xf] %v283_v37  ;;  %v285_v38 = vld [vmem:[%s4392_s6 + $0x130] sm:$0xf] }
  0x2f   : > { %v287_v39 = vld [vmem:[%s4392_s6 + $0x138] sm:$0xf]  ;;  %v289_v40 = vld [vmem:[%s4392_s6 + $0x140] sm:$0xf]  ;;  %286 = vst [vmem:[%s4399_s7 + $0x98] sm:$0xf] %v285_v38 }
  0x30   : > { %288 = vst [vmem:[%s4399_s7 + $0x9c] sm:$0xf] %v287_v39  ;;  %290 = vst [vmem:[%s4399_s7 + $0xa0] sm:$0xf] %v289_v40  ;;  %v291_v41 = vld [vmem:[%s4392_s6 + $0x148] sm:$0xf] }
  0x31   : > { %v293_v42 = vld [vmem:[%s4392_s6 + $0x150] sm:$0xf]  ;;  %v295_v43 = vld [vmem:[%s4392_s6 + $0x158] sm:$0xf]  ;;  %292 = vst [vmem:[%s4399_s7 + $0xa4] sm:$0xf] %v291_v41 }
  0x32   : > { %294 = vst [vmem:[%s4399_s7 + $0xa8] sm:$0xf] %v293_v42  ;;  %296 = vst [vmem:[%s4399_s7 + $0xac] sm:$0xf] %v295_v43  ;;  %v297_v44 = vld [vmem:[%s4392_s6 + $0x160] sm:$0xf] }
  0x33   : > { %v299_v45 = vld [vmem:[%s4392_s6 + $0x168] sm:$0xf]  ;;  %v301_v46 = vld [vmem:[%s4392_s6 + $0x170] sm:$0xf]  ;;  %298 = vst [vmem:[%s4399_s7 + $0xb0] sm:$0xf] %v297_v44 }
  0x34   : > { %300 = vst [vmem:[%s4399_s7 + $0xb4] sm:$0xf] %v299_v45  ;;  %302 = vst [vmem:[%s4399_s7 + $0xb8] sm:$0xf] %v301_v46  ;;  %v303_v47 = vld [vmem:[%s4392_s6 + $0x178] sm:$0xf] }
  0x35   : > { %v305_v48 = vld [vmem:[%s4392_s6 + $0x180] sm:$0xf]  ;;  %v307_v49 = vld [vmem:[%s4392_s6 + $0x188] sm:$0xf]  ;;  %304 = vst [vmem:[%s4399_s7 + $0xbc] sm:$0xf] %v303_v47 }
  0x36   : > { %306 = vst [vmem:[%s4399_s7 + $0xc0] sm:$0xf] %v305_v48  ;;  %308 = vst [vmem:[%s4399_s7 + $0xc4] sm:$0xf] %v307_v49  ;;  %v309_v50 = vld [vmem:[%s4392_s6 + $0x190] sm:$0xf] }
  0x37   : > { %v311_v51 = vld [vmem:[%s4392_s6 + $0x198] sm:$0xf]  ;;  %v313_v52 = vld [vmem:[%s4392_s6 + $0x1a0] sm:$0xf]  ;;  %310 = vst [vmem:[%s4399_s7 + $0xc8] sm:$0xf] %v309_v50 }
  0x38   : > { %312 = vst [vmem:[%s4399_s7 + $0xcc] sm:$0xf] %v311_v51  ;;  %314 = vst [vmem:[%s4399_s7 + $0xd0] sm:$0xf] %v313_v52  ;;  %v315_v53 = vld [vmem:[%s4392_s6 + $0x1a8] sm:$0xf] }
  0x39   : > { %v317_v54 = vld [vmem:[%s4392_s6 + $0x1b0] sm:$0xf]  ;;  %v319_v55 = vld [vmem:[%s4392_s6 + $0x1b8] sm:$0xf]  ;;  %316 = vst [vmem:[%s4399_s7 + $0xd4] sm:$0xf] %v315_v53 }
  0x3a   : > { %318 = vst [vmem:[%s4399_s7 + $0xd8] sm:$0xf] %v317_v54  ;;  %320 = vst [vmem:[%s4399_s7 + $0xdc] sm:$0xf] %v319_v55  ;;  %v321_v56 = vld [vmem:[%s4392_s6 + $0x1c0] sm:$0xf] }
  0x3b   : > { %v323_v57 = vld [vmem:[%s4392_s6 + $0x1c8] sm:$0xf]  ;;  %v325_v58 = vld [vmem:[%s4392_s6 + $0x1d0] sm:$0xf]  ;;  %322 = vst [vmem:[%s4399_s7 + $0xe0] sm:$0xf] %v321_v56 }
  0x3c   : > { %324 = vst [vmem:[%s4399_s7 + $0xe4] sm:$0xf] %v323_v57  ;;  %326 = vst [vmem:[%s4399_s7 + $0xe8] sm:$0xf] %v325_v58  ;;  %v327_v59 = vld [vmem:[%s4392_s6 + $0x1d8] sm:$0xf] }
  0x3d   : > { %v329_v60 = vld [vmem:[%s4392_s6 + $0x1e0] sm:$0xf]  ;;  %v331_v61 = vld [vmem:[%s4392_s6 + $0x1e8] sm:$0xf]  ;;  %328 = vst [vmem:[%s4399_s7 + $0xec] sm:$0xf] %v327_v59 }
  0x3e   : > { %330 = vst [vmem:[%s4399_s7 + $0xf0] sm:$0xf] %v329_v60  ;;  %332 = vst [vmem:[%s4399_s7 + $0xf4] sm:$0xf] %v331_v61  ;;  %v333_v62 = vld [vmem:[%s4392_s6 + $0x1f0] sm:$0xf] }
  0x3f   : > { %v335_v63 = vld [vmem:[%s4392_s6 + $0x1f8] sm:$0xf]  ;;  %v337_v0 = vld [vmem:[%s4392_s6 + $0x200] sm:$0xf]  ;;  %334 = vst [vmem:[%s4399_s7 + $0xf8] sm:$0xf] %v333_v62 }
  0x40   : > { %336 = vst [vmem:[%s4399_s7 + $0xfc] sm:$0xf] %v335_v63  ;;  %338 = vst [vmem:[%s4399_s7 + $0x100] sm:$0xf] %v337_v0  ;;  %v339_v1 = vld [vmem:[%s4392_s6 + $0x208] sm:$0xf] }
  0x41   : > { %v341_v2 = vld [vmem:[%s4392_s6 + $0x210] sm:$0xf]  ;;  %v343_v3 = vld [vmem:[%s4392_s6 + $0x218] sm:$0xf]  ;;  %340 = vst [vmem:[%s4399_s7 + $0x104] sm:$0xf] %v339_v1 }
  0x42   : > { %342 = vst [vmem:[%s4399_s7 + $0x108] sm:$0xf] %v341_v2  ;;  %344 = vst [vmem:[%s4399_s7 + $0x10c] sm:$0xf] %v343_v3  ;;  %v345_v4 = vld [vmem:[%s4392_s6 + $0x220] sm:$0xf] }
  0x43   : > { %v347_v5 = vld [vmem:[%s4392_s6 + $0x228] sm:$0xf]  ;;  %v349_v6 = vld [vmem:[%s4392_s6 + $0x230] sm:$0xf]  ;;  %346 = vst [vmem:[%s4399_s7 + $0x110] sm:$0xf] %v345_v4 }
  0x44   : > { %348 = vst [vmem:[%s4399_s7 + $0x114] sm:$0xf] %v347_v5  ;;  %350 = vst [vmem:[%s4399_s7 + $0x118] sm:$0xf] %v349_v6  ;;  %v351_v7 = vld [vmem:[%s4392_s6 + $0x238] sm:$0xf] }
  0x45   : > { %v353_v8 = vld [vmem:[%s4392_s6 + $0x240] sm:$0xf]  ;;  %v355_v9 = vld [vmem:[%s4392_s6 + $0x248] sm:$0xf]  ;;  %352 = vst [vmem:[%s4399_s7 + $0x11c] sm:$0xf] %v351_v7 }
  0x46   : > { %354 = vst [vmem:[%s4399_s7 + $0x120] sm:$0xf] %v353_v8  ;;  %356 = vst [vmem:[%s4399_s7 + $0x124] sm:$0xf] %v355_v9  ;;  %v357_v10 = vld [vmem:[%s4392_s6 + $0x250] sm:$0xf] }
  0x47   : > { %v359_v11 = vld [vmem:[%s4392_s6 + $0x258] sm:$0xf]  ;;  %v361_v12 = vld [vmem:[%s4392_s6 + $0x260] sm:$0xf]  ;;  %358 = vst [vmem:[%s4399_s7 + $0x128] sm:$0xf] %v357_v10 }
  0x48   : > { %360 = vst [vmem:[%s4399_s7 + $0x12c] sm:$0xf] %v359_v11  ;;  %362 = vst [vmem:[%s4399_s7 + $0x130] sm:$0xf] %v361_v12  ;;  %v363_v13 = vld [vmem:[%s4392_s6 + $0x268] sm:$0xf] }
  0x49   : > { %v365_v14 = vld [vmem:[%s4392_s6 + $0x270] sm:$0xf]  ;;  %v367_v15 = vld [vmem:[%s4392_s6 + $0x278] sm:$0xf]  ;;  %364 = vst [vmem:[%s4399_s7 + $0x134] sm:$0xf] %v363_v13 }
  0x4a   : > { %366 = vst [vmem:[%s4399_s7 + $0x138] sm:$0xf] %v365_v14  ;;  %368 = vst [vmem:[%s4399_s7 + $0x13c] sm:$0xf] %v367_v15  ;;  %v369_v16 = vld [vmem:[%s4392_s6 + $0x280] sm:$0xf] }
  0x4b   : > { %v371_v17 = vld [vmem:[%s4392_s6 + $0x288] sm:$0xf]  ;;  %v373_v18 = vld [vmem:[%s4392_s6 + $0x290] sm:$0xf]  ;;  %370 = vst [vmem:[%s4399_s7 + $0x140] sm:$0xf] %v369_v16 }
  0x4c   : > { %372 = vst [vmem:[%s4399_s7 + $0x144] sm:$0xf] %v371_v17  ;;  %374 = vst [vmem:[%s4399_s7 + $0x148] sm:$0xf] %v373_v18  ;;  %v375_v19 = vld [vmem:[%s4392_s6 + $0x298] sm:$0xf] }
  0x4d   : > { %v377_v20 = vld [vmem:[%s4392_s6 + $0x2a0] sm:$0xf]  ;;  %v379_v21 = vld [vmem:[%s4392_s6 + $0x2a8] sm:$0xf]  ;;  %376 = vst [vmem:[%s4399_s7 + $0x14c] sm:$0xf] %v375_v19 }
  0x4e   : > { %378 = vst [vmem:[%s4399_s7 + $0x150] sm:$0xf] %v377_v20  ;;  %380 = vst [vmem:[%s4399_s7 + $0x154] sm:$0xf] %v379_v21  ;;  %v381_v22 = vld [vmem:[%s4392_s6 + $0x2b0] sm:$0xf] }
  0x4f   : > { %v383_v23 = vld [vmem:[%s4392_s6 + $0x2b8] sm:$0xf]  ;;  %v385_v24 = vld [vmem:[%s4392_s6 + $0x2c0] sm:$0xf]  ;;  %382 = vst [vmem:[%s4399_s7 + $0x158] sm:$0xf] %v381_v22 }
  0x50   : > { %384 = vst [vmem:[%s4399_s7 + $0x15c] sm:$0xf] %v383_v23  ;;  %386 = vst [vmem:[%s4399_s7 + $0x160] sm:$0xf] %v385_v24  ;;  %v387_v25 = vld [vmem:[%s4392_s6 + $0x2c8] sm:$0xf] }
  0x51   : > { %v389_v26 = vld [vmem:[%s4392_s6 + $0x2d0] sm:$0xf]  ;;  %v391_v27 = vld [vmem:[%s4392_s6 + $0x2d8] sm:$0xf]  ;;  %388 = vst [vmem:[%s4399_s7 + $0x164] sm:$0xf] %v387_v25 }
  0x52   : > { %390 = vst [vmem:[%s4399_s7 + $0x168] sm:$0xf] %v389_v26  ;;  %392 = vst [vmem:[%s4399_s7 + $0x16c] sm:$0xf] %v391_v27  ;;  %v393_v28 = vld [vmem:[%s4392_s6 + $0x2e0] sm:$0xf] }
  0x53   : > { %v395_v29 = vld [vmem:[%s4392_s6 + $0x2e8] sm:$0xf]  ;;  %v397_v30 = vld [vmem:[%s4392_s6 + $0x2f0] sm:$0xf]  ;;  %394 = vst [vmem:[%s4399_s7 + $0x170] sm:$0xf] %v393_v28 }
  0x54   : > { %396 = vst [vmem:[%s4399_s7 + $0x174] sm:$0xf] %v395_v29  ;;  %398 = vst [vmem:[%s4399_s7 + $0x178] sm:$0xf] %v397_v30  ;;  %v399_v31 = vld [vmem:[%s4392_s6 + $0x2f8] sm:$0xf] }
  0x55   : > { %v401_v32 = vld [vmem:[%s4392_s6 + $0x300] sm:$0xf]  ;;  %v403_v33 = vld [vmem:[%s4392_s6 + $0x308] sm:$0xf]  ;;  %400 = vst [vmem:[%s4399_s7 + $0x17c] sm:$0xf] %v399_v31 }
  0x56   : > { %402 = vst [vmem:[%s4399_s7 + $0x180] sm:$0xf] %v401_v32  ;;  %404 = vst [vmem:[%s4399_s7 + $0x184] sm:$0xf] %v403_v33  ;;  %v405_v34 = vld [vmem:[%s4392_s6 + $0x310] sm:$0xf] }
  0x57   : > { %v407_v35 = vld [vmem:[%s4392_s6 + $0x318] sm:$0xf]  ;;  %v409_v36 = vld [vmem:[%s4392_s6 + $0x320] sm:$0xf]  ;;  %406 = vst [vmem:[%s4399_s7 + $0x188] sm:$0xf] %v405_v34 }
  0x58   : > { %408 = vst [vmem:[%s4399_s7 + $0x18c] sm:$0xf] %v407_v35  ;;  %410 = vst [vmem:[%s4399_s7 + $0x190] sm:$0xf] %v409_v36  ;;  %v411_v37 = vld [vmem:[%s4392_s6 + $0x328] sm:$0xf] }
  0x59   : > { %v413_v38 = vld [vmem:[%s4392_s6 + $0x330] sm:$0xf]  ;;  %v415_v39 = vld [vmem:[%s4392_s6 + $0x338] sm:$0xf]  ;;  %412 = vst [vmem:[%s4399_s7 + $0x194] sm:$0xf] %v411_v37 }
  0x5a   : > { %414 = vst [vmem:[%s4399_s7 + $0x198] sm:$0xf] %v413_v38  ;;  %416 = vst [vmem:[%s4399_s7 + $0x19c] sm:$0xf] %v415_v39  ;;  %v417_v40 = vld [vmem:[%s4392_s6 + $0x340] sm:$0xf] }
  0x5b   : > { %v419_v41 = vld [vmem:[%s4392_s6 + $0x348] sm:$0xf]  ;;  %v421_v42 = vld [vmem:[%s4392_s6 + $0x350] sm:$0xf]  ;;  %418 = vst [vmem:[%s4399_s7 + $0x1a0] sm:$0xf] %v417_v40 }
  0x5c   : > { %420 = vst [vmem:[%s4399_s7 + $0x1a4] sm:$0xf] %v419_v41  ;;  %422 = vst [vmem:[%s4399_s7 + $0x1a8] sm:$0xf] %v421_v42  ;;  %v423_v43 = vld [vmem:[%s4392_s6 + $0x358] sm:$0xf] }
  0x5d   : > { %v425_v44 = vld [vmem:[%s4392_s6 + $0x360] sm:$0xf]  ;;  %v427_v45 = vld [vmem:[%s4392_s6 + $0x368] sm:$0xf]  ;;  %424 = vst [vmem:[%s4399_s7 + $0x1ac] sm:$0xf] %v423_v43 }
  0x5e   : > { %426 = vst [vmem:[%s4399_s7 + $0x1b0] sm:$0xf] %v425_v44  ;;  %428 = vst [vmem:[%s4399_s7 + $0x1b4] sm:$0xf] %v427_v45  ;;  %v429_v46 = vld [vmem:[%s4392_s6 + $0x370] sm:$0xf] }
  0x5f   : > { %v431_v47 = vld [vmem:[%s4392_s6 + $0x378] sm:$0xf]  ;;  %v433_v48 = vld [vmem:[%s4392_s6 + $0x380] sm:$0xf]  ;;  %430 = vst [vmem:[%s4399_s7 + $0x1b8] sm:$0xf] %v429_v46 }
  0x60   : > { %432 = vst [vmem:[%s4399_s7 + $0x1bc] sm:$0xf] %v431_v47  ;;  %434 = vst [vmem:[%s4399_s7 + $0x1c0] sm:$0xf] %v433_v48  ;;  %v435_v49 = vld [vmem:[%s4392_s6 + $0x388] sm:$0xf] }
  0x61   : > { %v437_v50 = vld [vmem:[%s4392_s6 + $0x390] sm:$0xf]  ;;  %v439_v51 = vld [vmem:[%s4392_s6 + $0x398] sm:$0xf]  ;;  %436 = vst [vmem:[%s4399_s7 + $0x1c4] sm:$0xf] %v435_v49 }
  0x62   : > { %438 = vst [vmem:[%s4399_s7 + $0x1c8] sm:$0xf] %v437_v50  ;;  %440 = vst [vmem:[%s4399_s7 + $0x1cc] sm:$0xf] %v439_v51  ;;  %v441_v52 = vld [vmem:[%s4392_s6 + $0x3a0] sm:$0xf] }
  0x63   : > { %v443_v53 = vld [vmem:[%s4392_s6 + $0x3a8] sm:$0xf]  ;;  %v445_v54 = vld [vmem:[%s4392_s6 + $0x3b0] sm:$0xf]  ;;  %442 = vst [vmem:[%s4399_s7 + $0x1d0] sm:$0xf] %v441_v52 }
  0x64   : > { %444 = vst [vmem:[%s4399_s7 + $0x1d4] sm:$0xf] %v443_v53  ;;  %446 = vst [vmem:[%s4399_s7 + $0x1d8] sm:$0xf] %v445_v54  ;;  %v447_v55 = vld [vmem:[%s4392_s6 + $0x3b8] sm:$0xf] }
  0x65   : > { %v449_v56 = vld [vmem:[%s4392_s6 + $0x3c0] sm:$0xf]  ;;  %v451_v57 = vld [vmem:[%s4392_s6 + $0x3c8] sm:$0xf]  ;;  %448 = vst [vmem:[%s4399_s7 + $0x1dc] sm:$0xf] %v447_v55 }
  0x66   : > { %450 = vst [vmem:[%s4399_s7 + $0x1e0] sm:$0xf] %v449_v56  ;;  %452 = vst [vmem:[%s4399_s7 + $0x1e4] sm:$0xf] %v451_v57  ;;  %v453_v58 = vld [vmem:[%s4392_s6 + $0x3d0] sm:$0xf] }
  0x67   : > { %v455_v59 = vld [vmem:[%s4392_s6 + $0x3d8] sm:$0xf]  ;;  %v457_v60 = vld [vmem:[%s4392_s6 + $0x3e0] sm:$0xf]  ;;  %454 = vst [vmem:[%s4399_s7 + $0x1e8] sm:$0xf] %v453_v58 }
  0x68   : > { %456 = vst [vmem:[%s4399_s7 + $0x1ec] sm:$0xf] %v455_v59  ;;  %458 = vst [vmem:[%s4399_s7 + $0x1f0] sm:$0xf] %v457_v60  ;;  %v459_v61 = vld [vmem:[%s4392_s6 + $0x3e8] sm:$0xf] }
  0x69   : > { %v461_v62 = vld [vmem:[%s4392_s6 + $0x3f0] sm:$0xf]  ;;  %v463_v63 = vld [vmem:[%s4392_s6 + $0x3f8] sm:$0xf]  ;;  %460 = vst [vmem:[%s4399_s7 + $0x1f4] sm:$0xf] %v459_v61 }
  0x6a   : > { %462 = vst [vmem:[%s4399_s7 + $0x1f8] sm:$0xf] %v461_v62  ;;  %464 = vst [vmem:[%s4399_s7 + $0x1fc] sm:$0xf] %v463_v63  ;;  %v465_v0 = vld [vmem:[%s4392_s6 + $0x400] sm:$0xf] }
  0x6b   : > { %v467_v1 = vld [vmem:[%s4392_s6 + $0x408] sm:$0xf]  ;;  %v469_v2 = vld [vmem:[%s4392_s6 + $0x410] sm:$0xf]  ;;  %466 = vst [vmem:[%s4399_s7 + $0x200] sm:$0xf] %v465_v0 }
  0x6c   : > { %468 = vst [vmem:[%s4399_s7 + $0x204] sm:$0xf] %v467_v1  ;;  %470 = vst [vmem:[%s4399_s7 + $0x208] sm:$0xf] %v469_v2  ;;  %v471_v3 = vld [vmem:[%s4392_s6 + $0x418] sm:$0xf] }
  0x6d   : > { %v473_v4 = vld [vmem:[%s4392_s6 + $0x420] sm:$0xf]  ;;  %v475_v5 = vld [vmem:[%s4392_s6 + $0x428] sm:$0xf]  ;;  %472 = vst [vmem:[%s4399_s7 + $0x20c] sm:$0xf] %v471_v3 }
  0x6e   : > { %474 = vst [vmem:[%s4399_s7 + $0x210] sm:$0xf] %v473_v4  ;;  %476 = vst [vmem:[%s4399_s7 + $0x214] sm:$0xf] %v475_v5  ;;  %v477_v6 = vld [vmem:[%s4392_s6 + $0x430] sm:$0xf] }
  0x6f   : > { %v479_v7 = vld [vmem:[%s4392_s6 + $0x438] sm:$0xf]  ;;  %v481_v8 = vld [vmem:[%s4392_s6 + $0x440] sm:$0xf]  ;;  %478 = vst [vmem:[%s4399_s7 + $0x218] sm:$0xf] %v477_v6 }
  0x70   : > { %480 = vst [vmem:[%s4399_s7 + $0x21c] sm:$0xf] %v479_v7  ;;  %482 = vst [vmem:[%s4399_s7 + $0x220] sm:$0xf] %v481_v8  ;;  %v483_v9 = vld [vmem:[%s4392_s6 + $0x448] sm:$0xf] }
  0x71   : > { %v485_v10 = vld [vmem:[%s4392_s6 + $0x450] sm:$0xf]  ;;  %v487_v11 = vld [vmem:[%s4392_s6 + $0x458] sm:$0xf]  ;;  %484 = vst [vmem:[%s4399_s7 + $0x224] sm:$0xf] %v483_v9 }
  0x72   : > { %486 = vst [vmem:[%s4399_s7 + $0x228] sm:$0xf] %v485_v10  ;;  %488 = vst [vmem:[%s4399_s7 + $0x22c] sm:$0xf] %v487_v11  ;;  %v489_v12 = vld [vmem:[%s4392_s6 + $0x460] sm:$0xf] }
  0x73   : > { %v491_v13 = vld [vmem:[%s4392_s6 + $0x468] sm:$0xf]  ;;  %v493_v14 = vld [vmem:[%s4392_s6 + $0x470] sm:$0xf]  ;;  %490 = vst [vmem:[%s4399_s7 + $0x230] sm:$0xf] %v489_v12 }
  0x74   : > { %492 = vst [vmem:[%s4399_s7 + $0x234] sm:$0xf] %v491_v13  ;;  %494 = vst [vmem:[%s4399_s7 + $0x238] sm:$0xf] %v493_v14  ;;  %v495_v15 = vld [vmem:[%s4392_s6 + $0x478] sm:$0xf] }
  0x75   : > { %v497_v16 = vld [vmem:[%s4392_s6 + $0x480] sm:$0xf]  ;;  %v499_v17 = vld [vmem:[%s4392_s6 + $0x488] sm:$0xf]  ;;  %496 = vst [vmem:[%s4399_s7 + $0x23c] sm:$0xf] %v495_v15 }
  0x76   : > { %498 = vst [vmem:[%s4399_s7 + $0x240] sm:$0xf] %v497_v16  ;;  %500 = vst [vmem:[%s4399_s7 + $0x244] sm:$0xf] %v499_v17  ;;  %v501_v18 = vld [vmem:[%s4392_s6 + $0x490] sm:$0xf] }
  0x77   : > { %v503_v19 = vld [vmem:[%s4392_s6 + $0x498] sm:$0xf]  ;;  %v505_v20 = vld [vmem:[%s4392_s6 + $0x4a0] sm:$0xf]  ;;  %502 = vst [vmem:[%s4399_s7 + $0x248] sm:$0xf] %v501_v18 }
  0x78   : > { %504 = vst [vmem:[%s4399_s7 + $0x24c] sm:$0xf] %v503_v19  ;;  %506 = vst [vmem:[%s4399_s7 + $0x250] sm:$0xf] %v505_v20  ;;  %v507_v21 = vld [vmem:[%s4392_s6 + $0x4a8] sm:$0xf] }
  0x79   : > { %v509_v22 = vld [vmem:[%s4392_s6 + $0x4b0] sm:$0xf]  ;;  %v511_v23 = vld [vmem:[%s4392_s6 + $0x4b8] sm:$0xf]  ;;  %508 = vst [vmem:[%s4399_s7 + $0x254] sm:$0xf] %v507_v21 }
  0x7a   : > { %510 = vst [vmem:[%s4399_s7 + $0x258] sm:$0xf] %v509_v22  ;;  %512 = vst [vmem:[%s4399_s7 + $0x25c] sm:$0xf] %v511_v23  ;;  %v513_v24 = vld [vmem:[%s4392_s6 + $0x4c0] sm:$0xf] }
  0x7b   : > { %v515_v25 = vld [vmem:[%s4392_s6 + $0x4c8] sm:$0xf]  ;;  %v517_v26 = vld [vmem:[%s4392_s6 + $0x4d0] sm:$0xf]  ;;  %514 = vst [vmem:[%s4399_s7 + $0x260] sm:$0xf] %v513_v24 }
  0x7c   : > { %516 = vst [vmem:[%s4399_s7 + $0x264] sm:$0xf] %v515_v25  ;;  %518 = vst [vmem:[%s4399_s7 + $0x268] sm:$0xf] %v517_v26  ;;  %v519_v27 = vld [vmem:[%s4392_s6 + $0x4d8] sm:$0xf] }
  0x7d   : > { %v521_v28 = vld [vmem:[%s4392_s6 + $0x4e0] sm:$0xf]  ;;  %v523_v29 = vld [vmem:[%s4392_s6 + $0x4e8] sm:$0xf]  ;;  %520 = vst [vmem:[%s4399_s7 + $0x26c] sm:$0xf] %v519_v27 }
  0x7e   : > { %522 = vst [vmem:[%s4399_s7 + $0x270] sm:$0xf] %v521_v28  ;;  %524 = vst [vmem:[%s4399_s7 + $0x274] sm:$0xf] %v523_v29  ;;  %v525_v30 = vld [vmem:[%s4392_s6 + $0x4f0] sm:$0xf] }
  0x7f   : > { %v527_v31 = vld [vmem:[%s4392_s6 + $0x4f8] sm:$0xf]  ;;  %v529_v32 = vld [vmem:[%s4392_s6 + $0x500] sm:$0xf]  ;;  %526 = vst [vmem:[%s4399_s7 + $0x278] sm:$0xf] %v525_v30 }
  0x80   : > { %528 = vst [vmem:[%s4399_s7 + $0x27c] sm:$0xf] %v527_v31  ;;  %530 = vst [vmem:[%s4399_s7 + $0x280] sm:$0xf] %v529_v32  ;;  %v531_v33 = vld [vmem:[%s4392_s6 + $0x508] sm:$0xf] }
  0x81   : > { %v533_v34 = vld [vmem:[%s4392_s6 + $0x510] sm:$0xf]  ;;  %v535_v35 = vld [vmem:[%s4392_s6 + $0x518] sm:$0xf]  ;;  %532 = vst [vmem:[%s4399_s7 + $0x284] sm:$0xf] %v531_v33 }
  0x82   : > { %534 = vst [vmem:[%s4399_s7 + $0x288] sm:$0xf] %v533_v34  ;;  %536 = vst [vmem:[%s4399_s7 + $0x28c] sm:$0xf] %v535_v35  ;;  %v537_v36 = vld [vmem:[%s4392_s6 + $0x520] sm:$0xf] }
  0x83   : > { %v539_v37 = vld [vmem:[%s4392_s6 + $0x528] sm:$0xf]  ;;  %v541_v38 = vld [vmem:[%s4392_s6 + $0x530] sm:$0xf]  ;;  %538 = vst [vmem:[%s4399_s7 + $0x290] sm:$0xf] %v537_v36 }
  0x84   : > { %540 = vst [vmem:[%s4399_s7 + $0x294] sm:$0xf] %v539_v37  ;;  %542 = vst [vmem:[%s4399_s7 + $0x298] sm:$0xf] %v541_v38  ;;  %v543_v39 = vld [vmem:[%s4392_s6 + $0x538] sm:$0xf] }
  0x85   : > { %v545_v40 = vld [vmem:[%s4392_s6 + $0x540] sm:$0xf]  ;;  %v547_v41 = vld [vmem:[%s4392_s6 + $0x548] sm:$0xf]  ;;  %544 = vst [vmem:[%s4399_s7 + $0x29c] sm:$0xf] %v543_v39 }
  0x86   : > { %546 = vst [vmem:[%s4399_s7 + $0x2a0] sm:$0xf] %v545_v40  ;;  %548 = vst [vmem:[%s4399_s7 + $0x2a4] sm:$0xf] %v547_v41  ;;  %v549_v42 = vld [vmem:[%s4392_s6 + $0x550] sm:$0xf] }
  0x87   : > { %v551_v43 = vld [vmem:[%s4392_s6 + $0x558] sm:$0xf]  ;;  %v553_v44 = vld [vmem:[%s4392_s6 + $0x560] sm:$0xf]  ;;  %550 = vst [vmem:[%s4399_s7 + $0x2a8] sm:$0xf] %v549_v42 }
  0x88   : > { %552 = vst [vmem:[%s4399_s7 + $0x2ac] sm:$0xf] %v551_v43  ;;  %554 = vst [vmem:[%s4399_s7 + $0x2b0] sm:$0xf] %v553_v44  ;;  %v555_v45 = vld [vmem:[%s4392_s6 + $0x568] sm:$0xf] }
  0x89   : > { %v557_v46 = vld [vmem:[%s4392_s6 + $0x570] sm:$0xf]  ;;  %v559_v47 = vld [vmem:[%s4392_s6 + $0x578] sm:$0xf]  ;;  %556 = vst [vmem:[%s4399_s7 + $0x2b4] sm:$0xf] %v555_v45 }
  0x8a   : > { %558 = vst [vmem:[%s4399_s7 + $0x2b8] sm:$0xf] %v557_v46  ;;  %560 = vst [vmem:[%s4399_s7 + $0x2bc] sm:$0xf] %v559_v47  ;;  %v561_v48 = vld [vmem:[%s4392_s6 + $0x580] sm:$0xf] }
  0x8b   : > { %v563_v49 = vld [vmem:[%s4392_s6 + $0x588] sm:$0xf]  ;;  %v565_v50 = vld [vmem:[%s4392_s6 + $0x590] sm:$0xf]  ;;  %562 = vst [vmem:[%s4399_s7 + $0x2c0] sm:$0xf] %v561_v48 }
  0x8c   : > { %564 = vst [vmem:[%s4399_s7 + $0x2c4] sm:$0xf] %v563_v49  ;;  %566 = vst [vmem:[%s4399_s7 + $0x2c8] sm:$0xf] %v565_v50  ;;  %v567_v51 = vld [vmem:[%s4392_s6 + $0x598] sm:$0xf] }
  0x8d   : > { %v569_v52 = vld [vmem:[%s4392_s6 + $0x5a0] sm:$0xf]  ;;  %v571_v53 = vld [vmem:[%s4392_s6 + $0x5a8] sm:$0xf]  ;;  %568 = vst [vmem:[%s4399_s7 + $0x2cc] sm:$0xf] %v567_v51 }
  0x8e   : > { %570 = vst [vmem:[%s4399_s7 + $0x2d0] sm:$0xf] %v569_v52  ;;  %572 = vst [vmem:[%s4399_s7 + $0x2d4] sm:$0xf] %v571_v53  ;;  %v573_v54 = vld [vmem:[%s4392_s6 + $0x5b0] sm:$0xf] }
  0x8f   : > { %v575_v55 = vld [vmem:[%s4392_s6 + $0x5b8] sm:$0xf]  ;;  %v577_v56 = vld [vmem:[%s4392_s6 + $0x5c0] sm:$0xf]  ;;  %574 = vst [vmem:[%s4399_s7 + $0x2d8] sm:$0xf] %v573_v54 }
  0x90   : > { %576 = vst [vmem:[%s4399_s7 + $0x2dc] sm:$0xf] %v575_v55  ;;  %578 = vst [vmem:[%s4399_s7 + $0x2e0] sm:$0xf] %v577_v56  ;;  %v579_v57 = vld [vmem:[%s4392_s6 + $0x5c8] sm:$0xf] }
  0x91   : > { %v581_v58 = vld [vmem:[%s4392_s6 + $0x5d0] sm:$0xf]  ;;  %v583_v59 = vld [vmem:[%s4392_s6 + $0x5d8] sm:$0xf]  ;;  %580 = vst [vmem:[%s4399_s7 + $0x2e4] sm:$0xf] %v579_v57 }
  0x92   : > { %582 = vst [vmem:[%s4399_s7 + $0x2e8] sm:$0xf] %v581_v58  ;;  %584 = vst [vmem:[%s4399_s7 + $0x2ec] sm:$0xf] %v583_v59  ;;  %v585_v60 = vld [vmem:[%s4392_s6 + $0x5e0] sm:$0xf] }
  0x93   : > { %v587_v61 = vld [vmem:[%s4392_s6 + $0x5e8] sm:$0xf]  ;;  %v589_v62 = vld [vmem:[%s4392_s6 + $0x5f0] sm:$0xf]  ;;  %586 = vst [vmem:[%s4399_s7 + $0x2f0] sm:$0xf] %v585_v60 }
  0x94   : > { %588 = vst [vmem:[%s4399_s7 + $0x2f4] sm:$0xf] %v587_v61  ;;  %590 = vst [vmem:[%s4399_s7 + $0x2f8] sm:$0xf] %v589_v62  ;;  %v591_v63 = vld [vmem:[%s4392_s6 + $0x5f8] sm:$0xf] }
  0x95   : > { %v593_v0 = vld [vmem:[%s4392_s6 + $0x600] sm:$0xf]  ;;  %v595_v1 = vld [vmem:[%s4392_s6 + $0x608] sm:$0xf]  ;;  %592 = vst [vmem:[%s4399_s7 + $0x2fc] sm:$0xf] %v591_v63 }
  0x96   : > { %594 = vst [vmem:[%s4399_s7 + $0x300] sm:$0xf] %v593_v0  ;;  %596 = vst [vmem:[%s4399_s7 + $0x304] sm:$0xf] %v595_v1  ;;  %v597_v2 = vld [vmem:[%s4392_s6 + $0x610] sm:$0xf] }
  0x97   : > { %v599_v3 = vld [vmem:[%s4392_s6 + $0x618] sm:$0xf]  ;;  %v601_v4 = vld [vmem:[%s4392_s6 + $0x620] sm:$0xf]  ;;  %598 = vst [vmem:[%s4399_s7 + $0x308] sm:$0xf] %v597_v2 }
  0x98   : > { %600 = vst [vmem:[%s4399_s7 + $0x30c] sm:$0xf] %v599_v3  ;;  %602 = vst [vmem:[%s4399_s7 + $0x310] sm:$0xf] %v601_v4  ;;  %v603_v5 = vld [vmem:[%s4392_s6 + $0x628] sm:$0xf] }
  0x99   : > { %v605_v6 = vld [vmem:[%s4392_s6 + $0x630] sm:$0xf]  ;;  %v607_v7 = vld [vmem:[%s4392_s6 + $0x638] sm:$0xf]  ;;  %604 = vst [vmem:[%s4399_s7 + $0x314] sm:$0xf] %v603_v5 }
  0x9a   : > { %606 = vst [vmem:[%s4399_s7 + $0x318] sm:$0xf] %v605_v6  ;;  %608 = vst [vmem:[%s4399_s7 + $0x31c] sm:$0xf] %v607_v7  ;;  %v609_v8 = vld [vmem:[%s4392_s6 + $0x640] sm:$0xf] }
  0x9b   : > { %v611_v9 = vld [vmem:[%s4392_s6 + $0x648] sm:$0xf]  ;;  %v613_v10 = vld [vmem:[%s4392_s6 + $0x650] sm:$0xf]  ;;  %610 = vst [vmem:[%s4399_s7 + $0x320] sm:$0xf] %v609_v8 }
  0x9c   : > { %612 = vst [vmem:[%s4399_s7 + $0x324] sm:$0xf] %v611_v9  ;;  %614 = vst [vmem:[%s4399_s7 + $0x328] sm:$0xf] %v613_v10  ;;  %v615_v11 = vld [vmem:[%s4392_s6 + $0x658] sm:$0xf] }
  0x9d   : > { %v617_v12 = vld [vmem:[%s4392_s6 + $0x660] sm:$0xf]  ;;  %v619_v13 = vld [vmem:[%s4392_s6 + $0x668] sm:$0xf]  ;;  %616 = vst [vmem:[%s4399_s7 + $0x32c] sm:$0xf] %v615_v11 }
  0x9e   : > { %618 = vst [vmem:[%s4399_s7 + $0x330] sm:$0xf] %v617_v12  ;;  %620 = vst [vmem:[%s4399_s7 + $0x334] sm:$0xf] %v619_v13  ;;  %v621_v14 = vld [vmem:[%s4392_s6 + $0x670] sm:$0xf] }
  0x9f   : > { %v623_v15 = vld [vmem:[%s4392_s6 + $0x678] sm:$0xf]  ;;  %v625_v16 = vld [vmem:[%s4392_s6 + $0x680] sm:$0xf]  ;;  %622 = vst [vmem:[%s4399_s7 + $0x338] sm:$0xf] %v621_v14 }
  0xa0   : > { %624 = vst [vmem:[%s4399_s7 + $0x33c] sm:$0xf] %v623_v15  ;;  %626 = vst [vmem:[%s4399_s7 + $0x340] sm:$0xf] %v625_v16  ;;  %v627_v17 = vld [vmem:[%s4392_s6 + $0x688] sm:$0xf] }
  0xa1   : > { %v629_v18 = vld [vmem:[%s4392_s6 + $0x690] sm:$0xf]  ;;  %v631_v19 = vld [vmem:[%s4392_s6 + $0x698] sm:$0xf]  ;;  %628 = vst [vmem:[%s4399_s7 + $0x344] sm:$0xf] %v627_v17 }
  0xa2   : > { %630 = vst [vmem:[%s4399_s7 + $0x348] sm:$0xf] %v629_v18  ;;  %632 = vst [vmem:[%s4399_s7 + $0x34c] sm:$0xf] %v631_v19  ;;  %v633_v20 = vld [vmem:[%s4392_s6 + $0x6a0] sm:$0xf] }
  0xa3   : > { %v635_v21 = vld [vmem:[%s4392_s6 + $0x6a8] sm:$0xf]  ;;  %v637_v22 = vld [vmem:[%s4392_s6 + $0x6b0] sm:$0xf]  ;;  %634 = vst [vmem:[%s4399_s7 + $0x350] sm:$0xf] %v633_v20 }
  0xa4   : > { %636 = vst [vmem:[%s4399_s7 + $0x354] sm:$0xf] %v635_v21  ;;  %638 = vst [vmem:[%s4399_s7 + $0x358] sm:$0xf] %v637_v22  ;;  %v639_v23 = vld [vmem:[%s4392_s6 + $0x6b8] sm:$0xf] }
  0xa5   : > { %v641_v24 = vld [vmem:[%s4392_s6 + $0x6c0] sm:$0xf]  ;;  %v643_v25 = vld [vmem:[%s4392_s6 + $0x6c8] sm:$0xf]  ;;  %640 = vst [vmem:[%s4399_s7 + $0x35c] sm:$0xf] %v639_v23 }
  0xa6   : > { %642 = vst [vmem:[%s4399_s7 + $0x360] sm:$0xf] %v641_v24  ;;  %644 = vst [vmem:[%s4399_s7 + $0x364] sm:$0xf] %v643_v25  ;;  %v645_v26 = vld [vmem:[%s4392_s6 + $0x6d0] sm:$0xf] }
  0xa7   : > { %v647_v27 = vld [vmem:[%s4392_s6 + $0x6d8] sm:$0xf]  ;;  %v649_v28 = vld [vmem:[%s4392_s6 + $0x6e0] sm:$0xf]  ;;  %646 = vst [vmem:[%s4399_s7 + $0x368] sm:$0xf] %v645_v26 }
  0xa8   : > { %648 = vst [vmem:[%s4399_s7 + $0x36c] sm:$0xf] %v647_v27  ;;  %650 = vst [vmem:[%s4399_s7 + $0x370] sm:$0xf] %v649_v28  ;;  %v651_v29 = vld [vmem:[%s4392_s6 + $0x6e8] sm:$0xf] }
  0xa9   : > { %v653_v30 = vld [vmem:[%s4392_s6 + $0x6f0] sm:$0xf]  ;;  %v655_v31 = vld [vmem:[%s4392_s6 + $0x6f8] sm:$0xf]  ;;  %652 = vst [vmem:[%s4399_s7 + $0x374] sm:$0xf] %v651_v29 }
  0xaa   : > { %654 = vst [vmem:[%s4399_s7 + $0x378] sm:$0xf] %v653_v30  ;;  %656 = vst [vmem:[%s4399_s7 + $0x37c] sm:$0xf] %v655_v31  ;;  %v657_v32 = vld [vmem:[%s4392_s6 + $0x700] sm:$0xf] }
  0xab   : > { %v659_v33 = vld [vmem:[%s4392_s6 + $0x708] sm:$0xf]  ;;  %v661_v34 = vld [vmem:[%s4392_s6 + $0x710] sm:$0xf]  ;;  %658 = vst [vmem:[%s4399_s7 + $0x380] sm:$0xf] %v657_v32 }
  0xac   : > { %660 = vst [vmem:[%s4399_s7 + $0x384] sm:$0xf] %v659_v33  ;;  %662 = vst [vmem:[%s4399_s7 + $0x388] sm:$0xf] %v661_v34  ;;  %v663_v35 = vld [vmem:[%s4392_s6 + $0x718] sm:$0xf] }
  0xad   : > { %v665_v36 = vld [vmem:[%s4392_s6 + $0x720] sm:$0xf]  ;;  %v667_v37 = vld [vmem:[%s4392_s6 + $0x728] sm:$0xf]  ;;  %664 = vst [vmem:[%s4399_s7 + $0x38c] sm:$0xf] %v663_v35 }
  0xae   : > { %666 = vst [vmem:[%s4399_s7 + $0x390] sm:$0xf] %v665_v36  ;;  %668 = vst [vmem:[%s4399_s7 + $0x394] sm:$0xf] %v667_v37  ;;  %v669_v38 = vld [vmem:[%s4392_s6 + $0x730] sm:$0xf] }
  0xaf   : > { %v671_v39 = vld [vmem:[%s4392_s6 + $0x738] sm:$0xf]  ;;  %v673_v40 = vld [vmem:[%s4392_s6 + $0x740] sm:$0xf]  ;;  %670 = vst [vmem:[%s4399_s7 + $0x398] sm:$0xf] %v669_v38 }
  0xb0   : > { %672 = vst [vmem:[%s4399_s7 + $0x39c] sm:$0xf] %v671_v39  ;;  %674 = vst [vmem:[%s4399_s7 + $0x3a0] sm:$0xf] %v673_v40  ;;  %v675_v41 = vld [vmem:[%s4392_s6 + $0x748] sm:$0xf] }
  0xb1   : > { %v677_v42 = vld [vmem:[%s4392_s6 + $0x750] sm:$0xf]  ;;  %v679_v43 = vld [vmem:[%s4392_s6 + $0x758] sm:$0xf]  ;;  %676 = vst [vmem:[%s4399_s7 + $0x3a4] sm:$0xf] %v675_v41 }
  0xb2   : > { %678 = vst [vmem:[%s4399_s7 + $0x3a8] sm:$0xf] %v677_v42  ;;  %680 = vst [vmem:[%s4399_s7 + $0x3ac] sm:$0xf] %v679_v43  ;;  %v681_v44 = vld [vmem:[%s4392_s6 + $0x760] sm:$0xf] }
  0xb3   : > { %v683_v45 = vld [vmem:[%s4392_s6 + $0x768] sm:$0xf]  ;;  %v685_v46 = vld [vmem:[%s4392_s6 + $0x770] sm:$0xf]  ;;  %682 = vst [vmem:[%s4399_s7 + $0x3b0] sm:$0xf] %v681_v44 }
  0xb4   : > { %684 = vst [vmem:[%s4399_s7 + $0x3b4] sm:$0xf] %v683_v45  ;;  %686 = vst [vmem:[%s4399_s7 + $0x3b8] sm:$0xf] %v685_v46  ;;  %v687_v47 = vld [vmem:[%s4392_s6 + $0x778] sm:$0xf] }
  0xb5   : > { %v689_v48 = vld [vmem:[%s4392_s6 + $0x780] sm:$0xf]  ;;  %v691_v49 = vld [vmem:[%s4392_s6 + $0x788] sm:$0xf]  ;;  %688 = vst [vmem:[%s4399_s7 + $0x3bc] sm:$0xf] %v687_v47 }
  0xb6   : > { %690 = vst [vmem:[%s4399_s7 + $0x3c0] sm:$0xf] %v689_v48  ;;  %692 = vst [vmem:[%s4399_s7 + $0x3c4] sm:$0xf] %v691_v49  ;;  %v693_v50 = vld [vmem:[%s4392_s6 + $0x790] sm:$0xf] }
  0xb7   : > { %v695_v51 = vld [vmem:[%s4392_s6 + $0x798] sm:$0xf]  ;;  %v697_v52 = vld [vmem:[%s4392_s6 + $0x7a0] sm:$0xf]  ;;  %694 = vst [vmem:[%s4399_s7 + $0x3c8] sm:$0xf] %v693_v50 }
  0xb8   : > { %696 = vst [vmem:[%s4399_s7 + $0x3cc] sm:$0xf] %v695_v51  ;;  %698 = vst [vmem:[%s4399_s7 + $0x3d0] sm:$0xf] %v697_v52  ;;  %v699_v53 = vld [vmem:[%s4392_s6 + $0x7a8] sm:$0xf] }
  0xb9   : > { %v701_v54 = vld [vmem:[%s4392_s6 + $0x7b0] sm:$0xf]  ;;  %v703_v55 = vld [vmem:[%s4392_s6 + $0x7b8] sm:$0xf]  ;;  %700 = vst [vmem:[%s4399_s7 + $0x3d4] sm:$0xf] %v699_v53 }
  0xba   : > { %702 = vst [vmem:[%s4399_s7 + $0x3d8] sm:$0xf] %v701_v54  ;;  %704 = vst [vmem:[%s4399_s7 + $0x3dc] sm:$0xf] %v703_v55  ;;  %v705_v56 = vld [vmem:[%s4392_s6 + $0x7c0] sm:$0xf] }
  0xbb   : > { %v707_v57 = vld [vmem:[%s4392_s6 + $0x7c8] sm:$0xf]  ;;  %v709_v58 = vld [vmem:[%s4392_s6 + $0x7d0] sm:$0xf]  ;;  %706 = vst [vmem:[%s4399_s7 + $0x3e0] sm:$0xf] %v705_v56 }
  0xbc   : > { %708 = vst [vmem:[%s4399_s7 + $0x3e4] sm:$0xf] %v707_v57  ;;  %710 = vst [vmem:[%s4399_s7 + $0x3e8] sm:$0xf] %v709_v58  ;;  %v711_v59 = vld [vmem:[%s4392_s6 + $0x7d8] sm:$0xf] }
  0xbd   : > { %v713_v60 = vld [vmem:[%s4392_s6 + $0x7e0] sm:$0xf]  ;;  %v715_v61 = vld [vmem:[%s4392_s6 + $0x7e8] sm:$0xf]  ;;  %712 = vst [vmem:[%s4399_s7 + $0x3ec] sm:$0xf] %v711_v59 }
  0xbe   : > { %714 = vst [vmem:[%s4399_s7 + $0x3f0] sm:$0xf] %v713_v60  ;;  %716 = vst [vmem:[%s4399_s7 + $0x3f4] sm:$0xf] %v715_v61  ;;  %v717_v62 = vld [vmem:[%s4392_s6 + $0x7f0] sm:$0xf] }
  0xbf   : > { %v719_v63 = vld [vmem:[%s4392_s6 + $0x7f8] sm:$0xf]  ;;  %v721_v0 = vld [vmem:[%s4392_s6 + $0x800] sm:$0xf]  ;;  %718 = vst [vmem:[%s4399_s7 + $0x3f8] sm:$0xf] %v717_v62 }
  0xc0   : > { %720 = vst [vmem:[%s4399_s7 + $0x3fc] sm:$0xf] %v719_v63  ;;  %722 = vst [vmem:[%s4399_s7 + $0x400] sm:$0xf] %v721_v0  ;;  %v723_v1 = vld [vmem:[%s4392_s6 + $0x808] sm:$0xf] }
  0xc1   : > { %v725_v2 = vld [vmem:[%s4392_s6 + $0x810] sm:$0xf]  ;;  %v727_v3 = vld [vmem:[%s4392_s6 + $0x818] sm:$0xf]  ;;  %724 = vst [vmem:[%s4399_s7 + $0x404] sm:$0xf] %v723_v1 }
  0xc2   : > { %726 = vst [vmem:[%s4399_s7 + $0x408] sm:$0xf] %v725_v2  ;;  %728 = vst [vmem:[%s4399_s7 + $0x40c] sm:$0xf] %v727_v3  ;;  %v729_v4 = vld [vmem:[%s4392_s6 + $0x820] sm:$0xf] }
  0xc3   : > { %v731_v5 = vld [vmem:[%s4392_s6 + $0x828] sm:$0xf]  ;;  %v733_v6 = vld [vmem:[%s4392_s6 + $0x830] sm:$0xf]  ;;  %730 = vst [vmem:[%s4399_s7 + $0x410] sm:$0xf] %v729_v4 }
  0xc4   : > { %732 = vst [vmem:[%s4399_s7 + $0x414] sm:$0xf] %v731_v5  ;;  %734 = vst [vmem:[%s4399_s7 + $0x418] sm:$0xf] %v733_v6  ;;  %v735_v7 = vld [vmem:[%s4392_s6 + $0x838] sm:$0xf] }
  0xc5   : > { %v737_v8 = vld [vmem:[%s4392_s6 + $0x840] sm:$0xf]  ;;  %v739_v9 = vld [vmem:[%s4392_s6 + $0x848] sm:$0xf]  ;;  %736 = vst [vmem:[%s4399_s7 + $0x41c] sm:$0xf] %v735_v7 }
  0xc6   : > { %738 = vst [vmem:[%s4399_s7 + $0x420] sm:$0xf] %v737_v8  ;;  %740 = vst [vmem:[%s4399_s7 + $0x424] sm:$0xf] %v739_v9  ;;  %v741_v10 = vld [vmem:[%s4392_s6 + $0x850] sm:$0xf] }
  0xc7   : > { %v743_v11 = vld [vmem:[%s4392_s6 + $0x858] sm:$0xf]  ;;  %v745_v12 = vld [vmem:[%s4392_s6 + $0x860] sm:$0xf]  ;;  %742 = vst [vmem:[%s4399_s7 + $0x428] sm:$0xf] %v741_v10 }
  0xc8   : > { %744 = vst [vmem:[%s4399_s7 + $0x42c] sm:$0xf] %v743_v11  ;;  %746 = vst [vmem:[%s4399_s7 + $0x430] sm:$0xf] %v745_v12  ;;  %v747_v13 = vld [vmem:[%s4392_s6 + $0x868] sm:$0xf] }
  0xc9   : > { %v749_v14 = vld [vmem:[%s4392_s6 + $0x870] sm:$0xf]  ;;  %v751_v15 = vld [vmem:[%s4392_s6 + $0x878] sm:$0xf]  ;;  %748 = vst [vmem:[%s4399_s7 + $0x434] sm:$0xf] %v747_v13 }
  0xca   : > { %750 = vst [vmem:[%s4399_s7 + $0x438] sm:$0xf] %v749_v14  ;;  %752 = vst [vmem:[%s4399_s7 + $0x43c] sm:$0xf] %v751_v15  ;;  %v753_v16 = vld [vmem:[%s4392_s6 + $0x880] sm:$0xf] }
  0xcb   : > { %v755_v17 = vld [vmem:[%s4392_s6 + $0x888] sm:$0xf]  ;;  %v757_v18 = vld [vmem:[%s4392_s6 + $0x890] sm:$0xf]  ;;  %754 = vst [vmem:[%s4399_s7 + $0x440] sm:$0xf] %v753_v16 }
  0xcc   : > { %756 = vst [vmem:[%s4399_s7 + $0x444] sm:$0xf] %v755_v17  ;;  %758 = vst [vmem:[%s4399_s7 + $0x448] sm:$0xf] %v757_v18  ;;  %v759_v19 = vld [vmem:[%s4392_s6 + $0x898] sm:$0xf] }
  0xcd   : > { %v761_v20 = vld [vmem:[%s4392_s6 + $0x8a0] sm:$0xf]  ;;  %v763_v21 = vld [vmem:[%s4392_s6 + $0x8a8] sm:$0xf]  ;;  %760 = vst [vmem:[%s4399_s7 + $0x44c] sm:$0xf] %v759_v19 }
  0xce   : > { %762 = vst [vmem:[%s4399_s7 + $0x450] sm:$0xf] %v761_v20  ;;  %764 = vst [vmem:[%s4399_s7 + $0x454] sm:$0xf] %v763_v21  ;;  %v765_v22 = vld [vmem:[%s4392_s6 + $0x8b0] sm:$0xf] }
  0xcf   : > { %v767_v23 = vld [vmem:[%s4392_s6 + $0x8b8] sm:$0xf]  ;;  %v769_v24 = vld [vmem:[%s4392_s6 + $0x8c0] sm:$0xf]  ;;  %766 = vst [vmem:[%s4399_s7 + $0x458] sm:$0xf] %v765_v22 }
  0xd0   : > { %768 = vst [vmem:[%s4399_s7 + $0x45c] sm:$0xf] %v767_v23  ;;  %770 = vst [vmem:[%s4399_s7 + $0x460] sm:$0xf] %v769_v24  ;;  %v771_v25 = vld [vmem:[%s4392_s6 + $0x8c8] sm:$0xf] }
  0xd1   : > { %v773_v26 = vld [vmem:[%s4392_s6 + $0x8d0] sm:$0xf]  ;;  %v775_v27 = vld [vmem:[%s4392_s6 + $0x8d8] sm:$0xf]  ;;  %772 = vst [vmem:[%s4399_s7 + $0x464] sm:$0xf] %v771_v25 }
  0xd2   : > { %774 = vst [vmem:[%s4399_s7 + $0x468] sm:$0xf] %v773_v26  ;;  %776 = vst [vmem:[%s4399_s7 + $0x46c] sm:$0xf] %v775_v27  ;;  %v777_v28 = vld [vmem:[%s4392_s6 + $0x8e0] sm:$0xf] }
  0xd3   : > { %v779_v29 = vld [vmem:[%s4392_s6 + $0x8e8] sm:$0xf]  ;;  %v781_v30 = vld [vmem:[%s4392_s6 + $0x8f0] sm:$0xf]  ;;  %778 = vst [vmem:[%s4399_s7 + $0x470] sm:$0xf] %v777_v28 }
  0xd4   : > { %780 = vst [vmem:[%s4399_s7 + $0x474] sm:$0xf] %v779_v29  ;;  %782 = vst [vmem:[%s4399_s7 + $0x478] sm:$0xf] %v781_v30  ;;  %v783_v31 = vld [vmem:[%s4392_s6 + $0x8f8] sm:$0xf] }
  0xd5   : > { %784 = vst [vmem:[%s4399_s7 + $0x47c] sm:$0xf] %v783_v31 }
  0xd6 PF: > { %1389 = sbr.rel (!%p4370_p3) target bundleno = 221 (0xdd), region = 69  ;;  %s1391_s8 = sand.u32 (%p4370_p3), 1, %s4299_s16  }
  0xd7   : > { %s3548_s9 = sshll.u32 (%p4370_p3), %s4307_s18, 2  ;;  %s3547_s10 = sshll.u32 (%p4370_p3), %s1391_s8, 4 }
  0xd8   : > { %s1398_s13 = scalar_lea.vmem (%p4370_p3), %s5273_s3, %s3548_s9  ;;  %s1393_s14 = scalar_lea.vmem (%p4370_p3), [#allocation3], %s3547_s10 }
  0xd9   : > { %v1414_v32 = vld [vmem:[%s1398_s13] sm:$0xf] (%p4370_p3)  ;;  %v1416_v33 = vld [vmem:[%s1398_s13 + $0x8] sm:$0xf] (%p4370_p3)  ;;  %v1418_v34 = vld [vmem:[%s1398_s13 + $0x10] sm:$0xf] (%p4370_p3) }
  0xda   : > { %1415 = vst [vmem:[%s1393_s14] sm:$0xf] (%p4370_p3), %v1414_v32  ;;  %1417 = vst [vmem:[%s1393_s14 + $0x4] sm:$0xf] (%p4370_p3), %v1416_v33  ;;  %v1420_v35 = vld [vmem:[%s1398_s13 + $0x18] sm:$0xf] (%p4370_p3) }
  0xdb   : > { %1419 = vst [vmem:[%s1393_s14 + $0x8] sm:$0xf] (%p4370_p3), %v1418_v34  ;;  %1421 = vst [vmem:[%s1393_s14 + $0xc] sm:$0xf] (%p4370_p3), %v1420_v35 }
  0xdd PF: > { %p3549_p8 = scmp.ge.s32.totalorder %s4311_s19, 1  ;;  %p1451_p9 = scmp.lt.s32.totalorder %s4311_s19, 3 }
  0xdf   : > { %p1452_p10 = pnand %p3549_p8, %p1451_p9 }
  0xe0   : > { %s1458_s21 = sand.u32 (!%p1452_p10), 1, %s4295_s15   ;;  %v4109_v36 = vld [vmem:[%s5270_s0 + $0x4] ss:$72 sps:$4 sm:$0xff] (!%p1452_p10)   ;;  %v4107_v4 = vld [vmem:[%s5270_s0] ss:$72 sps:$4 sm:$0xff] (!%p1452_p10)   ;;  %p1509_p11 = scmp.lt.s32.totalorder (!%p1452_p10), %s4303_s17, 1 }
  0xe1   : > { %1455 = sbr.rel (%p1452_p10) target bundleno = 627 (0x273), region = 110  ;;  %v4112_v37 = vld [vmem:[%s5270_s0 + $0xc] ss:$72 sps:$4 sm:$0xff] (!%p1452_p10)   ;;  %2922 = vmatprep.mubr.bf16.mxu0 (!%p1452_p10), %v4109_v36  ;;  %v4110_v6 = vld [vmem:[%s5270_s0 + $0x8] ss:$72 sps:$4 sm:$0xff] (!%p1452_p10)   ;;  %s5245_s11 = sshll.u32 (!%p1452_p10), %s1458_s21, 4 }
  0xe2   : > { %s4034_s22 = smul.u32 (!%p1452_p10), 1152, %s1458_s21  ;;  %2971 = vmatprep.mubr.bf16.mxu1 (!%p1452_p10), %v4112_v37  ;;  %v4133_v8 = vld [vmem:[%s5270_s0 + $0x94] ss:$72 sps:$4 sm:$0xff] (!%p1452_p10)   ;;  %v4135_v15 = vld [vmem:[%s5270_s0 + $0x90] ss:$72 sps:$4 sm:$0xff] (!%p1452_p10)   ;;  %s1467_s12 = scalar_lea.vmem (!%p1452_p10), [#allocation3], %s5245_s11 }
  0xe3   : > { %v4138_v32 = vld [vmem:[%s5270_s0 + $0x9c] ss:$72 sps:$4 sm:$0xff] (!%p1452_p10)   ;;  %v4142_v35 = vld [vmem:[%s5270_s0 + $0x98] ss:$72 sps:$4 sm:$0xff] (!%p1452_p10)   ;;  %s1501_s15 = scalar_lea.vmem (!%p1452_p10), [#allocation4], %s5245_s11 }
  0xe4   : > { %s4990_s29 = scalar_lea.vmem (!%p1452_p10), [#allocation2], %s4034_s22 }
  0xe5   : > { %v4075_v38 = vld [vmem:[%s4990_s29 + $0x40] sm:$0xff] (!%p1452_p10)   ;;  %v4079_v42 = vld [vmem:[%s4990_s29 + $0x48] sm:$0xff] (!%p1452_p10)   ;;  %v4083_v46 = vld [vmem:[%s4990_s29 + $0x50] sm:$0xff] (!%p1452_p10)  }
  0xe6   : > { %v4076_v39 = vld [vmem:[%s4990_s29 + $0xc0] sm:$0xff] (!%p1452_p10)   ;;  %3765 = vmatprep.subr.bf16.mxu0 (!%p1452_p10), %v4075_v38  ;;  %v4080_v43 = vld [vmem:[%s4990_s29 + $0xc8] sm:$0xff] (!%p1452_p10)   ;;  %v4084_v47 = vld [vmem:[%s4990_s29 + $0xd0] sm:$0xff] (!%p1452_p10)  }
  0xe7   : > { %v4077_v40 = vld [vmem:[%s4990_s29] sm:$0xff] (!%p1452_p10)   ;;  %3793 = vmatprep.subr.bf16.mxu1 (!%p1452_p10), %v4076_v39  ;;  %v4081_v44 = vld [vmem:[%s4990_s29 + $0x8] sm:$0xff] (!%p1452_p10)   ;;  %v4085_v48 = vld [vmem:[%s4990_s29 + $0x10] sm:$0xff] (!%p1452_p10)  }
  0xe8   : > { %v4078_v41 = vld [vmem:[%s4990_s29 + $0x80] sm:$0xff]   ;;  %3766 = vmatpush3.bf16.msra.mxu0 %v4077_v40  ;;  %v4082_v45 = vld [vmem:[%s4990_s29 + $0x88] sm:$0xff]   ;;  %v4086_v49 = vld [vmem:[%s4990_s29 + $0x90] sm:$0xff]   ;;  %s1510_s8 = scalar_select %p1509_p11, %s4303_s17, 1 }
  0xe9   : > { %3794 = vmatpush3.bf16.msra.mxu1 %v4078_v41  ;;  %3767 = vmatprep.subr.bf16.mxu0 %v4079_v42  ;;  %v4087_v50 = vld [vmem:[%s4990_s29 + $0x58] sm:$0xff]   ;;  %v4091_v54 = vld [vmem:[%s4990_s29 + $0x60] sm:$0xff]   ;;  %v4095_v58 = vld [vmem:[%s4990_s29 + $0x68] sm:$0xff]   ;;  %s3738_s21 = sshll.u32 (%p4377_p6), %s4303_s17, 2 }
  0xea   : > { %3795 = vmatprep.subr.bf16.mxu1 %v4080_v43  ;;  %v4088_v51 = vld [vmem:[%s4990_s29 + $0xd8] sm:$0xff]   ;;  %v4092_v55 = vld [vmem:[%s4990_s29 + $0xe0] sm:$0xff]   ;;  %v4096_v59 = vld [vmem:[%s4990_s29 + $0xe8] sm:$0xff]   ;;  %s3378_s22 = scalar_lea.vmem (%p4377_p6), %s5274_s4, %s3738_s21 }
  0xeb   : > { %v4089_v52 = vld [vmem:[%s4990_s29 + $0x18] sm:$0xff]   ;;  %v4093_v56 = vld [vmem:[%s4990_s29 + $0x20] sm:$0xff]   ;;  %v4097_v60 = vld [vmem:[%s4990_s29 + $0x28] sm:$0xff]  }
  0xec   : > { %3768 = vmatpush3.bf16.msra.mxu0 %v4081_v44  ;;  %v4090_v53 = vld [vmem:[%s4990_s29 + $0x98] sm:$0xff]   ;;  %v4094_v57 = vld [vmem:[%s4990_s29 + $0xa0] sm:$0xff]   ;;  %v4098_v61 = vld [vmem:[%s4990_s29 + $0xa8] sm:$0xff]  }
  0xed   : > { %3796 = vmatpush3.bf16.msra.mxu1 %v4082_v45  ;;  %3769 = vmatprep.subr.bf16.mxu0 %v4083_v46  ;;  %v4099_v62 = vld [vmem:[%s4990_s29 + $0x70] sm:$0xff]   ;;  %v4103_v2 = vld [vmem:[%s4990_s29 + $0x78] sm:$0xff]   ;;  %v4113_v9 = vld [vmem:[%s4990_s29 + $0x140] sm:$0xff]  }
  0xee   : > { %3797 = vmatprep.subr.bf16.mxu1 %v4084_v47  ;;  %v4100_v63 = vld [vmem:[%s4990_s29 + $0xf0] sm:$0xff]   ;;  %v4104_v3 = vld [vmem:[%s4990_s29 + $0xf8] sm:$0xff]   ;;  %v4114_v10 = vld [vmem:[%s4990_s29 + $0x1c0] sm:$0xff]  }
  0xef   : > { %v4101_v0 = vld [vmem:[%s4990_s29 + $0x30] sm:$0xff]   ;;  %v4105_v5 = vld [vmem:[%s4990_s29 + $0x38] sm:$0xff]   ;;  %v4115_v11 = vld [vmem:[%s4990_s29 + $0x100] sm:$0xff]  }
  0xf0   : > { %3770 = vmatpush3.bf16.msra.mxu0 %v4085_v48  ;;  %v4102_v1 = vld [vmem:[%s4990_s29 + $0xb0] sm:$0xff]   ;;  %v4106_v7 = vld [vmem:[%s4990_s29 + $0xb8] sm:$0xff]   ;;  %v4116_v12 = vld [vmem:[%s4990_s29 + $0x180] sm:$0xff]  }
  0xf1   : > { %3798 = vmatpush3.bf16.msra.mxu1 %v4086_v49  ;;  %3771 = vmatprep.subr.bf16.mxu0 %v4087_v50  ;;  %v4117_v13 = vld [vmem:[%s4990_s29 + $0x148] sm:$0xff]   ;;  %v4121_v18 = vld [vmem:[%s4990_s29 + $0x150] sm:$0xff]   ;;  %v4125_v22 = vld [vmem:[%s4990_s29 + $0x158] sm:$0xff]  }
  0xf2   : > { %3799 = vmatprep.subr.bf16.mxu1 %v4088_v51  ;;  %v4118_v14 = vld [vmem:[%s4990_s29 + $0x1c8] sm:$0xff]   ;;  %v4122_v19 = vld [vmem:[%s4990_s29 + $0x1d0] sm:$0xff]   ;;  %v4126_v23 = vld [vmem:[%s4990_s29 + $0x1d8] sm:$0xff]  }
  0xf3   : > { %v4119_v16 = vld [vmem:[%s4990_s29 + $0x108] sm:$0xff]   ;;  %v4123_v20 = vld [vmem:[%s4990_s29 + $0x110] sm:$0xff]   ;;  %v4127_v24 = vld [vmem:[%s4990_s29 + $0x118] sm:$0xff]  }
  0xf4   : > { %3772 = vmatpush3.bf16.msra.mxu0 %v4089_v52  ;;  %v4120_v17 = vld [vmem:[%s4990_s29 + $0x188] sm:$0xff]   ;;  %v4124_v21 = vld [vmem:[%s4990_s29 + $0x190] sm:$0xff]   ;;  %v4128_v25 = vld [vmem:[%s4990_s29 + $0x198] sm:$0xff]  }
  0xf5   : > { %3800 = vmatpush3.bf16.msra.mxu1 %v4090_v53  ;;  %3773 = vmatprep.subr.bf16.mxu0 %v4091_v54  ;;  %v4129_v26 = vld [vmem:[%s4990_s29 + $0x160] sm:$0xff]   ;;  %v4136_v30 = vld [vmem:[%s4990_s29 + $0x168] sm:$0xff]   ;;  %v4143_v36 = vld [vmem:[%s4990_s29 + $0x170] sm:$0xff]  }
  0xf6   : > { %3801 = vmatprep.subr.bf16.mxu1 %v4092_v55  ;;  %v4130_v27 = vld [vmem:[%s4990_s29 + $0x1e0] sm:$0xff]   ;;  %v4137_v31 = vld [vmem:[%s4990_s29 + $0x1e8] sm:$0xff]   ;;  %v4144_v37 = vld [vmem:[%s4990_s29 + $0x1f0] sm:$0xff]  }
  0xf7   : > { %v4131_v28 = vld [vmem:[%s4990_s29 + $0x120] sm:$0xff]   ;;  %v4140_v33 = vld [vmem:[%s4990_s29 + $0x128] sm:$0xff]   ;;  %v4145_v38 = vld [vmem:[%s4990_s29 + $0x130] sm:$0xff]  }
  0xf8   : > { %3774 = vmatpush3.bf16.msra.mxu0 %v4093_v56  ;;  %v4132_v29 = vld [vmem:[%s4990_s29 + $0x1a0] sm:$0xff]   ;;  %v4141_v34 = vld [vmem:[%s4990_s29 + $0x1a8] sm:$0xff]   ;;  %v4146_v39 = vld [vmem:[%s4990_s29 + $0x1b0] sm:$0xff]  }
  0xf9   : > { %3802 = vmatpush3.bf16.msra.mxu1 %v4094_v57  ;;  %3775 = vmatprep.subr.bf16.mxu0 %v4095_v58  ;;  %v4147_v40 = vld [vmem:[%s4990_s29 + $0x178] sm:$0xff]   ;;  %v4157_v48 = vld [vmem:[%s4990_s29 + $0x240] sm:$0xff]   ;;  %v4161_v52 = vld [vmem:[%s4990_s29 + $0x248] sm:$0xff]  }
  0xfa   : > { %3803 = vmatprep.subr.bf16.mxu1 %v4096_v59  ;;  %v4148_v41 = vld [vmem:[%s4990_s29 + $0x1f8] sm:$0xff]   ;;  %v4158_v49 = vld [vmem:[%s4990_s29 + $0x2c0] sm:$0xff]   ;;  %v4162_v53 = vld [vmem:[%s4990_s29 + $0x2c8] sm:$0xff]  }
  0xfb   : > { %v4149_v42 = vld [vmem:[%s4990_s29 + $0x138] sm:$0xff]   ;;  %v4159_v50 = vld [vmem:[%s4990_s29 + $0x200] sm:$0xff]   ;;  %v4163_v54 = vld [vmem:[%s4990_s29 + $0x208] sm:$0xff]  }
  0xfc   : > { %3776 = vmatpush3.bf16.msra.mxu0 %v4097_v60  ;;  %v4150_v43 = vld [vmem:[%s4990_s29 + $0x1b8] sm:$0xff]   ;;  %v4160_v51 = vld [vmem:[%s4990_s29 + $0x280] sm:$0xff]   ;;  %v4164_v55 = vld [vmem:[%s4990_s29 + $0x288] sm:$0xff]  }
  0xfd   : > { %3804 = vmatpush3.bf16.msra.mxu1 %v4098_v61  ;;  %3777 = vmatprep.subr.bf16.mxu0 %v4099_v62  ;;  %v4151_v44 = vld [vmem:[%s5270_s0 + $0x10] ss:$72 sps:$4 sm:$0xff]   ;;  %v4153_v45 = vld [vmem:[%s5270_s0 + $0x14] ss:$72 sps:$4 sm:$0xff]   ;;  %v4165_v56 = vld [vmem:[%s5270_s0 + $0xa4] ss:$72 sps:$4 sm:$0xff]  }
  0xfe   : > { %3805 = vmatprep.subr.bf16.mxu1 %v4100_v63  ;;  %v4154_v46 = vld [vmem:[%s5270_s0 + $0x18] ss:$72 sps:$4 sm:$0xff]   ;;  %v4156_v47 = vld [vmem:[%s5270_s0 + $0x1c] ss:$72 sps:$4 sm:$0xff]   ;;  %v4168_v58 = vld [vmem:[%s4990_s29 + $0x250] sm:$0xff]  }
  0xff   : > { %v4167_v57 = vld [vmem:[%s5270_s0 + $0xa0] ss:$72 sps:$4 sm:$0xff]   ;;  %v4169_v59 = vld [vmem:[%s4990_s29 + $0x2d0] sm:$0xff]  }
 0x100   : > { %3778 = vmatpush3.bf16.msra.mxu0 %v4101_v0  ;;  %v4170_v60 = vld [vmem:[%s5270_s0 + $0xac] ss:$72 sps:$4 sm:$0xff]   ;;  %v4174_v63 = vld [vmem:[%s5270_s0 + $0xa8] ss:$72 sps:$4 sm:$0xff]   ;;  %v4175_v0 = vld [vmem:[%s4990_s29 + $0x258] sm:$0xff]  }
 0x101   : > { %3806 = vmatpush3.bf16.msra.mxu1 %v4102_v1  ;;  %3779 = vmatprep.subr.bf16.mxu0 %v4103_v2  ;;  %v4172_v61 = vld [vmem:[%s4990_s29 + $0x210] sm:$0xff]   ;;  %v4176_v1 = vld [vmem:[%s4990_s29 + $0x2d8] sm:$0xff]  }
 0x102   : > { %3807 = vmatprep.subr.bf16.mxu1 %v4104_v3  ;;  %v4173_v62 = vld [vmem:[%s4990_s29 + $0x290] sm:$0xff]   ;;  %v4177_v2 = vld [vmem:[%s4990_s29 + $0x218] sm:$0xff]  }
 0x103   : > { %v4178_v3 = vld [vmem:[%s4990_s29 + $0x298] sm:$0xff]  }
 0x104   : > { %3780 = vmatpush3.bf16.msra.mxu0 %v4105_v5  ;;  %v4180_v5 = vld [vmem:[%s4990_s29 + $0x2e0] sm:$0xff]  }
 0x105   : > { %3808 = vmatpush3.bf16.msra.mxu1 %v4106_v7  ;;  %3821 = vmatprep.subr.bf16.mxu0 %v4113_v9  ;;  %v4182_v7 = vld [vmem:[%s4990_s29 + $0x2a0] sm:$0xff]   ;;  %v4184_v9 = vld [vmem:[%s4990_s29 + $0x2e8] sm:$0xff]  }
 0x106   : > { %3849 = vmatprep.subr.bf16.mxu1 %v4114_v10  ;;  %v4185_v10 = vld [vmem:[%s4990_s29 + $0x228] sm:$0xff]  }
 0x107   : > { %2923 = vmatmul.mubr.bf16.vlgmr.msra.gmra.mrb[0].mxu0 %v4107_v4  ;;  %v4179_v4 = vld [vmem:[%s4990_s29 + $0x260] sm:$0xff]  }
 0x108   : > { %2972 = vmatmul.mubr.bf16.vlgmr.msra.gmra.mrb[0].mxu1 %v4110_v6  ;;  %3822 = vmatpush3.bf16.msra.mxu0 %v4115_v11  ;;  %v4181_v6 = vld [vmem:[%s4990_s29 + $0x220] sm:$0xff]   ;;  %v4186_v11 = vld [vmem:[%s4990_s29 + $0x2a8] sm:$0xff]  }
 0x109   : > { %3850 = vmatpush3.bf16.msra.mxu1 %v4116_v12  ;;  %2930 = vmatprep.mubr.bf16.mxu0 %v4133_v8  ;;  %v4183_v8 = vld [vmem:[%s4990_s29 + $0x268] sm:$0xff]   ;;  %v4187_v12 = vld [vmem:[%s4990_s29 + $0x270] sm:$0xff]  }
 0x10a   : > { %3823 = vmatprep.subr.bf16.mxu0 %v4117_v13  ;;  %3851 = vmatprep.subr.bf16.mxu1 %v4118_v14  ;;  %v4188_v13 = vld [vmem:[%s4990_s29 + $0x2f0] sm:$0xff]  }
 0x10b   : > { %2979 = vmatprep.mubr.bf16.mxu1 %v4138_v32  ;;  %v4189_v14 = vld [vmem:[%s4990_s29 + $0x230] sm:$0xff]  }
 0x10c   : > { %3824 = vmatpush3.bf16.msra.mxu0 %v4119_v16  ;;  %v4191_v16 = vld [vmem:[%s4990_s29 + $0x278] sm:$0xff]  }
 0x10d   : > { %3852 = vmatpush3.bf16.msra.mxu1 %v4120_v17  ;;  %3825 = vmatprep.subr.bf16.mxu0 %v4121_v18  ;;  %v4192_v17 = vld [vmem:[%s4990_s29 + $0x2f8] sm:$0xff]  }
 0x10e   : > { %3853 = vmatprep.subr.bf16.mxu1 %v4122_v19  ;;  %v4193_v18 = vld [vmem:[%s4990_s29 + $0x238] sm:$0xff]  }
 0x10f   : > { %2931 = vmatmul.mubr.bf16.gmra.mrb[4].mxu0 %v4135_v15  ;;  %v4190_v15 = vld [vmem:[%s4990_s29 + $0x2b0] sm:$0xff]   ;;  %v4194_v19 = vld [vmem:[%s4990_s29 + $0x2b8] sm:$0xff]  }
 0x110   : > { %3826 = vmatpush3.bf16.msra.mxu0 %v4123_v20  ;;  %2980 = vmatmul.mubr.bf16.gmra.mrb[4].mxu1 %v4142_v35  ;;  %v4195_v20 = vld [vmem:[%s5270_s0 + $0x20] ss:$72 sps:$4 sm:$0xff]   ;;  %v4209_v32 = vld [vmem:[%s5270_s0 + $0xb4] ss:$72 sps:$4 sm:$0xff]  }
 0x111   : > { %3854 = vmatpush3.bf16.msra.mxu1 %v4124_v21  ;;  %3827 = vmatprep.subr.bf16.mxu0 %v4125_v22  ;;  %v4197_v21 = vld [vmem:[%s5270_s0 + $0x24] ss:$72 sps:$4 sm:$0xff]   ;;  %v4198_v22 = vld [vmem:[%s5270_s0 + $0x28] ss:$72 sps:$4 sm:$0xff]  }
 0x112   : > { %3855 = vmatprep.subr.bf16.mxu1 %v4126_v23  ;;  %3020 = vmatprep.mubr.bf16.mxu0 %v4153_v45  ;;  %v4200_v23 = vld [vmem:[%s5270_s0 + $0x2c] ss:$72 sps:$4 sm:$0xff]   ;;  %v4224_v45 = vld [vmem:[%s4990_s29 + $0x3e0] sm:$0xff]  }
 0x113   : > { %3069 = vmatprep.mubr.bf16.mxu1 %v4156_v47  ;;  %v4213_v35 = vld [vmem:[%s4990_s29 + $0x3d0] sm:$0xff]   ;;  %v4226_v47 = vld [vmem:[%s4990_s29 + $0x3a0] sm:$0xff]  }
 0x114   : > { %3828 = vmatpush3.bf16.msra.mxu0 %v4127_v24  ;;  %v4201_v24 = vld [vmem:[%s4990_s29 + $0x340] sm:$0xff]  }
 0x115   : > { %3856 = vmatpush3.bf16.msra.mxu1 %v4128_v25  ;;  %3829 = vmatprep.subr.bf16.mxu0 %v4129_v26  ;;  %v4202_v25 = vld [vmem:[%s4990_s29 + $0x3c0] sm:$0xff]  }
 0x116   : > { %3857 = vmatprep.subr.bf16.mxu1 %v4130_v27  ;;  %v4203_v26 = vld [vmem:[%s4990_s29 + $0x300] sm:$0xff]  }
 0x117   : > { %v4204_v27 = vld [vmem:[%s4990_s29 + $0x380] sm:$0xff]  }
 0x118   : > { %3830 = vmatpush3.bf16.msra.mxu0 %v4131_v28  ;;  %v4205_v28 = vld [vmem:[%s4990_s29 + $0x348] sm:$0xff]  }
 0x119   : > { %3858 = vmatpush3.bf16.msra.mxu1 %v4132_v29  ;;  %3831 = vmatprep.subr.bf16.mxu0 %v4136_v30  ;;  %v4206_v29 = vld [vmem:[%s4990_s29 + $0x3c8] sm:$0xff]  }
 0x11a   : > { %3859 = vmatprep.subr.bf16.mxu1 %v4137_v31  ;;  %v4207_v30 = vld [vmem:[%s4990_s29 + $0x308] sm:$0xff]  }
 0x11b   : > { %v4208_v31 = vld [vmem:[%s4990_s29 + $0x388] sm:$0xff]  }
 0x11c   : > { %3832 = vmatpush3.bf16.msra.mxu0 %v4140_v33  ;;  %v4211_v33 = vld [vmem:[%s5270_s0 + $0xb0] ss:$72 sps:$4 sm:$0xff]  }
 0x11d   : > { %3860 = vmatpush3.bf16.msra.mxu1 %v4141_v34  ;;  %3833 = vmatprep.subr.bf16.mxu0 %v4143_v36  ;;  %v4212_v34 = vld [vmem:[%s4990_s29 + $0x350] sm:$0xff]   ;;  %v4214_v36 = vld [vmem:[%s5270_s0 + $0xbc] ss:$72 sps:$4 sm:$0xff]  }
 0x11e   : > { %3861 = vmatprep.subr.bf16.mxu1 %v4144_v37  ;;  %v4216_v37 = vld [vmem:[%s4990_s29 + $0x310] sm:$0xff]  }
 0x120   : > { %3834 = vmatpush3.bf16.msra.mxu0 %v4145_v38  ;;  %v4217_v38 = vld [vmem:[%s4990_s29 + $0x390] sm:$0xff]  }
 0x121   : > { %3862 = vmatpush3.bf16.msra.mxu1 %v4146_v39  ;;  %3835 = vmatprep.subr.bf16.mxu0 %v4147_v40  ;;  %v4218_v39 = vld [vmem:[%s5270_s0 + $0xb8] ss:$72 sps:$4 sm:$0xff]  }
 0x122   : > { %3863 = vmatprep.subr.bf16.mxu1 %v4148_v41  ;;  %v4219_v40 = vld [vmem:[%s4990_s29 + $0x358] sm:$0xff]  }
 0x123   : > { %v4220_v41 = vld [vmem:[%s4990_s29 + $0x3d8] sm:$0xff]  }
 0x124   : > { %3836 = vmatpush3.bf16.msra.mxu0 %v4149_v42  ;;  %v4221_v42 = vld [vmem:[%s4990_s29 + $0x318] sm:$0xff]  }
 0x125   : > { %3864 = vmatpush3.bf16.msra.mxu1 %v4150_v43  ;;  %3877 = vmatprep.subr.bf16.mxu0 %v4157_v48  ;;  %v4222_v43 = vld [vmem:[%s4990_s29 + $0x398] sm:$0xff]   ;;  %v4227_v48 = vld [vmem:[%s4990_s29 + $0x368] sm:$0xff]  }
 0x126   : > { %3905 = vmatprep.subr.bf16.mxu1 %v4158_v49  ;;  %v4228_v49 = vld [vmem:[%s4990_s29 + $0x3e8] sm:$0xff]  }
 0x127   : > { %3021 = vmatmul.mubr.bf16.vlgmr.msra.gmra.mrb[8].mxu0 %v4151_v44  ;;  %v4223_v44 = vld [vmem:[%s4990_s29 + $0x360] sm:$0xff]  }
 0x128   : > { %3070 = vmatmul.mubr.bf16.vlgmr.msra.gmra.mrb[8].mxu1 %v4154_v46  ;;  %3878 = vmatpush3.bf16.msra.mxu0 %v4159_v50  ;;  %v4225_v46 = vld [vmem:[%s4990_s29 + $0x320] sm:$0xff]   ;;  %v4229_v50 = vld [vmem:[%s4990_s29 + $0x328] sm:$0xff]  }
 0x129   : > { %3906 = vmatpush3.bf16.msra.mxu1 %v4160_v51  ;;  %3879 = vmatprep.subr.bf16.mxu0 %v4161_v52  ;;  %v4230_v51 = vld [vmem:[%s4990_s29 + $0x3a8] sm:$0xff]   ;;  %v4231_v52 = vld [vmem:[%s4990_s29 + $0x370] sm:$0xff]  }
 0x12a   : > { %3907 = vmatprep.subr.bf16.mxu1 %v4162_v53  ;;  %3028 = vmatprep.mubr.bf16.mxu0 %v4165_v56  ;;  %v4232_v53 = vld [vmem:[%s4990_s29 + $0x3f0] sm:$0xff]   ;;  %v4235_v56 = vld [vmem:[%s4990_s29 + $0x378] sm:$0xff]  }
 0x12b   : > { %3077 = vmatprep.mubr.bf16.mxu1 %v4170_v60  ;;  %v4239_v60 = vld [vmem:[%s5270_s0 + $0x30] ss:$72 sps:$4 sm:$0xff]  }
 0x12c   : > { %3880 = vmatpush3.bf16.msra.mxu0 %v4163_v54  ;;  %v4233_v54 = vld [vmem:[%s4990_s29 + $0x330] sm:$0xff]  }
 0x12d   : > { %3908 = vmatpush3.bf16.msra.mxu1 %v4164_v55  ;;  %3881 = vmatprep.subr.bf16.mxu0 %v4168_v58  ;;  %v4234_v55 = vld [vmem:[%s4990_s29 + $0x3b0] sm:$0xff]   ;;  %v4237_v58 = vld [vmem:[%s4990_s29 + $0x338] sm:$0xff]  }
 0x12e   : > { %3909 = vmatprep.subr.bf16.mxu1 %v4169_v59  ;;  %v4238_v59 = vld [vmem:[%s4990_s29 + $0x3b8] sm:$0xff]  }
 0x12f   : > { %3029 = vmatmul.mubr.bf16.gmra.mrb[12].mxu0 %v4167_v57  ;;  %v4236_v57 = vld [vmem:[%s4990_s29 + $0x3f8] sm:$0xff]  }
 0x130   : > { %3882 = vmatpush3.bf16.msra.mxu0 %v4172_v61  ;;  %3078 = vmatmul.mubr.bf16.gmra.mrb[12].mxu1 %v4174_v63  ;;  %v4241_v61 = vld [vmem:[%s5270_s0 + $0x34] ss:$72 sps:$4 sm:$0xff]  }
 0x131   : > { %3910 = vmatpush3.bf16.msra.mxu1 %v4173_v62  ;;  %3883 = vmatprep.subr.bf16.mxu0 %v4175_v0  ;;  %v4242_v62 = vld [vmem:[%s5270_s0 + $0x38] ss:$72 sps:$4 sm:$0xff]   ;;  %v4244_v63 = vld [vmem:[%s5270_s0 + $0x3c] ss:$72 sps:$4 sm:$0xff]  }
 0x132   : > { %3911 = vmatprep.subr.bf16.mxu1 %v4176_v1  ;;  %3118 = vmatprep.mubr.bf16.mxu0 %v4197_v21  ;;  %v4245_v0 = vld [vmem:[%s4990_s29 + $0x440] sm:$0xff]   ;;  %v4266_v21 = vld [vmem:[%s4990_s29 + $0x438] sm:$0xff]  }
 0x133   : > { %3167 = vmatprep.mubr.bf16.mxu1 %v4200_v23  ;;  %v4246_v1 = vld [vmem:[%s4990_s29 + $0x400] sm:$0xff]   ;;  %v4270_v23 = vld [vmem:[%s5270_s0 + $0xd0] ss:$72 sps:$4 sm:$0xff]  }
 0x134   : > { %3884 = vmatpush3.bf16.msra.mxu0 %v4177_v2  ;;  %v4247_v2 = vld [vmem:[%s4990_s29 + $0x448] sm:$0xff]  }
 0x135   : > { %3912 = vmatpush3.bf16.msra.mxu1 %v4178_v3  ;;  %3885 = vmatprep.subr.bf16.mxu0 %v4179_v4  ;;  %v4248_v3 = vld [vmem:[%s4990_s29 + $0x408] sm:$0xff]  }
 0x136   : > { %3913 = vmatprep.subr.bf16.mxu1 %v4180_v5  ;;  %v4249_v4 = vld [vmem:[%s5270_s0 + $0xc4] ss:$72 sps:$4 sm:$0xff]   ;;  %v4251_v5 = vld [vmem:[%s5270_s0 + $0xc0] ss:$72 sps:$4 sm:$0xff]  }
 0x138   : > { %3886 = vmatpush3.bf16.msra.mxu0 %v4181_v6  ;;  %v4252_v6 = vld [vmem:[%s4990_s29 + $0x450] sm:$0xff]  }
 0x139   : > { %3914 = vmatpush3.bf16.msra.mxu1 %v4182_v7  ;;  %3887 = vmatprep.subr.bf16.mxu0 %v4183_v8  ;;  %v4253_v7 = vld [vmem:[%s5270_s0 + $0xcc] ss:$72 sps:$4 sm:$0xff]  }
 0x13a   : > { %3915 = vmatprep.subr.bf16.mxu1 %v4184_v9  ;;  %v4255_v8 = vld [vmem:[%s4990_s29 + $0x410] sm:$0xff]  }
 0x13b   : > { %v4256_v9 = vld [vmem:[%s5270_s0 + $0xc8] ss:$72 sps:$4 sm:$0xff]  }
 0x13c   : > { %3888 = vmatpush3.bf16.msra.mxu0 %v4185_v10  ;;  %v4257_v10 = vld [vmem:[%s4990_s29 + $0x458] sm:$0xff]  }
 0x13d   : > { %3916 = vmatpush3.bf16.msra.mxu1 %v4186_v11  ;;  %3889 = vmatprep.subr.bf16.mxu0 %v4187_v12  ;;  %v4258_v11 = vld [vmem:[%s4990_s29 + $0x418] sm:$0xff]   ;;  %v4259_v12 = vld [vmem:[%s4990_s29 + $0x460] sm:$0xff]  }
 0x13e   : > { %3917 = vmatprep.subr.bf16.mxu1 %v4188_v13  ;;  %v4260_v13 = vld [vmem:[%s4990_s29 + $0x420] sm:$0xff]  }
 0x140   : > { %3890 = vmatpush3.bf16.msra.mxu0 %v4189_v14  ;;  %v4261_v14 = vld [vmem:[%s4990_s29 + $0x468] sm:$0xff]  }
 0x141   : > { %3918 = vmatpush3.bf16.msra.mxu1 %v4190_v15  ;;  %3891 = vmatprep.subr.bf16.mxu0 %v4191_v16  ;;  %v4262_v15 = vld [vmem:[%s4990_s29 + $0x428] sm:$0xff]  }
 0x142   : > { %3919 = vmatprep.subr.bf16.mxu1 %v4192_v17  ;;  %v4269_v16 = vld [vmem:[%s5270_s0 + $0x44] ss:$72 sps:$4 sm:$0xff]   ;;  %v4263_v17 = vld [vmem:[%s4990_s29 + $0x470] sm:$0xff]  }
 0x144   : > { %3892 = vmatpush3.bf16.msra.mxu0 %v4193_v18  ;;  %v4272_v18 = vld [vmem:[%s5270_s0 + $0xd4] ss:$72 sps:$4 sm:$0xff]  }
 0x145   : > { %3920 = vmatpush3.bf16.msra.mxu1 %v4194_v19  ;;  %3933 = vmatprep.subr.bf16.mxu0 %v4201_v24  ;;  %v4264_v19 = vld [vmem:[%s4990_s29 + $0x430] sm:$0xff]  }
 0x146   : > { %3961 = vmatprep.subr.bf16.mxu1 %v4202_v25 }
 0x147   : > { %3119 = vmatmul.mubr.bf16.vlgmr.msra.gmra.mrb[16].mxu0 %v4195_v20  ;;  %v4265_v20 = vld [vmem:[%s4990_s29 + $0x478] sm:$0xff]   ;;  %s1511_s29 = scalar_lea.vmem %s5272_s2, %s1510_s8 }
 0x148   : > { %3168 = vmatmul.mubr.bf16.vlgmr.msra.gmra.mrb[16].mxu1 %v4198_v22  ;;  %3934 = vmatpush3.bf16.msra.mxu0 %v4203_v26  ;;  %v4267_v22 = vld [vmem:[%s5270_s0 + $0x40] ss:$72 sps:$4 sm:$0xff]  }
 0x149   : > { %3962 = vmatpush3.bf16.msra.mxu1 %v4204_v27  ;;  %3935 = vmatprep.subr.bf16.mxu0 %v4205_v28  ;;  %v3552_v26 = vld [vmem:[%s1511_s29] ss:$0 sm:$0xff] }
 0x14a   : > { %3963 = vmatprep.subr.bf16.mxu1 %v4206_v29  ;;  %3126 = vmatprep.mubr.bf16.mxu0 %v4209_v32 }
 0x14b   : > { %3175 = vmatprep.mubr.bf16.mxu1 %v4214_v36 }
 0x14c   : > { %3936 = vmatpush3.bf16.msra.mxu0 %v4207_v30 }
 0x14d   : > { %3964 = vmatpush3.bf16.msra.mxu1 %v4208_v31  ;;  %3937 = vmatprep.subr.bf16.mxu0 %v4212_v34 }
 0x14e   : > { %3965 = vmatprep.subr.bf16.mxu1 %v4213_v35 }
 0x14f   : > { %3127 = vmatmul.mubr.bf16.gmra.mrb[20].mxu0 %v4211_v33 }
 0x150   : > { %3938 = vmatpush3.bf16.msra.mxu0 %v4216_v37  ;;  %3176 = vmatmul.mubr.bf16.gmra.mrb[20].mxu1 %v4218_v39 }
 0x151   : > { %3966 = vmatpush3.bf16.msra.mxu1 %v4217_v38  ;;  %3939 = vmatprep.subr.bf16.mxu0 %v4219_v40 }
 0x152   : > { %3967 = vmatprep.subr.bf16.mxu1 %v4220_v41  ;;  %3216 = vmatprep.mubr.bf16.mxu0 %v4241_v61 }
 0x153   : > { %3265 = vmatprep.mubr.bf16.mxu1 %v4244_v63 }
 0x154   : > { %3940 = vmatpush3.bf16.msra.mxu0 %v4221_v42 }
 0x155   : > { %3968 = vmatpush3.bf16.msra.mxu1 %v4222_v43  ;;  %3941 = vmatprep.subr.bf16.mxu0 %v4223_v44 }
 0x156   : > { %3969 = vmatprep.subr.bf16.mxu1 %v4224_v45 }
 0x158   : > { %3942 = vmatpush3.bf16.msra.mxu0 %v4225_v46 }
 0x159   : > { %3970 = vmatpush3.bf16.msra.mxu1 %v4226_v47  ;;  %3943 = vmatprep.subr.bf16.mxu0 %v4227_v48 }
 0x15a   : > { %3971 = vmatprep.subr.bf16.mxu1 %v4228_v49 }
 0x15c   : > { %3944 = vmatpush3.bf16.msra.mxu0 %v4229_v50 }
 0x15d   : > { %3972 = vmatpush3.bf16.msra.mxu1 %v4230_v51  ;;  %3945 = vmatprep.subr.bf16.mxu0 %v4231_v52 }
 0x15e   : > { %3973 = vmatprep.subr.bf16.mxu1 %v4232_v53 }
 0x160   : > { %3946 = vmatpush3.bf16.msra.mxu0 %v4233_v54 }
 0x161   : > { %3974 = vmatpush3.bf16.msra.mxu1 %v4234_v55  ;;  %3947 = vmatprep.subr.bf16.mxu0 %v4235_v56 }
 0x162   : > { %3975 = vmatprep.subr.bf16.mxu1 %v4236_v57 }
 0x164   : > { %3948 = vmatpush3.bf16.msra.mxu0 %v4237_v58 }
 0x165   : > { %3976 = vmatpush3.bf16.msra.mxu1 %v4238_v59  ;;  %3989 = vmatprep.subr.bf16.mxu0 %v4245_v0 }
 0x166   : > { %4017 = vmatprep.subr.bf16.mxu1 %v4245_v0 }
 0x167   : > { %3217 = vmatmul.mubr.bf16.vlgmr.msra.gmra.mrb[24].mxu0 %v4239_v60 }
 0x168   : > { %3266 = vmatmul.mubr.bf16.vlgmr.msra.gmra.mrb[24].mxu1 %v4242_v62  ;;  %3990 = vmatpush3.bf16.msra.mxu0 %v4246_v1 }
 0x169   : > { %4025 = vmatpush3.bf16.msra.mxu1 %v4246_v1  ;;  %3991 = vmatprep.subr.bf16.mxu0 %v4247_v2 }
 0x16a   : > { %4018 = vmatprep.subr.bf16.mxu1 %v4247_v2  ;;  %3224 = vmatprep.mubr.bf16.mxu0 %v4249_v4 }
 0x16b   : > { %3273 = vmatprep.mubr.bf16.mxu1 %v4253_v7 }
 0x16c   : > { %3992 = vmatpush3.bf16.msra.mxu0 %v4248_v3 }
 0x16d   : > { %4026 = vmatpush3.bf16.msra.mxu1 %v4248_v3  ;;  %3993 = vmatprep.subr.bf16.mxu0 %v4252_v6 }
 0x16e   : > { %4019 = vmatprep.subr.bf16.mxu1 %v4252_v6 }
 0x16f   : > { %3225 = vmatmul.mubr.bf16.gmra.mrb[28].mxu0 %v4251_v5 }
 0x170   : > { %3994 = vmatpush3.bf16.msra.mxu0 %v4255_v8  ;;  %3274 = vmatmul.mubr.bf16.gmra.mrb[28].mxu1 %v4256_v9 }
 0x171   : > { %4027 = vmatpush3.bf16.msra.mxu1 %v4255_v8  ;;  %3995 = vmatprep.subr.bf16.mxu0 %v4257_v10 }
 0x172   : > { %4020 = vmatprep.subr.bf16.mxu1 %v4257_v10  ;;  %3314 = vmatprep.mubr.bf16.mxu0 %v4269_v16 }
 0x173   : > { %3322 = vmatprep.mubr.bf16.mxu1 %v4272_v18 }
 0x174   : > { %3996 = vmatpush3.bf16.msra.mxu0 %v4258_v11 }
 0x175   : > { %4028 = vmatpush3.bf16.msra.mxu1 %v4258_v11  ;;  %3997 = vmatprep.subr.bf16.mxu0 %v4259_v12 }
 0x176   : > { %4021 = vmatprep.subr.bf16.mxu1 %v4259_v12 }
 0x178   : > { %3998 = vmatpush3.bf16.msra.mxu0 %v4260_v13 }
 0x179   : > { %4029 = vmatpush3.bf16.msra.mxu1 %v4260_v13  ;;  %3999 = vmatprep.subr.bf16.mxu0 %v4261_v14 }
 0x17a   : > { %4022 = vmatprep.subr.bf16.mxu1 %v4261_v14 }
 0x17c   : > { %4000 = vmatpush3.bf16.msra.mxu0 %v4262_v15 }
 0x17d   : > { %4030 = vmatpush3.bf16.msra.mxu1 %v4262_v15  ;;  %4001 = vmatprep.subr.bf16.mxu0 %v4263_v17 }
 0x17e   : > { %4023 = vmatprep.subr.bf16.mxu1 %v4263_v17 }
 0x180   : > { %4002 = vmatpush3.bf16.msra.mxu0 %v4264_v19 }
 0x181   : > { %4031 = vmatpush3.bf16.msra.mxu1 %v4264_v19  ;;  %4003 = vmatprep.subr.bf16.mxu0 %v4265_v20 }
 0x182   : > { %4024 = vmatprep.subr.bf16.mxu1 %v4265_v20 }
 0x184   : > { %4004 = vmatpush3.bf16.msra.mxu0 %v4266_v21 }
 0x185   : > { %4032 = vmatpush3.bf16.msra.mxu1 %v4266_v21 }
 0x187   : > { %3315 = vmatmul.mubr.bf16.vlgmr.msra.gmra.mrb[32].mxu0 %v4267_v22 }
 0x188   : > { %3323 = vmatmul.mubr.bf16.vlgmr.msra.gmra.mrb[32].mxu1 %v4270_v23 }
 0x1da   : > { %v3781_v24 = vpop.f32.mrb[0].mxu0 }
 0x1db   : > { %v3809_v25 = vpop.f32.mrb[0].mxu1  ;;  %v3782_v27 = vpop.f32.mrb[1].mxu0 }
 0x1dc   : > { %v3783_v28 = vadd.f32 %v3782_v27, %v3781_v24  ;;  %v3810_v29 = vpop.f32.mrb[1].mxu1  ;;  %v3784_v30 = vpop.f32.mrb[2].mxu0 }
 0x1dd   : > { %v3811_v31 = vadd.f32 %v3810_v29, %v3809_v25  ;;  %v3812_v32 = vpop.f32.mrb[2].mxu1  ;;  %v3785_v33 = vpop.f32.mrb[3].mxu0 }
 0x1de   : > { %v2925_v34 = vadd.f32 %v3783_v28, %v3552_v26  ;;  %v3786_v35 = vadd.f32 %v3785_v33, %v3784_v30  ;;  %v3813_v36 = vpop.f32.mrb[3].mxu1 }
 0x1df   : > { %v3814_v37 = vadd.f32 %v3813_v36, %v3812_v32 }
 0x1e0   : > { %v2974_v38 = vadd.f32 %v3811_v31, %v2925_v34  ;;  %v2928_v39 = vadd.f32 %v3786_v35, %v3552_v26 }
 0x1e2   : > { %v2977_v40 = vadd.f32 %v3814_v37, %v2928_v39  ;;  %v3787_v41 = vpop.f32.mrb[4].mxu0 }
 0x1e3   : > { %v3788_v42 = vpop.f32.mrb[5].mxu0  ;;  %v3815_v48 = vpop.f32.mrb[4].mxu1 }
 0x1e4   : > { %v3789_v43 = vadd.f32 %v3788_v42, %v3787_v41  ;;  %v3790_v44 = vpop.f32.mrb[6].mxu0  ;;  %v3816_v49 = vpop.f32.mrb[5].mxu1 }
 0x1e5   : > { %v3791_v45 = vpop.f32.mrb[7].mxu0  ;;  %v3817_v51 = vadd.f32 %v3816_v49, %v3815_v48  ;;  %v3818_v52 = vpop.f32.mrb[6].mxu1 }
 0x1e6   : > { %v3792_v46 = vadd.f32 %v3791_v45, %v3790_v44  ;;  %v2933_v47 = vadd.f32 %v3789_v43, %v3552_v26  ;;  %v3819_v53 = vpop.f32.mrb[7].mxu1 }
 0x1e7   : > { %v3820_v55 = vadd.f32 %v3819_v53, %v3818_v52 }
 0x1e8   : > { %v2936_v50 = vadd.f32 %v3792_v46, %v3552_v26  ;;  %v2982_v54 = vadd.f32 %v3817_v51, %v2933_v47 }
 0x1ea   : > { %v2985_v56 = vadd.f32 %v3820_v55, %v2936_v50 }
 0x1fa   : > { %v3837_v57 = vpop.f32.mrb[8].mxu0 }
 0x1fb   : > { %v3865_v58 = vpop.f32.mrb[8].mxu1  ;;  %v3838_v59 = vpop.f32.mrb[9].mxu0 }
 0x1fc   : > { %v3839_v60 = vadd.f32 %v3838_v59, %v3837_v57  ;;  %v3866_v61 = vpop.f32.mrb[9].mxu1  ;;  %v3840_v62 = vpop.f32.mrb[10].mxu0 }
 0x1fd   : > { %v3867_v63 = vadd.f32 %v3866_v61, %v3865_v58  ;;  %v3868_v0 = vpop.f32.mrb[10].mxu1  ;;  %v3841_v1 = vpop.f32.mrb[11].mxu0 }
 0x1fe   : > { %v3023_v2 = vadd.f32 %v3839_v60, %v2974_v38  ;;  %v3842_v3 = vadd.f32 %v3841_v1, %v3840_v62  ;;  %v3869_v4 = vpop.f32.mrb[11].mxu1 }
 0x1ff   : > { %v3870_v5 = vadd.f32 %v3869_v4, %v3868_v0 }
 0x200   : > { %v3072_v6 = vadd.f32 %v3867_v63, %v3023_v2  ;;  %v3026_v7 = vadd.f32 %v3842_v3, %v2977_v40 }
 0x202   : > { %v3075_v8 = vadd.f32 %v3870_v5, %v3026_v7  ;;  %v3843_v9 = vpop.f32.mrb[12].mxu0 }
 0x203   : > { %v3844_v10 = vpop.f32.mrb[13].mxu0  ;;  %v3871_v16 = vpop.f32.mrb[12].mxu1 }
 0x204   : > { %v3845_v11 = vadd.f32 %v3844_v10, %v3843_v9  ;;  %v3846_v12 = vpop.f32.mrb[14].mxu0  ;;  %v3872_v18 = vpop.f32.mrb[13].mxu1 }
 0x205   : > { %v3847_v13 = vpop.f32.mrb[15].mxu0  ;;  %v3873_v19 = vadd.f32 %v3872_v18, %v3871_v16  ;;  %v3874_v20 = vpop.f32.mrb[14].mxu1 }
 0x206   : > { %v3031_v14 = vadd.f32 %v3845_v11, %v2982_v54  ;;  %v3848_v15 = vadd.f32 %v3847_v13, %v3846_v12  ;;  %v3875_v21 = vpop.f32.mrb[15].mxu1 }
 0x207   : > { %v3876_v23 = vadd.f32 %v3875_v21, %v3874_v20 }
 0x208   : > { %v3034_v17 = vadd.f32 %v3848_v15, %v2985_v56  ;;  %v3080_v22 = vadd.f32 %v3873_v19, %v3031_v14 }
 0x20a   : > { %v3083_v24 = vadd.f32 %v3876_v23, %v3034_v17 }
 0x21a   : > { %v3893_v25 = vpop.f32.mrb[16].mxu0 }
 0x21b   : > { %v3894_v26 = vpop.f32.mrb[17].mxu0  ;;  %v3921_v27 = vpop.f32.mrb[16].mxu1 }
 0x21c   : > { %v3895_v28 = vadd.f32 %v3894_v26, %v3893_v25  ;;  %v3896_v29 = vpop.f32.mrb[18].mxu0  ;;  %v3922_v30 = vpop.f32.mrb[17].mxu1  ;;  %v3746_v25 = vld [vmem:[%s1467_s12] sm:$0xff]  }
 0x21d   : > { %v3897_v31 = vpop.f32.mrb[19].mxu0  ;;  %v3923_v33 = vadd.f32 %v3922_v30, %v3921_v27  ;;  %v3924_v34 = vpop.f32.mrb[18].mxu1  ;;  %v3763_v27 = vld [vmem:[%s1467_s12 + $0x8] sm:$0xff]  }
 0x21e   : > { %v3121_v32 = vadd.f32 %v3895_v28, %v3072_v6  ;;  %v3898_v35 = vadd.f32 %v3897_v31, %v3896_v29  ;;  %v3925_v36 = vpop.f32.mrb[19].mxu1  ;;  %v3747_v31 = vunpack.c.l.bf16 %v3746_v25 }
 0x21f   : > { %v3926_v39 = vadd.f32 %v3925_v36, %v3924_v34 }
 0x220   : > { %v3170_v37 = vadd.f32 %v3923_v33, %v3121_v32  ;;  %v3124_v38 = vadd.f32 %v3898_v35, %v3075_v8  ;;  %v3751_v35 = vunpack.c.l.bf16 %v3763_v27 }
 0x222   : > { %v3173_v40 = vadd.f32 %v3926_v39, %v3124_v38  ;;  %v3899_v41 = vpop.f32.mrb[20].mxu0 }
 0x223   : > { %v3900_v42 = vpop.f32.mrb[21].mxu0  ;;  %v3927_v48 = vpop.f32.mrb[20].mxu1 }
 0x224   : > { %v3901_v43 = vadd.f32 %v3900_v42, %v3899_v41  ;;  %v3902_v44 = vpop.f32.mrb[22].mxu0  ;;  %v3928_v50 = vpop.f32.mrb[21].mxu1 }
 0x225   : > { %v3903_v45 = vpop.f32.mrb[23].mxu0  ;;  %v3929_v51 = vadd.f32 %v3928_v50, %v3927_v48  ;;  %v3930_v52 = vpop.f32.mrb[22].mxu1 }
 0x226   : > { %v3129_v46 = vadd.f32 %v3901_v43, %v3080_v22  ;;  %v3904_v47 = vadd.f32 %v3903_v45, %v3902_v44  ;;  %v3931_v53 = vpop.f32.mrb[23].mxu1  ;;  %v3752_v44 = vunpack.c.h.bf16 %v3763_v27 }
 0x227   : > { %v3932_v55 = vadd.f32 %v3931_v53, %v3930_v52 }
 0x228   : > { %v3132_v49 = vadd.f32 %v3904_v47, %v3083_v24  ;;  %v3178_v54 = vadd.f32 %v3929_v51, %v3129_v46 }
 0x22a   : > { %v3181_v56 = vadd.f32 %v3932_v55, %v3132_v49 }
 0x23a   : > { %v3949_v57 = vpop.f32.mrb[24].mxu0 }
 0x23b   : > { %v3977_v58 = vpop.f32.mrb[24].mxu1  ;;  %v3950_v59 = vpop.f32.mrb[25].mxu0 }
 0x23c   : > { %v3951_v60 = vadd.f32 %v3950_v59, %v3949_v57  ;;  %v3978_v61 = vpop.f32.mrb[25].mxu1  ;;  %v3952_v62 = vpop.f32.mrb[26].mxu0 }
 0x23d   : > { %v3979_v63 = vadd.f32 %v3978_v61, %v3977_v58  ;;  %v3980_v0 = vpop.f32.mrb[26].mxu1  ;;  %v3953_v1 = vpop.f32.mrb[27].mxu0 }
 0x23e   : > { %v3219_v2 = vadd.f32 %v3951_v60, %v3170_v37  ;;  %v3954_v3 = vadd.f32 %v3953_v1, %v3952_v62  ;;  %v3981_v4 = vpop.f32.mrb[27].mxu1 }
 0x23f   : > { %v3982_v5 = vadd.f32 %v3981_v4, %v3980_v0 }
 0x240   : > { %v3268_v6 = vadd.f32 %v3979_v63, %v3219_v2  ;;  %v3222_v7 = vadd.f32 %v3954_v3, %v3173_v40  ;;  %v3748_v40 = vunpack.c.h.bf16 %v3746_v25 }
 0x242   : > { %v3271_v8 = vadd.f32 %v3982_v5, %v3222_v7  ;;  %v3955_v9 = vpop.f32.mrb[28].mxu0 }
 0x243   : > { %v3956_v10 = vpop.f32.mrb[29].mxu0  ;;  %v3983_v13 = vpop.f32.mrb[28].mxu1 }
 0x244   : > { %v3957_v11 = vadd.f32 %v3956_v10, %v3955_v9  ;;  %v3958_v12 = vpop.f32.mrb[30].mxu0  ;;  %v3984_v15 = vpop.f32.mrb[29].mxu1 }
 0x245   : > { %v3959_v14 = vpop.f32.mrb[31].mxu0  ;;  %v3985_v18 = vadd.f32 %v3984_v15, %v3983_v13  ;;  %v3986_v19 = vpop.f32.mrb[30].mxu1 }
 0x246   : > { %v3227_v16 = vadd.f32 %v3957_v11, %v3178_v54  ;;  %v3960_v17 = vadd.f32 %v3959_v14, %v3958_v12  ;;  %v3987_v20 = vpop.f32.mrb[31].mxu1 }
 0x247   : > { %v3988_v23 = vadd.f32 %v3987_v20, %v3986_v19 }
 0x248   : > { %v3230_v21 = vadd.f32 %v3960_v17, %v3181_v56  ;;  %v3276_v22 = vadd.f32 %v3985_v18, %v3227_v16 }
 0x24a   : > { %v3279_v24 = vadd.f32 %v3988_v23, %v3230_v21 }
 0x25a   : > { %v4005_v26 = vpop.f32.mrb[32].mxu0 }
 0x25b   : > { %v4011_v28 = vpop.f32.mrb[32].mxu1  ;;  %v4006_v29 = vpop.f32.mrb[33].mxu0 }
 0x25c   : > { %v4007_v30 = vadd.f32 %v4006_v29, %v4005_v26  ;;  %v4012_v32 = vpop.f32.mrb[33].mxu1  ;;  %v4008_v33 = vpop.f32.mrb[34].mxu0 }
 0x25d   : > { %v4013_v34 = vadd.f32 %v4012_v32, %v4011_v28  ;;  %v4014_v36 = vpop.f32.mrb[34].mxu1  ;;  %v4009_v37 = vpop.f32.mrb[35].mxu0 }
 0x25e   : > { %v3317_v38 = vadd.f32 %v4007_v30, %v3268_v6  ;;  %v4010_v39 = vadd.f32 %v4009_v37, %v4008_v33  ;;  %v4015_v41 = vpop.f32.mrb[35].mxu1 }
 0x25f   : > { %v3325_v42 = vadd.f32 %v4013_v34, %v3276_v22  ;;  %v4016_v43 = vadd.f32 %v4015_v41, %v4014_v36 }
 0x260   : > { %v3339_v45 = vadd.f32 %v3747_v31, %v3317_v38  ;;  %v3320_v46 = vadd.f32 %v4010_v39, %v3271_v8 }
 0x261   : > { %v3341_v47 = vadd.f32 %v3751_v35, %v3325_v42  ;;  %v3328_v48 = vadd.f32 %v4016_v43, %v3279_v24 }
 0x262   : > { %v3340_v49 = vadd.f32 %v3748_v40, %v3320_v46  ;;  %v3343_v51 = vmax.f32 %v3339_v45, 0.0 }
 0x263   : > { %v3342_v50 = vadd.f32 %v3752_v44, %v3328_v48  ;;  %v3345_v53 = vmax.f32 %v3341_v47, 0.0  ;;  %3373 = sbr.rel (!%p4377_p6) target bundleno = 627 (0x273), region = 122 }
 0x264   : > { %v3344_v52 = vmax.f32 %v3340_v49, 0.0 }
 0x265   : > { %v3346_v54 = vmax.f32 %v3342_v50, 0.0 }
 0x266   : > { %v3756_v55 = vpack.c.bf16 %v3344_v52, %v3343_v51 }
 0x267   : > { %v3761_v56 = vpack.c.bf16 %v3346_v54, %v3345_v53 }
 0x268   : > { %3757 = vst [vmem:[%s1501_s15] sm:$0xff] %v3756_v55  }
 0x269   : > { %3764 = vst [vmem:[%s1501_s15 + $0x8] sm:$0xff] %v3761_v56  }
 0x26f   : > { %v3394_v57 = vld [vmem:[%s1501_s15] sm:$0xf]  ;;  %v3396_v58 = vld [vmem:[%s1501_s15 + $0x4] sm:$0xf] }
 0x270   : > { %v3398_v59 = vld [vmem:[%s1501_s15 + $0x8] sm:$0xf]  ;;  %v3400_v60 = vld [vmem:[%s1501_s15 + $0xc] sm:$0xf]  ;;  %3395 = vst [vmem:[%s3378_s22] sm:$0xf] %v3394_v57 }
 0x271   : > { %3397 = vst [vmem:[%s3378_s22 + $0x8] sm:$0xf] %v3396_v58  ;;  %3399 = vst [vmem:[%s3378_s22 + $0x10] sm:$0xf] %v3398_v59 }
 0x272   : > { %3401 = vst [vmem:[%s3378_s22 + $0x18] sm:$0xf] %v3400_v60 }
 0x273 PF: > { %s14_s19 = sadd.s32 1, %s4311_s19   ;;  %s5277_s15 = smov %s4299_s16 }
 0x274   : > { %p11_p12 = scmp.ge.s32.totalorder %s14_s19, 4   ;;  %s5278_s16 = smov %s4382_s26 }
 0x275   : > { %s5279_s17 = smov %s4307_s18  ;;  %s5280_s18 = smov %s5282_s20 }
 0x276   :  { %13 = sbr.rel (!%p11_p12) target bundleno = 3 (0x3), region = 208 }

// kernel: model_wrapper_forward.23
= control target key start
LH: loop header
LB: loop body
LE: loop exit
PB: predicated region body
PF: predicated region fallthrough
CT: control target
= control target key end

     0   :  { %s951_s9 = smov 0   ;;  %s953_s10 = smov 0   ;;  %s1125_s0 = inlined_call_operand.vmem [shape: bf16[2,256], index: 0, kind: input, shape index: {}]   ;;  %s1126_s1 = inlined_call_operand.vmem [shape: bf16[256,256], index: 1, kind: input, shape index: {}]   ;;  %s1127_s2 = inlined_call_operand.vmem [shape: f32[2,256], index: 2, kind: output, shape index: {}]  }
   0x1   :  { %s955_s11 = smov 0   ;;  %s957_s12 = smov 0  }
   0x2   :  { %s959_s13 = smov 0  }
   0x3 LB: > { %s21_s14 = sadd.s32 1, %s925_s12  ;;  %s732_s15 = sadd.s32 4294967295, %s929_s13   ;;  %s929_s13 = sphi %s959_s13, %s12_s13   ;;  %s925_s12 = sphi %s957_s12, %s1132_s12   ;;  %s921_s11 = sphi %s955_s11, %s1131_s11   ;;  %s917_s10 = sphi %s953_s10, %s1130_s10   ;;  %s913_s9 = sphi %s951_s9, %s1129_s9  }
   0x4   : > { %p22_p0 = scmp.ge.s32.totalorder %s21_s14, 2  ;;  %p64_p1 = scmp.ne.s32.totalorder %s917_s10, %s913_s9 }
   0x5   : > { %p65_p2 = scmp.eq.s32.totalorder %s929_s13, 0  ;;  %p96_p4 = scmp.eq.s32.totalorder %s732_s15, 1 }
   0x6   : > { %s1134_s14 = smov (%p22_p0, %s21_s14), 0  ;;  %s57_s17 = sadd.s32 1, %s917_s10 }
   0x7   : > { %p66_p3 = por %p65_p2, %p64_p1  ;;  %s54_s16 = ssub.s32 %s925_s12, %s1134_s14 }
   0x8   : > { %p55_p5 = scmp.eq.s32.totalorder %s54_s16, 0  ;;  %p986_p6 = por %p96_p4, %p64_p1 }
   0x9   : > { %p736_p7 = scmp.ge.s32.totalorder %s929_s13, 2 }
   0xa   : > { %s991_s19 = scalar_select %p55_p5, %s917_s10, %s57_s17  }
   0xb   : > { %133 = sbr.rel (%p736_p7) target bundleno = 43 (0x2b), region = 20 }
  0x12   : > { %136 = sbr.rel (!%p66_p3) target bundleno = 43 (0x2b), region = 24  ;;  %s138_s20 = sand.u32 (%p66_p3), 1, %s917_s10  }
  0x13   : > { %s738_s21 = sshll.u32 (%p66_p3), %s925_s12, 2  ;;  %s737_s22 = sshll.u32 (%p66_p3), %s138_s20, 7 }
  0x14   : > { %s999_s25 = scalar_lea.vmem (%p66_p3), %s1126_s1, %s738_s21  ;;  %s1003_s26 = scalar_lea.vmem (%p66_p3), [#allocation2], %s737_s22 }
  0x15   : > { %v158_v0 = vld [vmem:[%s999_s25] sm:$0xf] (%p66_p3)  ;;  %v160_v1 = vld [vmem:[%s999_s25 + $0x8] sm:$0xf] (%p66_p3)  ;;  %v162_v2 = vld [vmem:[%s999_s25 + $0x10] sm:$0xf] (%p66_p3) }
  0x16   : > { %159 = vst [vmem:[%s1003_s26] sm:$0xf] (%p66_p3), %v158_v0  ;;  %161 = vst [vmem:[%s1003_s26 + $0x4] sm:$0xf] (%p66_p3), %v160_v1  ;;  %v164_v3 = vld [vmem:[%s999_s25 + $0x18] sm:$0xf] (%p66_p3) }
  0x17   : > { %v166_v4 = vld [vmem:[%s999_s25 + $0x20] sm:$0xf] (%p66_p3)  ;;  %163 = vst [vmem:[%s1003_s26 + $0x8] sm:$0xf] (%p66_p3), %v162_v2  ;;  %165 = vst [vmem:[%s1003_s26 + $0xc] sm:$0xf] (%p66_p3), %v164_v3 }
  0x18   : > { %167 = vst [vmem:[%s1003_s26 + $0x10] sm:$0xf] (%p66_p3), %v166_v4  ;;  %v168_v5 = vld [vmem:[%s999_s25 + $0x28] sm:$0xf] (%p66_p3)  ;;  %v170_v6 = vld [vmem:[%s999_s25 + $0x30] sm:$0xf] (%p66_p3) }
  0x19   : > { %v172_v7 = vld [vmem:[%s999_s25 + $0x38] sm:$0xf]  ;;  %169 = vst [vmem:[%s1003_s26 + $0x14] sm:$0xf] %v168_v5  ;;  %171 = vst [vmem:[%s1003_s26 + $0x18] sm:$0xf] %v170_v6 }
  0x1a   : > { %173 = vst [vmem:[%s1003_s26 + $0x1c] sm:$0xf] %v172_v7  ;;  %v174_v8 = vld [vmem:[%s999_s25 + $0x40] sm:$0xf]  ;;  %v176_v9 = vld [vmem:[%s999_s25 + $0x48] sm:$0xf] }
  0x1b   : > { %v178_v10 = vld [vmem:[%s999_s25 + $0x50] sm:$0xf]  ;;  %175 = vst [vmem:[%s1003_s26 + $0x20] sm:$0xf] %v174_v8  ;;  %177 = vst [vmem:[%s1003_s26 + $0x24] sm:$0xf] %v176_v9 }
  0x1c   : > { %179 = vst [vmem:[%s1003_s26 + $0x28] sm:$0xf] %v178_v10  ;;  %v180_v11 = vld [vmem:[%s999_s25 + $0x58] sm:$0xf]  ;;  %v182_v12 = vld [vmem:[%s999_s25 + $0x60] sm:$0xf] }
  0x1d   : > { %v184_v13 = vld [vmem:[%s999_s25 + $0x68] sm:$0xf]  ;;  %181 = vst [vmem:[%s1003_s26 + $0x2c] sm:$0xf] %v180_v11  ;;  %183 = vst [vmem:[%s1003_s26 + $0x30] sm:$0xf] %v182_v12 }
  0x1e   : > { %185 = vst [vmem:[%s1003_s26 + $0x34] sm:$0xf] %v184_v13  ;;  %v186_v14 = vld [vmem:[%s999_s25 + $0x70] sm:$0xf]  ;;  %v188_v15 = vld [vmem:[%s999_s25 + $0x78] sm:$0xf] }
  0x1f   : > { %v190_v16 = vld [vmem:[%s999_s25 + $0x80] sm:$0xf]  ;;  %187 = vst [vmem:[%s1003_s26 + $0x38] sm:$0xf] %v186_v14  ;;  %189 = vst [vmem:[%s1003_s26 + $0x3c] sm:$0xf] %v188_v15 }
  0x20   : > { %191 = vst [vmem:[%s1003_s26 + $0x40] sm:$0xf] %v190_v16  ;;  %v192_v17 = vld [vmem:[%s999_s25 + $0x88] sm:$0xf]  ;;  %v194_v18 = vld [vmem:[%s999_s25 + $0x90] sm:$0xf] }
  0x21   : > { %v196_v19 = vld [vmem:[%s999_s25 + $0x98] sm:$0xf]  ;;  %193 = vst [vmem:[%s1003_s26 + $0x44] sm:$0xf] %v192_v17  ;;  %195 = vst [vmem:[%s1003_s26 + $0x48] sm:$0xf] %v194_v18 }
  0x22   : > { %197 = vst [vmem:[%s1003_s26 + $0x4c] sm:$0xf] %v196_v19  ;;  %v198_v20 = vld [vmem:[%s999_s25 + $0xa0] sm:$0xf]  ;;  %v200_v21 = vld [vmem:[%s999_s25 + $0xa8] sm:$0xf] }
  0x23   : > { %v202_v22 = vld [vmem:[%s999_s25 + $0xb0] sm:$0xf]  ;;  %199 = vst [vmem:[%s1003_s26 + $0x50] sm:$0xf] %v198_v20  ;;  %201 = vst [vmem:[%s1003_s26 + $0x54] sm:$0xf] %v200_v21 }
  0x24   : > { %203 = vst [vmem:[%s1003_s26 + $0x58] sm:$0xf] %v202_v22  ;;  %v204_v23 = vld [vmem:[%s999_s25 + $0xb8] sm:$0xf]  ;;  %v206_v24 = vld [vmem:[%s999_s25 + $0xc0] sm:$0xf] }
  0x25   : > { %v208_v25 = vld [vmem:[%s999_s25 + $0xc8] sm:$0xf]  ;;  %205 = vst [vmem:[%s1003_s26 + $0x5c] sm:$0xf] %v204_v23  ;;  %207 = vst [vmem:[%s1003_s26 + $0x60] sm:$0xf] %v206_v24 }
  0x26   : > { %209 = vst [vmem:[%s1003_s26 + $0x64] sm:$0xf] %v208_v25  ;;  %v210_v26 = vld [vmem:[%s999_s25 + $0xd0] sm:$0xf]  ;;  %v212_v27 = vld [vmem:[%s999_s25 + $0xd8] sm:$0xf] }
  0x27   : > { %v214_v28 = vld [vmem:[%s999_s25 + $0xe0] sm:$0xf]  ;;  %211 = vst [vmem:[%s1003_s26 + $0x68] sm:$0xf] %v210_v26  ;;  %213 = vst [vmem:[%s1003_s26 + $0x6c] sm:$0xf] %v212_v27 }
  0x28   : > { %215 = vst [vmem:[%s1003_s26 + $0x70] sm:$0xf] %v214_v28  ;;  %v216_v29 = vld [vmem:[%s999_s25 + $0xe8] sm:$0xf]  ;;  %v218_v30 = vld [vmem:[%s999_s25 + $0xf0] sm:$0xf] }
  0x29   : > { %v220_v31 = vld [vmem:[%s999_s25 + $0xf8] sm:$0xf]  ;;  %217 = vst [vmem:[%s1003_s26 + $0x74] sm:$0xf] %v216_v29  ;;  %219 = vst [vmem:[%s1003_s26 + $0x78] sm:$0xf] %v218_v30 }
  0x2a   : > { %221 = vst [vmem:[%s1003_s26 + $0x7c] sm:$0xf] %v220_v31 }
  0x2b PF: > { %p739_p8 = scmp.ge.s32.totalorder %s929_s13, 1  ;;  %p307_p9 = scmp.lt.s32.totalorder %s929_s13, 3 }
  0x2d   : > { %p308_p10 = pnand %p739_p8, %p307_p9 }
  0x2e   : > { %s314_s27 = sand.u32 (!%p308_p10), 1, %s913_s9   ;;  %v358_v32 = vld [vmem:[%s1125_s0] sm:$0x3] (!%p308_p10)  ;;  %v403_v33 = vlaneseq (!%p308_p10)  ;;  %v359_v34 = vld [vmem:[%s1125_s0 + $0x2] sm:$0x3] (!%p308_p10) }
  0x2f   : > { %311 = sbr.rel (%p308_p10) target bundleno = 308 (0x134), region = 65  ;;  %s740_s30 = sshll.u32 (!%p308_p10), %s314_s27, 7  ;;  %v360_v35 = vld [vmem:[%s1125_s0 + $0x4] sm:$0x3] (!%p308_p10)  ;;  %v361_v36 = vld [vmem:[%s1125_s0 + $0x6] sm:$0x3] (!%p308_p10)  ;;  %v398_v43 = vcombine.low (!%p308_p10), %v358_v32, %v359_v34 }
  0x30   : > { %s1084_s15 = scalar_lea.vmem (!%p308_p10), [#allocation2], %s740_s30  ;;  %v935_v38 = vmov (!%p308_p10), 1966171168   ;;  %v404_v40 = vshrl.u32 (!%p308_p10), %v403_v33, 7  ;;  %v399_v44 = vcombine.low (!%p308_p10), %v360_v35, %v361_v36  ;;  %s741_s16 = sshll.u32 (!%p308_p10), %s314_s27, 3 }
  0x31   : > { %v859_v37 = vld [vmem:[%s1084_s15 + $0x40] sm:$0xff] (!%p308_p10)   ;;  %v401_v39 = vunpack.c.l.s4 (!%p308_p10), %v935_v38  ;;  %v861_v42 = vld [vmem:[%s1084_s15 + $0x48] sm:$0xff] (!%p308_p10)   ;;  %v863_v47 = vld [vmem:[%s1084_s15 + $0x50] sm:$0xff] (!%p308_p10)   ;;  %s341_s17 = scalar_lea.vmem (!%p308_p10), [#allocation3], %s741_s16  }
  0x32   : > { %v860_v41 = vld [vmem:[%s1084_s15] sm:$0xff] (!%p308_p10)   ;;  %764 = vmatprep.subr.bf16.mxu0 (!%p308_p10), %v859_v37  ;;  %v862_v46 = vld [vmem:[%s1084_s15 + $0x8] sm:$0xff] (!%p308_p10)   ;;  %v864_v51 = vld [vmem:[%s1084_s15 + $0x10] sm:$0xff] (!%p308_p10)  }
  0x33   : > { %v402_v45 = vunpack.c.0.s8 (!%p308_p10), %v401_v39  ;;  %765 = vmatpush3.bf16.msra.mxu0 (!%p308_p10), %v860_v41  ;;  %v865_v52 = vld [vmem:[%s1084_s15 + $0x58] sm:$0xff] (!%p308_p10)   ;;  %v867_v56 = vld [vmem:[%s1084_s15 + $0x60] sm:$0xff] (!%p308_p10)   ;;  %v869_v58 = vld [vmem:[%s1084_s15 + $0x68] sm:$0xff] (!%p308_p10)  }
  0x34   : > { %766 = vmatprep.subr.bf16.mxu0 (!%p308_p10), %v861_v42  ;;  %v866_v55 = vld [vmem:[%s1084_s15 + $0x18] sm:$0xff] (!%p308_p10)   ;;  %v868_v57 = vld [vmem:[%s1084_s15 + $0x20] sm:$0xff] (!%p308_p10)   ;;  %v870_v59 = vld [vmem:[%s1084_s15 + $0x28] sm:$0xff] (!%p308_p10)  }
  0x35   : > { %v405_v48 = vsub.s32 (!%p308_p10), %v402_v45, %v404_v40  ;;  %v871_v60 = vld [vmem:[%s1084_s15 + $0x70] sm:$0xff] (!%p308_p10)   ;;  %v873_v62 = vld [vmem:[%s1084_s15 + $0x78] sm:$0xff] (!%p308_p10)  }
  0x36   : > { %v872_v61 = vld [vmem:[%s1084_s15 + $0x30] sm:$0xff]   ;;  %v874_v0 = vld [vmem:[%s1084_s15 + $0x38] sm:$0xff]   ;;  %s759_s20 = sshll.u32 (%p986_p6), %s921_s11, 1  ;;  %s931_s24 = smov (%p986_p6), 0  }
  0x37   : > { %v406_v49 = vrot.slane %v398_v43, %v405_v48  ;;  %v413_v50 = vrot.slane %v399_v44, %v405_v48  ;;  %767 = vmatpush3.bf16.msra.mxu0 %v862_v46  ;;  %s583_s23 = scalar_lea.vmem (%p986_p6), %s1127_s2, %s759_s20  }
  0x38   : > { %768 = vmatprep.subr.bf16.mxu0 %v863_v47 }
  0x39   : > { %v415_v53 = vcombine.high %v406_v49, %v413_v50  ;;  %v414_v63 = vcombine.low %v406_v49, %v413_v50 }
  0x3b   : > { %v429_v54 = vrot.slane %v415_v53, %v405_v48  ;;  %769 = vmatpush3.bf16.msra.mxu0 %v864_v51  ;;  %v422_v1 = vrot.slane %v414_v63, %v405_v48 }
  0x3c   : > { %770 = vmatprep.subr.bf16.mxu0 %v865_v52 }
  0x3d   : > { %560 = vmatprep.mubr.bf16.mxu0 %v429_v54 }
  0x3f   : > { %771 = vmatpush3.bf16.msra.mxu0 %v866_v55 }
  0x40   : > { %772 = vmatprep.subr.bf16.mxu0 %v867_v56 }
  0x43   : > { %773 = vmatpush3.bf16.msra.mxu0 %v868_v57 }
  0x44   : > { %774 = vmatprep.subr.bf16.mxu0 %v869_v58 }
  0x47   : > { %775 = vmatpush3.bf16.msra.mxu0 %v870_v59 }
  0x48   : > { %776 = vmatprep.subr.bf16.mxu0 %v871_v60 }
  0x4b   : > { %777 = vmatpush3.bf16.msra.mxu0 %v872_v61 }
  0x4c   : > { %778 = vmatprep.subr.bf16.mxu0 %v873_v62 }
  0x4f   : > { %779 = vmatpush3.bf16.msra.mxu0 %v874_v0 }
  0x52   : > { %561 = vmatmul.mubr.bf16.vlgmr.msra.gmra.mrb[0].mxu0 %v422_v1 }
 0x123   : > { %575 = sbr.rel (!%p986_p6) target bundleno = 308 (0x134), region = 73 }
 0x125   : > { %v780_v2 = vpop.f32.mrb[0].mxu0 }
 0x126   : > { %v781_v3 = vpop.f32.mrb[1].mxu0 }
 0x127   : > { %v782_v4 = vadd.f32 %v781_v3, %v780_v2  ;;  %v783_v5 = vpop.f32.mrb[2].mxu0 }
 0x128   : > { %v784_v6 = vpop.f32.mrb[3].mxu0 }
 0x129   : > { %568 = vst [vmem:[%s341_s17] sm:$0xff] %v782_v4 }
 0x12a LB: >> { %s595_s24 = sadd.s32 1, %s933_s24   ;;  %s933_s24 = sphi %s931_s24, %s595_s24  }
 0x12b   : >> { %p594_p11 = scmp.ge.s32.totalorder %s595_s24, 1 }
 0x12d   : > { %597 = sbr.rel (!%p594_p11) target bundleno = 298 (0x12a), region = 141 }
 0x130   : >> { %v601_v7 = vld [vmem:[%s341_s17] sm:$0x3] }
 0x131   : >> { %602 = vst [vmem:[%s583_s23] sm:$0x3] %v601_v7 }
 0x134 PF: > { %s12_s13 = sadd.s32 1, %s929_s13   ;;  %s1129_s9 = smov %s917_s10 }
 0x135   : > { %p9_p12 = scmp.ge.s32.totalorder %s12_s13, 4   ;;  %s1130_s10 = smov %s991_s19 }
 0x136   : > { %s1131_s11 = smov %s925_s12  ;;  %s1132_s12 = smov %s1134_s14 }
 0x137   :  { %11 = sbr.rel (!%p9_p12) target bundleno = 3 (0x3), region = 152 }

</bundles_post_ra>
